<compile_context>
chip_gen: v5e
topology: v5e:2x2
jax: 0.10.0
libtpu: 0.0.40
codegen_flags: <defaults>
</compile_context>

<pallas_src>
import functools
import math

import jax
import jax.numpy as jnp
from jax.experimental import pallas as pl
from jax.experimental.pallas import tpu as pltpu


# ---------------------------------------------------------------------------
# Pallas kernel: fused im2col-matmul conv (+ bias + activation + BN stats)
# ---------------------------------------------------------------------------

def _conv_mm_kernel(p_ref, w_ref, b_ref, o_ref, s_ref, *, negative_slope,
                    apply_leaky, apply_sigmoid):
    """One image per grid step.

    p_ref: (1, P, K)    im2col patches (P = OH*OW, K = KH*KW*Cin)
    w_ref: (K, Cout)    reshaped conv weight
    b_ref: (1, Cout)    bias
    o_ref: (1, P, Cout) activation output
    s_ref: (1, 2, Cout) per-image channel stats of the activation:
                        row 0 = sum, row 1 = sum of squares (for BN folding)
    """
    acc = jnp.dot(p_ref[0], w_ref[...], preferred_element_type=jnp.float32)
    acc = acc + b_ref[...]
    if apply_leaky:
        acc = jnp.where(acc >= 0.0, acc, negative_slope * acc)
    if apply_sigmoid:
        acc = jax.nn.sigmoid(acc)
    o_ref[0] = acc.astype(o_ref.dtype)
    s_ref[0, 0:1, :] = jnp.sum(acc, axis=0, keepdims=True)
    s_ref[0, 1:2, :] = jnp.sum(acc * acc, axis=0, keepdims=True)


# ---------------------------------------------------------------------------
# Wrappers
# ---------------------------------------------------------------------------

def _im2col(x, KH, KW, stride, padding):
    """x: (N, H, W, Cin) -> patches (N, OH*OW, KH*KW*Cin), plus OH, OW.

    Pure layout glue (pad + 16 strided tap slices + channel concat); under jit
    XLA fuses this with the preceding per-channel BN affine.
    """
    N, H, W, Cin = x.shape
    xp = jnp.pad(x, ((0, 0), (padding, padding), (padding, padding), (0, 0)))
    Hp, Wp = H + 2 * padding, W + 2 * padding
    OH = (Hp - KH) // stride + 1
    OW = (Wp - KW) // stride + 1
    cols = []
    for kh in range(KH):
        for kw in range(KW):
            sl = xp[:, kh:kh + (OH - 1) * stride + 1:stride,
                    kw:kw + (OW - 1) * stride + 1:stride, :]    # (N, OH, OW, Cin)
            cols.append(sl)
    patches = jnp.concatenate(cols, axis=-1)        # (N, OH, OW, KH*KW*Cin)
    return patches.reshape(N, OH * OW, KH * KW * Cin), OH, OW


def conv2d_pallas(x, w, b, *, stride, padding, negative_slope=0.2,
                  apply_leaky=False, apply_sigmoid=False):
    """x: (N,H,W,Cin) f32 NHWC; w: (KH,KW,Cin,Cout); b: (Cout,).

    Returns (y, stats):
      y     : (N, OH, OW, Cout) activation
      stats : (N, 2, Cout)  per-image channel [sum, sum_sq] of y
    """
    N = x.shape[0]
    KH, KW, Cin, Cout = w.shape
    patches, OH, OW = _im2col(x.astype(jnp.float32), KH, KW, stride, padding)
    P, K = OH * OW, KH * KW * Cin
    w2 = w.reshape(K, Cout).astype(jnp.float32)
    b2 = b.reshape(1, Cout).astype(jnp.float32)

    kern = functools.partial(_conv_mm_kernel, negative_slope=negative_slope,
                             apply_leaky=apply_leaky,
                             apply_sigmoid=apply_sigmoid)
    y, stats = pl.pallas_call(
        kern,
        out_shape=(jax.ShapeDtypeStruct((N, P, Cout), jnp.float32),
                   jax.ShapeDtypeStruct((N, 2, Cout), jnp.float32)),
        grid=(N,),
        in_specs=[pl.BlockSpec((1, P, K), lambda n: (n, 0, 0)),
                  pl.BlockSpec((K, Cout), lambda n: (0, 0)),
                  pl.BlockSpec((1, Cout), lambda n: (0, 0))],
        out_specs=(pl.BlockSpec((1, P, Cout), lambda n: (n, 0, 0)),
                   pl.BlockSpec((1, 2, Cout), lambda n: (n, 0, 0))),
        compiler_params=pltpu.CompilerParams(
            dimension_semantics=("parallel",)),
    )(patches, w2, b2)
    return y.reshape(N, OH, OW, Cout), stats


def discriminator_forward(x_nchw, params, strides, padding,
                          negative_slope=0.2, eps=1e-5):
    """Equivalent of Discriminator.forward (training-mode BatchNorm)."""
    x = jnp.transpose(x_nchw, (0, 2, 3, 1)).astype(jnp.float32)  # NCHW -> NHWC
    convs = params["conv"]
    bns = params["bn"]
    n_layers = len(convs)

    w, b = convs[0]
    y, _ = conv2d_pallas(x, w, b, stride=strides[0], padding=padding[0],
                         negative_slope=negative_slope, apply_leaky=True)
    for i in range(1, n_layers - 1):
        w, b = convs[i]
        y, stats = conv2d_pallas(y, w, b, stride=strides[i], padding=padding[i],
                                 negative_slope=negative_slope,
                                 apply_leaky=True)
        gamma, beta = bns[i - 1]
        # Fold training-mode BatchNorm2d (batch stats, biased variance) into a
        # per-channel affine applied to the next conv's input; XLA fuses it
        # with that conv's im2col under jit.  Exact: padded zeros stay zero.
        cnt = y.shape[0] * y.shape[1] * y.shape[2]
        tot = jnp.sum(stats, axis=0)                 # (2, C): [sum, sum_sq]
        mean = tot[0] / cnt
        var = tot[1] / cnt - mean * mean
        scale = gamma * jax.lax.rsqrt(var + eps)
        shift = beta - mean * scale
        y = y * scale.reshape(1, 1, 1, -1) + shift.reshape(1, 1, 1, -1)
    w, b = convs[-1]
    y, _ = conv2d_pallas(y, w, b, stride=strides[-1], padding=padding[-1],
                         apply_sigmoid=True)
    return y.reshape(-1)                             # torch: sigmoid(y.view(-1))


# ---------------------------------------------------------------------------
# Deterministic parameter init (mirrors Discriminator.reset_parameters)
# ---------------------------------------------------------------------------

def init_params(key, in_channels, channels, kernels):
    params = {"conv": [], "bn": []}
    last = in_channels
    keys = jax.random.split(key, 2 * len(channels))
    for i, (c, k) in enumerate(zip(channels, kernels)):
        wkey, bkey = keys[2 * i], keys[2 * i + 1]
        fan_in = last * k * k
        if i < len(channels) - 1:
            # kaiming_normal_(nonlinearity='leaky_relu', a=0): gain = sqrt(2)
            std = math.sqrt(2.0) / math.sqrt(fan_in)
            w = std * jax.random.normal(wkey, (k, k, last, c), jnp.float32)
            bias = (1e-6 / 3.0) * jax.random.normal(bkey, (c,), jnp.float32)
        else:
            # xavier_normal_
            fan_out = c * k * k
            std = math.sqrt(2.0 / (fan_in + fan_out))
            w = std * jax.random.normal(wkey, (k, k, last, c), jnp.float32)
            bias = jnp.zeros((c,), jnp.float32)
        params["conv"].append((w, bias))
        if 0 < i < len(channels) - 1:
            params["bn"].append((jnp.ones((c,), jnp.float32),
                                 jnp.zeros((c,), jnp.float32)))
        last = c
    return params


# ---------------------------------------------------------------------------
# Pure-JAX reference (for a sanity check)
# ---------------------------------------------------------------------------

def reference_forward(x_nchw, params, strides, padding, slope=0.2, eps=1e-5):
    x = jnp.transpose(x_nchw, (0, 2, 3, 1)).astype(jnp.float32)

    def conv(v, w, b, s, p):
        y = jax.lax.conv_general_dilated(
            v, w, window_strides=(s, s), padding=[(p, p), (p, p)],
            dimension_numbers=("NHWC", "HWIO", "NHWC"),
            precision=jax.lax.Precision.HIGHEST)
        return y + b.reshape(1, 1, 1, -1)

    def leaky(v):
        return jnp.where(v >= 0, v, slope * v)

    def bn(v, g, be):
        m = jnp.mean(v, axis=(0, 1, 2), keepdims=True)
        var = jnp.mean((v - m) ** 2, axis=(0, 1, 2), keepdims=True)
        vhat = (v - m) * jax.lax.rsqrt(var + eps)
        return vhat * g.reshape(1, 1, 1, -1) + be.reshape(1, 1, 1, -1)

    convs = params["conv"]
    bns = params["bn"]
    y = leaky(conv(x, *convs[0], strides[0], padding[0]))
    for i in range(1, len(convs) - 1):
        y = leaky(conv(y, *convs[i], strides[i], padding[i]))
        y = bn(y, *bns[i - 1])
    y = conv(y, *convs[-1], strides[-1], padding[-1])
    return jax.nn.sigmoid(y.reshape(-1))


# ---------------------------------------------------------------------------

if __name__ == "__main__":
    # Small, module-consistent configuration (channels are configurable in the
    # torch module; spatial 64 is what the default k/s/p chain implies for a
    # (B, 1, 1, 1) final conv output).
    IN_CHANNELS = 1
    CHANNELS = (16, 32, 64, 128, 1)
    KERNELS = (4, 4, 4, 4, 4)
    STRIDES = (2, 2, 2, 2, 1)
    PADDING = (1, 1, 1, 1, 0)
    BATCH, H, W = 2, 64, 64

    key = jax.random.PRNGKey(0)
    pkey, xkey = jax.random.split(key)
    params = init_params(pkey, IN_CHANNELS, CHANNELS, KERNELS)
    x = jax.random.normal(xkey, (BATCH, IN_CHANNELS, H, W), jnp.float32)

    fwd = jax.jit(lambda xv, pv: discriminator_forward(xv, pv, STRIDES, PADDING))
    out = jax.block_until_ready(fwd(x, params))

    assert out.shape == (BATCH,), out.shape
    assert bool(jnp.all(jnp.isfinite(out)))
    assert bool(jnp.all((out > 0.0) & (out < 1.0)))

    ref = jax.block_until_ready(reference_forward(x, params, STRIDES, PADDING))
    assert bool(jnp.allclose(out, ref, atol=2e-2, rtol=0.0)), (out, ref)

    print("KERNEL_OK")
</pallas_src>

<mosaic_0001>
module attributes {stable_mosaic.version = 11 : i64} {
  func.func @_conv_mm_kernel(%arg0: i32, %arg1: memref<1x1024x16xf32, #tpu.memory_space<vmem>>, %arg2: memref<16x16xf32, #tpu.memory_space<vmem>>, %arg3: memref<1x16xf32, #tpu.memory_space<vmem>>, %arg4: memref<1x1024x16xf32, #tpu.memory_space<vmem>>, %arg5: memref<1x2x16xf32, #tpu.memory_space<vmem>>) attributes {dimension_semantics = [#tpu.dimension_semantics<parallel>], iteration_bounds = array<i64: 2>, scalar_prefetch = 0 : i64, scratch_operands = 0 : i64, tpu.core_type = #tpu.core_type<tc>, window_params = [{transform_indices = @transform_0, window_bounds = array<i64: 1, 1024, 16>}, {pipeline_mode = #tpu.pipeline_mode<synchronous>, transform_indices = @transform_1, window_bounds = array<i64: 16, 16>}, {pipeline_mode = #tpu.pipeline_mode<synchronous>, transform_indices = @transform_2, window_bounds = array<i64: 1, 16>}, {transform_indices = @transform_3, window_bounds = array<i64: 1, 1024, 16>}, {transform_indices = @transform_4, window_bounds = array<i64: 1, 2, 16>}]} {
    %c0 = arith.constant 0 : index
    %c0_0 = arith.constant 0 : index
    %c0_1 = arith.constant 0 : index
    %0 = vector.load %arg1[%c0, %c0_0, %c0_1] : memref<1x1024x16xf32, #tpu.memory_space<vmem>>, vector<1x1024x16xf32>
    %1 = vector.shape_cast %0 : vector<1x1024x16xf32> to vector<1024x16xf32>
    %c0_2 = arith.constant 0 : index
    %c0_3 = arith.constant 0 : index
    %2 = vector.load %arg2[%c0_2, %c0_3] : memref<16x16xf32, #tpu.memory_space<vmem>>, vector<16x16xf32>
    %cst = arith.constant dense<0.000000e+00> : vector<1024x16xf32>
    %3 = tpu.matmul %1, %2, %cst {dimension_numbers = #tpu.dot_dimension_numbers<[1], [0], [0], [1], [0, 0, 1, 1], [], []>} : vector<1024x16xf32>, vector<16x16xf32>, vector<1024x16xf32> -> vector<1024x16xf32>
    %c0_4 = arith.constant 0 : index
    %c0_5 = arith.constant 0 : index
    %4 = vector.load %arg3[%c0_4, %c0_5] : memref<1x16xf32, #tpu.memory_space<vmem>>, vector<1x16xf32>
    %5 = vector.broadcast %4 : vector<1x16xf32> to vector<1024x16xf32>
    %6 = arith.addf %3, %5 : vector<1024x16xf32>
    %cst_6 = arith.constant 0.000000e+00 : f32
    %7 = vector.broadcast %cst_6 : f32 to vector<1024x16xf32>
    %8 = arith.cmpf oge, %6, %7 : vector<1024x16xf32>
    %cst_7 = arith.constant 2.000000e-01 : f32
    %9 = vector.broadcast %cst_7 : f32 to vector<1024x16xf32>
    %10 = arith.mulf %9, %6 : vector<1024x16xf32>
    %11 = arith.select %8, %6, %10 : vector<1024x16xi1>, vector<1024x16xf32>
    %c0_8 = arith.constant 0 : index
    %c0_9 = arith.constant 0 : index
    %c0_10 = arith.constant 0 : index
    %12 = vector.load %arg4[%c0_8, %c0_9, %c0_10] : memref<1x1024x16xf32, #tpu.memory_space<vmem>>, vector<1x1024x16xf32>
    %13 = vector.shape_cast %12 : vector<1x1024x16xf32> to vector<1024x16xf32>
    %14 = vector.shape_cast %11 : vector<1024x16xf32> to vector<1x1024x16xf32>
    tpu.vector_store %arg4[%c0_8, %c0_9, %c0_10], %14 {strides = array<i32>} : memref<1x1024x16xf32, #tpu.memory_space<vmem>>, vector<1x1024x16xf32>,
    %cst_11 = arith.constant dense<0.000000e+00> : vector<16xf32>
    %15 = vector.multi_reduction <add>, %11, %cst_11 [0] : vector<1024x16xf32> to vector<16xf32>
    %16 = vector.shape_cast %15 : vector<16xf32> to vector<1x16xf32>
    %c0_12 = arith.constant 0 : index
    %c0_13 = arith.constant 0 : index
    %c0_14 = arith.constant 0 : index
    %17 = vector.load %arg5[%c0_12, %c0_13, %c0_14] : memref<1x2x16xf32, #tpu.memory_space<vmem>>, vector<1x1x16xf32>
    %18 = vector.shape_cast %17 : vector<1x1x16xf32> to vector<1x16xf32>
    %19 = vector.shape_cast %16 : vector<1x16xf32> to vector<1x1x16xf32>
    tpu.vector_store %arg5[%c0_12, %c0_13, %c0_14], %19 {strides = array<i32>} : memref<1x2x16xf32, #tpu.memory_space<vmem>>, vector<1x1x16xf32>,
    %20 = arith.mulf %11, %11 : vector<1024x16xf32>
    %cst_15 = arith.constant dense<0.000000e+00> : vector<16xf32>
    %21 = vector.multi_reduction <add>, %20, %cst_15 [0] : vector<1024x16xf32> to vector<16xf32>
    %22 = vector.shape_cast %21 : vector<16xf32> to vector<1x16xf32>
    %c0_16 = arith.constant 0 : index
    %c1 = arith.constant 1 : index
    %c0_17 = arith.constant 0 : index
    %23 = vector.load %arg5[%c0_16, %c1, %c0_17] : memref<1x2x16xf32, #tpu.memory_space<vmem>>, vector<1x1x16xf32>
    %24 = vector.shape_cast %23 : vector<1x1x16xf32> to vector<1x16xf32>
    %25 = vector.shape_cast %22 : vector<1x16xf32> to vector<1x1x16xf32>
    tpu.vector_store %arg5[%c0_16, %c1, %c0_17], %25 {strides = array<i32>} : memref<1x2x16xf32, #tpu.memory_space<vmem>>, vector<1x1x16xf32>,
    return
  }
  func.func @transform_0(%arg0: i32) -> (i32, i32, i32) {
    %c0_i32 = arith.constant 0 : i32
    %c0_i32_0 = arith.constant 0 : i32
    %c0_i32_1 = arith.constant 0 : i32
    return %arg0, %c0_i32, %c0_i32_0 : i32, i32, i32
  }
  func.func @transform_1(%arg0: i32) -> (i32, i32) {
    %c0_i32 = arith.constant 0 : i32
    %c0_i32_0 = arith.constant 0 : i32
    %c0_i32_1 = arith.constant 0 : i32
    return %c0_i32, %c0_i32_0 : i32, i32
  }
  func.func @transform_2(%arg0: i32) -> (i32, i32) {
    %c0_i32 = arith.constant 0 : i32
    %c0_i32_0 = arith.constant 0 : i32
    %c0_i32_1 = arith.constant 0 : i32
    return %c0_i32, %c0_i32_0 : i32, i32
  }
  func.func @transform_3(%arg0: i32) -> (i32, i32, i32) {
    %c0_i32 = arith.constant 0 : i32
    %c0_i32_0 = arith.constant 0 : i32
    %c0_i32_1 = arith.constant 0 : i32
    return %arg0, %c0_i32, %c0_i32_0 : i32, i32, i32
  }
  func.func @transform_4(%arg0: i32) -> (i32, i32, i32) {
    %c0_i32 = arith.constant 0 : i32
    %c0_i32_0 = arith.constant 0 : i32
    %c0_i32_1 = arith.constant 0 : i32
    return %arg0, %c0_i32, %c0_i32_0 : i32, i32, i32
  }
}

module attributes {stable_mosaic.version = 11 : i64} {
  func.func @_conv_mm_kernel(%arg0: i32, %arg1: memref<1x256x256xf32, #tpu.memory_space<vmem>>, %arg2: memref<256x32xf32, #tpu.memory_space<vmem>>, %arg3: memref<1x32xf32, #tpu.memory_space<vmem>>, %arg4: memref<1x256x32xf32, #tpu.memory_space<vmem>>, %arg5: memref<1x2x32xf32, #tpu.memory_space<vmem>>) attributes {dimension_semantics = [#tpu.dimension_semantics<parallel>], iteration_bounds = array<i64: 2>, scalar_prefetch = 0 : i64, scratch_operands = 0 : i64, tpu.core_type = #tpu.core_type<tc>, window_params = [{transform_indices = @transform_0, window_bounds = array<i64: 1, 256, 256>}, {pipeline_mode = #tpu.pipeline_mode<synchronous>, transform_indices = @transform_1, window_bounds = array<i64: 256, 32>}, {pipeline_mode = #tpu.pipeline_mode<synchronous>, transform_indices = @transform_2, window_bounds = array<i64: 1, 32>}, {transform_indices = @transform_3, window_bounds = array<i64: 1, 256, 32>}, {transform_indices = @transform_4, window_bounds = array<i64: 1, 2, 32>}]} {
    %c0 = arith.constant 0 : index
    %c0_0 = arith.constant 0 : index
    %c0_1 = arith.constant 0 : index
    %0 = vector.load %arg1[%c0, %c0_0, %c0_1] : memref<1x256x256xf32, #tpu.memory_space<vmem>>, vector<1x256x256xf32>
    %1 = vector.shape_cast %0 : vector<1x256x256xf32> to vector<256x256xf32>
    %c0_2 = arith.constant 0 : index
    %c0_3 = arith.constant 0 : index
    %2 = vector.load %arg2[%c0_2, %c0_3] : memref<256x32xf32, #tpu.memory_space<vmem>>, vector<256x32xf32>
    %cst = arith.constant dense<0.000000e+00> : vector<256x32xf32>
    %3 = tpu.matmul %1, %2, %cst {dimension_numbers = #tpu.dot_dimension_numbers<[1], [0], [0], [1], [0, 0, 1, 1], [], []>} : vector<256x256xf32>, vector<256x32xf32>, vector<256x32xf32> -> vector<256x32xf32>
    %c0_4 = arith.constant 0 : index
    %c0_5 = arith.constant 0 : index
    %4 = vector.load %arg3[%c0_4, %c0_5] : memref<1x32xf32, #tpu.memory_space<vmem>>, vector<1x32xf32>
    %5 = vector.broadcast %4 : vector<1x32xf32> to vector<256x32xf32>
    %6 = arith.addf %3, %5 : vector<256x32xf32>
    %cst_6 = arith.constant 0.000000e+00 : f32
    %7 = vector.broadcast %cst_6 : f32 to vector<256x32xf32>
    %8 = arith.cmpf oge, %6, %7 : vector<256x32xf32>
    %cst_7 = arith.constant 2.000000e-01 : f32
    %9 = vector.broadcast %cst_7 : f32 to vector<256x32xf32>
    %10 = arith.mulf %9, %6 : vector<256x32xf32>
    %11 = arith.select %8, %6, %10 : vector<256x32xi1>, vector<256x32xf32>
    %c0_8 = arith.constant 0 : index
    %c0_9 = arith.constant 0 : index
    %c0_10 = arith.constant 0 : index
    %12 = vector.load %arg4[%c0_8, %c0_9, %c0_10] : memref<1x256x32xf32, #tpu.memory_space<vmem>>, vector<1x256x32xf32>
    %13 = vector.shape_cast %12 : vector<1x256x32xf32> to vector<256x32xf32>
    %14 = vector.shape_cast %11 : vector<256x32xf32> to vector<1x256x32xf32>
    tpu.vector_store %arg4[%c0_8, %c0_9, %c0_10], %14 {strides = array<i32>} : memref<1x256x32xf32, #tpu.memory_space<vmem>>, vector<1x256x32xf32>,
    %cst_11 = arith.constant dense<0.000000e+00> : vector<32xf32>
    %15 = vector.multi_reduction <add>, %11, %cst_11 [0] : vector<256x32xf32> to vector<32xf32>
    %16 = vector.shape_cast %15 : vector<32xf32> to vector<1x32xf32>
    %c0_12 = arith.constant 0 : index
    %c0_13 = arith.constant 0 : index
    %c0_14 = arith.constant 0 : index
    %17 = vector.load %arg5[%c0_12, %c0_13, %c0_14] : memref<1x2x32xf32, #tpu.memory_space<vmem>>, vector<1x1x32xf32>
    %18 = vector.shape_cast %17 : vector<1x1x32xf32> to vector<1x32xf32>
    %19 = vector.shape_cast %16 : vector<1x32xf32> to vector<1x1x32xf32>
    tpu.vector_store %arg5[%c0_12, %c0_13, %c0_14], %19 {strides = array<i32>} : memref<1x2x32xf32, #tpu.memory_space<vmem>>, vector<1x1x32xf32>,
    %20 = arith.mulf %11, %11 : vector<256x32xf32>
    %cst_15 = arith.constant dense<0.000000e+00> : vector<32xf32>
    %21 = vector.multi_reduction <add>, %20, %cst_15 [0] : vector<256x32xf32> to vector<32xf32>
    %22 = vector.shape_cast %21 : vector<32xf32> to vector<1x32xf32>
    %c0_16 = arith.constant 0 : index
    %c1 = arith.constant 1 : index
    %c0_17 = arith.constant 0 : index
    %23 = vector.load %arg5[%c0_16, %c1, %c0_17] : memref<1x2x32xf32, #tpu.memory_space<vmem>>, vector<1x1x32xf32>
    %24 = vector.shape_cast %23 : vector<1x1x32xf32> to vector<1x32xf32>
    %25 = vector.shape_cast %22 : vector<1x32xf32> to vector<1x1x32xf32>
    tpu.vector_store %arg5[%c0_16, %c1, %c0_17], %25 {strides = array<i32>} : memref<1x2x32xf32, #tpu.memory_space<vmem>>, vector<1x1x32xf32>,
    return
  }
  func.func @transform_0(%arg0: i32) -> (i32, i32, i32) {
    %c0_i32 = arith.constant 0 : i32
    %c0_i32_0 = arith.constant 0 : i32
    %c0_i32_1 = arith.constant 0 : i32
    return %arg0, %c0_i32, %c0_i32_0 : i32, i32, i32
  }
  func.func @transform_1(%arg0: i32) -> (i32, i32) {
    %c0_i32 = arith.constant 0 : i32
    %c0_i32_0 = arith.constant 0 : i32
    %c0_i32_1 = arith.constant 0 : i32
    return %c0_i32, %c0_i32_0 : i32, i32
  }
  func.func @transform_2(%arg0: i32) -> (i32, i32) {
    %c0_i32 = arith.constant 0 : i32
    %c0_i32_0 = arith.constant 0 : i32
    %c0_i32_1 = arith.constant 0 : i32
    return %c0_i32, %c0_i32_0 : i32, i32
  }
  func.func @transform_3(%arg0: i32) -> (i32, i32, i32) {
    %c0_i32 = arith.constant 0 : i32
    %c0_i32_0 = arith.constant 0 : i32
    %c0_i32_1 = arith.constant 0 : i32
    return %arg0, %c0_i32, %c0_i32_0 : i32, i32, i32
  }
  func.func @transform_4(%arg0: i32) -> (i32, i32, i32) {
    %c0_i32 = arith.constant 0 : i32
    %c0_i32_0 = arith.constant 0 : i32
    %c0_i32_1 = arith.constant 0 : i32
    return %arg0, %c0_i32, %c0_i32_0 : i32, i32, i32
  }
}

module attributes {stable_mosaic.version = 11 : i64} {
  func.func @_conv_mm_kernel(%arg0: i32, %arg1: memref<1x64x512xf32, #tpu.memory_space<vmem>>, %arg2: memref<512x64xf32, #tpu.memory_space<vmem>>, %arg3: memref<1x64xf32, #tpu.memory_space<vmem>>, %arg4: memref<1x64x64xf32, #tpu.memory_space<vmem>>, %arg5: memref<1x2x64xf32, #tpu.memory_space<vmem>>) attributes {dimension_semantics = [#tpu.dimension_semantics<parallel>], iteration_bounds = array<i64: 2>, scalar_prefetch = 0 : i64, scratch_operands = 0 : i64, tpu.core_type = #tpu.core_type<tc>, window_params = [{transform_indices = @transform_0, window_bounds = array<i64: 1, 64, 512>}, {pipeline_mode = #tpu.pipeline_mode<synchronous>, transform_indices = @transform_1, window_bounds = array<i64: 512, 64>}, {pipeline_mode = #tpu.pipeline_mode<synchronous>, transform_indices = @transform_2, window_bounds = array<i64: 1, 64>}, {transform_indices = @transform_3, window_bounds = array<i64: 1, 64, 64>}, {transform_indices = @transform_4, window_bounds = array<i64: 1, 2, 64>}]} {
    %c0 = arith.constant 0 : index
    %c0_0 = arith.constant 0 : index
    %c0_1 = arith.constant 0 : index
    %0 = vector.load %arg1[%c0, %c0_0, %c0_1] : memref<1x64x512xf32, #tpu.memory_space<vmem>>, vector<1x64x512xf32>
    %1 = vector.shape_cast %0 : vector<1x64x512xf32> to vector<64x512xf32>
    %c0_2 = arith.constant 0 : index
    %c0_3 = arith.constant 0 : index
    %2 = vector.load %arg2[%c0_2, %c0_3] : memref<512x64xf32, #tpu.memory_space<vmem>>, vector<512x64xf32>
    %cst = arith.constant dense<0.000000e+00> : vector<64x64xf32>
    %3 = tpu.matmul %1, %2, %cst {dimension_numbers = #tpu.dot_dimension_numbers<[1], [0], [0], [1], [0, 0, 1, 1], [], []>} : vector<64x512xf32>, vector<512x64xf32>, vector<64x64xf32> -> vector<64x64xf32>
    %c0_4 = arith.constant 0 : index
    %c0_5 = arith.constant 0 : index
    %4 = vector.load %arg3[%c0_4, %c0_5] : memref<1x64xf32, #tpu.memory_space<vmem>>, vector<1x64xf32>
    %5 = vector.broadcast %4 : vector<1x64xf32> to vector<64x64xf32>
    %6 = arith.addf %3, %5 : vector<64x64xf32>
    %cst_6 = arith.constant 0.000000e+00 : f32
    %7 = vector.broadcast %cst_6 : f32 to vector<64x64xf32>
    %8 = arith.cmpf oge, %6, %7 : vector<64x64xf32>
    %cst_7 = arith.constant 2.000000e-01 : f32
    %9 = vector.broadcast %cst_7 : f32 to vector<64x64xf32>
    %10 = arith.mulf %9, %6 : vector<64x64xf32>
    %11 = arith.select %8, %6, %10 : vector<64x64xi1>, vector<64x64xf32>
    %c0_8 = arith.constant 0 : index
    %c0_9 = arith.constant 0 : index
    %c0_10 = arith.constant 0 : index
    %12 = vector.load %arg4[%c0_8, %c0_9, %c0_10] : memref<1x64x64xf32, #tpu.memory_space<vmem>>, vector<1x64x64xf32>
    %13 = vector.shape_cast %12 : vector<1x64x64xf32> to vector<64x64xf32>
    %14 = vector.shape_cast %11 : vector<64x64xf32> to vector<1x64x64xf32>
    tpu.vector_store %arg4[%c0_8, %c0_9, %c0_10], %14 {strides = array<i32>} : memref<1x64x64xf32, #tpu.memory_space<vmem>>, vector<1x64x64xf32>,
    %cst_11 = arith.constant dense<0.000000e+00> : vector<64xf32>
    %15 = vector.multi_reduction <add>, %11, %cst_11 [0] : vector<64x64xf32> to vector<64xf32>
    %16 = vector.shape_cast %15 : vector<64xf32> to vector<1x64xf32>
    %c0_12 = arith.constant 0 : index
    %c0_13 = arith.constant 0 : index
    %c0_14 = arith.constant 0 : index
    %17 = vector.load %arg5[%c0_12, %c0_13, %c0_14] : memref<1x2x64xf32, #tpu.memory_space<vmem>>, vector<1x1x64xf32>
    %18 = vector.shape_cast %17 : vector<1x1x64xf32> to vector<1x64xf32>
    %19 = vector.shape_cast %16 : vector<1x64xf32> to vector<1x1x64xf32>
    tpu.vector_store %arg5[%c0_12, %c0_13, %c0_14], %19 {strides = array<i32>} : memref<1x2x64xf32, #tpu.memory_space<vmem>>, vector<1x1x64xf32>,
    %20 = arith.mulf %11, %11 : vector<64x64xf32>
    %cst_15 = arith.constant dense<0.000000e+00> : vector<64xf32>
    %21 = vector.multi_reduction <add>, %20, %cst_15 [0] : vector<64x64xf32> to vector<64xf32>
    %22 = vector.shape_cast %21 : vector<64xf32> to vector<1x64xf32>
    %c0_16 = arith.constant 0 : index
    %c1 = arith.constant 1 : index
    %c0_17 = arith.constant 0 : index
    %23 = vector.load %arg5[%c0_16, %c1, %c0_17] : memref<1x2x64xf32, #tpu.memory_space<vmem>>, vector<1x1x64xf32>
    %24 = vector.shape_cast %23 : vector<1x1x64xf32> to vector<1x64xf32>
    %25 = vector.shape_cast %22 : vector<1x64xf32> to vector<1x1x64xf32>
    tpu.vector_store %arg5[%c0_16, %c1, %c0_17], %25 {strides = array<i32>} : memref<1x2x64xf32, #tpu.memory_space<vmem>>, vector<1x1x64xf32>,
    return
  }
  func.func @transform_0(%arg0: i32) -> (i32, i32, i32) {
    %c0_i32 = arith.constant 0 : i32
    %c0_i32_0 = arith.constant 0 : i32
    %c0_i32_1 = arith.constant 0 : i32
    return %arg0, %c0_i32, %c0_i32_0 : i32, i32, i32
  }
  func.func @transform_1(%arg0: i32) -> (i32, i32) {
    %c0_i32 = arith.constant 0 : i32
    %c0_i32_0 = arith.constant 0 : i32
    %c0_i32_1 = arith.constant 0 : i32
    return %c0_i32, %c0_i32_0 : i32, i32
  }
  func.func @transform_2(%arg0: i32) -> (i32, i32) {
    %c0_i32 = arith.constant 0 : i32
    %c0_i32_0 = arith.constant 0 : i32
    %c0_i32_1 = arith.constant 0 : i32
    return %c0_i32, %c0_i32_0 : i32, i32
  }
  func.func @transform_3(%arg0: i32) -> (i32, i32, i32) {
    %c0_i32 = arith.constant 0 : i32
    %c0_i32_0 = arith.constant 0 : i32
    %c0_i32_1 = arith.constant 0 : i32
    return %arg0, %c0_i32, %c0_i32_0 : i32, i32, i32
  }
  func.func @transform_4(%arg0: i32) -> (i32, i32, i32) {
    %c0_i32 = arith.constant 0 : i32
    %c0_i32_0 = arith.constant 0 : i32
    %c0_i32_1 = arith.constant 0 : i32
    return %arg0, %c0_i32, %c0_i32_0 : i32, i32, i32
  }
}

module attributes {stable_mosaic.version = 11 : i64} {
  func.func @_conv_mm_kernel(%arg0: i32, %arg1: memref<1x16x1024xf32, #tpu.memory_space<vmem>>, %arg2: memref<1024x128xf32, #tpu.memory_space<vmem>>, %arg3: memref<1x128xf32, #tpu.memory_space<vmem>>, %arg4: memref<1x16x128xf32, #tpu.memory_space<vmem>>, %arg5: memref<1x2x128xf32, #tpu.memory_space<vmem>>) attributes {dimension_semantics = [#tpu.dimension_semantics<parallel>], iteration_bounds = array<i64: 2>, scalar_prefetch = 0 : i64, scratch_operands = 0 : i64, tpu.core_type = #tpu.core_type<tc>, window_params = [{transform_indices = @transform_0, window_bounds = array<i64: 1, 16, 1024>}, {pipeline_mode = #tpu.pipeline_mode<synchronous>, transform_indices = @transform_1, window_bounds = array<i64: 1024, 128>}, {pipeline_mode = #tpu.pipeline_mode<synchronous>, transform_indices = @transform_2, window_bounds = array<i64: 1, 128>}, {transform_indices = @transform_3, window_bounds = array<i64: 1, 16, 128>}, {transform_indices = @transform_4, window_bounds = array<i64: 1, 2, 128>}]} {
    %c0 = arith.constant 0 : index
    %c0_0 = arith.constant 0 : index
    %c0_1 = arith.constant 0 : index
    %0 = vector.load %arg1[%c0, %c0_0, %c0_1] : memref<1x16x1024xf32, #tpu.memory_space<vmem>>, vector<1x16x1024xf32>
    %1 = vector.shape_cast %0 : vector<1x16x1024xf32> to vector<16x1024xf32>
    %c0_2 = arith.constant 0 : index
    %c0_3 = arith.constant 0 : index
    %2 = vector.load %arg2[%c0_2, %c0_3] : memref<1024x128xf32, #tpu.memory_space<vmem>>, vector<1024x128xf32>
    %cst = arith.constant dense<0.000000e+00> : vector<16x128xf32>
    %3 = tpu.matmul %1, %2, %cst {dimension_numbers = #tpu.dot_dimension_numbers<[1], [0], [0], [1], [0, 0, 1, 1], [], []>} : vector<16x1024xf32>, vector<1024x128xf32>, vector<16x128xf32> -> vector<16x128xf32>
    %c0_4 = arith.constant 0 : index
    %c0_5 = arith.constant 0 : index
    %4 = vector.load %arg3[%c0_4, %c0_5] : memref<1x128xf32, #tpu.memory_space<vmem>>, vector<1x128xf32>
    %5 = vector.broadcast %4 : vector<1x128xf32> to vector<16x128xf32>
    %6 = arith.addf %3, %5 : vector<16x128xf32>
    %cst_6 = arith.constant 0.000000e+00 : f32
    %7 = vector.broadcast %cst_6 : f32 to vector<16x128xf32>
    %8 = arith.cmpf oge, %6, %7 : vector<16x128xf32>
    %cst_7 = arith.constant 2.000000e-01 : f32
    %9 = vector.broadcast %cst_7 : f32 to vector<16x128xf32>
    %10 = arith.mulf %9, %6 : vector<16x128xf32>
    %11 = arith.select %8, %6, %10 : vector<16x128xi1>, vector<16x128xf32>
    %c0_8 = arith.constant 0 : index
    %c0_9 = arith.constant 0 : index
    %c0_10 = arith.constant 0 : index
    %12 = vector.load %arg4[%c0_8, %c0_9, %c0_10] : memref<1x16x128xf32, #tpu.memory_space<vmem>>, vector<1x16x128xf32>
    %13 = vector.shape_cast %12 : vector<1x16x128xf32> to vector<16x128xf32>
    %14 = vector.shape_cast %11 : vector<16x128xf32> to vector<1x16x128xf32>
    tpu.vector_store %arg4[%c0_8, %c0_9, %c0_10], %14 {strides = array<i32>} : memref<1x16x128xf32, #tpu.memory_space<vmem>>, vector<1x16x128xf32>,
    %cst_11 = arith.constant dense<0.000000e+00> : vector<128xf32>
    %15 = vector.multi_reduction <add>, %11, %cst_11 [0] : vector<16x128xf32> to vector<128xf32>
    %16 = vector.shape_cast %15 : vector<128xf32> to vector<1x128xf32>
    %c0_12 = arith.constant 0 : index
    %c0_13 = arith.constant 0 : index
    %c0_14 = arith.constant 0 : index
    %17 = vector.load %arg5[%c0_12, %c0_13, %c0_14] : memref<1x2x128xf32, #tpu.memory_space<vmem>>, vector<1x1x128xf32>
    %18 = vector.shape_cast %17 : vector<1x1x128xf32> to vector<1x128xf32>
    %19 = vector.shape_cast %16 : vector<1x128xf32> to vector<1x1x128xf32>
    tpu.vector_store %arg5[%c0_12, %c0_13, %c0_14], %19 {strides = array<i32>} : memref<1x2x128xf32, #tpu.memory_space<vmem>>, vector<1x1x128xf32>,
    %20 = arith.mulf %11, %11 : vector<16x128xf32>
    %cst_15 = arith.constant dense<0.000000e+00> : vector<128xf32>
    %21 = vector.multi_reduction <add>, %20, %cst_15 [0] : vector<16x128xf32> to vector<128xf32>
    %22 = vector.shape_cast %21 : vector<128xf32> to vector<1x128xf32>
    %c0_16 = arith.constant 0 : index
    %c1 = arith.constant 1 : index
    %c0_17 = arith.constant 0 : index
    %23 = vector.load %arg5[%c0_16, %c1, %c0_17] : memref<1x2x128xf32, #tpu.memory_space<vmem>>, vector<1x1x128xf32>
    %24 = vector.shape_cast %23 : vector<1x1x128xf32> to vector<1x128xf32>
    %25 = vector.shape_cast %22 : vector<1x128xf32> to vector<1x1x128xf32>
    tpu.vector_store %arg5[%c0_16, %c1, %c0_17], %25 {strides = array<i32>} : memref<1x2x128xf32, #tpu.memory_space<vmem>>, vector<1x1x128xf32>,
    return
  }
  func.func @transform_0(%arg0: i32) -> (i32, i32, i32) {
    %c0_i32 = arith.constant 0 : i32
    %c0_i32_0 = arith.constant 0 : i32
    %c0_i32_1 = arith.constant 0 : i32
    return %arg0, %c0_i32, %c0_i32_0 : i32, i32, i32
  }
  func.func @transform_1(%arg0: i32) -> (i32, i32) {
    %c0_i32 = arith.constant 0 : i32
    %c0_i32_0 = arith.constant 0 : i32
    %c0_i32_1 = arith.constant 0 : i32
    return %c0_i32, %c0_i32_0 : i32, i32
  }
  func.func @transform_2(%arg0: i32) -> (i32, i32) {
    %c0_i32 = arith.constant 0 : i32
    %c0_i32_0 = arith.constant 0 : i32
    %c0_i32_1 = arith.constant 0 : i32
    return %c0_i32, %c0_i32_0 : i32, i32
  }
  func.func @transform_3(%arg0: i32) -> (i32, i32, i32) {
    %c0_i32 = arith.constant 0 : i32
    %c0_i32_0 = arith.constant 0 : i32
    %c0_i32_1 = arith.constant 0 : i32
    return %arg0, %c0_i32, %c0_i32_0 : i32, i32, i32
  }
  func.func @transform_4(%arg0: i32) -> (i32, i32, i32) {
    %c0_i32 = arith.constant 0 : i32
    %c0_i32_0 = arith.constant 0 : i32
    %c0_i32_1 = arith.constant 0 : i32
    return %arg0, %c0_i32, %c0_i32_0 : i32, i32, i32
  }
}

module attributes {stable_mosaic.version = 11 : i64} {
  func.func @_conv_mm_kernel(%arg0: i32, %arg1: memref<1x1x2048xf32, #tpu.memory_space<vmem>>, %arg2: memref<2048x1xf32, #tpu.memory_space<vmem>>, %arg3: memref<1x1xf32, #tpu.memory_space<vmem>>, %arg4: memref<1x1x1xf32, #tpu.memory_space<vmem>>, %arg5: memref<1x2x1xf32, #tpu.memory_space<vmem>>) attributes {dimension_semantics = [#tpu.dimension_semantics<parallel>], iteration_bounds = array<i64: 2>, scalar_prefetch = 0 : i64, scratch_operands = 0 : i64, tpu.core_type = #tpu.core_type<tc>, window_params = [{transform_indices = @transform_0, window_bounds = array<i64: 1, 1, 2048>}, {pipeline_mode = #tpu.pipeline_mode<synchronous>, transform_indices = @transform_1, window_bounds = array<i64: 2048, 1>}, {pipeline_mode = #tpu.pipeline_mode<synchronous>, transform_indices = @transform_2, window_bounds = array<i64: 1, 1>}, {transform_indices = @transform_3, window_bounds = array<i64: 1, 1, 1>}, {transform_indices = @transform_4, window_bounds = array<i64: 1, 2, 1>}]} {
    %c0 = arith.constant 0 : index
    %c0_0 = arith.constant 0 : index
    %c0_1 = arith.constant 0 : index
    %0 = vector.load %arg1[%c0, %c0_0, %c0_1] : memref<1x1x2048xf32, #tpu.memory_space<vmem>>, vector<1x1x2048xf32>
    %1 = vector.shape_cast %0 : vector<1x1x2048xf32> to vector<1x2048xf32>
    %c0_2 = arith.constant 0 : index
    %c0_3 = arith.constant 0 : index
    %2 = vector.load %arg2[%c0_2, %c0_3] : memref<2048x1xf32, #tpu.memory_space<vmem>>, vector<2048x1xf32>
    %cst = arith.constant dense<0.000000e+00> : vector<1x1xf32>
    %3 = tpu.matmul %1, %2, %cst {dimension_numbers = #tpu.dot_dimension_numbers<[1], [0], [0], [1], [0, 0, 1, 1], [], []>} : vector<1x2048xf32>, vector<2048x1xf32>, vector<1x1xf32> -> vector<1x1xf32>
    %c0_4 = arith.constant 0 : index
    %c0_5 = arith.constant 0 : index
    %4 = vector.load %arg3[%c0_4, %c0_5] : memref<1x1xf32, #tpu.memory_space<vmem>>, vector<1x1xf32>
    %5 = arith.addf %3, %4 : vector<1x1xf32>
    %6 = arith.negf %5 : vector<1x1xf32>
    %7 = math.exp %6 : vector<1x1xf32>
    %cst_6 = arith.constant 1.000000e+00 : f32
    %8 = vector.broadcast %cst_6 : f32 to vector<1x1xf32>
    %9 = arith.addf %8, %7 : vector<1x1xf32>
    %10 = arith.divf %8, %9 : vector<1x1xf32>
    %c0_7 = arith.constant 0 : index
    %c0_8 = arith.constant 0 : index
    %c0_9 = arith.constant 0 : index
    %11 = vector.load %arg4[%c0_7, %c0_8, %c0_9] : memref<1x1x1xf32, #tpu.memory_space<vmem>>, vector<1x1x1xf32>
    %12 = vector.shape_cast %11 : vector<1x1x1xf32> to vector<1x1xf32>
    %13 = vector.shape_cast %10 : vector<1x1xf32> to vector<1x1x1xf32>
    tpu.vector_store %arg4[%c0_7, %c0_8, %c0_9], %13 {strides = array<i32>} : memref<1x1x1xf32, #tpu.memory_space<vmem>>, vector<1x1x1xf32>,
    %cst_10 = arith.constant dense<0.000000e+00> : vector<1xf32>
    %14 = vector.multi_reduction <add>, %10, %cst_10 [0] : vector<1x1xf32> to vector<1xf32>
    %15 = vector.shape_cast %14 : vector<1xf32> to vector<1x1xf32>
    %c0_11 = arith.constant 0 : index
    %c0_12 = arith.constant 0 : index
    %c0_13 = arith.constant 0 : index
    %16 = vector.load %arg5[%c0_11, %c0_12, %c0_13] : memref<1x2x1xf32, #tpu.memory_space<vmem>>, vector<1x1x1xf32>
    %17 = vector.shape_cast %16 : vector<1x1x1xf32> to vector<1x1xf32>
    %18 = vector.shape_cast %15 : vector<1x1xf32> to vector<1x1x1xf32>
    tpu.vector_store %arg5[%c0_11, %c0_12, %c0_13], %18 {strides = array<i32>} : memref<1x2x1xf32, #tpu.memory_space<vmem>>, vector<1x1x1xf32>,
    %19 = arith.mulf %10, %10 : vector<1x1xf32>
    %cst_14 = arith.constant dense<0.000000e+00> : vector<1xf32>
    %20 = vector.multi_reduction <add>, %19, %cst_14 [0] : vector<1x1xf32> to vector<1xf32>
    %21 = vector.shape_cast %20 : vector<1xf32> to vector<1x1xf32>
    %c0_15 = arith.constant 0 : index
    %c1 = arith.constant 1 : index
    %c0_16 = arith.constant 0 : index
    %22 = vector.load %arg5[%c0_15, %c1, %c0_16] : memref<1x2x1xf32, #tpu.memory_space<vmem>>, vector<1x1x1xf32>
    %23 = vector.shape_cast %22 : vector<1x1x1xf32> to vector<1x1xf32>
    %24 = vector.shape_cast %21 : vector<1x1xf32> to vector<1x1x1xf32>
    tpu.vector_store %arg5[%c0_15, %c1, %c0_16], %24 {strides = array<i32>} : memref<1x2x1xf32, #tpu.memory_space<vmem>>, vector<1x1x1xf32>,
    return
  }
  func.func @transform_0(%arg0: i32) -> (i32, i32, i32) {
    %c0_i32 = arith.constant 0 : i32
    %c0_i32_0 = arith.constant 0 : i32
    %c0_i32_1 = arith.constant 0 : i32
    return %arg0, %c0_i32, %c0_i32_0 : i32, i32, i32
  }
  func.func @transform_1(%arg0: i32) -> (i32, i32) {
    %c0_i32 = arith.constant 0 : i32
    %c0_i32_0 = arith.constant 0 : i32
    %c0_i32_1 = arith.constant 0 : i32
    return %c0_i32, %c0_i32_0 : i32, i32
  }
  func.func @transform_2(%arg0: i32) -> (i32, i32) {
    %c0_i32 = arith.constant 0 : i32
    %c0_i32_0 = arith.constant 0 : i32
    %c0_i32_1 = arith.constant 0 : i32
    return %c0_i32, %c0_i32_0 : i32, i32
  }
  func.func @transform_3(%arg0: i32) -> (i32, i32, i32) {
    %c0_i32 = arith.constant 0 : i32
    %c0_i32_0 = arith.constant 0 : i32
    %c0_i32_1 = arith.constant 0 : i32
    return %arg0, %c0_i32, %c0_i32_0 : i32, i32, i32
  }
  func.func @transform_4(%arg0: i32) -> (i32, i32, i32) {
    %c0_i32 = arith.constant 0 : i32
    %c0_i32_0 = arith.constant 0 : i32
    %c0_i32_1 = arith.constant 0 : i32
    return %arg0, %c0_i32, %c0_i32_0 : i32, i32, i32
  }
}

</mosaic_0001>

<bundles_post_ra>
// kernel: _lambda_.5
= control target key start
LH: loop header
LB: loop body
LE: loop exit
PB: predicated region body
PF: predicated region fallthrough
CT: control target
= control target key end

     0   :  { %10 = vsyncpa [#allocation3], 0  ;;  %s4324_s0 = inlined_call_operand.vmem [shape: f32[2,1024,16], index: 0, kind: input, shape index: {}]   ;;  %s4325_s1 = inlined_call_operand.vmem [shape: f32[16,16], index: 1, kind: input, shape index: {}]   ;;  %s4326_s2 = inlined_call_operand.vmem [shape: f32[1,16], index: 2, kind: input, shape index: {}]   ;;  %s4327_s3 = inlined_call_operand.vmem [shape: f32[2,1024,16], index: 3, kind: output, shape index: {0}]   ;;  %s4328_s4 = inlined_call_operand.hbm [shape: f32[2,2,16], index: 4, kind: output, shape index: {1}]  }
   0x1   :  { %12 = vsyncpa [#allocation3 + $0x1], 0  ;;  %s2682_s15 = smov 0   ;;  %s2684_s16 = smov 0  }
   0x2   :  { %s2686_s17 = smov 0   ;;  %s2688_s18 = smov 0  }
   0x3 LB: > { %s2703_s19 = sadd.s32 4294967295, %s2655_s18   ;;  %s2402_s20 = sadd.s32 4294967294, %s2655_s18   ;;  %s2655_s18 = sphi %s2688_s18, %s4410_s18   ;;  %s2651_s17 = sphi %s2686_s17, %s4409_s17   ;;  %s2647_s16 = sphi %s2684_s16, %s4408_s16   ;;  %s2643_s15 = sphi %s2682_s15, %s4407_s15  }
   0x4   : > { %s2707_s21 = sadd.s32 1, %s2655_s18   ;;  %s119_s22 = sadd.s32 1, %s2651_s17 }
   0x5   : > { %s116_s23 = ssub.s32 %s2655_s18, %s2707_s21  ;;  %p129_p0 = scmp.ne.s32.totalorder %s2651_s17, %s2647_s16 }
   0x6   : > { %p117_p1 = scmp.eq.s32.totalorder %s116_s23, 0  ;;  %p130_p2 = scmp.eq.s32.totalorder %s2703_s19, 1 }
   0x7   : > { %p135_p3 = scmp.ne.s32.totalorder %s2647_s16, %s2643_s15  ;;  %p136_p4 = scmp.eq.s32.totalorder %s2402_s20, 1 }
   0x8   : > { %s2718_s24 = scalar_select %p117_p1, %s2651_s17, %s119_s22  }
   0x9   : > { %p2720_p5 = por %p130_p2, %p129_p0  ;;  %p2724_p6 = por %p136_p4, %p135_p3 }
   0xa   : > { %p2405_p7 = scmp.ge.s32.totalorder %s2655_s18, 1  ;;  %p168_p8 = scmp.lt.s32.totalorder %s2655_s18, 3 }
   0xc   : > { %p169_p9 = pnand %p2405_p7, %p168_p8 }
   0xe   : > { %172 = sbr.rel (%p169_p9) target bundleno = 617 (0x269), region = 32 }
  0x13   : > { %v338_v0 = vld [vmem:[%s4325_s1 + $0x8] sm:$0xff]  ;;  %v337_v1 = vld [vmem:[%s4325_s1] sm:$0xff]  ;;  %p199_p10 = scmp.lt.s32.totalorder %s2703_s19, 1  ;;  %vm343_vm0 = vcmask 130048   ;;  %s196_s28 = sand.u32 1, %s2647_s16  }
  0x14   : > { %742 = vmatpush.msra.mxu0 %v338_v0  ;;  %2545 = vmatpush.msra.mxu1 %v338_v0  ;;  %v2817_v35 = vld [vmem:[%s4326_s2] ss:$0 sm:$0xff]  ;;  %s2406_s29 = sshll.u32 %s196_s28, 1  ;;  %s2540_s30 = sshll.u32 %s2703_s19, 1 }
  0x15   : > { %s2738_s5 = scalar_select %p199_p10, %s2703_s19, 1  ;;  %2546 = vmatpush.msra.mxu2 %v338_v0  ;;  %2547 = vmatpush.msra.mxu3 %v338_v0 }
  0x16   : > { %743 = vmatpush.msra.mxu0 %v337_v1  ;;  %2548 = vmatpush.msra.mxu1 %v337_v1  ;;  %s2313_s7 = scalar_lea.hbm %s4328_s4, %s2540_s30  ;;  %s198_s8 = scalar_lea.vmem [#allocation2], %s2406_s29 }
  0x17   : > { %s2543_s6 = sshll.u32 %s2738_s5, 10  ;;  %2549 = vmatpush.msra.mxu2 %v337_v1  ;;  %2550 = vmatpush.msra.mxu3 %v337_v1  ;;  %s2317_s10 = sshll.u32 %s2313_s7, 4  ;;  %s2318_s10 = int_to_ptr.hbm [resolvable:$true] %s2317_s10 }
  0x18   : > { %s2746_s9 = scalar_lea.vmem %s4324_s0, %s2543_s6  ;;  %s2829_s14 = scalar_lea.vmem %s4327_s3, %s2543_s6 }
  0x19   : > { %v209_v2 = vld [vmem:[%s2746_s9] sm:$0xff]  ;;  %v210_v3 = vld [vmem:[%s2746_s9 + $0x8] sm:$0xff]  ;;  %v211_v4 = vld [vmem:[%s2746_s9 + $0x10] sm:$0xff]  ;;  %s2300_s19 = scalar_lea.sflag [#allocation3], %s196_s28  ;;  %s2607_s11 = sshra.s32 %s2318_s10, 4  ;;  %s2608_s11 = int_to_ptr.hbm [resolvable:$true] %s2607_s11 }
  0x1a   : > { %2411 = vmatmul.msk.f32.vlgmr.msra.gmra.mxu0 %vm343_vm0, %v209_v2  ;;  %v212_v5 = vld [vmem:[%s2746_s9 + $0x18] sm:$0xff]  ;;  %v241_v6 = vld [vmem:[%s2746_s9 + $0x100] sm:$0xff]  ;;  %v242_v8 = vld [vmem:[%s2746_s9 + $0x108] sm:$0xff]  ;;  %s2609_s12 = scalar_lea.hbm %s2608_s11, 2  ;;  %s2613_s20 = scalar_lea.hbm %s4328_s4, 4 }
  0x1b   : > { %2443 = vmatmul.msk.f32.vlgmr.msra.gmra.mxu1 %vm343_vm0, %v241_v6  ;;  %v213_v7 = vld [vmem:[%s2746_s9 + $0x20] sm:$0xff]  ;;  %v214_v9 = vld [vmem:[%s2746_s9 + $0x28] sm:$0xff]  ;;  %v243_v10 = vld [vmem:[%s2746_s9 + $0x110] sm:$0xff]  ;;  %p2610_p11 = scmp.ne.s32.totalorder %s2608_s11, %s2609_s12  ;;  %p2614_p0 = scmp.lt.s32.totalorder %s2608_s11, %s4328_s4 }
  0x1c   : > { %v215_v11 = vld [vmem:[%s2746_s9 + $0x30] sm:$0xff]  ;;  %v244_v12 = vld [vmem:[%s2746_s9 + $0x118] sm:$0xff]  ;;  %v245_v14 = vld [vmem:[%s2746_s9 + $0x120] sm:$0xff]  ;;  %p2615_p1 = scmp.lt.s32.totalorder %s2613_s20, %s2609_s12 }
  0x1d   : > { %v216_v13 = vld [vmem:[%s2746_s9 + $0x38] sm:$0xff]  ;;  %v217_v15 = vld [vmem:[%s2746_s9 + $0x40] sm:$0xff]  ;;  %v246_v16 = vld [vmem:[%s2746_s9 + $0x128] sm:$0xff]  ;;  %p2611_p12 = pnand %p2610_p11, %p2720_p5 }
  0x1e   : > { %v218_v17 = vld [vmem:[%s2746_s9 + $0x48] sm:$0xff]  ;;  %v247_v18 = vld [vmem:[%s2746_s9 + $0x130] sm:$0xff]  ;;  %v248_v20 = vld [vmem:[%s2746_s9 + $0x138] sm:$0xff]  ;;  %p2616_p2 = por %p2615_p1, %p2614_p0 }
  0x1f   : > { %v219_v19 = vld [vmem:[%s2746_s9 + $0x50] sm:$0xff]  ;;  %v220_v21 = vld [vmem:[%s2746_s9 + $0x58] sm:$0xff]  ;;  %v273_v22 = vld [vmem:[%s2746_s9 + $0x200] sm:$0xff]  ;;  %p2612_p13 = pneg %p2611_p12 }
  0x20   : > { %2475 = vmatmul.msk.f32.vlgmr.msra.gmra.mxu2 %vm343_vm0, %v273_v22  ;;  %v221_v23 = vld [vmem:[%s2746_s9 + $0x60] sm:$0xff]  ;;  %v274_v25 = vld [vmem:[%s2746_s9 + $0x208] sm:$0xff]  ;;  %v275_v28 = vld [vmem:[%s2746_s9 + $0x210] sm:$0xff] }
  0x21   : > { %v249_v24 = vld [vmem:[%s2746_s9 + $0x140] sm:$0xff]  ;;  %v222_v26 = vld [vmem:[%s2746_s9 + $0x68] sm:$0xff]  ;;  %v223_v29 = vld [vmem:[%s2746_s9 + $0x70] sm:$0xff]  ;;  %p2617_p3 = pnand %p2616_p2, %p2612_p13 }
  0x22   : > { %2412 = vmatmul.msk.f32.gmra.mxu0 %vm343_vm0, %v210_v3  ;;  %v250_v27 = vld [vmem:[%s2746_s9 + $0x148] sm:$0xff]  ;;  %v251_v30 = vld [vmem:[%s2746_s9 + $0x150] sm:$0xff]  ;;  %v276_v31 = vld [vmem:[%s2746_s9 + $0x218] sm:$0xff] }
  0x23   : > { %2444 = vmatmul.msk.f32.gmra.mxu1 %vm343_vm0, %v242_v8  ;;  %v224_v32 = vld [vmem:[%s2746_s9 + $0x78] sm:$0xff]  ;;  %v277_v34 = vld [vmem:[%s2746_s9 + $0x220] sm:$0xff]  ;;  %v278_v40 = vld [vmem:[%s2746_s9 + $0x228] sm:$0xff] }
  0x24   : > { %v252_v33 = vld [vmem:[%s2746_s9 + $0x158] sm:$0xff]  ;;  %v225_v37 = vld [vmem:[%s2746_s9 + $0x80] sm:$0xff]  ;;  %v226_v44 = vld [vmem:[%s2746_s9 + $0x88] sm:$0xff] }
  0x25   : > { %v253_v38 = vld [vmem:[%s2746_s9 + $0x160] sm:$0xff]  ;;  %v254_v45 = vld [vmem:[%s2746_s9 + $0x168] sm:$0xff]  ;;  %v279_v47 = vld [vmem:[%s2746_s9 + $0x230] sm:$0xff] }
  0x26   : > { %v227_v58 = vld [vmem:[%s2746_s9 + $0x90] sm:$0xff]  ;;  %v280_v62 = vld [vmem:[%s2746_s9 + $0x238] sm:$0xff]  ;;  %v257_v22 = vld [vmem:[%s2746_s9 + $0x180] sm:$0xff] }
  0x27   : > { %v255_v59 = vld [vmem:[%s2746_s9 + $0x170] sm:$0xff]  ;;  %v228_v6 = vld [vmem:[%s2746_s9 + $0x98] sm:$0xff] }
  0x28   : > { %2476 = vmatmul.msk.f32.gmra.mxu2 %vm343_vm0, %v274_v25 }
  0x2a   : > { %2413 = vmatmul.msk.f32.gmra.mxu0 %vm343_vm0, %v211_v4 }
  0x2b   : > { %2445 = vmatmul.msk.f32.gmra.mxu1 %vm343_vm0, %v243_v10  ;;  %v281_v10 = vld [vmem:[%s2746_s9 + $0x240] sm:$0xff] }
  0x30   : > { %2477 = vmatmul.msk.f32.gmra.mxu2 %vm343_vm0, %v275_v28 }
  0x32   : > { %2414 = vmatmul.msk.f32.gmra.mxu0 %vm343_vm0, %v212_v5 }
  0x33   : > { %2446 = vmatmul.msk.f32.gmra.mxu1 %vm343_vm0, %v244_v12 }
  0x38   : > { %2478 = vmatmul.msk.f32.gmra.mxu2 %vm343_vm0, %v276_v31 }
  0x3a   : > { %2415 = vmatmul.msk.f32.gmra.mxu0 %vm343_vm0, %v213_v7  ;;  %v256_v7 = vld [vmem:[%s2746_s9 + $0x178] sm:$0xff] }
  0x3b   : > { %2447 = vmatmul.msk.f32.gmra.mxu1 %vm343_vm0, %v245_v14 }
  0x40   : > { %2479 = vmatmul.msk.f32.gmra.mxu2 %vm343_vm0, %v277_v34 }
  0x42   : > { %2416 = vmatmul.msk.f32.gmra.mxu0 %vm343_vm0, %v214_v9 }
  0x43   : > { %2448 = vmatmul.msk.f32.gmra.mxu1 %vm343_vm0, %v246_v16 }
  0x48   : > { %2480 = vmatmul.msk.f32.gmra.mxu2 %vm343_vm0, %v278_v40  ;;  %v258_v40 = vld [vmem:[%s2746_s9 + $0x188] sm:$0xff] }
  0x4a   : > { %2417 = vmatmul.msk.f32.gmra.mxu0 %vm343_vm0, %v215_v11  ;;  %v305_v11 = vld [vmem:[%s2746_s9 + $0x300] sm:$0xff] }
  0x4b   : > { %2449 = vmatmul.msk.f32.gmra.mxu1 %vm343_vm0, %v247_v18  ;;  %2507 = vmatmul.msk.f32.vlgmr.msra.gmra.mxu3 %vm343_vm0, %v305_v11 }
  0x50   : > { %2481 = vmatmul.msk.f32.gmra.mxu2 %vm343_vm0, %v279_v47 }
  0x52   : > { %2418 = vmatmul.msk.f32.gmra.mxu0 %vm343_vm0, %v216_v13 }
  0x53   : > { %2450 = vmatmul.msk.f32.gmra.mxu1 %vm343_vm0, %v248_v20 }
  0x58   : > { %2482 = vmatmul.msk.f32.gmra.mxu2 %vm343_vm0, %v280_v62  ;;  %v308_v62 = vld [vmem:[%s2746_s9 + $0x318] sm:$0xff] }
  0x5a   : > { %2419 = vmatmul.msk.f32.gmra.mxu0 %vm343_vm0, %v217_v15 }
  0x5b   : > { %2451 = vmatmul.msk.f32.gmra.mxu1 %vm343_vm0, %v249_v24 }
  0x60   : > { %2483 = vmatmul.msk.f32.gmra.mxu2 %vm343_vm0, %v281_v10  ;;  %v260_v10 = vld [vmem:[%s2746_s9 + $0x198] sm:$0xff] }
  0x62   : > { %2420 = vmatmul.msk.f32.gmra.mxu0 %vm343_vm0, %v218_v17 }
  0x63   : > { %2452 = vmatmul.msk.f32.gmra.mxu1 %vm343_vm0, %v250_v27  ;;  %v306_v27 = vld [vmem:[%s2746_s9 + $0x308] sm:$0xff] }
  0x64   : > { %2508 = vmatmul.msk.f32.gmra.mxu3 %vm343_vm0, %v306_v27  ;;  %v261_v27 = vld [vmem:[%s2746_s9 + $0x1a0] sm:$0xff] }
  0x6a   : > { %2421 = vmatmul.msk.f32.gmra.mxu0 %vm343_vm0, %v219_v19 }
  0x6b   : > { %2453 = vmatmul.msk.f32.gmra.mxu1 %vm343_vm0, %v251_v30 }
  0x72   : > { %2422 = vmatmul.msk.f32.gmra.mxu0 %vm343_vm0, %v220_v21  ;;  %v229_v21 = vld [vmem:[%s2746_s9 + $0xa0] sm:$0xff] }
  0x73   : > { %2454 = vmatmul.msk.f32.gmra.mxu1 %vm343_vm0, %v252_v33 }
  0x7a   : > { %2423 = vmatmul.msk.f32.gmra.mxu0 %vm343_vm0, %v221_v23 }
  0x7b   : > { %2455 = vmatmul.msk.f32.gmra.mxu1 %vm343_vm0, %v253_v38 }
  0x82   : > { %2424 = vmatmul.msk.f32.gmra.mxu0 %vm343_vm0, %v222_v26  ;;  %v282_v26 = vld [vmem:[%s2746_s9 + $0x248] sm:$0xff] }
  0x83   : > { %2456 = vmatmul.msk.f32.gmra.mxu1 %vm343_vm0, %v254_v45  ;;  %2484 = vmatmul.msk.f32.gmra.mxu2 %vm343_vm0, %v282_v26  ;;  %v307_v45 = vld [vmem:[%s2746_s9 + $0x310] sm:$0xff]  ;;  %v233_v26 = vld [vmem:[%s2746_s9 + $0xc0] sm:$0xff] }
  0x84   : > { %2509 = vmatmul.msk.f32.gmra.mxu3 %vm343_vm0, %v307_v45  ;;  %v234_v45 = vld [vmem:[%s2746_s9 + $0xc8] sm:$0xff] }
  0x8a   : > { %2425 = vmatmul.msk.f32.gmra.mxu0 %vm343_vm0, %v223_v29 }
  0x8b   : > { %2457 = vmatmul.msk.f32.gmra.mxu1 %vm343_vm0, %v255_v59 }
  0x8c   : > { %2510 = vmatmul.msk.f32.gmra.mxu3 %vm343_vm0, %v308_v62 }
  0x92   : > { %2426 = vmatmul.msk.f32.gmra.mxu0 %vm343_vm0, %v224_v32 }
  0x93   : > { %2458 = vmatmul.msk.f32.gmra.mxu1 %vm343_vm0, %v256_v7 }
  0x97   : > { %v745_v36 = vpop.f32.mrf.mxu0 }
  0x98   : > { %v746_v39 = vadd.f32 %v2817_v35, %v745_v36  ;;  %v841_v16 = vpop.f32.mrf.mxu1 }
  0x99   : > { %v842_v18 = vadd.f32 %v2817_v35, %v841_v16 }
  0x9a   : > { %vm1129_vm1 = vcmp.ge.f32.partialorder %v746_v39, 0.0  ;;  %v1257_v41 = vmul.f32 0.2, %v746_v39  ;;  %2427 = vmatmul.msk.f32.gmra.mxu0 %vm343_vm0, %v225_v37 }
  0x9b   : > { %vm1161_vm5 = vcmp.ge.f32.partialorder %v842_v18, 0.0  ;;  %v1289_v25 = vmul.f32 0.2, %v842_v18  ;;  %2459 = vmatmul.msk.f32.gmra.mxu1 %vm343_vm0, %v257_v22 }
  0x9c   : > { %v1385_v42 = vsel %vm1129_vm1, %v746_v39, %v1257_v41  ;;  %v230_v39 = vld [vmem:[%s2746_s9 + $0xa8] sm:$0xff] }
  0x9d   : > { %1513 = vst.msk [vmem:[%s2829_s14] sm:$0xff] %vm343_vm0, %v1385_v42  ;;  %v1904_v49 = vmul.f32 %v1385_v42, %v1385_v42  ;;  %v1641_v51 = vsel %vm343_vm0, %v1385_v42, 0.0  ;;  %v2880_v29 = vsel %vm1161_vm5, %v842_v18, %v1289_v25 }
  0x9e   : > { %1545 = vst.msk [vmem:[%s2829_s14 + $0x100] sm:$0xff] %vm343_vm0, %v2880_v29 }
  0x9f   : > { %v748_v43 = vpop.f32.mrf.mxu0  ;;  %v2032_v55 = vsel %vm343_vm0, %v1904_v49, 0.0 }
  0xa0   : > { %v749_v46 = vadd.f32 %v2817_v35, %v748_v43  ;;  %v844_v33 = vpop.f32.mrf.mxu1 }
  0xa1   : > { %v845_v36 = vadd.f32 %v2817_v35, %v844_v33  ;;  %v310_v33 = vld [vmem:[%s2746_s9 + $0x328] sm:$0xff] }
  0xa2   : > { %vm1130_vm2 = vcmp.ge.f32.partialorder %v749_v46, 0.0  ;;  %v1258_v48 = vmul.f32 0.2, %v749_v46  ;;  %2428 = vmatmul.msk.f32.gmra.mxu0 %vm343_vm0, %v226_v44  ;;  %v283_v44 = vld [vmem:[%s2746_s9 + $0x250] sm:$0xff] }
  0xa3   : > { %vm1162_vm7 = vcmp.ge.f32.partialorder %v845_v36, 0.0  ;;  %v1290_v43 = vmul.f32 0.2, %v845_v36  ;;  %2460 = vmatmul.msk.f32.gmra.mxu1 %vm343_vm0, %v258_v40  ;;  %2485 = vmatmul.msk.f32.gmra.mxu2 %vm343_vm0, %v283_v44 }
  0xa4   : > { %v1386_v50 = vsel %vm1130_vm2, %v749_v46, %v1258_v48 }
  0xa5   : > { %1514 = vst.msk [vmem:[%s2829_s14 + $0x8] sm:$0xff] %vm343_vm0, %v1386_v50  ;;  %v1642_v52 = vsel %vm343_vm0, %v1386_v50, 0.0  ;;  %v1905_v53 = vmul.f32 %v1386_v50, %v1386_v50  ;;  %v2899_v47 = vsel %vm1162_vm7, %v845_v36, %v1290_v43 }
  0xa6   : > { %v1643_v54 = vadd.f32 %v1642_v52, %v1641_v51  ;;  %1546 = vst.msk [vmem:[%s2829_s14 + $0x108] sm:$0xff] %vm343_vm0, %v2899_v47 }
  0xa7   : > { %v2033_v56 = vsel %vm343_vm0, %v1905_v53, 0.0  ;;  %v751_v57 = vpop.f32.mrf.mxu0 }
  0xa8   : > { %v2034_v60 = vadd.f32 %v2033_v56, %v2032_v55  ;;  %v752_v61 = vadd.f32 %v2817_v35, %v751_v57  ;;  %v847_v51 = vpop.f32.mrf.mxu1  ;;  %v231_v56 = vld [vmem:[%s2746_s9 + $0xb0] sm:$0xff] }
  0xa9   : > { %v848_v53 = vadd.f32 %v2817_v35, %v847_v51  ;;  %v259_v57 = vld [vmem:[%s2746_s9 + $0x190] sm:$0xff] }
  0xaa   : > { %vm1131_vm3 = vcmp.ge.f32.partialorder %v752_v61, 0.0  ;;  %v1259_v63 = vmul.f32 0.2, %v752_v61  ;;  %2429 = vmatmul.msk.f32.gmra.mxu0 %vm343_vm0, %v227_v58  ;;  %v287_v51 = vld [vmem:[%s2746_s9 + $0x270] sm:$0xff] }
  0xab   : > { %vm1163_vm9 = vcmp.ge.f32.partialorder %v848_v53, 0.0  ;;  %2461 = vmatmul.msk.f32.gmra.mxu1 %vm343_vm0, %v259_v57 }
  0xac   : > { %v1387_v0 = vsel %vm1131_vm3, %v752_v61, %v1259_v63  ;;  %v284_v61 = vld [vmem:[%s2746_s9 + $0x258] sm:$0xff] }
  0xad   : > { %1515 = vst.msk [vmem:[%s2829_s14 + $0x10] sm:$0xff] %vm343_vm0, %v1387_v0  ;;  %v1644_v1 = vsel %vm343_vm0, %v1387_v0, 0.0  ;;  %v1906_v2 = vmul.f32 %v1387_v0, %v1387_v0  ;;  %2486 = vmatmul.msk.f32.gmra.mxu2 %vm343_vm0, %v284_v61 }
  0xae   : > { %v1645_v3 = vadd.f32 %v1644_v1, %v1643_v54 }
  0xaf   : > { %v2035_v4 = vsel %vm343_vm0, %v1906_v2, 0.0  ;;  %v754_v5 = vpop.f32.mrf.mxu0 }
  0xb0   : > { %v2036_v8 = vadd.f32 %v2035_v4, %v2034_v60  ;;  %v755_v9 = vadd.f32 %v2817_v35, %v754_v5  ;;  %v1291_v60 = vmul.f32 0.2, %v848_v53  ;;  %v850_v4 = vpop.f32.mrf.mxu1 }
  0xb2   : > { %vm1132_vm4 = vcmp.ge.f32.partialorder %v755_v9, 0.0  ;;  %v1260_v12 = vmul.f32 0.2, %v755_v9  ;;  %2430 = vmatmul.msk.f32.gmra.mxu0 %vm343_vm0, %v228_v6  ;;  %v2918_v0 = vsel %vm1163_vm9, %v848_v53, %v1291_v60  ;;  %v851_v6 = vadd.f32 %v2817_v35, %v850_v4 }
  0xb3   : > { %1547 = vst.msk [vmem:[%s2829_s14 + $0x110] sm:$0xff] %vm343_vm0, %v2918_v0  ;;  %2462 = vmatmul.msk.f32.gmra.mxu1 %vm343_vm0, %v260_v10 }
  0xb4   : > { %v1388_v13 = vsel %vm1132_vm4, %v755_v9, %v1260_v12  ;;  %v232_v9 = vld [vmem:[%s2746_s9 + $0xb8] sm:$0xff]  ;;  %vm1164_vm11 = vcmp.ge.f32.partialorder %v851_v6, 0.0 }
  0xb5   : > { %1516 = vst.msk [vmem:[%s2829_s14 + $0x18] sm:$0xff] %vm343_vm0, %v1388_v13  ;;  %v1646_v14 = vsel %vm343_vm0, %v1388_v13, 0.0  ;;  %v1907_v15 = vmul.f32 %v1388_v13, %v1388_v13  ;;  %v1292_v13 = vmul.f32 0.2, %v851_v6 }
  0xb6   : > { %v1647_v17 = vadd.f32 %v1646_v14, %v1645_v3  ;;  %v285_v14 = vld [vmem:[%s2746_s9 + $0x260] sm:$0xff] }
  0xb7   : > { %v2037_v19 = vsel %vm343_vm0, %v1907_v15, 0.0  ;;  %v757_v20 = vpop.f32.mrf.mxu0  ;;  %v309_v15 = vld [vmem:[%s2746_s9 + $0x320] sm:$0xff]  ;;  %2487 = vmatmul.msk.f32.gmra.mxu2 %vm343_vm0, %v285_v14 }
  0xb8   : > { %v2038_v23 = vadd.f32 %v2037_v19, %v2036_v8  ;;  %v758_v24 = vadd.f32 %v2817_v35, %v757_v20  ;;  %2511 = vmatmul.msk.f32.gmra.mxu3 %vm343_vm0, %v309_v15 }
  0xba   : > { %vm1133_vm6 = vcmp.ge.f32.partialorder %v758_v24, 0.0  ;;  %v1261_v28 = vmul.f32 0.2, %v758_v24  ;;  %2431 = vmatmul.msk.f32.gmra.mxu0 %vm343_vm0, %v229_v21  ;;  %v853_v21 = vpop.f32.mrf.mxu1 }
  0xbb   : > { %2463 = vmatmul.msk.f32.gmra.mxu1 %vm343_vm0, %v261_v27 }
  0xbc   : > { %v1389_v30 = vsel %vm1133_vm6, %v758_v24, %v1261_v28 }
  0xbd   : > { %1517 = vst.msk [vmem:[%s2829_s14 + $0x20] sm:$0xff] %vm343_vm0, %v1389_v30  ;;  %v1648_v31 = vsel %vm343_vm0, %v1389_v30, 0.0  ;;  %v1908_v32 = vmul.f32 %v1389_v30, %v1389_v30 }
  0xbe   : > { %v1649_v34 = vadd.f32 %v1648_v31, %v1647_v17  ;;  %v2937_v17 = vsel %vm1164_vm11, %v851_v6, %v1292_v13  ;;  %v312_v6 = vld [vmem:[%s2746_s9 + $0x338] sm:$0xff] }
  0xbf   : > { %v2039_v37 = vsel %vm343_vm0, %v1908_v32, 0.0  ;;  %v760_v38 = vpop.f32.mrf.mxu0  ;;  %1548 = vst.msk [vmem:[%s2829_s14 + $0x118] sm:$0xff] %vm343_vm0, %v2937_v17  ;;  %v286_v32 = vld [vmem:[%s2746_s9 + $0x268] sm:$0xff] }
  0xc0   : > { %v2040_v41 = vadd.f32 %v2039_v37, %v2038_v23  ;;  %v761_v42 = vadd.f32 %v2817_v35, %v760_v38  ;;  %v854_v23 = vadd.f32 %v2817_v35, %v853_v21  ;;  %2488 = vmatmul.msk.f32.gmra.mxu2 %vm343_vm0, %v286_v32  ;;  %2512 = vmatmul.msk.f32.gmra.mxu3 %vm343_vm0, %v310_v33  ;;  %v937_v32 = vpop.f32.mrf.mxu2 }
  0xc2   : > { %vm1134_vm8 = vcmp.ge.f32.partialorder %v761_v42, 0.0  ;;  %v1262_v46 = vmul.f32 0.2, %v761_v42  ;;  %2432 = vmatmul.msk.f32.gmra.mxu0 %vm343_vm0, %v230_v39  ;;  %vm1165_vm13 = vcmp.ge.f32.partialorder %v854_v23, 0.0  ;;  %v1293_v31 = vmul.f32 0.2, %v854_v23  ;;  %v856_v40 = vpop.f32.mrf.mxu1 }
  0xc4   : > { %v1390_v48 = vsel %vm1134_vm8, %v761_v42, %v1262_v46  ;;  %v2956_v36 = vsel %vm1165_vm13, %v854_v23, %v1293_v31  ;;  %v857_v42 = vadd.f32 %v2817_v35, %v856_v40  ;;  %v262_v46 = vld [vmem:[%s2746_s9 + $0x1a8] sm:$0xff]  ;;  %v289_v23 = vld [vmem:[%s2746_s9 + $0x280] sm:$0xff] }
  0xc5   : > { %1518 = vst.msk [vmem:[%s2829_s14 + $0x28] sm:$0xff] %vm343_vm0, %v1390_v48  ;;  %v1650_v49 = vsel %vm343_vm0, %v1390_v48, 0.0  ;;  %v1909_v50 = vmul.f32 %v1390_v48, %v1390_v48  ;;  %2464 = vmatmul.msk.f32.gmra.mxu1 %vm343_vm0, %v262_v46  ;;  %v237_v40 = vld [vmem:[%s2746_s9 + $0xe0] sm:$0xff]  ;;  %v290_v46 = vld [vmem:[%s2746_s9 + $0x288] sm:$0xff] }
  0xc6   : > { %v1651_v52 = vadd.f32 %v1650_v49, %v1649_v34  ;;  %1549 = vst.msk [vmem:[%s2829_s14 + $0x120] sm:$0xff] %vm343_vm0, %v2956_v36  ;;  %vm1166_vm15 = vcmp.ge.f32.partialorder %v857_v42, 0.0 }
  0xc7   : > { %v2041_v54 = vsel %vm343_vm0, %v1909_v50, 0.0  ;;  %v763_v55 = vpop.f32.mrf.mxu0  ;;  %v1294_v50 = vmul.f32 0.2, %v857_v42 }
  0xc8   : > { %v2042_v58 = vadd.f32 %v2041_v54, %v2040_v41  ;;  %v764_v59 = vadd.f32 %v2817_v35, %v763_v55  ;;  %2489 = vmatmul.msk.f32.gmra.mxu2 %vm343_vm0, %v287_v51 }
  0xc9   : > { %v2975_v54 = vsel %vm1166_vm15, %v857_v42, %v1294_v50 }
  0xca   : > { %vm1135_vm10 = vcmp.ge.f32.partialorder %v764_v59, 0.0  ;;  %v1263_v63 = vmul.f32 0.2, %v764_v59  ;;  %2433 = vmatmul.msk.f32.gmra.mxu0 %vm343_vm0, %v231_v56  ;;  %1550 = vst.msk [vmem:[%s2829_s14 + $0x128] sm:$0xff] %vm343_vm0, %v2975_v54 }
  0xcc   : > { %v1391_v1 = vsel %vm1135_vm10, %v764_v59, %v1263_v63  ;;  %v235_v63 = vld [vmem:[%s2746_s9 + $0xd0] sm:$0xff] }
  0xcd   : > { %1519 = vst.msk [vmem:[%s2829_s14 + $0x30] sm:$0xff] %vm343_vm0, %v1391_v1  ;;  %v1652_v2 = vsel %vm343_vm0, %v1391_v1, 0.0  ;;  %v1910_v3 = vmul.f32 %v1391_v1, %v1391_v1  ;;  %v263_v1 = vld [vmem:[%s2746_s9 + $0x1b0] sm:$0xff] }
  0xce   : > { %v1653_v5 = vadd.f32 %v1652_v2, %v1651_v52  ;;  %v311_v52 = vld [vmem:[%s2746_s9 + $0x330] sm:$0xff]  ;;  %2465 = vmatmul.msk.f32.gmra.mxu1 %vm343_vm0, %v263_v1  ;;  %v266_v1 = vld [vmem:[%s2746_s9 + $0x1c8] sm:$0xff] }
  0xcf   : > { %v2043_v7 = vsel %vm343_vm0, %v1910_v3, 0.0  ;;  %v766_v8 = vpop.f32.mrf.mxu0  ;;  %2513 = vmatmul.msk.f32.gmra.mxu3 %vm343_vm0, %v311_v52 }
  0xd0   : > { %v2044_v11 = vadd.f32 %v2043_v7, %v2042_v58  ;;  %v767_v12 = vadd.f32 %v2817_v35, %v766_v8  ;;  %v859_v58 = vpop.f32.mrf.mxu1 }
  0xd1   : > { %v860_v60 = vadd.f32 %v2817_v35, %v859_v58 }
  0xd2   : > { %vm1136_vm12 = vcmp.ge.f32.partialorder %v767_v12, 0.0  ;;  %v1264_v16 = vmul.f32 0.2, %v767_v12  ;;  %2434 = vmatmul.msk.f32.gmra.mxu0 %vm343_vm0, %v232_v9 }
  0xd3   : > { %vm1167_vm2 = vcmp.ge.f32.partialorder %v860_v60, 0.0  ;;  %v1295_v4 = vmul.f32 0.2, %v860_v60 }
  0xd4   : > { %v1392_v18 = vsel %vm1136_vm12, %v767_v12, %v1264_v16 }
  0xd5   : > { %1520 = vst.msk [vmem:[%s2829_s14 + $0x38] sm:$0xff] %vm343_vm0, %v1392_v18  ;;  %v1654_v19 = vsel %vm343_vm0, %v1392_v18, 0.0  ;;  %v1911_v20 = vmul.f32 %v1392_v18, %v1392_v18  ;;  %v2994_v8 = vsel %vm1167_vm2, %v860_v60, %v1295_v4  ;;  %v236_v18 = vld [vmem:[%s2746_s9 + $0xd8] sm:$0xff] }
  0xd6   : > { %v1655_v22 = vadd.f32 %v1654_v19, %v1653_v5  ;;  %v288_v5 = vld [vmem:[%s2746_s9 + $0x278] sm:$0xff]  ;;  %1551 = vst.msk [vmem:[%s2829_s14 + $0x130] sm:$0xff] %vm343_vm0, %v2994_v8 }
  0xd7   : > { %v2045_v24 = vsel %vm343_vm0, %v1911_v20, 0.0  ;;  %v769_v25 = vpop.f32.mrf.mxu0  ;;  %2490 = vmatmul.msk.f32.gmra.mxu2 %vm343_vm0, %v288_v5  ;;  %2514 = vmatmul.msk.f32.gmra.mxu3 %vm343_vm0, %v312_v6  ;;  %v264_v19 = vld [vmem:[%s2746_s9 + $0x1b8] sm:$0xff]  ;;  %v291_v6 = vld [vmem:[%s2746_s9 + $0x290] sm:$0xff] }
  0xd8   : > { %v2046_v28 = vadd.f32 %v2045_v24, %v2044_v11  ;;  %v770_v30 = vadd.f32 %v2817_v35, %v769_v25  ;;  %v862_v12 = vpop.f32.mrf.mxu1  ;;  %2466 = vmatmul.msk.f32.gmra.mxu1 %vm343_vm0, %v264_v19  ;;  %v313_v24 = vld [vmem:[%s2746_s9 + $0x340] sm:$0xff] }
  0xd9   : > { %v863_v14 = vadd.f32 %v2817_v35, %v862_v12 }
  0xda   : > { %vm1137_vm14 = vcmp.ge.f32.partialorder %v770_v30, 0.0  ;;  %v1265_v34 = vmul.f32 0.2, %v770_v30  ;;  %2435 = vmatmul.msk.f32.gmra.mxu0 %vm343_vm0, %v233_v26 }
  0xdb   : > { %vm1168_vm4 = vcmp.ge.f32.partialorder %v863_v14, 0.0 }
  0xdc   : > { %v1393_v37 = vsel %vm1137_vm14, %v770_v30, %v1265_v34 }
  0xdd   : > { %1521 = vst.msk [vmem:[%s2829_s14 + $0x40] sm:$0xff] %vm343_vm0, %v1393_v37  ;;  %v1656_v38 = vsel %vm343_vm0, %v1393_v37, 0.0  ;;  %v1912_v39 = vmul.f32 %v1393_v37, %v1393_v37  ;;  %v938_v37 = vadd.f32 %v2817_v35, %v937_v32  ;;  %v316_v32 = vld [vmem:[%s2746_s9 + $0x358] sm:$0xff] }
  0xde   : > { %v1657_v41 = vadd.f32 %v1656_v38, %v1655_v22  ;;  %v1296_v22 = vmul.f32 0.2, %v863_v14 }
  0xdf   : > { %v2047_v43 = vsel %vm343_vm0, %v1912_v39, 0.0  ;;  %v772_v44 = vpop.f32.mrf.mxu0  ;;  %2491 = vmatmul.msk.f32.gmra.mxu2 %vm343_vm0, %v289_v23  ;;  %2515 = vmatmul.msk.f32.gmra.mxu3 %vm343_vm0, %v313_v24  ;;  %vm1193_vm7 = vcmp.ge.f32.partialorder %v938_v37, 0.0  ;;  %v239_v23 = vld [vmem:[%s2746_s9 + $0xf0] sm:$0xff] }
  0xe0   : > { %v2048_v48 = vadd.f32 %v2047_v43, %v2046_v28  ;;  %v773_v49 = vadd.f32 %v2817_v35, %v772_v44  ;;  %v3013_v26 = vsel %vm1168_vm4, %v863_v14, %v1296_v22  ;;  %v865_v31 = vpop.f32.mrf.mxu1  ;;  %v267_v24 = vld [vmem:[%s2746_s9 + $0x1d0] sm:$0xff] }
  0xe1   : > { %1552 = vst.msk [vmem:[%s2829_s14 + $0x138] sm:$0xff] %vm343_vm0, %v3013_v26  ;;  %v866_v34 = vadd.f32 %v2817_v35, %v865_v31  ;;  %v292_v31 = vld [vmem:[%s2746_s9 + $0x298] sm:$0xff] }
  0xe2   : > { %vm1138_vm1 = vcmp.ge.f32.partialorder %v773_v49, 0.0  ;;  %v1266_v53 = vmul.f32 0.2, %v773_v49  ;;  %2436 = vmatmul.msk.f32.gmra.mxu0 %vm343_vm0, %v234_v45  ;;  %v1321_v45 = vmul.f32 0.2, %v938_v37 }
  0xe3   : > { %vm1169_vm6 = vcmp.ge.f32.partialorder %v866_v34, 0.0  ;;  %v1297_v44 = vmul.f32 0.2, %v866_v34 }
  0xe4   : > { %v1394_v55 = vsel %vm1138_vm1, %v773_v49, %v1266_v53  ;;  %v3039_v51 = vsel %vm1193_vm7, %v938_v37, %v1321_v45 }
  0xe5   : > { %1522 = vst.msk [vmem:[%s2829_s14 + $0x48] sm:$0xff] %vm343_vm0, %v1394_v55  ;;  %v1658_v56 = vsel %vm343_vm0, %v1394_v55, 0.0  ;;  %v1913_v57 = vmul.f32 %v1394_v55, %v1394_v55  ;;  %v3033_v50 = vsel %vm1169_vm6, %v866_v34, %v1297_v44 }
  0xe6   : > { %v1659_v59 = vadd.f32 %v1658_v56, %v1657_v41  ;;  %v265_v41 = vld [vmem:[%s2746_s9 + $0x1c0] sm:$0xff]  ;;  %1553 = vst.msk [vmem:[%s2829_s14 + $0x140] sm:$0xff] %vm343_vm0, %v3033_v50 }
  0xe7   : > { %v2049_v61 = vsel %vm343_vm0, %v1913_v57, 0.0  ;;  %v775_v62 = vpop.f32.mrf.mxu0  ;;  %2467 = vmatmul.msk.f32.gmra.mxu1 %vm343_vm0, %v265_v41  ;;  %2492 = vmatmul.msk.f32.gmra.mxu2 %vm343_vm0, %v290_v46  ;;  %1577 = vst.msk [vmem:[%s2829_s14 + $0x200] sm:$0xff] %vm343_vm0, %v3039_v51  ;;  %v940_v57 = vpop.f32.mrf.mxu2 }
  0xe8   : > { %v2050_v2 = vadd.f32 %v2049_v61, %v2048_v48  ;;  %v776_v3 = vadd.f32 %v2817_v35, %v775_v62  ;;  %v314_v48 = vld [vmem:[%s2746_s9 + $0x348] sm:$0xff]  ;;  %v868_v56 = vpop.f32.mrf.mxu1  ;;  %v941_v60 = vadd.f32 %v2817_v35, %v940_v57 }
  0xe9   : > { %2516 = vmatmul.msk.f32.gmra.mxu3 %vm343_vm0, %v314_v48 }
  0xea   : > { %vm1139_vm3 = vcmp.ge.f32.partialorder %v776_v3, 0.0  ;;  %v1267_v7 = vmul.f32 0.2, %v776_v3  ;;  %2437 = vmatmul.msk.f32.gmra.mxu0 %vm343_vm0, %v235_v63  ;;  %v238_v63 = vld [vmem:[%s2746_s9 + $0xe8] sm:$0xff]  ;;  %vm1194_vm10 = vcmp.ge.f32.partialorder %v941_v60, 0.0 }
  0xeb   : > { %v1322_v5 = vmul.f32 0.2, %v941_v60 }
  0xec   : > { %v1395_v9 = vsel %vm1139_vm3, %v776_v3, %v1267_v7  ;;  %v315_v7 = vld [vmem:[%s2746_s9 + $0x350] sm:$0xff] }
  0xed   : > { %1523 = vst.msk [vmem:[%s2829_s14 + $0x50] sm:$0xff] %vm343_vm0, %v1395_v9  ;;  %v1660_v10 = vsel %vm343_vm0, %v1395_v9, 0.0  ;;  %v1914_v11 = vmul.f32 %v1395_v9, %v1395_v9 }
  0xee   : > { %v1661_v13 = vadd.f32 %v1660_v10, %v1659_v59  ;;  %v869_v59 = vadd.f32 %v2817_v35, %v868_v56 }
  0xef   : > { %v2051_v15 = vsel %vm343_vm0, %v1914_v11, 0.0  ;;  %v778_v16 = vpop.f32.mrf.mxu0  ;;  %2468 = vmatmul.msk.f32.gmra.mxu1 %vm343_vm0, %v266_v1  ;;  %2493 = vmatmul.msk.f32.gmra.mxu2 %vm343_vm0, %v291_v6  ;;  %v3064_v11 = vsel %vm1194_vm10, %v941_v60, %v1322_v5 }
  0xf0   : > { %v2052_v20 = vadd.f32 %v2051_v15, %v2050_v2  ;;  %v779_v21 = vadd.f32 %v2817_v35, %v778_v16  ;;  %vm1170_vm9 = vcmp.ge.f32.partialorder %v869_v59, 0.0  ;;  %v1298_v4 = vmul.f32 0.2, %v869_v59  ;;  %1578 = vst.msk [vmem:[%s2829_s14 + $0x208] sm:$0xff] %vm343_vm0, %v3064_v11  ;;  %v871_v15 = vpop.f32.mrf.mxu1  ;;  %v943_v16 = vpop.f32.mrf.mxu2 }
  0xf1   : > { %2517 = vmatmul.msk.f32.gmra.mxu3 %vm343_vm0, %v315_v7  ;;  %v872_v19 = vadd.f32 %v2817_v35, %v871_v15 }
  0xf2   : > { %vm1140_vm5 = vcmp.ge.f32.partialorder %v779_v21, 0.0  ;;  %v1268_v25 = vmul.f32 0.2, %v779_v21  ;;  %2438 = vmatmul.msk.f32.gmra.mxu0 %vm343_vm0, %v236_v18  ;;  %v3058_v10 = vsel %vm1170_vm9, %v869_v59, %v1298_v4  ;;  %v317_v59 = vld [vmem:[%s2746_s9 + $0x360] sm:$0xff] }
  0xf3   : > { %1554 = vst.msk [vmem:[%s2829_s14 + $0x148] sm:$0xff] %vm343_vm0, %v3058_v10  ;;  %vm1171_vm12 = vcmp.ge.f32.partialorder %v872_v19, 0.0 }
  0xf4   : > { %v1396_v27 = vsel %vm1140_vm5, %v779_v21, %v1268_v25 }
  0xf5   : > { %1524 = vst.msk [vmem:[%s2829_s14 + $0x58] sm:$0xff] %vm343_vm0, %v1396_v27  ;;  %v1662_v28 = vsel %vm343_vm0, %v1396_v27, 0.0  ;;  %v1915_v30 = vmul.f32 %v1396_v27, %v1396_v27 }
  0xf6   : > { %v1663_v33 = vadd.f32 %v1662_v28, %v1661_v13  ;;  %v1299_v28 = vmul.f32 0.2, %v872_v19 }
  0xf7   : > { %v2053_v38 = vsel %vm343_vm0, %v1915_v30, 0.0  ;;  %v781_v39 = vpop.f32.mrf.mxu0  ;;  %2469 = vmatmul.msk.f32.gmra.mxu1 %vm343_vm0, %v267_v24  ;;  %2494 = vmatmul.msk.f32.gmra.mxu2 %vm343_vm0, %v292_v31 }
  0xf8   : > { %v2054_v42 = vadd.f32 %v2053_v38, %v2052_v20  ;;  %v782_v43 = vadd.f32 %v2817_v35, %v781_v39  ;;  %v944_v20 = vadd.f32 %v2817_v35, %v943_v16  ;;  %v3083_v34 = vsel %vm1171_vm12, %v872_v19, %v1299_v28  ;;  %v874_v41 = vpop.f32.mrf.mxu1  ;;  %v294_v19 = vld [vmem:[%s2746_s9 + $0x2a8] sm:$0xff] }
  0xf9   : > { %1555 = vst.msk [vmem:[%s2829_s14 + $0x150] sm:$0xff] %vm343_vm0, %v3083_v34  ;;  %2518 = vmatmul.msk.f32.gmra.mxu3 %vm343_vm0, %v316_v32  ;;  %v875_v44 = vadd.f32 %v2817_v35, %v874_v41 }
  0xfa   : > { %vm1141_vm8 = vcmp.ge.f32.partialorder %v782_v43, 0.0  ;;  %v1269_v49 = vmul.f32 0.2, %v782_v43  ;;  %2439 = vmatmul.msk.f32.gmra.mxu0 %vm343_vm0, %v237_v40  ;;  %vm1195_vm13 = vcmp.ge.f32.partialorder %v944_v20, 0.0  ;;  %v1323_v30 = vmul.f32 0.2, %v944_v20 }
  0xfb   : > { %vm1172_vm15 = vcmp.ge.f32.partialorder %v875_v44, 0.0  ;;  %v1300_v56 = vmul.f32 0.2, %v875_v44 }
  0xfc   : > { %v1397_v52 = vsel %vm1141_vm8, %v782_v43, %v1269_v49  ;;  %v3089_v37 = vsel %vm1195_vm13, %v944_v20, %v1323_v30  ;;  %v240_v49 = vld [vmem:[%s2746_s9 + $0xf8] sm:$0xff]  ;;  %v318_v20 = vld [vmem:[%s2746_s9 + $0x368] sm:$0xff] }
  0xfd   : > { %1525 = vst.msk [vmem:[%s2829_s14 + $0x60] sm:$0xff] %vm343_vm0, %v1397_v52  ;;  %v1664_v53 = vsel %vm343_vm0, %v1397_v52, 0.0  ;;  %v1916_v55 = vmul.f32 %v1397_v52, %v1397_v52  ;;  %v268_v52 = vld [vmem:[%s2746_s9 + $0x1d8] sm:$0xff] }
  0xfe   : > { %v1665_v58 = vadd.f32 %v1664_v53, %v1663_v33  ;;  %1579 = vst.msk [vmem:[%s2829_s14 + $0x210] sm:$0xff] %vm343_vm0, %v3089_v37 }
  0xff   : > { %v2055_v61 = vsel %vm343_vm0, %v1916_v55, 0.0  ;;  %v784_v62 = vpop.f32.mrf.mxu0  ;;  %2470 = vmatmul.msk.f32.gmra.mxu1 %vm343_vm0, %v268_v52 }
 0x100   : > { %v2056_v2 = vadd.f32 %v2055_v61, %v2054_v42  ;;  %v785_v3 = vadd.f32 %v2817_v35, %v784_v62  ;;  %v946_v42 = vpop.f32.mrf.mxu2  ;;  %v3108_v61 = vsel %vm1172_vm15, %v875_v44, %v1300_v56 }
 0x101   : > { %v947_v45 = vadd.f32 %v2817_v35, %v946_v42  ;;  %1556 = vst.msk [vmem:[%s2829_s14 + $0x158] sm:$0xff] %vm343_vm0, %v3108_v61  ;;  %2519 = vmatmul.msk.f32.gmra.mxu3 %vm343_vm0, %v317_v59 }
 0x102   : > { %vm1142_vm11 = vcmp.ge.f32.partialorder %v785_v3, 0.0  ;;  %v1270_v9 = vmul.f32 0.2, %v785_v3  ;;  %2440 = vmatmul.msk.f32.gmra.mxu0 %vm343_vm0, %v238_v63 }
 0x103   : > { %vm1196_vm1 = vcmp.ge.f32.partialorder %v947_v45, 0.0  ;;  %v1324_v57 = vmul.f32 0.2, %v947_v45 }
 0x104   : > { %v1398_v12 = vsel %vm1142_vm11, %v785_v3, %v1270_v9  ;;  %v877_v3 = vpop.f32.mrf.mxu1 }
 0x105   : > { %1526 = vst.msk [vmem:[%s2829_s14 + $0x68] sm:$0xff] %vm343_vm0, %v1398_v12  ;;  %v1666_v13 = vsel %vm343_vm0, %v1398_v12, 0.0  ;;  %v1917_v14 = vmul.f32 %v1398_v12, %v1398_v12  ;;  %v3114_v62 = vsel %vm1196_vm1, %v947_v45, %v1324_v57  ;;  %v878_v6 = vadd.f32 %v2817_v35, %v877_v3  ;;  %v295_v45 = vld [vmem:[%s2746_s9 + $0x2b0] sm:$0xff] }
 0x106   : > { %v1667_v18 = vadd.f32 %v1666_v13, %v1665_v58  ;;  %v293_v58 = vld [vmem:[%s2746_s9 + $0x2a0] sm:$0xff]  ;;  %1580 = vst.msk [vmem:[%s2829_s14 + $0x218] sm:$0xff] %vm343_vm0, %v3114_v62  ;;  %v271_v3 = vld [vmem:[%s2746_s9 + $0x1f0] sm:$0xff] }
 0x107   : > { %v2057_v21 = vsel %vm343_vm0, %v1917_v14, 0.0  ;;  %v787_v22 = vpop.f32.mrf.mxu0  ;;  %2495 = vmatmul.msk.f32.gmra.mxu2 %vm343_vm0, %v293_v58  ;;  %v269_v13 = vld [vmem:[%s2746_s9 + $0x1e0] sm:$0xff]  ;;  %vm1173_vm3 = vcmp.ge.f32.partialorder %v878_v6, 0.0  ;;  %v1301_v16 = vmul.f32 0.2, %v878_v6 }
 0x108   : > { %v2058_v25 = vadd.f32 %v2057_v21, %v2056_v2  ;;  %v788_v27 = vadd.f32 %v2817_v35, %v787_v22  ;;  %v949_v4 = vpop.f32.mrf.mxu2  ;;  %2471 = vmatmul.msk.f32.gmra.mxu1 %vm343_vm0, %v269_v13 }
 0x109   : > { %v950_v7 = vadd.f32 %v2817_v35, %v949_v4  ;;  %v3131_v22 = vsel %vm1173_vm3, %v878_v6, %v1301_v16  ;;  %2520 = vmatmul.msk.f32.gmra.mxu3 %vm343_vm0, %v318_v20 }
 0x10a   : > { %vm1143_vm14 = vcmp.ge.f32.partialorder %v788_v27, 0.0  ;;  %v1271_v33 = vmul.f32 0.2, %v788_v27  ;;  %2441 = vmatmul.msk.f32.gmra.mxu0 %vm343_vm0, %v239_v23  ;;  %1557 = vst.msk [vmem:[%s2829_s14 + $0x160] sm:$0xff] %vm343_vm0, %v3131_v22 }
 0x10b   : > { %vm1197_vm4 = vcmp.ge.f32.partialorder %v950_v7, 0.0 }
 0x10c   : > { %v1399_v38 = vsel %vm1143_vm14, %v788_v27, %v1271_v33  ;;  %v880_v28 = vpop.f32.mrf.mxu1 }
 0x10d   : > { %1527 = vst.msk [vmem:[%s2829_s14 + $0x70] sm:$0xff] %vm343_vm0, %v1399_v38  ;;  %v1668_v39 = vsel %vm343_vm0, %v1399_v38, 0.0  ;;  %v1918_v40 = vmul.f32 %v1399_v38, %v1399_v38  ;;  %v881_v32 = vadd.f32 %v2817_v35, %v880_v28 }
 0x10e   : > { %v1669_v43 = vadd.f32 %v1668_v39, %v1667_v18  ;;  %v1325_v18 = vmul.f32 0.2, %v950_v7 }
 0x10f   : > { %v2059_v46 = vsel %vm343_vm0, %v1918_v40, 0.0  ;;  %v790_v48 = vpop.f32.mrf.mxu0  ;;  %2496 = vmatmul.msk.f32.gmra.mxu2 %vm343_vm0, %v294_v19  ;;  %v270_v40 = vld [vmem:[%s2746_s9 + $0x1e8] sm:$0xff]  ;;  %vm1174_vm6 = vcmp.ge.f32.partialorder %v881_v32, 0.0 }
 0x110   : > { %v2060_v53 = vadd.f32 %v2059_v46, %v2058_v25  ;;  %v791_v55 = vadd.f32 %v2817_v35, %v790_v48  ;;  %v3137_v23 = vsel %vm1197_vm4, %v950_v7, %v1325_v18  ;;  %v952_v30 = vpop.f32.mrf.mxu2  ;;  %2472 = vmatmul.msk.f32.gmra.mxu1 %vm343_vm0, %v270_v40  ;;  %v319_v46 = vld [vmem:[%s2746_s9 + $0x370] sm:$0xff]  ;;  %v297_v40 = vld [vmem:[%s2746_s9 + $0x2c0] sm:$0xff] }
 0x111   : > { %1581 = vst.msk [vmem:[%s2829_s14 + $0x220] sm:$0xff] %vm343_vm0, %v3137_v23  ;;  %v953_v33 = vadd.f32 %v2817_v35, %v952_v30  ;;  %2521 = vmatmul.msk.f32.gmra.mxu3 %vm343_vm0, %v319_v46 }
 0x112   : > { %vm1144_vm2 = vcmp.ge.f32.partialorder %v791_v55, 0.0  ;;  %v1272_v60 = vmul.f32 0.2, %v791_v55  ;;  %2442 = vmatmul.msk.f32.gmra.mxu0 %vm343_vm0, %v240_v49 }
 0x113   : > { %vm1198_vm7 = vcmp.ge.f32.partialorder %v953_v33, 0.0  ;;  %v1326_v44 = vmul.f32 0.2, %v953_v33 }
 0x114   : > { %v1400_v63 = vsel %vm1144_vm2, %v791_v55, %v1272_v60  ;;  %v883_v57 = vpop.f32.mrf.mxu1 }
 0x115   : > { %1528 = vst.msk [vmem:[%s2829_s14 + $0x78] sm:$0xff] %vm343_vm0, %v1400_v63  ;;  %v1670_v1 = vsel %vm343_vm0, %v1400_v63, 0.0  ;;  %v1919_v2 = vmul.f32 %v1400_v63, %v1400_v63  ;;  %v3160_v52 = vsel %vm1198_vm7, %v953_v33, %v1326_v44  ;;  %v884_v60 = vadd.f32 %v2817_v35, %v883_v57 }
 0x116   : > { %v1671_v5 = vadd.f32 %v1670_v1, %v1669_v43  ;;  %v1302_v43 = vmul.f32 0.2, %v881_v32  ;;  %1582 = vst.msk [vmem:[%s2829_s14 + $0x228] sm:$0xff] %vm343_vm0, %v3160_v52 }
 0x117   : > { %v2061_v9 = vsel %vm343_vm0, %v1919_v2, 0.0  ;;  %v793_v12 = vpop.f32.mrf.mxu0  ;;  %2497 = vmatmul.msk.f32.gmra.mxu2 %vm343_vm0, %v295_v45  ;;  %vm1175_vm9 = vcmp.ge.f32.partialorder %v884_v60, 0.0  ;;  %v1303_v6 = vmul.f32 0.2, %v884_v60 }
 0x118   : > { %v2062_v14 = vadd.f32 %v2061_v9, %v2060_v53  ;;  %v794_v15 = vadd.f32 %v2817_v35, %v793_v12  ;;  %v3154_v49 = vsel %vm1174_vm6, %v881_v32, %v1302_v43  ;;  %v955_v58 = vpop.f32.mrf.mxu2  ;;  %2473 = vmatmul.msk.f32.gmra.mxu1 %vm343_vm0, %v271_v3  ;;  %v296_v9 = vld [vmem:[%s2746_s9 + $0x2b8] sm:$0xff] }
 0x119   : > { %1558 = vst.msk [vmem:[%s2829_s14 + $0x168] sm:$0xff] %vm343_vm0, %v3154_v49  ;;  %v956_v63 = vadd.f32 %v2817_v35, %v955_v58  ;;  %v320_v12 = vld [vmem:[%s2746_s9 + $0x378] sm:$0xff] }
 0x11a   : > { %vm1145_vm5 = vcmp.ge.f32.partialorder %v794_v15, 0.0  ;;  %v1273_v21 = vmul.f32 0.2, %v794_v15  ;;  %2522 = vmatmul.msk.f32.gmra.mxu3 %vm343_vm0, %v320_v12  ;;  %v298_v12 = vld [vmem:[%s2746_s9 + $0x2c8] sm:$0xff] }
 0x11b   : > { %vm1199_vm10 = vcmp.ge.f32.partialorder %v956_v63, 0.0  ;;  %v1327_v7 = vmul.f32 0.2, %v956_v63 }
 0x11c   : > { %v1401_v24 = vsel %vm1145_vm5, %v794_v15, %v1273_v21  ;;  %v886_v20 = vpop.f32.mrf.mxu1 }
 0x11d   : > { %1529 = vst.msk [vmem:[%s2829_s14 + $0x80] sm:$0xff] %vm343_vm0, %v1401_v24  ;;  %v1672_v25 = vsel %vm343_vm0, %v1401_v24, 0.0  ;;  %v1920_v27 = vmul.f32 %v1401_v24, %v1401_v24  ;;  %v3183_v15 = vsel %vm1199_vm10, %v956_v63, %v1327_v7 }
 0x11e   : > { %v1673_v31 = vadd.f32 %v1672_v25, %v1671_v5  ;;  %1583 = vst.msk [vmem:[%s2829_s14 + $0x230] sm:$0xff] %vm343_vm0, %v3183_v15  ;;  %v887_v25 = vadd.f32 %v2817_v35, %v886_v20 }
 0x11f   : > { %v2063_v38 = vsel %vm343_vm0, %v1920_v27, 0.0  ;;  %v796_v39 = vpop.f32.mrf.mxu0  ;;  %2498 = vmatmul.msk.f32.gmra.mxu2 %vm343_vm0, %v296_v9 }
 0x120   : > { %v2064_v41 = vadd.f32 %v2063_v38, %v2062_v14  ;;  %v797_v42 = vadd.f32 %v2817_v35, %v796_v39  ;;  %v3177_v14 = vsel %vm1175_vm9, %v884_v60, %v1303_v6  ;;  %v958_v21 = vpop.f32.mrf.mxu2  ;;  %vm1176_vm12 = vcmp.ge.f32.partialorder %v887_v25, 0.0 }
 0x121   : > { %1559 = vst.msk [vmem:[%s2829_s14 + $0x170] sm:$0xff] %vm343_vm0, %v3177_v14  ;;  %v959_v27 = vadd.f32 %v2817_v35, %v958_v21  ;;  %v1304_v38 = vmul.f32 0.2, %v887_v25 }
 0x122   : > { %vm1146_vm8 = vcmp.ge.f32.partialorder %v797_v42, 0.0  ;;  %v1274_v48 = vmul.f32 0.2, %v797_v42 }
 0x123   : > { %vm1200_vm13 = vcmp.ge.f32.partialorder %v959_v27, 0.0  ;;  %v1328_v39 = vmul.f32 0.2, %v959_v27  ;;  %v3200_v43 = vsel %vm1176_vm12, %v887_v25, %v1304_v38 }
 0x124   : > { %v1402_v53 = vsel %vm1146_vm8, %v797_v42, %v1274_v48  ;;  %1560 = vst.msk [vmem:[%s2829_s14 + $0x178] sm:$0xff] %vm343_vm0, %v3200_v43 }
 0x125   : > { %1530 = vst.msk [vmem:[%s2829_s14 + $0x88] sm:$0xff] %vm343_vm0, %v1402_v53  ;;  %v1674_v55 = vsel %vm343_vm0, %v1402_v53, 0.0  ;;  %v1921_v56 = vmul.f32 %v1402_v53, %v1402_v53  ;;  %v3206_v44 = vsel %vm1200_vm13, %v959_v27, %v1328_v39  ;;  %v889_v53 = vpop.f32.mrf.mxu1 }
 0x126   : > { %v1675_v59 = vadd.f32 %v1674_v55, %v1673_v31  ;;  %v272_v31 = vld [vmem:[%s2746_s9 + $0x1f8] sm:$0xff]  ;;  %1584 = vst.msk [vmem:[%s2829_s14 + $0x238] sm:$0xff] %vm343_vm0, %v3206_v44  ;;  %v890_v57 = vadd.f32 %v2817_v35, %v889_v53  ;;  %v299_v53 = vld [vmem:[%s2746_s9 + $0x2d0] sm:$0xff] }
 0x127   : > { %v2065_v1 = vsel %vm343_vm0, %v1921_v56, 0.0  ;;  %v799_v2 = vpop.f32.mrf.mxu0  ;;  %2474 = vmatmul.msk.f32.gmra.mxu1 %vm343_vm0, %v272_v31  ;;  %2499 = vmatmul.msk.f32.gmra.mxu2 %vm343_vm0, %v297_v40 }
 0x128   : > { %v2066_v4 = vadd.f32 %v2065_v1, %v2064_v41  ;;  %v800_v5 = vadd.f32 %v2817_v35, %v799_v2  ;;  %v321_v41 = vld [vmem:[%s2746_s9 + $0x380] sm:$0xff]  ;;  %v961_v55 = vpop.f32.mrf.mxu2  ;;  %vm1177_vm15 = vcmp.ge.f32.partialorder %v890_v57, 0.0 }
 0x129   : > { %2523 = vmatmul.msk.f32.gmra.mxu3 %vm343_vm0, %v321_v41  ;;  %v962_v58 = vadd.f32 %v2817_v35, %v961_v55  ;;  %v3221_v1 = vld [vmem:[%s4326_s2] ss:$0 sm:$0xff]  ;;  %v323_v55 = vld [vmem:[%s2746_s9 + $0x390] sm:$0xff] }
 0x12a   : > { %vm1147_vm11 = vcmp.ge.f32.partialorder %v800_v5, 0.0  ;;  %v1275_v13 = vmul.f32 0.2, %v800_v5 }
 0x12b   : > { %vm1201_vm1 = vcmp.ge.f32.partialorder %v962_v58, 0.0 }
 0x12c   : > { %v1403_v16 = vsel %vm1147_vm11, %v800_v5, %v1275_v13  ;;  %v1329_v5 = vmul.f32 0.2, %v962_v58  ;;  %v322_v13 = vld [vmem:[%s2746_s9 + $0x388] sm:$0xff] }
 0x12d   : > { %1531 = vst.msk [vmem:[%s2829_s14 + $0x90] sm:$0xff] %vm343_vm0, %v1403_v16  ;;  %v1676_v18 = vsel %vm343_vm0, %v1403_v16, 0.0  ;;  %v1922_v19 = vmul.f32 %v1403_v16, %v1403_v16 }
 0x12e   : > { %v1677_v24 = vadd.f32 %v1676_v18, %v1675_v59  ;;  %v1033_v59 = vpop.f32.mrf.mxu3  ;;  %v3232_v16 = vsel %vm1201_vm1, %v962_v58, %v1329_v5 }
 0x12f   : > { %v2067_v28 = vsel %vm343_vm0, %v1922_v19, 0.0  ;;  %v802_v30 = vpop.f32.mrf.mxu0  ;;  %v1034_v2 = vadd.f32 %v3221_v1, %v1033_v59  ;;  %2500 = vmatmul.msk.f32.gmra.mxu2 %vm343_vm0, %v298_v12  ;;  %1585 = vst.msk [vmem:[%s2829_s14 + $0x240] sm:$0xff] %vm343_vm0, %v3232_v16 }
 0x130   : > { %v2068_v32 = vadd.f32 %v2067_v28, %v2066_v4  ;;  %v803_v33 = vadd.f32 %v2817_v35, %v802_v30  ;;  %v1305_v35 = vmul.f32 0.2, %v890_v57  ;;  %v964_v25 = vpop.f32.mrf.mxu2 }
 0x131   : > { %vm1225_vm2 = vcmp.ge.f32.partialorder %v1034_v2, 0.0  ;;  %v1353_v6 = vmul.f32 0.2, %v1034_v2  ;;  %2524 = vmatmul.msk.f32.gmra.mxu3 %vm343_vm0, %v322_v13  ;;  %v965_v30 = vadd.f32 %v3221_v1, %v964_v25 }
 0x132   : > { %vm1148_vm14 = vcmp.ge.f32.partialorder %v803_v33, 0.0  ;;  %v1276_v42 = vmul.f32 0.2, %v803_v33  ;;  %v3225_v9 = vsel %vm1177_vm15, %v890_v57, %v1305_v35 }
 0x133   : > { %1561 = vst.msk [vmem:[%s2829_s14 + $0x180] sm:$0xff] %vm343_vm0, %v3225_v9  ;;  %v3234_v18 = vsel %vm1225_vm2, %v1034_v2, %v1353_v6  ;;  %vm1202_vm5 = vcmp.ge.f32.partialorder %v965_v30, 0.0 }
 0x134   : > { %v1404_v45 = vsel %vm1148_vm14, %v803_v33, %v1276_v42  ;;  %4369 = vst [vmem:[#allocation5_spill] sm:$0xff] %v3234_v18  ;;  %v1330_v42 = vmul.f32 0.2, %v965_v30 }
 0x135   : > { %1532 = vst.msk [vmem:[%s2829_s14 + $0x98] sm:$0xff] %vm343_vm0, %v1404_v45  ;;  %v1678_v46 = vsel %vm343_vm0, %v1404_v45, 0.0  ;;  %v1923_v48 = vmul.f32 %v1404_v45, %v1404_v45 }
 0x136   : > { %v1679_v56 = vadd.f32 %v1678_v46, %v1677_v24  ;;  %v892_v24 = vpop.f32.mrf.mxu1  ;;  %1609 = vst.msk [vmem:[%s2829_s14 + $0x300] sm:$0xff] %vm343_vm0, %v3234_v18  ;;  %v1036_v31 = vpop.f32.mrf.mxu3 }
 0x137   : > { %v2069_v60 = vsel %vm343_vm0, %v1923_v48, 0.0  ;;  %v805_v63 = vpop.f32.mrf.mxu0  ;;  %v893_v28 = vadd.f32 %v3221_v1, %v892_v24  ;;  %v1037_v38 = vadd.f32 %v3221_v1, %v1036_v31  ;;  %2501 = vmatmul.msk.f32.gmra.mxu2 %vm343_vm0, %v299_v53 }
 0x138   : > { %v2070_v3 = vadd.f32 %v2069_v60, %v2068_v32  ;;  %v806_v4 = vadd.f32 %v3221_v1, %v805_v63  ;;  %v967_v60 = vpop.f32.mrf.mxu2 }
 0x139   : > { %vm1178_vm4 = vcmp.ge.f32.partialorder %v893_v28, 0.0  ;;  %v1306_v41 = vmul.f32 0.2, %v893_v28  ;;  %vm1226_vm6 = vcmp.ge.f32.partialorder %v1037_v38, 0.0  ;;  %v1354_v45 = vmul.f32 0.2, %v1037_v38  ;;  %2525 = vmatmul.msk.f32.gmra.mxu3 %vm343_vm0, %v323_v55 }
 0x13a   : > { %vm1149_vm3 = vcmp.ge.f32.partialorder %v806_v4, 0.0  ;;  %v1277_v7 = vmul.f32 0.2, %v806_v4  ;;  %v968_v2 = vadd.f32 %v3221_v1, %v967_v60  ;;  %v301_v60 = vld [vmem:[%s2746_s9 + $0x2e0] sm:$0xff] }
 0x13b   : > { %v3256_v48 = vsel %vm1178_vm4, %v893_v28, %v1306_v41  ;;  %v3265_v57 = vsel %vm1226_vm6, %v1037_v38, %v1354_v45 }
 0x13c   : > { %v1405_v19 = vsel %vm1149_vm3, %v806_v4, %v1277_v7  ;;  %1562 = vst.msk [vmem:[%s2829_s14 + $0x188] sm:$0xff] %vm343_vm0, %v3256_v48  ;;  %vm1203_vm9 = vcmp.ge.f32.partialorder %v968_v2, 0.0  ;;  %v1331_v7 = vmul.f32 0.2, %v968_v2 }
 0x13d   : > { %1533 = vst.msk [vmem:[%s2829_s14 + $0xa0] sm:$0xff] %vm343_vm0, %v1405_v19  ;;  %v1680_v20 = vsel %vm343_vm0, %v1405_v19, 0.0  ;;  %v1924_v21 = vmul.f32 %v1405_v19, %v1405_v19 }
 0x13e   : > { %v3244_v27 = vadd.f32 %v1680_v20, %v1679_v56  ;;  %v3263_v56 = vsel %vm1202_vm5, %v965_v30, %v1330_v42  ;;  %4370 = vst [vmem:[#allocation6_spill] sm:$0xff] %v3265_v57  ;;  %v895_v59 = vpop.f32.mrf.mxu1  ;;  %v300_v20 = vld [vmem:[%s2746_s9 + $0x2d8] sm:$0xff]  ;;  %v3291_v24 = vsel %vm1203_vm9, %v968_v2, %v1331_v7 }
 0x13f   : > { %v2071_v32 = vsel %vm343_vm0, %v1924_v21, 0.0  ;;  %v808_v33 = vpop.f32.mrf.mxu0  ;;  %1586 = vst.msk [vmem:[%s2829_s14 + $0x248] sm:$0xff] %vm343_vm0, %v3263_v56  ;;  %v896_v63 = vadd.f32 %v3221_v1, %v895_v59  ;;  %v324_v21 = vld [vmem:[%s2746_s9 + $0x398] sm:$0xff]  ;;  %2502 = vmatmul.msk.f32.gmra.mxu2 %vm343_vm0, %v300_v20 }
 0x140   : > { %v3253_v39 = vadd.f32 %v2071_v32, %v2070_v3  ;;  %v809_v40 = vadd.f32 %v3221_v1, %v808_v33  ;;  %1610 = vst.msk [vmem:[%s2829_s14 + $0x308] sm:$0xff] %vm343_vm0, %v3265_v57  ;;  %v1039_v3 = vpop.f32.mrf.mxu3  ;;  %v970_v31 = vpop.f32.mrf.mxu2 }
 0x141   : > { %v1040_v35 = vadd.f32 %v3221_v1, %v1039_v3  ;;  %vm1179_vm8 = vcmp.ge.f32.partialorder %v896_v63, 0.0  ;;  %v1307_v6 = vmul.f32 0.2, %v896_v63  ;;  %1587 = vst.msk [vmem:[%s2829_s14 + $0x250] sm:$0xff] %vm343_vm0, %v3291_v24  ;;  %2526 = vmatmul.msk.f32.gmra.mxu3 %vm343_vm0, %v324_v21  ;;  %v971_v33 = vadd.f32 %v3221_v1, %v970_v31 }
 0x142   : > { %vm1150_vm7 = vcmp.ge.f32.partialorder %v809_v40, 0.0  ;;  %v1278_v46 = vmul.f32 0.2, %v809_v40 }
 0x143   : > { %vm1227_vm10 = vcmp.ge.f32.partialorder %v1040_v35, 0.0  ;;  %v1355_v12 = vmul.f32 0.2, %v1040_v35  ;;  %v3284_v19 = vsel %vm1179_vm8, %v896_v63, %v1307_v6  ;;  %vm1204_vm13 = vcmp.ge.f32.partialorder %v971_v33, 0.0  ;;  %v325_v63 = vld [vmem:[%s2746_s9 + $0x3a0] sm:$0xff] }
 0x144   : > { %v3268_v58 = vsel %vm1150_vm7, %v809_v40, %v1278_v46  ;;  %1563 = vst.msk [vmem:[%s2829_s14 + $0x190] sm:$0xff] %vm343_vm0, %v3284_v19  ;;  %v1332_v46 = vmul.f32 0.2, %v971_v33 }
 0x145   : > { %1534 = vst.msk [vmem:[%s2829_s14 + $0xa8] sm:$0xff] %vm343_vm0, %v3268_v58  ;;  %v3293_v25 = vsel %vm1227_vm10, %v1040_v35, %v1355_v12 }
 0x146   : > { %4371 = vst [vmem:[#allocation7_spill] sm:$0xff] %v3293_v25  ;;  %v898_v30 = vpop.f32.mrf.mxu1  ;;  %v3319_v2 = vsel %vm1204_vm13, %v971_v33, %v1332_v46 }
 0x147   : > { %v811_v4 = vpop.f32.mrf.mxu0  ;;  %1611 = vst.msk [vmem:[%s2829_s14 + $0x310] sm:$0xff] %vm343_vm0, %v3293_v25  ;;  %v899_v32 = vadd.f32 %v3221_v1, %v898_v30  ;;  %2503 = vmatmul.msk.f32.gmra.mxu2 %vm343_vm0, %v301_v60 }
 0x148   : > { %v812_v5 = vadd.f32 %v3221_v1, %v811_v4  ;;  %v1042_v38 = vpop.f32.mrf.mxu3  ;;  %1588 = vst.msk [vmem:[%s2829_s14 + $0x258] sm:$0xff] %vm343_vm0, %v3319_v2 }
 0x149   : > { %v1043_v41 = vadd.f32 %v3221_v1, %v1042_v38  ;;  %vm1180_vm12 = vcmp.ge.f32.partialorder %v899_v32, 0.0  ;;  %v1308_v45 = vmul.f32 0.2, %v899_v32  ;;  %2527 = vmatmul.msk.f32.gmra.mxu3 %vm343_vm0, %v325_v63 }
 0x14a   : > { %vm1151_vm11 = vcmp.ge.f32.partialorder %v812_v5, 0.0  ;;  %v1279_v13 = vmul.f32 0.2, %v812_v5 }
 0x14b   : > { %vm1228_vm14 = vcmp.ge.f32.partialorder %v1043_v41, 0.0  ;;  %v1356_v53 = vmul.f32 0.2, %v1043_v41  ;;  %v3312_v59 = vsel %vm1180_vm12, %v899_v32, %v1308_v45 }
 0x14c   : > { %v3296_v28 = vsel %vm1151_vm11, %v812_v5, %v1279_v13  ;;  %1564 = vst.msk [vmem:[%s2829_s14 + $0x198] sm:$0xff] %vm343_vm0, %v3312_v59  ;;  %v973_v5 = vpop.f32.mrf.mxu2 }
 0x14d   : > { %1535 = vst.msk [vmem:[%s2829_s14 + $0xb0] sm:$0xff] %vm343_vm0, %v3296_v28  ;;  %v3321_v3 = vsel %vm1228_vm14, %v1043_v41, %v1356_v53  ;;  %v974_v7 = vadd.f32 %v3221_v1, %v973_v5  ;;  %v326_v41 = vld [vmem:[%s2746_s9 + $0x3a8] sm:$0xff] }
 0x14e   : > { %4372 = vst [vmem:[#allocation8_spill] sm:$0xff] %v3321_v3  ;;  %v901_v35 = vpop.f32.mrf.mxu1 }
 0x14f   : > { %v814_v40 = vpop.f32.mrf.mxu0  ;;  %1612 = vst.msk [vmem:[%s2829_s14 + $0x318] sm:$0xff] %vm343_vm0, %v3321_v3  ;;  %v902_v6 = vadd.f32 %v3221_v1, %v901_v35  ;;  %vm1205_vm2 = vcmp.ge.f32.partialorder %v974_v7, 0.0  ;;  %v1333_v31 = vmul.f32 0.2, %v974_v7 }
 0x150   : > { %v815_v42 = vadd.f32 %v3221_v1, %v814_v40  ;;  %v1045_v12 = vpop.f32.mrf.mxu3  ;;  %v302_v40 = vld [vmem:[%s2746_s9 + $0x2e8] sm:$0xff] }
 0x151   : > { %v1046_v20 = vadd.f32 %v3221_v1, %v1045_v12  ;;  %vm1181_vm1 = vcmp.ge.f32.partialorder %v902_v6, 0.0  ;;  %v1309_v30 = vmul.f32 0.2, %v902_v6  ;;  %2504 = vmatmul.msk.f32.gmra.mxu2 %vm343_vm0, %v302_v40  ;;  %2528 = vmatmul.msk.f32.gmra.mxu3 %vm343_vm0, %v326_v41 }
 0x152   : > { %vm1152_vm15 = vcmp.ge.f32.partialorder %v815_v42, 0.0  ;;  %v1280_v55 = vmul.f32 0.2, %v815_v42 }
 0x153   : > { %vm1229_vm3 = vcmp.ge.f32.partialorder %v1046_v20, 0.0  ;;  %v1357_v32 = vmul.f32 0.2, %v1046_v20  ;;  %v3340_v38 = vsel %vm1181_vm1, %v902_v6, %v1309_v30 }
 0x154   : > { %v3324_v4 = vsel %vm1152_vm15, %v815_v42, %v1280_v55  ;;  %1565 = vst.msk [vmem:[%s2829_s14 + $0x1a0] sm:$0xff] %vm343_vm0, %v3340_v38  ;;  %v3347_v42 = vsel %vm1205_vm2, %v974_v7, %v1333_v31  ;;  %v976_v55 = vpop.f32.mrf.mxu2  ;;  %v303_v31 = vld [vmem:[%s2746_s9 + $0x2f0] sm:$0xff] }
 0x155   : > { %1536 = vst.msk [vmem:[%s2829_s14 + $0xb8] sm:$0xff] %vm343_vm0, %v3324_v4  ;;  %v3349_v45 = vsel %vm1229_vm3, %v1046_v20, %v1357_v32  ;;  %v977_v63 = vadd.f32 %v3221_v1, %v976_v55  ;;  %v327_v32 = vld [vmem:[%s2746_s9 + $0x3b0] sm:$0xff] }
 0x156   : > { %4373 = vst [vmem:[#allocation9_spill] sm:$0xff] %v3347_v42  ;;  %v904_v53 = vpop.f32.mrf.mxu1 }
 0x157   : > { %v817_v13 = vpop.f32.mrf.mxu0  ;;  %4374 = vst [vmem:[#allocation10_spill] sm:$0xff] %v3349_v45  ;;  %v905_v60 = vadd.f32 %v3221_v1, %v904_v53  ;;  %vm1206_vm6 = vcmp.ge.f32.partialorder %v977_v63, 0.0 }
 0x158   : > { %v818_v21 = vadd.f32 %v3221_v1, %v817_v13  ;;  %1589 = vst.msk [vmem:[%s2829_s14 + $0x260] sm:$0xff] %vm343_vm0, %v3347_v42  ;;  %v1048_v35 = vpop.f32.mrf.mxu3  ;;  %v1334_v13 = vmul.f32 0.2, %v977_v63 }
 0x159   : > { %1613 = vst.msk [vmem:[%s2829_s14 + $0x320] sm:$0xff] %vm343_vm0, %v3349_v45  ;;  %v1049_v6 = vadd.f32 %v3221_v1, %v1048_v35  ;;  %vm1182_vm5 = vcmp.ge.f32.partialorder %v905_v60, 0.0  ;;  %v1310_v12 = vmul.f32 0.2, %v905_v60  ;;  %2505 = vmatmul.msk.f32.gmra.mxu2 %vm343_vm0, %v303_v31  ;;  %2529 = vmatmul.msk.f32.gmra.mxu3 %vm343_vm0, %v327_v32  ;;  %v304_v32 = vld [vmem:[%s2746_s9 + $0x2f8] sm:$0xff] }
 0x15a   : > { %vm1153_vm4 = vcmp.ge.f32.partialorder %v818_v21, 0.0  ;;  %v1281_v33 = vmul.f32 0.2, %v818_v21 }
 0x15b   : > { %vm1230_vm7 = vcmp.ge.f32.partialorder %v1049_v6, 0.0  ;;  %v1358_v20 = vmul.f32 0.2, %v1049_v6  ;;  %v3368_v30 = vsel %vm1182_vm5, %v905_v60, %v1310_v12 }
 0x15c   : > { %v3352_v46 = vsel %vm1153_vm4, %v818_v21, %v1281_v33  ;;  %1566 = vst.msk [vmem:[%s2829_s14 + $0x1a8] sm:$0xff] %vm343_vm0, %v3368_v30  ;;  %v3375_v33 = vsel %vm1206_vm6, %v977_v63, %v1334_v13  ;;  %v979_v55 = vpop.f32.mrf.mxu2 }
 0x15d   : > { %1537 = vst.msk [vmem:[%s2829_s14 + $0xc0] sm:$0xff] %vm343_vm0, %v3352_v46  ;;  %v3377_v40 = vsel %vm1230_vm7, %v1049_v6, %v1358_v20  ;;  %v980_v63 = vadd.f32 %v3221_v1, %v979_v55 }
 0x15e   : > { %4375 = vst [vmem:[#allocation11_spill] sm:$0xff] %v3375_v33  ;;  %v907_v53 = vpop.f32.mrf.mxu1 }
 0x15f   : > { %v820_v5 = vpop.f32.mrf.mxu0  ;;  %4376 = vst [vmem:[#allocation12_spill] sm:$0xff] %v3377_v40  ;;  %v908_v60 = vadd.f32 %v3221_v1, %v907_v53  ;;  %vm1207_vm10 = vcmp.ge.f32.partialorder %v980_v63, 0.0  ;;  %v1335_v13 = vmul.f32 0.2, %v980_v63  ;;  %v328_v53 = vld [vmem:[%s2746_s9 + $0x3b8] sm:$0xff] }
 0x160   : > { %v821_v7 = vadd.f32 %v3221_v1, %v820_v5  ;;  %1590 = vst.msk [vmem:[%s2829_s14 + $0x268] sm:$0xff] %vm343_vm0, %v3375_v33  ;;  %v1051_v35 = vpop.f32.mrf.mxu3 }
 0x161   : > { %1614 = vst.msk [vmem:[%s2829_s14 + $0x328] sm:$0xff] %vm343_vm0, %v3377_v40  ;;  %v1052_v6 = vadd.f32 %v3221_v1, %v1051_v35  ;;  %vm1183_vm9 = vcmp.ge.f32.partialorder %v908_v60, 0.0  ;;  %v1311_v12 = vmul.f32 0.2, %v908_v60  ;;  %v3403_v55 = vsel %vm1207_vm10, %v980_v63, %v1335_v13  ;;  %2506 = vmatmul.msk.f32.gmra.mxu2 %vm343_vm0, %v304_v32  ;;  %2530 = vmatmul.msk.f32.gmra.mxu3 %vm343_vm0, %v328_v53 }
 0x162   : > { %vm1154_vm8 = vcmp.ge.f32.partialorder %v821_v7, 0.0  ;;  %v1282_v21 = vmul.f32 0.2, %v821_v7  ;;  %4377 = vst [vmem:[#allocation13_spill] sm:$0xff] %v3403_v55 }
 0x163   : > { %vm1231_vm11 = vcmp.ge.f32.partialorder %v1052_v6, 0.0  ;;  %v1359_v20 = vmul.f32 0.2, %v1052_v6  ;;  %v3396_v31 = vsel %vm1183_vm9, %v908_v60, %v1311_v12  ;;  %1591 = vst.msk [vmem:[%s2829_s14 + $0x270] sm:$0xff] %vm343_vm0, %v3403_v55 }
 0x164   : > { %v3380_v41 = vsel %vm1154_vm8, %v821_v7, %v1282_v21  ;;  %1567 = vst.msk [vmem:[%s2829_s14 + $0x1b0] sm:$0xff] %vm343_vm0, %v3396_v31  ;;  %v982_v63 = vpop.f32.mrf.mxu2 }
 0x165   : > { %1538 = vst.msk [vmem:[%s2829_s14 + $0xc8] sm:$0xff] %vm343_vm0, %v3380_v41  ;;  %v3405_v35 = vsel %vm1231_vm11, %v1052_v6, %v1359_v20  ;;  %v983_v12 = vadd.f32 %v3221_v1, %v982_v63  ;;  %v1929_v33 = vmul.f32 %v3380_v41, %v3380_v41 }
 0x166   : > { %4378 = vst [vmem:[#allocation14_spill] sm:$0xff] %v3405_v35  ;;  %v910_v60 = vpop.f32.mrf.mxu1 }
 0x167   : > { %v823_v5 = vpop.f32.mrf.mxu0  ;;  %1615 = vst.msk [vmem:[%s2829_s14 + $0x330] sm:$0xff] %vm343_vm0, %v3405_v35  ;;  %v911_v6 = vadd.f32 %v3221_v1, %v910_v60  ;;  %vm1208_vm14 = vcmp.ge.f32.partialorder %v983_v12, 0.0  ;;  %v1336_v60 = vmul.f32 0.2, %v983_v12  ;;  %v1684_v35 = vsel %vm343_vm0, %v3296_v28, 0.0 }
 0x168   : > { %v824_v7 = vadd.f32 %v3221_v1, %v823_v5  ;;  %v1925_v5 = vmul.f32 %v3268_v58, %v3268_v58  ;;  %v1054_v13 = vpop.f32.mrf.mxu3 }
 0x169   : > { %vm1184_vm13 = vcmp.ge.f32.partialorder %v911_v6, 0.0  ;;  %v1312_v45 = vmul.f32 0.2, %v911_v6  ;;  %v3441_v25 = vsel %vm1208_vm14, %v983_v12, %v1336_v60  ;;  %v1686_v60 = vsel %vm343_vm0, %v3324_v4, 0.0 }
 0x16a   : > { %vm1155_vm12 = vcmp.ge.f32.partialorder %v824_v7, 0.0  ;;  %v1283_v21 = vmul.f32 0.2, %v824_v7  ;;  %v2073_v32 = vsel %vm343_vm0, %v1925_v5, 0.0  ;;  %v1926_v5 = vmul.f32 %v3296_v28, %v3296_v28  ;;  %4379 = vst [vmem:[#allocation15_spill] sm:$0xff] %v3441_v25 }
 0x16b   : > { %v3431_v3 = vsel %vm1184_vm13, %v911_v6, %v1312_v45  ;;  %1592 = vst.msk [vmem:[%s2829_s14 + $0x278] sm:$0xff] %vm343_vm0, %v3441_v25  ;;  %v2074_v6 = vadd.f32 %v2073_v32, %v3253_v39 }
 0x16c   : > { %v3410_v40 = vsel %vm1155_vm12, %v824_v7, %v1283_v21  ;;  %v1682_v7 = vsel %vm343_vm0, %v3268_v58, 0.0  ;;  %v1055_v21 = vadd.f32 %v3221_v1, %v1054_v13  ;;  %v329_v13 = vld [vmem:[%s2746_s9 + $0x3c0] sm:$0xff]  ;;  %1568 = vst.msk [vmem:[%s2829_s14 + $0x1b8] sm:$0xff] %vm343_vm0, %v3431_v3  ;;  %v985_v45 = vpop.f32.mrf.mxu2 }
 0x16d   : > { %1539 = vst.msk [vmem:[%s2829_s14 + $0xd0] sm:$0xff] %vm343_vm0, %v3410_v40  ;;  %v1683_v18 = vadd.f32 %v1682_v7, %v3244_v27  ;;  %2531 = vmatmul.msk.f32.gmra.mxu3 %vm343_vm0, %v329_v13  ;;  %v986_v7 = vadd.f32 %v3221_v1, %v985_v45 }
 0x16e   : > { %vm1232_vm15 = vcmp.ge.f32.partialorder %v1055_v21, 0.0  ;;  %v1360_v63 = vmul.f32 0.2, %v1055_v21  ;;  %v913_v28 = vpop.f32.mrf.mxu1 }
 0x16f   : > { %v826_v20 = vpop.f32.mrf.mxu0  ;;  %v1685_v12 = vadd.f32 %v1684_v35, %v1683_v18  ;;  %v914_v27 = vadd.f32 %v3221_v1, %v913_v28  ;;  %v1928_v18 = vmul.f32 %v3352_v46, %v3352_v46  ;;  %v1337_v13 = vmul.f32 0.2, %v986_v7  ;;  %v330_v28 = vld [vmem:[%s2746_s9 + $0x3c8] sm:$0xff] }
 0x170   : > { %v827_v53 = vadd.f32 %v3221_v1, %v826_v20  ;;  %v1927_v20 = vmul.f32 %v3324_v4, %v3324_v4  ;;  %v3443_v57 = vsel %vm1232_vm15, %v1055_v21, %v1360_v63  ;;  %v1057_v21 = vpop.f32.mrf.mxu3  ;;  %vm1209_vm3 = vcmp.ge.f32.partialorder %v986_v7, 0.0 }
 0x171   : > { %4380 = vst [vmem:[#allocation16_spill] sm:$0xff] %v3443_v57  ;;  %v1058_v39 = vadd.f32 %v3221_v1, %v1057_v21  ;;  %v1313_v32 = vmul.f32 0.2, %v914_v27  ;;  %vm1185_vm2 = vcmp.ge.f32.partialorder %v914_v27, 0.0  ;;  %v3472_v45 = vsel %vm1209_vm3, %v986_v7, %v1337_v13 }
 0x172   : > { %vm1156_vm1 = vcmp.ge.f32.partialorder %v827_v53, 0.0  ;;  %v1284_v58 = vmul.f32 0.2, %v827_v53  ;;  %1616 = vst.msk [vmem:[%s2829_s14 + $0x338] sm:$0xff] %vm343_vm0, %v3443_v57  ;;  %v2077_v63 = vsel %vm343_vm0, %v1927_v20, 0.0  ;;  %v1687_v57 = vadd.f32 %v1686_v60, %v1685_v12 }
 0x173   : > { %vm1233_vm4 = vcmp.ge.f32.partialorder %v1058_v39, 0.0  ;;  %v3470_v20 = vsel %vm1185_vm2, %v914_v27, %v1313_v32  ;;  %v2079_v25 = vsel %vm343_vm0, %v1928_v18, 0.0  ;;  %1593 = vst.msk [vmem:[%s2829_s14 + $0x280] sm:$0xff] %vm343_vm0, %v3472_v45 }
 0x174   : > { %v3446_v55 = vsel %vm1156_vm1, %v827_v53, %v1284_v58  ;;  %v2075_v53 = vsel %vm343_vm0, %v1926_v5, 0.0  ;;  %v1361_v5 = vmul.f32 0.2, %v1058_v39  ;;  %1569 = vst.msk [vmem:[%s2829_s14 + $0x1c0] sm:$0xff] %vm343_vm0, %v3470_v20  ;;  %v988_v7 = vpop.f32.mrf.mxu2 }
 0x175   : > { %1540 = vst.msk [vmem:[%s2829_s14 + $0xd8] sm:$0xff] %vm343_vm0, %v3446_v55  ;;  %v2076_v21 = vadd.f32 %v2075_v53, %v2074_v6  ;;  %2532 = vmatmul.msk.f32.gmra.mxu3 %vm343_vm0, %v330_v28  ;;  %v989_v32 = vadd.f32 %v3221_v1, %v988_v7 }
 0x176   : > { %v3485_v27 = vsel %vm1233_vm4, %v1058_v39, %v1361_v5  ;;  %v916_v12 = vpop.f32.mrf.mxu1 }
 0x177   : > { %v829_v58 = vpop.f32.mrf.mxu0  ;;  %4381 = vst [vmem:[#allocation17_spill] sm:$0xff] %v3485_v27  ;;  %v2078_v6 = vadd.f32 %v2077_v63, %v2076_v21  ;;  %v917_v60 = vadd.f32 %v3221_v1, %v916_v12  ;;  %vm1210_vm7 = vcmp.ge.f32.partialorder %v989_v32, 0.0 }
 0x178   : > { %v830_v35 = vadd.f32 %v3221_v1, %v829_v58  ;;  %v1688_v58 = vsel %vm343_vm0, %v3352_v46, 0.0  ;;  %v1690_v46 = vsel %vm343_vm0, %v3380_v41, 0.0  ;;  %1617 = vst.msk [vmem:[%s2829_s14 + $0x340] sm:$0xff] %vm343_vm0, %v3485_v27  ;;  %v1060_v18 = vpop.f32.mrf.mxu3 }
 0x179   : > { %v1689_v53 = vadd.f32 %v1688_v58, %v1687_v57  ;;  %v2080_v39 = vadd.f32 %v2079_v25, %v2078_v6  ;;  %v1061_v41 = vadd.f32 %v3221_v1, %v1060_v18  ;;  %v2081_v57 = vsel %vm343_vm0, %v1929_v33, 0.0  ;;  %v331_v25 = vld [vmem:[%s2746_s9 + $0x3d0] sm:$0xff] }
 0x17a   : > { %vm1157_vm5 = vcmp.ge.f32.partialorder %v830_v35, 0.0  ;;  %v1285_v4 = vmul.f32 0.2, %v830_v35  ;;  %v1314_v28 = vmul.f32 0.2, %v917_v60  ;;  %vm1186_vm6 = vcmp.ge.f32.partialorder %v917_v60, 0.0 }
 0x17b   : > { %v1691_v13 = vadd.f32 %v1690_v46, %v1689_v53  ;;  %vm1234_vm8 = vcmp.ge.f32.partialorder %v1061_v41, 0.0  ;;  %v1362_v6 = vmul.f32 0.2, %v1061_v41  ;;  %v2082_v46 = vadd.f32 %v2081_v57, %v2080_v39 }
 0x17c   : > { %v1413_v42 = vsel %vm1157_vm5, %v830_v35, %v1285_v4  ;;  %v1930_v35 = vmul.f32 %v3410_v40, %v3410_v40  ;;  %v1338_v4 = vmul.f32 0.2, %v989_v32  ;;  %v3503_v58 = vsel %vm1186_vm6, %v917_v60, %v1314_v28  ;;  %v991_v39 = vpop.f32.mrf.mxu2 }
 0x17d   : > { %1541 = vst.msk [vmem:[%s2829_s14 + $0xe0] sm:$0xff] %vm343_vm0, %v1413_v42  ;;  %v1692_v33 = vsel %vm343_vm0, %v3410_v40, 0.0  ;;  %v1931_v53 = vmul.f32 %v3446_v55, %v3446_v55  ;;  %v3518_v60 = vsel %vm1234_vm8, %v1061_v41, %v1362_v6  ;;  %2533 = vmatmul.msk.f32.gmra.mxu3 %vm343_vm0, %v331_v25  ;;  %v1932_v41 = vmul.f32 %v1413_v42, %v1413_v42 }
 0x17e   : > { %v2083_v12 = vsel %vm343_vm0, %v1930_v35, 0.0  ;;  %1570 = vst.msk [vmem:[%s2829_s14 + $0x1c8] sm:$0xff] %vm343_vm0, %v3503_v58  ;;  %v3511_v7 = vsel %vm1210_vm7, %v989_v32, %v1338_v4  ;;  %v919_v40 = vpop.f32.mrf.mxu1  ;;  %v1693_v35 = vadd.f32 %v1692_v33, %v1691_v13  ;;  %v992_v4 = vadd.f32 %v3221_v1, %v991_v39 }
 0x17f   : > { %v832_v63 = vpop.f32.mrf.mxu0  ;;  %4382 = vst [vmem:[#allocation18_spill] sm:$0xff] %v3511_v7  ;;  %v920_v32 = vadd.f32 %v3221_v1, %v919_v40  ;;  %v1696_v13 = vsel %vm343_vm0, %v1413_v42, 0.0  ;;  %v2087_v42 = vsel %vm343_vm0, %v1932_v41, 0.0  ;;  %v1936_v41 = vmul.f32 %v2880_v29, %v2880_v29 }
 0x180   : > { %v833_v5 = vadd.f32 %v3221_v1, %v832_v63  ;;  %1594 = vst.msk [vmem:[%s2829_s14 + $0x288] sm:$0xff] %vm343_vm0, %v3511_v7  ;;  %v2084_v63 = vadd.f32 %v2083_v12, %v2082_v46  ;;  %v1063_v57 = vpop.f32.mrf.mxu3  ;;  %vm1211_vm11 = vcmp.ge.f32.partialorder %v992_v4, 0.0  ;;  %v1339_v33 = vmul.f32 0.2, %v992_v4 }
 0x181   : > { %4383 = vst [vmem:[#allocation19_spill] sm:$0xff] %v3518_v60  ;;  %v1064_v25 = vadd.f32 %v3221_v1, %v1063_v57  ;;  %v1315_v46 = vmul.f32 0.2, %v920_v32  ;;  %vm1187_vm10 = vcmp.ge.f32.partialorder %v920_v32, 0.0 }
 0x182   : > { %vm1158_vm9 = vcmp.ge.f32.partialorder %v833_v5, 0.0  ;;  %v1286_v21 = vmul.f32 0.2, %v833_v5  ;;  %1618 = vst.msk [vmem:[%s2829_s14 + $0x348] sm:$0xff] %vm343_vm0, %v3518_v60 }
 0x183   : > { %vm1235_vm12 = vcmp.ge.f32.partialorder %v1064_v25, 0.0  ;;  %v3535_v40 = vsel %vm1187_vm10, %v920_v32, %v1315_v46  ;;  %v1363_v39 = vmul.f32 0.2, %v1064_v25 }
 0x184   : > { %v1414_v18 = vsel %vm1158_vm9, %v833_v5, %v1286_v21  ;;  %v1694_v5 = vsel %vm343_vm0, %v3446_v55, 0.0  ;;  %v2085_v21 = vsel %vm343_vm0, %v1931_v53, 0.0  ;;  %v332_v55 = vld [vmem:[%s2746_s9 + $0x3d8] sm:$0xff]  ;;  %1571 = vst.msk [vmem:[%s2829_s14 + $0x1d0] sm:$0xff] %vm343_vm0, %v3535_v40 }
 0x185   : > { %1542 = vst.msk [vmem:[%s2829_s14 + $0xe8] sm:$0xff] %vm343_vm0, %v1414_v18  ;;  %v1695_v57 = vadd.f32 %v1694_v5, %v1693_v35  ;;  %v2086_v53 = vadd.f32 %v2085_v21, %v2084_v63  ;;  %v1698_v60 = vsel %vm343_vm0, %v1414_v18, 0.0  ;;  %v1933_v27 = vmul.f32 %v1414_v18, %v1414_v18  ;;  %2534 = vmatmul.msk.f32.gmra.mxu3 %vm343_vm0, %v332_v55  ;;  %v994_v5 = vpop.f32.mrf.mxu2 }
 0x186   : > { %v3547_v32 = vsel %vm1235_vm12, %v1064_v25, %v1363_v39  ;;  %v922_v63 = vpop.f32.mrf.mxu1 }
 0x187   : > { %v835_v28 = vpop.f32.mrf.mxu0  ;;  %4385 = vst [vmem:[#allocation21_spill] sm:$0xff] %v3547_v32  ;;  %v1697_v35 = vadd.f32 %v1696_v13, %v1695_v57  ;;  %v923_v18 = vadd.f32 %v3221_v1, %v922_v63  ;;  %v995_v13 = vadd.f32 %v3221_v1, %v994_v5  ;;  %v2089_v55 = vsel %vm343_vm0, %v1933_v27, 0.0 }
 0x188   : > { %v836_v6 = vadd.f32 %v3221_v1, %v835_v28  ;;  %v3541_v28 = vsel %vm1211_vm11, %v992_v4, %v1339_v33  ;;  %v2088_v4 = vadd.f32 %v2087_v42, %v2086_v53  ;;  %1619 = vst.msk [vmem:[%s2829_s14 + $0x350] sm:$0xff] %vm343_vm0, %v3547_v32  ;;  %v1066_v21 = vpop.f32.mrf.mxu3  ;;  %v1704_v27 = vsel %vm343_vm0, %v2880_v29, 0.0 }
 0x189   : > { %4384 = vst [vmem:[#allocation20_spill] sm:$0xff] %v3541_v28  ;;  %v1699_v25 = vadd.f32 %v1698_v60, %v1697_v35  ;;  %v1067_v33 = vadd.f32 %v3221_v1, %v1066_v21  ;;  %v1316_v57 = vmul.f32 0.2, %v923_v18  ;;  %vm1188_vm14 = vcmp.ge.f32.partialorder %v923_v18, 0.0  ;;  %v333_v60 = vld [vmem:[%s2746_s9 + $0x3e0] sm:$0xff] }
 0x18a   : > { %vm1159_vm13 = vcmp.ge.f32.partialorder %v836_v6, 0.0  ;;  %v1287_v12 = vmul.f32 0.2, %v836_v6  ;;  %1595 = vst.msk [vmem:[%s2829_s14 + $0x290] sm:$0xff] %vm343_vm0, %v3541_v28  ;;  %vm1212_vm15 = vcmp.ge.f32.partialorder %v995_v13, 0.0  ;;  %v2090_v5 = vadd.f32 %v2089_v55, %v2088_v4 }
 0x18b   : > { %v1340_v53 = vmul.f32 0.2, %v995_v13  ;;  %vm1236_vm1 = vcmp.ge.f32.partialorder %v1067_v33, 0.0  ;;  %v3564_v35 = vsel %vm1188_vm14, %v923_v18, %v1316_v57  ;;  %v1364_v63 = vmul.f32 0.2, %v1067_v33 }
 0x18c   : > { %v1415_v7 = vsel %vm1159_vm13, %v836_v6, %v1287_v12  ;;  %1572 = vst.msk [vmem:[%s2829_s14 + $0x1d8] sm:$0xff] %vm343_vm0, %v3564_v35  ;;  %v1706_v29 = vsel %vm343_vm0, %v2899_v47, 0.0  ;;  %v1937_v4 = vmul.f32 %v2899_v47, %v2899_v47  ;;  %v1938_v55 = vmul.f32 %v2918_v0, %v2918_v0 }
 0x18d   : > { %1543 = vst.msk [vmem:[%s2829_s14 + $0xf0] sm:$0xff] %vm343_vm0, %v1415_v7  ;;  %v1934_v6 = vmul.f32 %v1415_v7, %v1415_v7  ;;  %v1700_v12 = vsel %vm343_vm0, %v1415_v7, 0.0  ;;  %v3572_v21 = vsel %vm1212_vm15, %v995_v13, %v1340_v53  ;;  %v3578_v18 = vsel %vm1236_vm1, %v1067_v33, %v1364_v63  ;;  %2535 = vmatmul.msk.f32.gmra.mxu3 %vm343_vm0, %v333_v60  ;;  %v997_v13 = vpop.f32.mrf.mxu2 }
 0x18e   : > { %4386 = vst [vmem:[#allocation22_spill] sm:$0xff] %v3572_v21  ;;  %v1701_v32 = vadd.f32 %v1700_v12, %v1699_v25  ;;  %v925_v25 = vpop.f32.mrf.mxu1  ;;  %v1939_v47 = vmul.f32 %v2937_v17, %v2937_v17 }
 0x18f   : > { %v838_v46 = vpop.f32.mrf.mxu0  ;;  %v2091_v7 = vsel %vm343_vm0, %v1934_v6, 0.0  ;;  %1596 = vst.msk [vmem:[%s2829_s14 + $0x298] sm:$0xff] %vm343_vm0, %v3572_v21  ;;  %v1708_v21 = vsel %vm343_vm0, %v2918_v0, 0.0  ;;  %v1710_v0 = vsel %vm343_vm0, %v2937_v17, 0.0 }
 0x190   : > { %v839_v39 = vadd.f32 %v3221_v1, %v838_v46  ;;  %v2095_v46 = vsel %vm343_vm0, %v1936_v41, 0.0  ;;  %4387 = vst [vmem:[#allocation23_spill] sm:$0xff] %v3578_v18  ;;  %v2092_v33 = vadd.f32 %v2091_v7, %v2090_v5  ;;  %v1069_v57 = vpop.f32.mrf.mxu3 }
 0x191   : > { %1620 = vst.msk [vmem:[%s2829_s14 + $0x358] sm:$0xff] %vm343_vm0, %v3578_v18  ;;  %v1070_v60 = vadd.f32 %v3221_v1, %v1069_v57  ;;  %v2097_v57 = vsel %vm343_vm0, %v1937_v4, 0.0  ;;  %v2101_v4 = vsel %vm343_vm0, %v1939_v47, 0.0 }
 0x192   : > { %vm1160_vm2 = vcmp.ge.f32.partialorder %v839_v39, 0.0  ;;  %v1288_v42 = vmul.f32 0.2, %v839_v39 }
 0x193   : > { %vm1237_vm5 = vcmp.ge.f32.partialorder %v1070_v60, 0.0 }
 0x194   : > { %v1416_v28 = vsel %vm1160_vm2, %v839_v39, %v1288_v42  ;;  %v926_v39 = vadd.f32 %v3221_v1, %v925_v25  ;;  %v1940_v42 = vmul.f32 %v2956_v36, %v2956_v36 }
 0x195   : > { %1544 = vst.msk [vmem:[%s2829_s14 + $0xf8] sm:$0xff] %vm343_vm0, %v1416_v28  ;;  %v1702_v41 = vsel %vm343_vm0, %v1416_v28, 0.0  ;;  %v1935_v6 = vmul.f32 %v1416_v28, %v1416_v28  ;;  %v998_v28 = vadd.f32 %v3221_v1, %v997_v13  ;;  %v1365_v13 = vmul.f32 0.2, %v1070_v60 }
 0x196   : > { %v1703_v12 = vadd.f32 %v1702_v41, %v1701_v32  ;;  %v1317_v5 = vmul.f32 0.2, %v926_v39  ;;  %vm1189_vm3 = vcmp.ge.f32.partialorder %v926_v39, 0.0  ;;  %v334_v41 = vld [vmem:[%s2746_s9 + $0x3e8] sm:$0xff] }
 0x197   : > { %v2093_v53 = vsel %vm343_vm0, %v1935_v6, 0.0  ;;  %vm1213_vm4 = vcmp.ge.f32.partialorder %v998_v28, 0.0  ;;  %v1341_v7 = vmul.f32 0.2, %v998_v28  ;;  %2536 = vmatmul.msk.f32.gmra.mxu3 %vm343_vm0, %v334_v41 }
 0x198   : > { %v1705_v32 = vadd.f32 %v1704_v27, %v1703_v12  ;;  %v2094_v63 = vadd.f32 %v2093_v53, %v2092_v33  ;;  %v3602_v6 = vsel %vm1189_vm3, %v926_v39, %v1317_v5  ;;  %v1941_v27 = vmul.f32 %v2975_v54, %v2975_v54  ;;  %v1072_v17 = vpop.f32.mrf.mxu3 }
 0x199   : > { %1573 = vst.msk [vmem:[%s2829_s14 + $0x1e0] sm:$0xff] %vm343_vm0, %v3602_v6  ;;  %v3612_v33 = vsel %vm1213_vm4, %v998_v28, %v1341_v7  ;;  %v1712_v39 = vsel %vm343_vm0, %v2956_v36, 0.0  ;;  %v3625_v53 = vsel %vm1237_vm5, %v1070_v60, %v1365_v13  ;;  %v928_v28 = vpop.f32.mrf.mxu1  ;;  %v1073_v5 = vadd.f32 %v3221_v1, %v1072_v17 }
 0x19a   : > { %v1707_v25 = vadd.f32 %v1706_v29, %v1705_v32  ;;  %v2096_v18 = vadd.f32 %v2095_v46, %v2094_v63  ;;  %v2099_v29 = vsel %vm343_vm0, %v1938_v55, 0.0  ;;  %1597 = vst.msk [vmem:[%s2829_s14 + $0x2a0] sm:$0xff] %vm343_vm0, %v3612_v33  ;;  %v1000_v55 = vpop.f32.mrf.mxu2  ;;  %v2105_v47 = vsel %vm343_vm0, %v1941_v27, 0.0 }
 0x19b   : > { %1621 = vst.msk [vmem:[%s2829_s14 + $0x360] sm:$0xff] %vm343_vm0, %v3625_v53  ;;  %v929_v36 = vadd.f32 %v3221_v1, %v928_v28  ;;  %v1001_v60 = vadd.f32 %v3221_v1, %v1000_v55  ;;  %vm1238_vm8 = vcmp.ge.f32.partialorder %v1073_v5, 0.0  ;;  %v1718_v55 = vsel %vm343_vm0, %v3013_v26, 0.0 }
 0x19c   : > { %v1709_v46 = vadd.f32 %v1708_v21, %v1707_v25  ;;  %v2098_v12 = vadd.f32 %v2097_v57, %v2096_v18  ;;  %v2103_v21 = vsel %vm343_vm0, %v1940_v42, 0.0  ;;  %v1714_v18 = vsel %vm343_vm0, %v2975_v54, 0.0  ;;  %v335_v57 = vld [vmem:[%s2746_s9 + $0x3f0] sm:$0xff] }
 0x19d   : > { %v1942_v42 = vmul.f32 %v2994_v8, %v2994_v8  ;;  %v1943_v54 = vmul.f32 %v3013_v26, %v3013_v26  ;;  %v1944_v25 = vmul.f32 %v3033_v50, %v3033_v50  ;;  %vm1190_vm6 = vcmp.ge.f32.partialorder %v929_v36, 0.0 }
 0x19e   : > { %v1711_v32 = vadd.f32 %v1710_v0, %v1709_v46  ;;  %v2100_v63 = vadd.f32 %v2099_v29, %v2098_v12  ;;  %v1318_v13 = vmul.f32 0.2, %v929_v36  ;;  %vm1214_vm7 = vcmp.ge.f32.partialorder %v1001_v60, 0.0 }
 0x19f   : > { %v1342_v46 = vmul.f32 0.2, %v1001_v60  ;;  %v1716_v12 = vsel %vm343_vm0, %v2994_v8, 0.0  ;;  %v1945_v0 = vmul.f32 %v3058_v10, %v3058_v10  ;;  %v2107_v28 = vsel %vm343_vm0, %v1942_v42, 0.0  ;;  %2537 = vmatmul.msk.f32.gmra.mxu3 %vm343_vm0, %v335_v57 }
 0x1a0   : > { %v1713_v7 = vadd.f32 %v1712_v39, %v1711_v32  ;;  %v2102_v41 = vadd.f32 %v2101_v4, %v2100_v63  ;;  %v3648_v39 = vsel %vm1190_vm6, %v929_v36, %v1318_v13  ;;  %v1366_v4 = vmul.f32 0.2, %v1073_v5 }
 0x1a1   : > { %1574 = vst.msk [vmem:[%s2829_s14 + $0x1e8] sm:$0xff] %vm343_vm0, %v3648_v39  ;;  %v2109_v8 = vsel %vm343_vm0, %v1943_v54, 0.0  ;;  %v3661_v63 = vsel %vm1214_vm7, %v1001_v60, %v1342_v46  ;;  %v931_v36 = vpop.f32.mrf.mxu1  ;;  %v1722_v42 = vsel %vm343_vm0, %v3058_v10, 0.0  ;;  %v1075_v54 = vpop.f32.mrf.mxu3  ;;  %v1724_v60 = vsel %vm343_vm0, %v3083_v34, 0.0 }
 0x1a2   : > { %v1715_v27 = vadd.f32 %v1714_v18, %v1713_v7  ;;  %v2104_v29 = vadd.f32 %v2103_v21, %v2102_v41  ;;  %v1720_v21 = vsel %vm343_vm0, %v3033_v50, 0.0  ;;  %v3663_v17 = vsel %vm1238_vm8, %v1073_v5, %v1366_v4  ;;  %v1003_v26 = vpop.f32.mrf.mxu2  ;;  %1598 = vst.msk [vmem:[%s2829_s14 + $0x2a8] sm:$0xff] %vm343_vm0, %v3661_v63 }
 0x1a3   : > { %v2113_v50 = vsel %vm343_vm0, %v1945_v0, 0.0  ;;  %v1946_v5 = vmul.f32 %v3083_v34, %v3083_v34  ;;  %1622 = vst.msk [vmem:[%s2829_s14 + $0x368] sm:$0xff] %vm343_vm0, %v3663_v17  ;;  %v932_v10 = vadd.f32 %v3221_v1, %v931_v36  ;;  %v1004_v57 = vadd.f32 %v3221_v1, %v1003_v26 }
 0x1a4   : > { %v1717_v32 = vadd.f32 %v1716_v12, %v1715_v27  ;;  %v2106_v18 = vadd.f32 %v2105_v47, %v2104_v29  ;;  %v2111_v47 = vsel %vm343_vm0, %v1944_v25, 0.0  ;;  %v1076_v27 = vadd.f32 %v3221_v1, %v1075_v54  ;;  %v336_v12 = vld [vmem:[%s2746_s9 + $0x3f8] sm:$0xff]  ;;  %s2315_s9 = sshll.u32 %s198_s8, 4  ;;  %s2316_s9 = int_to_ptr.vmem [resolvable:$true] %s2315_s9 }
 0x1a5   : > { %v1947_v29 = vmul.f32 %v3108_v61, %v3108_v61  ;;  %v1948_v46 = vmul.f32 %v3131_v22, %v3131_v22  ;;  %vm1191_vm9 = vcmp.ge.f32.partialorder %v932_v10, 0.0  ;;  %v1319_v34 = vmul.f32 0.2, %v932_v10 }
 0x1a6   : > { %v1719_v7 = vadd.f32 %v1718_v55, %v1717_v32  ;;  %v2108_v41 = vadd.f32 %v2107_v28, %v2106_v18  ;;  %vm1215_vm10 = vcmp.ge.f32.partialorder %v1004_v57, 0.0  ;;  %v1343_v28 = vmul.f32 0.2, %v1004_v57 }
 0x1a7   : > { %v1949_v55 = vmul.f32 %v3154_v49, %v3154_v49  ;;  %v3689_v32 = vsel %vm1191_vm9, %v932_v10, %v1319_v34  ;;  %vm1239_vm11 = vcmp.ge.f32.partialorder %v1076_v27, 0.0  ;;  %v1367_v18 = vmul.f32 0.2, %v1076_v27  ;;  %2538 = vmatmul.msk.f32.gmra.mxu3 %vm343_vm0, %v336_v12 }
 0x1a8   : > { %v1721_v25 = vadd.f32 %v1720_v21, %v1719_v7  ;;  %v2110_v13 = vadd.f32 %v2109_v8, %v2108_v41  ;;  %1575 = vst.msk [vmem:[%s2829_s14 + $0x1f0] sm:$0xff] %vm343_vm0, %v3689_v32  ;;  %v2115_v36 = vsel %vm343_vm0, %v1946_v5, 0.0  ;;  %v1726_v26 = vsel %vm343_vm0, %v3108_v61, 0.0 }
 0x1a9   : > { %v934_v7 = vpop.f32.mrf.mxu1  ;;  %v2117_v54 = vsel %vm343_vm0, %v1947_v29, 0.0  ;;  %v1078_v5 = vpop.f32.mrf.mxu3  ;;  %v1730_v61 = vsel %vm343_vm0, %v3154_v49, 0.0  ;;  %v3719_v29 = vld [vmem:[%s4326_s2] ss:$0 sm:$0xff]  ;;  %v1732_v49 = vsel %vm343_vm0, %v3177_v14, 0.0  ;;  %v1950_v12 = vmul.f32 %v3177_v14, %v3177_v14 }
 0x1aa   : > { %v1723_v0 = vadd.f32 %v1722_v42, %v1721_v25  ;;  %v2112_v4 = vadd.f32 %v2111_v47, %v2110_v13  ;;  %v3698_v47 = vsel %vm1215_vm10, %v1004_v57, %v1343_v28  ;;  %v3700_v42 = vsel %vm1239_vm11, %v1076_v27, %v1367_v18  ;;  %v1006_v41 = vpop.f32.mrf.mxu2 }
 0x1ab   : > { %1599 = vst.msk [vmem:[%s2829_s14 + $0x2b0] sm:$0xff] %vm343_vm0, %v3698_v47  ;;  %v2119_v25 = vsel %vm343_vm0, %v1948_v46, 0.0  ;;  %v2121_v13 = vsel %vm343_vm0, %v1949_v55, 0.0  ;;  %v935_v57 = vadd.f32 %v3221_v1, %v934_v7  ;;  %v1007_v34 = vadd.f32 %v3719_v29, %v1006_v41 }
 0x1ac   : > { %v1725_v8 = vadd.f32 %v1724_v60, %v1723_v0  ;;  %v2114_v21 = vadd.f32 %v2113_v50, %v2112_v4  ;;  %v1728_v50 = vsel %vm343_vm0, %v3131_v22, 0.0  ;;  %1623 = vst.msk [vmem:[%s2829_s14 + $0x370] sm:$0xff] %vm343_vm0, %v3700_v42  ;;  %v1079_v46 = vadd.f32 %v3719_v29, %v1078_v5 }
 0x1ad   : > { %vm1192_vm12 = vcmp.ge.f32.partialorder %v935_v57, 0.0  ;;  %v1320_v1 = vmul.f32 0.2, %v935_v57  ;;  %vm1216_vm13 = vcmp.ge.f32.partialorder %v1007_v34, 0.0  ;;  %v1344_v28 = vmul.f32 0.2, %v1007_v34 }
 0x1ae   : > { %v1727_v60 = vadd.f32 %v1726_v26, %v1725_v8  ;;  %v2116_v10 = vadd.f32 %v2115_v36, %v2114_v21  ;;  %v1951_v55 = vmul.f32 %v3200_v43, %v3200_v43  ;;  %vm1240_vm14 = vcmp.ge.f32.partialorder %v1079_v46, 0.0 }
 0x1af   : > { %v3729_v18 = vsel %vm1192_vm12, %v935_v57, %v1320_v1  ;;  %v1368_v8 = vmul.f32 0.2, %v1079_v46  ;;  %v1952_v21 = vmul.f32 %v3225_v9, %v3225_v9  ;;  %v2123_v26 = vsel %vm343_vm0, %v1950_v12, 0.0 }
 0x1b0   : > { %v2118_v27 = vadd.f32 %v2117_v54, %v2116_v10  ;;  %v1729_v22 = vadd.f32 %v1728_v50, %v1727_v60  ;;  %1576 = vst.msk [vmem:[%s2829_s14 + $0x1f8] sm:$0xff] %vm343_vm0, %v3729_v18  ;;  %v1734_v7 = vsel %vm343_vm0, %v3200_v43, 0.0  ;;  %v3739_v41 = vsel %vm1216_vm13, %v1007_v34, %v1344_v28 }
 0x1b1   : > { %v3741_v54 = vsel %vm1240_vm14, %v1079_v46, %v1368_v8  ;;  %1600 = vst.msk [vmem:[%s2829_s14 + $0x2b8] sm:$0xff] %vm343_vm0, %v3739_v41  ;;  %v1081_v5 = vpop.f32.mrf.mxu3  ;;  %v2127_v57 = vsel %vm343_vm0, %v1952_v21, 0.0  ;;  %v1738_v46 = vsel %vm343_vm0, %v3256_v48, 0.0  ;;  %v1740_v28 = vsel %vm343_vm0, %v3284_v19, 0.0 }
 0x1b2   : > { %v1731_v0 = vadd.f32 %v1730_v61, %v1729_v22  ;;  %v2120_v4 = vadd.f32 %v2119_v25, %v2118_v27  ;;  %v1009_v50 = vpop.f32.mrf.mxu2  ;;  %v2125_v25 = vsel %vm343_vm0, %v1951_v55, 0.0  ;;  %v1736_v61 = vsel %vm343_vm0, %v3225_v9, 0.0  ;;  %1624 = vst.msk [vmem:[%s2829_s14 + $0x378] sm:$0xff] %vm343_vm0, %v3741_v54 }
 0x1b3   : > { %v1010_v43 = vadd.f32 %v3719_v29, %v1009_v50  ;;  %v1082_v34 = vadd.f32 %v3719_v29, %v1081_v5  ;;  %v1954_v9 = vmul.f32 %v3284_v19, %v3284_v19  ;;  %v1955_v55 = vmul.f32 %v3312_v59, %v3312_v59 }
 0x1b4   : > { %v1733_v36 = vadd.f32 %v1732_v49, %v1731_v0  ;;  %v2122_v14 = vadd.f32 %v2121_v13, %v2120_v4  ;;  %v1953_v13 = vmul.f32 %v3256_v48, %v3256_v48  ;;  %v1956_v48 = vmul.f32 %v3340_v38, %v3340_v38 }
 0x1b5   : > { %vm1217_vm15 = vcmp.ge.f32.partialorder %v1010_v43, 0.0  ;;  %v1345_v49 = vmul.f32 0.2, %v1010_v43  ;;  %vm1241_vm1 = vcmp.ge.f32.partialorder %v1082_v34, 0.0  ;;  %v1369_v0 = vmul.f32 0.2, %v1082_v34 }
 0x1b6   : > { %v1735_v60 = vadd.f32 %v1734_v7, %v1733_v36  ;;  %v2124_v10 = vadd.f32 %v2123_v26, %v2122_v14  ;;  %v2129_v4 = vsel %vm343_vm0, %v1953_v13, 0.0  ;;  %v2131_v14 = vsel %vm343_vm0, %v1954_v9, 0.0 }
 0x1b7   : > { %v3766_v8 = vsel %vm1217_vm15, %v1010_v43, %v1345_v49  ;;  %v1742_v26 = vsel %vm343_vm0, %v3312_v59, 0.0  ;;  %v3776_v7 = vsel %vm1241_vm1, %v1082_v34, %v1369_v0  ;;  %v1744_v5 = vsel %vm343_vm0, %v3340_v38, 0.0 }
 0x1b8   : > { %v1737_v27 = vadd.f32 %v1736_v61, %v1735_v60  ;;  %v2126_v22 = vadd.f32 %v2125_v25, %v2124_v10  ;;  %1601 = vst.msk [vmem:[%s2829_s14 + $0x2c0] sm:$0xff] %vm343_vm0, %v3766_v8  ;;  %v2133_v10 = vsel %vm343_vm0, %v1955_v55, 0.0  ;;  %v1957_v25 = vmul.f32 %v3368_v30, %v3368_v30 }
 0x1b9   : > { %1625 = vst.msk [vmem:[%s2829_s14 + $0x380] sm:$0xff] %vm343_vm0, %v3776_v7  ;;  %v1084_v13 = vpop.f32.mrf.mxu3  ;;  %v2135_v59 = vsel %vm343_vm0, %v1956_v48, 0.0  ;;  %v1958_v34 = vmul.f32 %v3396_v31, %v3396_v31  ;;  %v1959_v0 = vmul.f32 %v3431_v3, %v3431_v3 }
 0x1ba   : > { %v1739_v12 = vadd.f32 %v1738_v46, %v1737_v27  ;;  %v2128_v1 = vadd.f32 %v2127_v57, %v2126_v22  ;;  %v1012_v60 = vpop.f32.mrf.mxu2  ;;  %v1085_v27 = vadd.f32 %v3719_v29, %v1084_v13  ;;  %v1746_v22 = vsel %vm343_vm0, %v3368_v30, 0.0 }
 0x1bb   : > { %v1013_v61 = vadd.f32 %v3719_v29, %v1012_v60  ;;  %v2139_v48 = vsel %vm343_vm0, %v1958_v34, 0.0  ;;  %v1961_v60 = vmul.f32 %v3503_v58, %v3503_v58 }
 0x1bc   : > { %v1741_v21 = vadd.f32 %v1740_v28, %v1739_v12  ;;  %v2130_v36 = vadd.f32 %v2129_v4, %v2128_v1  ;;  %vm1242_vm3 = vcmp.ge.f32.partialorder %v1085_v27, 0.0  ;;  %v1370_v49 = vmul.f32 0.2, %v1085_v27 }
 0x1bd   : > { %vm1218_vm2 = vcmp.ge.f32.partialorder %v1013_v61, 0.0  ;;  %v1346_v38 = vmul.f32 0.2, %v1013_v61  ;;  %v2137_v12 = vsel %vm343_vm0, %v1957_v25, 0.0  ;;  %v1748_v1 = vsel %vm343_vm0, %v3396_v31, 0.0 }
 0x1be   : > { %v1743_v19 = vadd.f32 %v1742_v26, %v1741_v21  ;;  %v2132_v50 = vadd.f32 %v2131_v14, %v2130_v36  ;;  %v1960_v28 = vmul.f32 %v3470_v20, %v3470_v20  ;;  %v1750_v21 = vsel %vm343_vm0, %v3431_v3, 0.0 }
 0x1bf   : > { %v3798_v4 = vsel %vm1218_vm2, %v1013_v61, %v1346_v38  ;;  %v3808_v36 = vsel %vm1242_vm3, %v1085_v27, %v1370_v49  ;;  %v2145_v34 = vsel %vm343_vm0, %v1961_v60, 0.0  ;;  %v1756_v38 = vsel %vm343_vm0, %v3535_v40, 0.0 }
 0x1c0   : > { %v1745_v43 = vadd.f32 %v1744_v5, %v1743_v19  ;;  %v2134_v57 = vadd.f32 %v2133_v10, %v2132_v50  ;;  %1602 = vst.msk [vmem:[%s2829_s14 + $0x2c8] sm:$0xff] %vm343_vm0, %v3798_v4  ;;  %v2141_v19 = vsel %vm343_vm0, %v1959_v0, 0.0  ;;  %v1752_v50 = vsel %vm343_vm0, %v3470_v20, 0.0 }
 0x1c1   : > { %1626 = vst.msk [vmem:[%s2829_s14 + $0x388] sm:$0xff] %vm343_vm0, %v3808_v36  ;;  %v1087_v5 = vpop.f32.mrf.mxu3  ;;  %v2143_v61 = vsel %vm343_vm0, %v1960_v28, 0.0  ;;  %v1758_v0 = vsel %vm343_vm0, %v3564_v35, 0.0 }
 0x1c2   : > { %v1747_v46 = vadd.f32 %v1746_v22, %v1745_v43  ;;  %v2136_v9 = vadd.f32 %v2135_v59, %v2134_v57  ;;  %v1015_v26 = vpop.f32.mrf.mxu2  ;;  %v1088_v13 = vadd.f32 %v3719_v29, %v1087_v5  ;;  %v1754_v59 = vsel %vm343_vm0, %v3503_v58, 0.0 }
 0x1c3   : > { %v1016_v10 = vadd.f32 %v3719_v29, %v1015_v26  ;;  %v1962_v43 = vmul.f32 %v3535_v40, %v3535_v40  ;;  %v1966_v5 = vmul.f32 %v3689_v32, %v3689_v32 }
 0x1c4   : > { %v1749_v30 = vadd.f32 %v1748_v1, %v1747_v46  ;;  %v2138_v55 = vadd.f32 %v2137_v12, %v2136_v9  ;;  %vm1243_vm5 = vcmp.ge.f32.partialorder %v1088_v13, 0.0  ;;  %v1371_v22 = vmul.f32 0.2, %v1088_v13 }
 0x1c5   : > { %vm1219_vm4 = vcmp.ge.f32.partialorder %v1016_v10, 0.0  ;;  %v1347_v20 = vmul.f32 0.2, %v1016_v10  ;;  %v1963_v46 = vmul.f32 %v3564_v35, %v3564_v35  ;;  %v1964_v12 = vmul.f32 %v3602_v6, %v3602_v6 }
 0x1c6   : > { %v1751_v31 = vadd.f32 %v1750_v21, %v1749_v30  ;;  %v2140_v14 = vadd.f32 %v2139_v48, %v2138_v55  ;;  %v2147_v1 = vsel %vm343_vm0, %v1962_v43, 0.0  ;;  %v3840_v30 = vsel %vm1243_vm5, %v1088_v13, %v1371_v22 }
 0x1c7   : > { %v3830_v9 = vsel %vm1219_vm4, %v1016_v10, %v1347_v20  ;;  %1627 = vst.msk [vmem:[%s2829_s14 + $0x390] sm:$0xff] %vm343_vm0, %v3840_v30  ;;  %v2149_v48 = vsel %vm343_vm0, %v1963_v46, 0.0  ;;  %v1760_v21 = vsel %vm343_vm0, %v3602_v6, 0.0  ;;  %v1762_v10 = vsel %vm343_vm0, %v3648_v39, 0.0 }
 0x1c8   : > { %v1753_v3 = vadd.f32 %v1752_v50, %v1751_v31  ;;  %v2142_v25 = vadd.f32 %v2141_v19, %v2140_v14  ;;  %1603 = vst.msk [vmem:[%s2829_s14 + $0x2d0] sm:$0xff] %vm343_vm0, %v3830_v9  ;;  %v1965_v31 = vmul.f32 %v3648_v39, %v3648_v39  ;;  %v2151_v50 = vsel %vm343_vm0, %v1964_v12, 0.0 }
 0x1c9   : > { %v1090_v26 = vpop.f32.mrf.mxu3  ;;  %v1967_v43 = vmul.f32 %v3729_v18, %v3729_v18  ;;  %v1968_v39 = vmul.f32 %v3039_v51, %v3039_v51  ;;  %v2155_v22 = vsel %vm343_vm0, %v1966_v5, 0.0  ;;  %v1969_v12 = vmul.f32 %v3064_v11, %v3064_v11 }
 0x1ca   : > { %v2144_v57 = vadd.f32 %v2143_v61, %v2142_v25  ;;  %v1755_v27 = vadd.f32 %v1754_v59, %v1753_v3  ;;  %v1018_v55 = vpop.f32.mrf.mxu2  ;;  %v1091_v60 = vadd.f32 %v3719_v29, %v1090_v26  ;;  %v2153_v13 = vsel %vm343_vm0, %v1965_v31, 0.0 }
 0x1cb   : > { %v1019_v14 = vadd.f32 %v3719_v29, %v1018_v55  ;;  %v1764_v59 = vsel %vm343_vm0, %v3689_v32, 0.0 }
 0x1cc   : > { %v2146_v58 = vadd.f32 %v2145_v34, %v2144_v57  ;;  %v1757_v49 = vadd.f32 %v1756_v38, %v1755_v27  ;;  %vm1244_vm7 = vcmp.ge.f32.partialorder %v1091_v60, 0.0  ;;  %v1372_v61 = vmul.f32 0.2, %v1091_v60 }
 0x1cd   : > { %vm1220_vm6 = vcmp.ge.f32.partialorder %v1019_v14, 0.0  ;;  %v1348_v6 = vmul.f32 0.2, %v1019_v14  ;;  %v1766_v34 = vsel %vm343_vm0, %v3729_v18, 0.0  ;;  %v2159_v18 = vsel %vm343_vm0, %v1968_v39, 0.0 }
 0x1ce   : > { %v2148_v40 = vadd.f32 %v2147_v1, %v2146_v58  ;;  %v1759_v28 = vadd.f32 %v1758_v0, %v1757_v49  ;;  %v3872_v38 = vsel %vm1244_vm7, %v1091_v60, %v1372_v61  ;;  %v1768_v49 = vsel %vm343_vm0, %v3039_v51, 0.0 }
 0x1cf   : > { %v3862_v20 = vsel %vm1220_vm6, %v1019_v14, %v1348_v6  ;;  %1628 = vst.msk [vmem:[%s2829_s14 + $0x398] sm:$0xff] %vm343_vm0, %v3872_v38  ;;  %v2157_v1 = vsel %vm343_vm0, %v1967_v43, 0.0  ;;  %v1970_v51 = vmul.f32 %v3089_v37, %v3089_v37  ;;  %v1971_v60 = vmul.f32 %v3114_v62, %v3114_v62 }
 0x1d0   : > { %v2150_v35 = vadd.f32 %v2149_v48, %v2148_v40  ;;  %v1761_v19 = vadd.f32 %v1760_v21, %v1759_v28  ;;  %1604 = vst.msk [vmem:[%s2829_s14 + $0x2d8] sm:$0xff] %vm343_vm0, %v3862_v20  ;;  %v1770_v21 = vsel %vm343_vm0, %v3064_v11, 0.0  ;;  %v1972_v11 = vmul.f32 %v3137_v23, %v3137_v23 }
 0x1d1   : > { %v1093_v40 = vpop.f32.mrf.mxu3  ;;  %v2165_v43 = vsel %vm343_vm0, %v1971_v60, 0.0  ;;  %v1776_v39 = vsel %vm343_vm0, %v3137_v23, 0.0  ;;  %v1977_v60 = vmul.f32 %v3263_v56, %v3263_v56 }
 0x1d2   : > { %v2152_v3 = vadd.f32 %v2151_v50, %v2150_v35  ;;  %v1763_v25 = vadd.f32 %v1762_v10, %v1761_v19  ;;  %v1021_v58 = vpop.f32.mrf.mxu2  ;;  %v1094_v48 = vadd.f32 %v3719_v29, %v1093_v40  ;;  %v2161_v19 = vsel %vm343_vm0, %v1969_v12, 0.0 }
 0x1d3   : > { %v1022_v0 = vadd.f32 %v3719_v29, %v1021_v58  ;;  %v1772_v50 = vsel %vm343_vm0, %v3089_v37, 0.0  ;;  %v1778_v58 = vsel %vm343_vm0, %v3160_v52, 0.0 }
 0x1d4   : > { %v2154_v57 = vadd.f32 %v2153_v13, %v2152_v3  ;;  %v1765_v27 = vadd.f32 %v1764_v59, %v1763_v25  ;;  %vm1245_vm9 = vcmp.ge.f32.partialorder %v1094_v48, 0.0  ;;  %v1373_v35 = vmul.f32 0.2, %v1094_v48 }
 0x1d5   : > { %vm1221_vm8 = vcmp.ge.f32.partialorder %v1022_v0, 0.0  ;;  %v1349_v31 = vmul.f32 0.2, %v1022_v0  ;;  %v2163_v3 = vsel %vm343_vm0, %v1970_v51, 0.0  ;;  %v1774_v25 = vsel %vm343_vm0, %v3114_v62, 0.0 }
 0x1d6   : > { %v2156_v32 = vadd.f32 %v2155_v22, %v2154_v57  ;;  %v1767_v46 = vadd.f32 %v1766_v34, %v1765_v27  ;;  %v3904_v61 = vsel %vm1245_vm9, %v1094_v48, %v1373_v35  ;;  %v1973_v57 = vmul.f32 %v3160_v52, %v3160_v52 }
 0x1d7   : > { %v3894_v10 = vsel %vm1221_vm8, %v1022_v0, %v1349_v31  ;;  %1629 = vst.msk [vmem:[%s2829_s14 + $0x3a0] sm:$0xff] %vm343_vm0, %v3904_v61  ;;  %v2167_v62 = vsel %vm343_vm0, %v1972_v11, 0.0  ;;  %v1976_v52 = vmul.f32 %v3232_v16, %v3232_v16  ;;  %v1782_v31 = vsel %vm343_vm0, %v3206_v44, 0.0 }
 0x1d8   : > { %v1769_v28 = vadd.f32 %v1768_v49, %v1767_v46  ;;  %v2158_v55 = vadd.f32 %v2157_v1, %v2156_v32  ;;  %1605 = vst.msk [vmem:[%s2829_s14 + $0x2e0] sm:$0xff] %vm343_vm0, %v3894_v10  ;;  %v1974_v49 = vmul.f32 %v3183_v15, %v3183_v15  ;;  %v2169_v40 = vsel %vm343_vm0, %v1973_v57, 0.0 }
 0x1d9   : > { %v1096_v22 = vpop.f32.mrf.mxu3  ;;  %v2177_v57 = vsel %vm343_vm0, %v1977_v60, 0.0  ;;  %vm1902_vm9 = vcmask 122880  }
 0x1da   : > { %v1771_v14 = vadd.f32 %v1770_v21, %v1769_v28  ;;  %v2160_v26 = vadd.f32 %v2159_v18, %v2158_v55  ;;  %v1024_v59 = vpop.f32.mrf.mxu2  ;;  %v1097_v46 = vadd.f32 %v3719_v29, %v1096_v22  ;;  %v1780_v18 = vsel %vm343_vm0, %v3183_v15, 0.0 }
 0x1db   : > { %v1025_v27 = vadd.f32 %v3719_v29, %v1024_v59  ;;  %v1975_v28 = vmul.f32 %v3206_v44, %v3206_v44  ;;  %v2171_v51 = vsel %vm343_vm0, %v1974_v49, 0.0  ;;  %v2175_v44 = vsel %vm343_vm0, %v1976_v52, 0.0 }
 0x1dc   : > { %v1773_v5 = vadd.f32 %v1772_v50, %v1771_v14  ;;  %v2162_v6 = vadd.f32 %v2161_v19, %v2160_v26  ;;  %vm1246_vm11 = vcmp.ge.f32.partialorder %v1097_v46, 0.0  ;;  %v1374_v0 = vmul.f32 0.2, %v1097_v46 }
 0x1dd   : > { %vm1222_vm10 = vcmp.ge.f32.partialorder %v1025_v27, 0.0  ;;  %v1350_v23 = vmul.f32 0.2, %v1025_v27  ;;  %v2173_v19 = vsel %vm343_vm0, %v1975_v28, 0.0  ;;  %v1784_v50 = vsel %vm343_vm0, %v3232_v16, 0.0 }
 0x1de   : > { %v1775_v37 = vadd.f32 %v1774_v25, %v1773_v5  ;;  %v2164_v13 = vadd.f32 %v2163_v3, %v2162_v6  ;;  %v3936_v14 = vsel %vm1246_vm11, %v1097_v46, %v1374_v0  ;;  %v1979_v22 = vmul.f32 %v3319_v2, %v3319_v2 }
 0x1df   : > { %v3926_v55 = vsel %vm1222_vm10, %v1025_v27, %v1350_v23  ;;  %1630 = vst.msk [vmem:[%s2829_s14 + $0x3a8] sm:$0xff] %vm343_vm0, %v3936_v14  ;;  %v1788_v27 = vsel %vm343_vm0, %v3291_v24, 0.0  ;;  %v1790_v49 = vsel %vm343_vm0, %v3319_v2, 0.0 }
 0x1e0   : > { %v1777_v34 = vadd.f32 %v1776_v39, %v1775_v37  ;;  %v2166_v32 = vadd.f32 %v2165_v43, %v2164_v13  ;;  %1606 = vst.msk [vmem:[%s2829_s14 + $0x2e8] sm:$0xff] %vm343_vm0, %v3926_v55  ;;  %v1786_v37 = vsel %vm343_vm0, %v3263_v56, 0.0  ;;  %v1978_v13 = vmul.f32 %v3291_v24, %v3291_v24  ;;  %v4388_v56 = vld [vmem:[#allocation9_spill] sm:$0xff] }
 0x1e1   : > { %v1099_v5 = vpop.f32.mrf.mxu3  ;;  %v2181_v0 = vsel %vm343_vm0, %v1979_v22, 0.0 }
 0x1e2   : > { %v1779_v12 = vadd.f32 %v1778_v58, %v1777_v34  ;;  %v2168_v1 = vadd.f32 %v2167_v62, %v2166_v32  ;;  %v1027_v35 = vpop.f32.mrf.mxu2  ;;  %v1100_v25 = vadd.f32 %v3719_v29, %v1099_v5  ;;  %v1980_v34 = vmul.f32 %v4388_v56, %v4388_v56 }
 0x1e3   : > { %v1028_v11 = vadd.f32 %v3719_v29, %v1027_v35  ;;  %v2179_v58 = vsel %vm343_vm0, %v1978_v13, 0.0 }
 0x1e4   : > { %v1781_v48 = vadd.f32 %v1780_v18, %v1779_v12  ;;  %v2170_v21 = vadd.f32 %v2169_v40, %v2168_v1  ;;  %vm1247_vm13 = vcmp.ge.f32.partialorder %v1100_v25, 0.0  ;;  %v1375_v39 = vmul.f32 0.2, %v1100_v25  ;;  %v4389_v18 = vld [vmem:[#allocation11_spill] sm:$0xff] }
 0x1e5   : > { %vm1223_vm12 = vcmp.ge.f32.partialorder %v1028_v11, 0.0  ;;  %v1351_v16 = vmul.f32 0.2, %v1028_v11  ;;  %v1792_v40 = vsel %vm343_vm0, %v4388_v56, 0.0  ;;  %v1981_v28 = vmul.f32 %v4389_v18, %v4389_v18 }
 0x1e6   : > { %v1783_v15 = vadd.f32 %v1782_v31, %v1781_v48  ;;  %v2172_v26 = vadd.f32 %v2171_v51, %v2170_v21  ;;  %v3968_v23 = vsel %vm1247_vm13, %v1100_v25, %v1375_v39  ;;  %v2183_v2 = vsel %vm343_vm0, %v1980_v34, 0.0  ;;  %v4392_v34 = vld [vmem:[#allocation18_spill] sm:$0xff] }
 0x1e7   : > { %v3958_v62 = vsel %vm1223_vm12, %v1028_v11, %v1351_v16  ;;  %1631 = vst.msk [vmem:[%s2829_s14 + $0x3b0] sm:$0xff] %vm343_vm0, %v3968_v23  ;;  %v2185_v5 = vsel %vm343_vm0, %v1981_v28, 0.0  ;;  %v1800_v56 = vsel %vm343_vm0, %v3472_v45, 0.0 }
 0x1e8   : > { %v1785_v6 = vadd.f32 %v1784_v50, %v1783_v15  ;;  %v2174_v3 = vadd.f32 %v2173_v19, %v2172_v26  ;;  %1607 = vst.msk [vmem:[%s2829_s14 + $0x2f0] sm:$0xff] %vm343_vm0, %v3958_v62  ;;  %v1794_v15 = vsel %vm343_vm0, %v4389_v18, 0.0  ;;  %v4390_v26 = vld [vmem:[#allocation13_spill] sm:$0xff] }
 0x1e9   : > { %v1102_v48 = vpop.f32.mrf.mxu3  ;;  %v1982_v35 = vmul.f32 %v4390_v26, %v4390_v26 }
 0x1ea   : > { %v1787_v59 = vadd.f32 %v1786_v37, %v1785_v6  ;;  %v2176_v43 = vadd.f32 %v2175_v44, %v2174_v3  ;;  %v1030_v1 = vpop.f32.mrf.mxu2  ;;  %v1103_v31 = vadd.f32 %v3719_v29, %v1102_v48  ;;  %v1796_v44 = vsel %vm343_vm0, %v4390_v26, 0.0  ;;  %v4391_v6 = vld [vmem:[#allocation15_spill] sm:$0xff] }
 0x1eb   : > { %v1031_v52 = vadd.f32 %v3719_v29, %v1030_v1  ;;  %v1983_v3 = vmul.f32 %v4391_v6, %v4391_v6  ;;  %v2187_v16 = vsel %vm343_vm0, %v1982_v35, 0.0  ;;  %v1802_v1 = vsel %vm343_vm0, %v4392_v34, 0.0 }
 0x1ec   : > { %v1789_v32 = vadd.f32 %v1788_v27, %v1787_v59  ;;  %v2178_v46 = vadd.f32 %v2177_v57, %v2176_v43  ;;  %vm1248_vm15 = vcmp.ge.f32.partialorder %v1103_v31, 0.0  ;;  %v1376_v11 = vmul.f32 0.2, %v1103_v31 }
 0x1ed   : > { %vm1224_vm14 = vcmp.ge.f32.partialorder %v1031_v52, 0.0  ;;  %v1352_v19 = vmul.f32 0.2, %v1031_v52  ;;  %v1798_v59 = vsel %vm343_vm0, %v4391_v6, 0.0  ;;  %v1984_v43 = vmul.f32 %v3472_v45, %v3472_v45 }
 0x1ee   : > { %v2180_v24 = vadd.f32 %v2179_v58, %v2178_v46  ;;  %v1791_v12 = vadd.f32 %v1790_v49, %v1789_v32  ;;  %v4000_v39 = vsel %vm1248_vm15, %v1103_v31, %v1376_v11  ;;  %v2189_v22 = vsel %vm343_vm0, %v1983_v3, 0.0 }
 0x1ef   : > { %v3990_v25 = vsel %vm1224_vm14, %v1031_v52, %v1352_v19  ;;  %1632 = vst.msk [vmem:[%s2829_s14 + $0x3b8] sm:$0xff] %vm343_vm0, %v4000_v39  ;;  %v1985_v32 = vmul.f32 %v4392_v34, %v4392_v34  ;;  %v1988_v19 = vmul.f32 %v3612_v33, %v3612_v33  ;;  %v1991_v34 = vmul.f32 %v3739_v41, %v3739_v41 }
 0x1f0   : > { %v1793_v21 = vadd.f32 %v1792_v40, %v1791_v12  ;;  %v2182_v51 = vadd.f32 %v2181_v0, %v2180_v24  ;;  %1608 = vst.msk [vmem:[%s2829_s14 + $0x2f8] sm:$0xff] %vm343_vm0, %v3990_v25  ;;  %v2191_v12 = vsel %vm343_vm0, %v1984_v43, 0.0  ;;  %v4393_v0 = vld [vmem:[#allocation20_spill] sm:$0xff]  ;;  %v1990_v43 = vmul.f32 %v3698_v47, %v3698_v47 }
 0x1f1   : > { %v1105_v46 = vpop.f32.mrf.mxu3  ;;  %v1986_v40 = vmul.f32 %v4393_v0, %v4393_v0  ;;  %v2193_v52 = vsel %vm343_vm0, %v1985_v32, 0.0  ;;  %v1804_v48 = vsel %vm343_vm0, %v4393_v0, 0.0  ;;  %v1816_v0 = vsel %vm343_vm0, %v3766_v8, 0.0 }
 0x1f2   : > { %v1795_v50 = vadd.f32 %v1794_v15, %v1793_v21  ;;  %v2184_v60 = vadd.f32 %v2183_v2, %v2182_v51  ;;  %v1106_v24 = vadd.f32 %v3719_v29, %v1105_v46  ;;  %v4394_v2 = vld [vmem:[#allocation22_spill] sm:$0xff] }
 0x1f3   : > { %v1987_v21 = vmul.f32 %v4394_v2, %v4394_v2  ;;  %v2195_v26 = vsel %vm343_vm0, %v1986_v40, 0.0  ;;  %v1806_v35 = vsel %vm343_vm0, %v4394_v2, 0.0  ;;  %v1993_v40 = vmul.f32 %v3798_v4, %v3798_v4 }
 0x1f4   : > { %v1797_v37 = vadd.f32 %v1796_v44, %v1795_v50  ;;  %v2186_v13 = vadd.f32 %v2185_v5, %v2184_v60  ;;  %vm1249_vm1 = vcmp.ge.f32.partialorder %v1106_v24, 0.0  ;;  %v1377_v45 = vmul.f32 0.2, %v1106_v24 }
 0x1f5   : > { %v2197_v11 = vsel %vm343_vm0, %v1987_v21, 0.0  ;;  %v1808_v5 = vsel %vm343_vm0, %v3612_v33, 0.0  ;;  %v1989_v44 = vmul.f32 %v3661_v63, %v3661_v63  ;;  %v1994_v2 = vmul.f32 %v3830_v9, %v3830_v9 }
 0x1f6   : > { %v1799_v57 = vadd.f32 %v1798_v59, %v1797_v37  ;;  %v2188_v27 = vadd.f32 %v2187_v16, %v2186_v13  ;;  %v4021_v15 = vsel %vm1249_vm1, %v1106_v24, %v1377_v45  ;;  %v2199_v16 = vsel %vm343_vm0, %v1988_v19, 0.0 }
 0x1f7   : > { %1633 = vst.msk [vmem:[%s2829_s14 + $0x3c0] sm:$0xff] %vm343_vm0, %v4021_v15  ;;  %v1810_v59 = vsel %vm343_vm0, %v3661_v63, 0.0  ;;  %v2203_v63 = vsel %vm343_vm0, %v1990_v43, 0.0  ;;  %v1992_v24 = vmul.f32 %v3766_v8, %v3766_v8 }
 0x1f8   : > { %v1801_v58 = vadd.f32 %v1800_v56, %v1799_v57  ;;  %v2190_v49 = vadd.f32 %v2189_v22, %v2188_v27  ;;  %v2201_v22 = vsel %vm343_vm0, %v1989_v44, 0.0  ;;  %v1812_v56 = vsel %vm343_vm0, %v3698_v47, 0.0 }
 0x1f9   : > { %v1108_v6 = vpop.f32.mrf.mxu3 }
 0x1fa   : > { %v1803_v18 = vadd.f32 %v1802_v1, %v1801_v58  ;;  %v2192_v28 = vadd.f32 %v2191_v12, %v2190_v49  ;;  %v1109_v13 = vadd.f32 %v3719_v29, %v1108_v6  ;;  %v1814_v49 = vsel %vm343_vm0, %v3739_v41, 0.0 }
 0x1fb   : > { %v2205_v1 = vsel %vm343_vm0, %v1991_v34, 0.0  ;;  %v1828_v34 = vsel %vm343_vm0, %v3958_v62, 0.0 }
 0x1fc   : > { %v1805_v51 = vadd.f32 %v1804_v48, %v1803_v18  ;;  %v2194_v31 = vadd.f32 %v2193_v52, %v2192_v28  ;;  %vm1250_vm2 = vcmp.ge.f32.partialorder %v1109_v13, 0.0  ;;  %v1378_v33 = vmul.f32 0.2, %v1109_v13 }
 0x1fd   : > { %v2207_v52 = vsel %vm343_vm0, %v1992_v24, 0.0  ;;  %v1818_v48 = vsel %vm343_vm0, %v3798_v4, 0.0  ;;  %v2211_v4 = vsel %vm343_vm0, %v1994_v2, 0.0 }
 0x1fe   : > { %v1807_v50 = vadd.f32 %v1806_v35, %v1805_v51  ;;  %v2196_v60 = vadd.f32 %v2195_v26, %v2194_v31  ;;  %v4047_v58 = vsel %vm1250_vm2, %v1109_v13, %v1378_v33  ;;  %v2209_v31 = vsel %vm343_vm0, %v1993_v40, 0.0  ;;  %v4396_v40 = vld [vmem:[#allocation6_spill] sm:$0xff] }
 0x1ff   : > { %1634 = vst.msk [vmem:[%s2829_s14 + $0x3c8] sm:$0xff] %vm343_vm0, %v4047_v58  ;;  %v1820_v26 = vsel %vm343_vm0, %v3830_v9, 0.0  ;;  %v1995_v35 = vmul.f32 %v3862_v20, %v3862_v20  ;;  %v1834_v2 = vsel %vm343_vm0, %v4396_v40, 0.0 }
 0x200   : > { %v1809_v3 = vadd.f32 %v1808_v5, %v1807_v50  ;;  %v2198_v37 = vadd.f32 %v2197_v11, %v2196_v60  ;;  %v1822_v11 = vsel %vm343_vm0, %v3862_v20, 0.0  ;;  %v1996_v5 = vmul.f32 %v3894_v10, %v3894_v10 }
 0x201   : > { %v1111_v18 = vpop.f32.mrf.mxu3  ;;  %v2213_v6 = vsel %vm343_vm0, %v1995_v35, 0.0 }
 0x202   : > { %v1811_v57 = vadd.f32 %v1810_v59, %v1809_v3  ;;  %v2200_v27 = vadd.f32 %v2199_v16, %v2198_v37  ;;  %v1112_v41 = vadd.f32 %v3719_v29, %v1111_v18  ;;  %v1824_v3 = vsel %vm343_vm0, %v3894_v10, 0.0 }
 0x203   : > { %v1997_v37 = vmul.f32 %v3926_v55, %v3926_v55  ;;  %v2215_v43 = vsel %vm343_vm0, %v1996_v5, 0.0  ;;  %v2001_v18 = vmul.f32 %v4396_v40, %v4396_v40 }
 0x204   : > { %v1813_v32 = vadd.f32 %v1812_v56, %v1811_v57  ;;  %v2202_v46 = vadd.f32 %v2201_v22, %v2200_v27  ;;  %vm1251_vm3 = vcmp.ge.f32.partialorder %v1112_v41, 0.0  ;;  %v1379_v8 = vmul.f32 0.2, %v1112_v41 }
 0x205   : > { %v1826_v57 = vsel %vm343_vm0, %v3926_v55, 0.0  ;;  %v1998_v27 = vmul.f32 %v3958_v62, %v3958_v62  ;;  %v2217_v56 = vsel %vm343_vm0, %v1997_v37, 0.0  ;;  %v4395_v55 = vld [vmem:[#allocation5_spill] sm:$0xff]  ;;  %v2225_v35 = vsel %vm343_vm0, %v2001_v18, 0.0 }
 0x206   : > { %v1815_v12 = vadd.f32 %v1814_v49, %v1813_v32  ;;  %v2204_v47 = vadd.f32 %v2203_v63, %v2202_v46  ;;  %v4073_v60 = vsel %vm1251_vm3, %v1112_v41, %v1379_v8  ;;  %v1999_v32 = vmul.f32 %v3990_v25, %v3990_v25 }
 0x207   : > { %1635 = vst.msk [vmem:[%s2829_s14 + $0x3d0] sm:$0xff] %vm343_vm0, %v4073_v60  ;;  %v2000_v24 = vmul.f32 %v4395_v55, %v4395_v55 }
 0x208   : > { %v2206_v28 = vadd.f32 %v2205_v1, %v2204_v47  ;;  %v1817_v45 = vadd.f32 %v1816_v0, %v1815_v12  ;;  %v2219_v12 = vsel %vm343_vm0, %v1998_v27, 0.0  ;;  %v1830_v47 = vsel %vm343_vm0, %v3990_v25, 0.0 }
 0x209   : > { %v1114_v13 = vpop.f32.mrf.mxu3  ;;  %v1832_v0 = vsel %vm343_vm0, %v4395_v55, 0.0  ;;  %v2223_v25 = vsel %vm343_vm0, %v2000_v24, 0.0 }
 0x20a   : > { %v2208_v21 = vadd.f32 %v2207_v52, %v2206_v28  ;;  %v1819_v51 = vadd.f32 %v1818_v48, %v1817_v45  ;;  %v1115_v20 = vadd.f32 %v3719_v29, %v1114_v13  ;;  %v2221_v28 = vsel %vm343_vm0, %v1999_v32, 0.0  ;;  %v4401_v32 = vld [vmem:[#allocation14_spill] sm:$0xff] }
 0x20c   : > { %v2210_v19 = vadd.f32 %v2209_v31, %v2208_v21  ;;  %v1821_v50 = vadd.f32 %v1820_v26, %v1819_v51  ;;  %vm1252_vm4 = vcmp.ge.f32.partialorder %v1115_v20, 0.0  ;;  %v1380_v10 = vmul.f32 0.2, %v1115_v20  ;;  %v4397_v21 = vld [vmem:[#allocation7_spill] sm:$0xff] }
 0x20d   : > { %v2002_v51 = vmul.f32 %v4397_v21, %v4397_v21 }
 0x20e   : > { %v2212_v44 = vadd.f32 %v2211_v4, %v2210_v19  ;;  %v1823_v9 = vadd.f32 %v1822_v11, %v1821_v50  ;;  %v4099_v49 = vsel %vm1252_vm4, %v1115_v20, %v1380_v10  ;;  %v1836_v19 = vsel %vm343_vm0, %v4397_v21, 0.0  ;;  %v4398_v50 = vld [vmem:[#allocation8_spill] sm:$0xff] }
 0x20f   : > { %1636 = vst.msk [vmem:[%s2829_s14 + $0x3d8] sm:$0xff] %vm343_vm0, %v4099_v49  ;;  %v2003_v4 = vmul.f32 %v4398_v50, %v4398_v50 }
 0x210   : > { %v2214_v16 = vadd.f32 %v2213_v6, %v2212_v44  ;;  %v1825_v59 = vadd.f32 %v1824_v3, %v1823_v9  ;;  %v2227_v9 = vsel %vm343_vm0, %v2002_v51, 0.0  ;;  %v1838_v6 = vsel %vm343_vm0, %v4398_v50, 0.0  ;;  %v4399_v3 = vld [vmem:[#allocation10_spill] sm:$0xff]  ;;  %v4404_v51 = vld [vmem:[#allocation19_spill] sm:$0xff] }
 0x211   : > { %v1117_v45 = vpop.f32.mrf.mxu3  ;;  %v2004_v37 = vmul.f32 %v4399_v3, %v4399_v3  ;;  %v1840_v20 = vsel %vm343_vm0, %v4399_v3, 0.0 }
 0x212   : > { %v2216_v33 = vadd.f32 %v2215_v43, %v2214_v16  ;;  %v1827_v22 = vadd.f32 %v1826_v57, %v1825_v59  ;;  %v1118_v48 = vadd.f32 %v3719_v29, %v1117_v45  ;;  %v2229_v59 = vsel %vm343_vm0, %v2003_v4, 0.0  ;;  %v4400_v43 = vld [vmem:[#allocation12_spill] sm:$0xff] }
 0x213   : > { %v2005_v57 = vmul.f32 %v4400_v43, %v4400_v43  ;;  %v1850_v4 = vsel %vm343_vm0, %v4404_v51, 0.0 }
 0x214   : > { %v2218_v46 = vadd.f32 %v2217_v56, %v2216_v33  ;;  %v1829_v63 = vadd.f32 %v1828_v34, %v1827_v22  ;;  %vm1253_vm5 = vcmp.ge.f32.partialorder %v1118_v48, 0.0  ;;  %v1381_v26 = vmul.f32 0.2, %v1118_v48 }
 0x215   : > { %v2231_v56 = vsel %vm343_vm0, %v2004_v37, 0.0  ;;  %v1842_v34 = vsel %vm343_vm0, %v4400_v43, 0.0 }
 0x216   : > { %v2220_v1 = vadd.f32 %v2219_v12, %v2218_v46  ;;  %v1831_v62 = vadd.f32 %v1830_v47, %v1829_v63  ;;  %v4125_v44 = vsel %vm1253_vm5, %v1118_v48, %v1381_v26  ;;  %v2006_v46 = vmul.f32 %v4401_v32, %v4401_v32 }
 0x217   : > { %1637 = vst.msk [vmem:[%s2829_s14 + $0x3e0] sm:$0xff] %vm343_vm0, %v4125_v44  ;;  %v2233_v12 = vsel %vm343_vm0, %v2005_v57, 0.0  ;;  %v1844_v47 = vsel %vm343_vm0, %v4401_v32, 0.0  ;;  %v1856_v32 = vsel %vm343_vm0, %v3625_v53, 0.0 }
 0x218   : > { %v1833_v41 = vadd.f32 %v1832_v0, %v1831_v62  ;;  %v2222_v52 = vadd.f32 %v2221_v28, %v2220_v1  ;;  %v4402_v1 = vld [vmem:[#allocation16_spill] sm:$0xff]  ;;  %v2235_v28 = vsel %vm343_vm0, %v2006_v46, 0.0  ;;  %v2013_v46 = vmul.f32 %v3663_v17, %v3663_v17 }
 0x219   : > { %v2007_v62 = vmul.f32 %v4402_v1, %v4402_v1  ;;  %v1846_v45 = vsel %vm343_vm0, %v4402_v1, 0.0  ;;  %v1858_v1 = vsel %vm343_vm0, %v3663_v17, 0.0 }
 0x21a   : > { %v1835_v8 = vadd.f32 %v1834_v2, %v1833_v41  ;;  %v2224_v31 = vadd.f32 %v2223_v25, %v2222_v52  ;;  %v1120_v27 = vpop.f32.mrf.mxu3  ;;  %v4403_v41 = vld [vmem:[#allocation17_spill] sm:$0xff] }
 0x21b   : > { %v1121_v10 = vadd.f32 %v3719_v29, %v1120_v27  ;;  %v2008_v52 = vmul.f32 %v4403_v41, %v4403_v41  ;;  %v2237_v2 = vsel %vm343_vm0, %v2007_v62, 0.0  ;;  %v1848_v21 = vsel %vm343_vm0, %v4403_v41, 0.0 }
 0x21c   : > { %v1837_v11 = vadd.f32 %v1836_v19, %v1835_v8  ;;  %v2226_v5 = vadd.f32 %v2225_v35, %v2224_v31  ;;  %v2009_v8 = vmul.f32 %v4404_v51, %v4404_v51  ;;  %v2014_v62 = vmul.f32 %v3700_v42, %v3700_v42 }
 0x21d   : > { %vm1254_vm6 = vcmp.ge.f32.partialorder %v1121_v10, 0.0  ;;  %v1382_v24 = vmul.f32 0.2, %v1121_v10  ;;  %v2239_v50 = vsel %vm343_vm0, %v2008_v52, 0.0 }
 0x21e   : > { %v1839_v13 = vadd.f32 %v1838_v6, %v1837_v11  ;;  %v2228_v16 = vadd.f32 %v2227_v9, %v2226_v5  ;;  %v4405_v11 = vld [vmem:[#allocation21_spill] sm:$0xff]  ;;  %v2241_v37 = vsel %vm343_vm0, %v2009_v8, 0.0  ;;  %v2251_v17 = vsel %vm343_vm0, %v2014_v62, 0.0 }
 0x21f   : > { %v4151_v18 = vsel %vm1254_vm6, %v1121_v10, %v1382_v24  ;;  %v2010_v5 = vmul.f32 %v4405_v11, %v4405_v11  ;;  %v1864_v8 = vsel %vm343_vm0, %v3776_v7, 0.0 }
 0x220   : > { %v1841_v33 = vadd.f32 %v1840_v20, %v1839_v13  ;;  %v2230_v22 = vadd.f32 %v2229_v59, %v2228_v16  ;;  %1638 = vst.msk [vmem:[%s2829_s14 + $0x3e8] sm:$0xff] %vm343_vm0, %v4151_v18  ;;  %v1852_v13 = vsel %vm343_vm0, %v4405_v11, 0.0  ;;  %v4406_v16 = vld [vmem:[#allocation23_spill] sm:$0xff] }
 0x221   : > { %v2011_v59 = vmul.f32 %v4406_v16, %v4406_v16  ;;  %v2243_v27 = vsel %vm343_vm0, %v2010_v5, 0.0 }
 0x222   : > { %v1843_v63 = vadd.f32 %v1842_v34, %v1841_v33  ;;  %v2232_v55 = vadd.f32 %v2231_v56, %v2230_v22  ;;  %v1123_v31 = vpop.f32.mrf.mxu3  ;;  %v1854_v33 = vsel %vm343_vm0, %v4406_v16, 0.0  ;;  %v2012_v22 = vmul.f32 %v3625_v53, %v3625_v53 }
 0x223   : > { %v1124_v19 = vadd.f32 %v3719_v29, %v1123_v31  ;;  %v2245_v34 = vsel %vm343_vm0, %v2011_v59, 0.0  ;;  %v2017_v31 = vmul.f32 %v3808_v36, %v3808_v36 }
 0x224   : > { %v1845_v0 = vadd.f32 %v1844_v47, %v1843_v63  ;;  %v2234_v40 = vadd.f32 %v2233_v12, %v2232_v55  ;;  %v2247_v47 = vsel %vm343_vm0, %v2012_v22, 0.0 }
 0x225   : > { %vm1255_vm7 = vcmp.ge.f32.partialorder %v1124_v19, 0.0  ;;  %v1383_v3 = vmul.f32 0.2, %v1124_v19  ;;  %v2257_v5 = vsel %vm343_vm0, %v2017_v31, 0.0 }
 0x226   : > { %v1847_v48 = vadd.f32 %v1846_v45, %v1845_v0  ;;  %v2236_v25 = vadd.f32 %v2235_v28, %v2234_v40  ;;  %v2249_v28 = vsel %vm343_vm0, %v2013_v46, 0.0  ;;  %v1860_v45 = vsel %vm343_vm0, %v3700_v42, 0.0 }
 0x227   : > { %v4177_v57 = vsel %vm1255_vm7, %v1124_v19, %v1383_v3  ;;  %v1866_v19 = vsel %vm343_vm0, %v3808_v36, 0.0  ;;  %v1870_v36 = vsel %vm343_vm0, %v3872_v38, 0.0  ;;  %v2023_v46 = vmul.f32 %v4000_v39, %v4000_v39 }
 0x228   : > { %v1849_v26 = vadd.f32 %v1848_v21, %v1847_v48  ;;  %v2238_v35 = vadd.f32 %v2237_v2, %v2236_v25  ;;  %1639 = vst.msk [vmem:[%s2829_s14 + $0x3f0] sm:$0xff] %vm343_vm0, %v4177_v57  ;;  %v1862_v25 = vsel %vm343_vm0, %v3741_v54, 0.0  ;;  %v2016_v2 = vmul.f32 %v3776_v7, %v3776_v7 }
 0x229   : > { %v1868_v7 = vsel %vm343_vm0, %v3840_v30, 0.0  ;;  %v2269_v62 = vsel %vm343_vm0, %v2023_v46, 0.0 }
 0x22a   : > { %v1851_v9 = vadd.f32 %v1850_v4, %v1849_v26  ;;  %v2240_v6 = vadd.f32 %v2239_v50, %v2238_v35  ;;  %v1126_v63 = vpop.f32.mrf.mxu3  ;;  %v2018_v50 = vmul.f32 %v3840_v30, %v3840_v30  ;;  %v1872_v30 = vsel %vm343_vm0, %v3904_v61, 0.0 }
 0x22b   : > { %v1127_v12 = vadd.f32 %v3719_v29, %v1126_v63  ;;  %v2015_v29 = vmul.f32 %v3741_v54, %v3741_v54  ;;  %v2255_v54 = vsel %vm343_vm0, %v2016_v2, 0.0 }
 0x22c   : > { %v1853_v20 = vadd.f32 %v1852_v13, %v1851_v9  ;;  %v2242_v43 = vadd.f32 %v2241_v37, %v2240_v6  ;;  %v2019_v9 = vmul.f32 %v3872_v38, %v3872_v38  ;;  %v2259_v37 = vsel %vm343_vm0, %v2018_v50, 0.0 }
 0x22d   : > { %vm1256_vm8 = vcmp.ge.f32.partialorder %v1127_v12, 0.0  ;;  %v1384_v53 = vmul.f32 0.2, %v1127_v12  ;;  %v2253_v51 = vsel %vm343_vm0, %v2015_v29, 0.0  ;;  %v2020_v13 = vmul.f32 %v3904_v61, %v3904_v61 }
 0x22e   : > { %v2244_v10 = vadd.f32 %v2243_v27, %v2242_v43  ;;  %v1855_v56 = vadd.f32 %v1854_v33, %v1853_v20  ;;  %v2261_v20 = vsel %vm343_vm0, %v2019_v9, 0.0  ;;  %v2021_v43 = vmul.f32 %v3936_v14, %v3936_v14 }
 0x22f   : > { %v4203_v48 = vsel %vm1256_vm8, %v1127_v12, %v1384_v53  ;;  %v2263_v22 = vsel %vm343_vm0, %v2020_v13, 0.0  ;;  %v1874_v38 = vsel %vm343_vm0, %v3936_v14, 0.0  ;;  %v1876_v61 = vsel %vm343_vm0, %v3968_v23, 0.0 }
 0x230   : > { %v1857_v55 = vadd.f32 %v1856_v32, %v1855_v56  ;;  %v2246_v24 = vadd.f32 %v2245_v34, %v2244_v10  ;;  %1640 = vst.msk [vmem:[%s2829_s14 + $0x3f8] sm:$0xff] %vm343_vm0, %v4203_v48  ;;  %v2022_v10 = vmul.f32 %v3968_v23, %v3968_v23  ;;  %v2265_v32 = vsel %vm343_vm0, %v2021_v43, 0.0 }
 0x231   : > { %v1878_v14 = vsel %vm343_vm0, %v4000_v39, 0.0  ;;  %v2024_v12 = vmul.f32 %v4021_v15, %v4021_v15  ;;  %v1880_v23 = vsel %vm343_vm0, %v4021_v15, 0.0  ;;  %v1882_v39 = vsel %vm343_vm0, %v4047_v58, 0.0 }
 0x232   : > { %v1859_v0 = vadd.f32 %v1858_v1, %v1857_v55  ;;  %v2248_v40 = vadd.f32 %v2247_v47, %v2246_v24  ;;  %v2267_v24 = vsel %vm343_vm0, %v2022_v10, 0.0  ;;  %v1884_v15 = vsel %vm343_vm0, %v4073_v60, 0.0 }
 0x233   : > { %v2030_v50 = vmul.f32 %v4177_v57, %v4177_v57 }
 0x234   : > { %v1861_v41 = vadd.f32 %v1860_v45, %v1859_v0  ;;  %v2250_v52 = vadd.f32 %v2249_v28, %v2248_v40  ;;  %v2025_v0 = vmul.f32 %v4047_v58, %v4047_v58  ;;  %v2271_v28 = vsel %vm343_vm0, %v2024_v12, 0.0 }
 0x235   : > { %v2026_v45 = vmul.f32 %v4073_v60, %v4073_v60  ;;  %v1886_v58 = vsel %vm343_vm0, %v4099_v49, 0.0  ;;  %v1888_v60 = vsel %vm343_vm0, %v4125_v44, 0.0 }
 0x236   : > { %v1863_v21 = vadd.f32 %v1862_v25, %v1861_v41  ;;  %v2252_v42 = vadd.f32 %v2251_v17, %v2250_v52  ;;  %v2273_v52 = vsel %vm343_vm0, %v2025_v0, 0.0  ;;  %v2027_v17 = vmul.f32 %v4099_v49, %v4099_v49 }
 0x237   : > { %v1890_v49 = vsel %vm343_vm0, %v4151_v18, 0.0 }
 0x238   : > { %v1865_v26 = vadd.f32 %v1864_v8, %v1863_v21  ;;  %v2254_v35 = vadd.f32 %v2253_v51, %v2252_v42  ;;  %v2275_v21 = vsel %vm343_vm0, %v2026_v45, 0.0  ;;  %v2028_v42 = vmul.f32 %v4125_v44, %v4125_v44 }
 0x239   : > { %v2277_v31 = vsel %vm343_vm0, %v2027_v17, 0.0  ;;  %v1892_v44 = vsel %vm343_vm0, %v4177_v57, 0.0 }
 0x23a   : > { %v1867_v4 = vadd.f32 %v1866_v19, %v1865_v26  ;;  %v2256_v11 = vadd.f32 %v2255_v54, %v2254_v35  ;;  %v2029_v26 = vmul.f32 %v4151_v18, %v4151_v18  ;;  %v2279_v19 = vsel %vm343_vm0, %v2028_v42, 0.0 }
 0x23b   : > { %v1894_v18 = vsel %vm343_vm0, %v4203_v48, 0.0 }
 0x23c   : > { %v1869_v6 = vadd.f32 %v1868_v7, %v1867_v4  ;;  %v2258_v3 = vadd.f32 %v2257_v5, %v2256_v11  ;;  %v2281_v5 = vsel %vm343_vm0, %v2029_v26, 0.0  ;;  %v2031_v7 = vmul.f32 %v4203_v48, %v4203_v48 }
 0x23e   : > { %v1871_v16 = vadd.f32 %v1870_v36, %v1869_v6  ;;  %v2260_v59 = vadd.f32 %v2259_v37, %v2258_v3  ;;  %v2283_v3 = vsel %vm343_vm0, %v2030_v50, 0.0  ;;  %v2285_v13 = vsel %vm343_vm0, %v2031_v7, 0.0 }
 0x240   : > { %v1873_v27 = vadd.f32 %v1872_v30, %v1871_v16  ;;  %v2262_v33 = vadd.f32 %v2261_v20, %v2260_v59 }
 0x242   : > { %v1875_v56 = vadd.f32 %v1874_v38, %v1873_v27  ;;  %v2264_v34 = vadd.f32 %v2263_v22, %v2262_v33 }
 0x244   : > { %v1877_v63 = vadd.f32 %v1876_v61, %v1875_v56  ;;  %v2266_v55 = vadd.f32 %v2265_v32, %v2264_v34 }
 0x246   : > { %v1879_v47 = vadd.f32 %v1878_v14, %v1877_v63  ;;  %v2268_v1 = vadd.f32 %v2267_v24, %v2266_v55 }
 0x248   : > { %v2270_v40 = vadd.f32 %v2269_v62, %v2268_v1  ;;  %v1881_v53 = vadd.f32 %v1880_v23, %v1879_v47 }
 0x24a   : > { %v2272_v29 = vadd.f32 %v2271_v28, %v2270_v40  ;;  %v1883_v41 = vadd.f32 %v1882_v39, %v1881_v53 }
 0x24c   : > { %v2274_v25 = vadd.f32 %v2273_v52, %v2272_v29  ;;  %v1885_v2 = vadd.f32 %v1884_v15, %v1883_v41 }
 0x24e   : > { %v2276_v51 = vadd.f32 %v2275_v21, %v2274_v25  ;;  %v1887_v8 = vadd.f32 %v1886_v58, %v1885_v2 }
 0x250   : > { %v2278_v35 = vadd.f32 %v2277_v31, %v2276_v51  ;;  %v1889_v54 = vadd.f32 %v1888_v60, %v1887_v8 }
 0x252   : > { %v2280_v4 = vadd.f32 %v2279_v19, %v2278_v35  ;;  %v1891_v11 = vadd.f32 %v1890_v49, %v1889_v54 }
 0x254   : > { %v2282_v9 = vadd.f32 %v2281_v5, %v2280_v4  ;;  %v1893_v6 = vadd.f32 %v1892_v44, %v1891_v11 }
 0x256   : > { %v2284_v37 = vadd.f32 %v2283_v3, %v2282_v9  ;;  %v1895_v36 = vadd.f32 %v1894_v18, %v1893_v6 }
 0x258   : > { %v1896_v16 = vrot.slane %v1895_v36, 4  ;;  %v2286_v59 = vadd.f32 %v2285_v13, %v2284_v37 }
 0x25a   : > { %v1897_v20 = vadd.f32 %v1896_v16, %v1895_v36  ;;  %v2287_v30 = vrot.slane %v2286_v59, 4 }
 0x25c   : > { %v1898_v57 = vrot.slane %v1897_v20, 2  ;;  %v2288_v43 = vadd.f32 %v2287_v30, %v2286_v59 }
 0x25e   : > { %v1899_v27 = vadd.f32 %v1898_v57, %v1897_v20  ;;  %v2289_v33 = vrot.slane %v2288_v43, 2 }
 0x260   : > { %v1900_v48 = vrot.slane %v1899_v27, 1  ;;  %v2290_v22 = vadd.f32 %v2289_v33, %v2288_v43 }
 0x262   : > { %v1901_v38 = vadd.f32 %v1900_v48, %v1899_v27  ;;  %v2291_v10 = vrot.slane %v2290_v22, 1 }
 0x264   : > { %1903 = vst.msk [vmem:[%s198_s8] sm:$0x1] %vm1902_vm9, %v1901_v38  ;;  %v2292_v56 = vadd.f32 %v2291_v10, %v2290_v22 }
 0x266   : > { %2293 = vst.msk [vmem:[%s198_s8 + $0x1] sm:$0x1] %vm1902_vm9, %v2292_v56 }
 0x267   : > { %2620 = shalt.err (!%p2617_p3)
}
 0x268   : > { %2551 = dma.vmem_to_hbm [thread:$0]  (%p2720_p5), %s2316_s9, 32, %s2318_s10, %s2300_s19  }
 0x269 PF: > { %p2557_p4 = scmp.ge.s32.totalorder %s2655_s18, 2  ;;  %s2337_s27 = sand.u32 1, %s2643_s15  }
 0x26a   : > { %s2338_s28 = scalar_lea.sflag [#allocation3], %s2337_s27 }
 0x26b   : > { %p2554_p7 = pnand %p2557_p4, %p2724_p6 }
 0x26d   : > { %p2555_p8 = pneg %p2554_p7 }
 0x26f   : > { %2638 = dma.done.wait (%p2555_p8), %s2338_s28, 32  }
 0x270   : > { %2640 = vsyncadd (%p2555_p8), %s2338_s28, 4294967264  ;;  %p15_p9 = scmp.ge.s32.totalorder %s2707_s21, 4   ;;  %s4407_s15 = smov %s2647_s16 }
 0x271   : > { %s4408_s16 = smov %s2651_s17  ;;  %s4409_s17 = smov %s2718_s24 }
 0x272   : > { %s4410_s18 = smov %s2707_s21  ;;  %17 = sbr.rel (!%p15_p9) target bundleno = 3 (0x3), region = 79 }
 0x277   :  { %2344 = vsyncpa [#allocation3], 1 }
 0x278   :  { %2346 = vsyncpa [#allocation3 + $0x1], 1 }

// kernel: _lambda_.6
= control target key start
LH: loop header
LB: loop body
LE: loop exit
PB: predicated region body
PF: predicated region fallthrough
CT: control target
= control target key end

     0   :  { %s1011_s15 = smov 0   ;;  %s1513_s0 = inlined_call_operand.vmem [shape: f32[2,256,256], index: 0, kind: input, shape index: {}]   ;;  %s1514_s1 = inlined_call_operand.vmem [shape: f32[256,32], index: 1, kind: input, shape index: {}]   ;;  %s1515_s2 = inlined_call_operand.vmem [shape: f32[1,32], index: 2, kind: input, shape index: {}]   ;;  %s1516_s3 = inlined_call_operand.vmem [shape: f32[2,256,32], index: 3, kind: output, shape index: {0}]   ;;  %s1517_s4 = inlined_call_operand.vmem [shape: f32[2,2,32], index: 4, kind: output, shape index: {1}]  }
   0x1 LB: > { %s923_s16 = sadd.s32 4294967295, %s984_s15   ;;  %p927_p0 = scmp.ge.s32.totalorder %s984_s15, 1  ;;  %s984_s15 = sphi %s1011_s15, %s15_s15  }
   0x2   : > { %p165_p1 = scmp.lt.s32.totalorder %s984_s15, 3 }
   0x4   : > { %p166_p2 = pnand %p927_p0, %p165_p1 }
   0x5   : > { %p195_p3 = scmp.lt.s32.totalorder (!%p166_p2), %s923_s16, 1 }
   0x6   : > { %169 = sbr.rel (%p166_p2) target bundleno = 346 (0x15a), region = 32 }
   0xb   : > { %v288_v0 = vld [vmem:[%s1514_s1 + $0x78] sm:$0xff]  ;;  %v287_v1 = vld [vmem:[%s1514_s1 + $0x70] sm:$0xff]  ;;  %v286_v4 = vld [vmem:[%s1514_s1 + $0x68] sm:$0xff]  ;;  %s1519_s16 = smov (!%p195_p3, %s923_s16), 1  ;;  %vm631_vm1 = vcmask 261120  }
   0xc   : > { %v304_v2 = vld [vmem:[%s1514_s1 + $0xf8] sm:$0xff]  ;;  %309 = vmatpush.msra.mxu0 %v288_v0  ;;  %v303_v3 = vld [vmem:[%s1514_s1 + $0xf0] sm:$0xff]  ;;  %v302_v5 = vld [vmem:[%s1514_s1 + $0xe8] sm:$0xff]  ;;  %937 = vmatpush.msra.mxu2 %v288_v0  ;;  %s935_s21 = sshll.u32 %s1519_s16, 9  ;;  %s936_s13 = sshll.u32 %s1519_s16, 8 }
   0xd   : > { %422 = vmatpush.msra.mxu1 %v304_v2  ;;  %953 = vmatpush.msra.mxu3 %v304_v2  ;;  %v285_v6 = vld [vmem:[%s1514_s1 + $0x60] sm:$0xff]  ;;  %v284_v8 = vld [vmem:[%s1514_s1 + $0x58] sm:$0xff]  ;;  %v283_v10 = vld [vmem:[%s1514_s1 + $0x50] sm:$0xff]  ;;  %s1119_s6 = scalar_lea.vmem %s1513_s0, %s935_s21  ;;  %s1201_s18 = scalar_lea.vmem %s1516_s3, %s936_s13 }
   0xe   : > { %310 = vmatpush.msra.mxu0 %v287_v1  ;;  %v301_v7 = vld [vmem:[%s1514_s1 + $0xe0] sm:$0xff]  ;;  %938 = vmatpush.msra.mxu2 %v287_v1  ;;  %v300_v9 = vld [vmem:[%s1514_s1 + $0xd8] sm:$0xff]  ;;  %v299_v11 = vld [vmem:[%s1514_s1 + $0xd0] sm:$0xff]  ;;  %s932_s19 = sshll.u32 %s1519_s16, 1 }
   0xf   : > { %423 = vmatpush.msra.mxu1 %v303_v3  ;;  %954 = vmatpush.msra.mxu3 %v303_v3  ;;  %v282_v12 = vld [vmem:[%s1514_s1 + $0x48] sm:$0xff]  ;;  %v281_v14 = vld [vmem:[%s1514_s1 + $0x40] sm:$0xff]  ;;  %v280_v16 = vld [vmem:[%s1514_s1 + $0x38] sm:$0xff]  ;;  %s208_s22 = scalar_lea.vmem %s1517_s4, %s932_s19 }
  0x10   : > { %311 = vmatpush.msra.mxu0 %v286_v4  ;;  %939 = vmatpush.msra.mxu2 %v286_v4  ;;  %v298_v13 = vld [vmem:[%s1514_s1 + $0xc8] sm:$0xff]  ;;  %v297_v15 = vld [vmem:[%s1514_s1 + $0xc0] sm:$0xff]  ;;  %v296_v17 = vld [vmem:[%s1514_s1 + $0xb8] sm:$0xff] }
  0x11   : > { %424 = vmatpush.msra.mxu1 %v302_v5  ;;  %955 = vmatpush.msra.mxu3 %v302_v5  ;;  %v279_v18 = vld [vmem:[%s1514_s1 + $0x30] sm:$0xff]  ;;  %v278_v20 = vld [vmem:[%s1514_s1 + $0x28] sm:$0xff]  ;;  %v277_v22 = vld [vmem:[%s1514_s1 + $0x20] sm:$0xff] }
  0x12   : > { %312 = vmatpush.msra.mxu0 %v285_v6  ;;  %940 = vmatpush.msra.mxu2 %v285_v6  ;;  %v295_v19 = vld [vmem:[%s1514_s1 + $0xb0] sm:$0xff]  ;;  %v294_v21 = vld [vmem:[%s1514_s1 + $0xa8] sm:$0xff]  ;;  %v293_v23 = vld [vmem:[%s1514_s1 + $0xa0] sm:$0xff] }
  0x13   : > { %425 = vmatpush.msra.mxu1 %v301_v7  ;;  %956 = vmatpush.msra.mxu3 %v301_v7  ;;  %v276_v24 = vld [vmem:[%s1514_s1 + $0x18] sm:$0xff]  ;;  %v275_v26 = vld [vmem:[%s1514_s1 + $0x10] sm:$0xff]  ;;  %v274_v28 = vld [vmem:[%s1514_s1 + $0x8] sm:$0xff] }
  0x14   : > { %313 = vmatpush.msra.mxu0 %v284_v8  ;;  %941 = vmatpush.msra.mxu2 %v284_v8  ;;  %v292_v25 = vld [vmem:[%s1514_s1 + $0x98] sm:$0xff]  ;;  %v291_v27 = vld [vmem:[%s1514_s1 + $0x90] sm:$0xff]  ;;  %v290_v29 = vld [vmem:[%s1514_s1 + $0x88] sm:$0xff] }
  0x15   : > { %426 = vmatpush.msra.mxu1 %v300_v9  ;;  %957 = vmatpush.msra.mxu3 %v300_v9  ;;  %v273_v30 = vld [vmem:[%s1514_s1] sm:$0xff]  ;;  %v210_v33 = vld [vmem:[%s1119_s6 + $0x8] sm:$0xff]  ;;  %v211_v36 = vld [vmem:[%s1119_s6 + $0x10] sm:$0xff] }
  0x16   : > { %314 = vmatpush.msra.mxu0 %v283_v10  ;;  %942 = vmatpush.msra.mxu2 %v283_v10  ;;  %v289_v31 = vld [vmem:[%s1514_s1 + $0x80] sm:$0xff]  ;;  %v242_v35 = vld [vmem:[%s1119_s6 + $0x108] sm:$0xff]  ;;  %v212_v37 = vld [vmem:[%s1119_s6 + $0x18] sm:$0xff] }
  0x17   : > { %427 = vmatpush.msra.mxu1 %v299_v11  ;;  %958 = vmatpush.msra.mxu3 %v299_v11  ;;  %v209_v32 = vld [vmem:[%s1119_s6] sm:$0xff]  ;;  %v243_v38 = vld [vmem:[%s1119_s6 + $0x110] sm:$0xff]  ;;  %v244_v39 = vld [vmem:[%s1119_s6 + $0x118] sm:$0xff] }
  0x18   : > { %315 = vmatpush.msra.mxu0 %v282_v12  ;;  %943 = vmatpush.msra.mxu2 %v282_v12  ;;  %v241_v34 = vld [vmem:[%s1119_s6 + $0x100] sm:$0xff]  ;;  %v214_v41 = vld [vmem:[%s1119_s6 + $0x28] sm:$0xff]  ;;  %v215_v44 = vld [vmem:[%s1119_s6 + $0x30] sm:$0xff] }
  0x19   : > { %428 = vmatpush.msra.mxu1 %v298_v13  ;;  %959 = vmatpush.msra.mxu3 %v298_v13  ;;  %v213_v40 = vld [vmem:[%s1119_s6 + $0x20] sm:$0xff]  ;;  %v246_v43 = vld [vmem:[%s1119_s6 + $0x128] sm:$0xff]  ;;  %v216_v45 = vld [vmem:[%s1119_s6 + $0x38] sm:$0xff] }
  0x1a   : > { %316 = vmatpush.msra.mxu0 %v281_v14  ;;  %944 = vmatpush.msra.mxu2 %v281_v14  ;;  %v245_v42 = vld [vmem:[%s1119_s6 + $0x120] sm:$0xff]  ;;  %v247_v46 = vld [vmem:[%s1119_s6 + $0x130] sm:$0xff]  ;;  %v248_v47 = vld [vmem:[%s1119_s6 + $0x138] sm:$0xff] }
  0x1b   : > { %429 = vmatpush.msra.mxu1 %v297_v15  ;;  %960 = vmatpush.msra.mxu3 %v297_v15  ;;  %v217_v48 = vld [vmem:[%s1119_s6 + $0x40] sm:$0xff]  ;;  %v218_v49 = vld [vmem:[%s1119_s6 + $0x48] sm:$0xff]  ;;  %v219_v52 = vld [vmem:[%s1119_s6 + $0x50] sm:$0xff] }
  0x1c   : > { %317 = vmatpush.msra.mxu0 %v280_v16  ;;  %945 = vmatpush.msra.mxu2 %v280_v16  ;;  %v249_v50 = vld [vmem:[%s1119_s6 + $0x140] sm:$0xff]  ;;  %v250_v51 = vld [vmem:[%s1119_s6 + $0x148] sm:$0xff]  ;;  %v220_v53 = vld [vmem:[%s1119_s6 + $0x58] sm:$0xff] }
  0x1d   : > { %430 = vmatpush.msra.mxu1 %v296_v17  ;;  %961 = vmatpush.msra.mxu3 %v296_v17  ;;  %v251_v54 = vld [vmem:[%s1119_s6 + $0x150] sm:$0xff]  ;;  %v252_v55 = vld [vmem:[%s1119_s6 + $0x158] sm:$0xff]  ;;  %v221_v56 = vld [vmem:[%s1119_s6 + $0x60] sm:$0xff] }
  0x1e   : > { %318 = vmatpush.msra.mxu0 %v279_v18  ;;  %946 = vmatpush.msra.mxu2 %v279_v18  ;;  %v222_v57 = vld [vmem:[%s1119_s6 + $0x68] sm:$0xff]  ;;  %v253_v58 = vld [vmem:[%s1119_s6 + $0x160] sm:$0xff]  ;;  %v223_v60 = vld [vmem:[%s1119_s6 + $0x70] sm:$0xff] }
  0x1f   : > { %431 = vmatpush.msra.mxu1 %v295_v19  ;;  %962 = vmatpush.msra.mxu3 %v295_v19  ;;  %v254_v59 = vld [vmem:[%s1119_s6 + $0x168] sm:$0xff]  ;;  %v224_v61 = vld [vmem:[%s1119_s6 + $0x78] sm:$0xff]  ;;  %v255_v62 = vld [vmem:[%s1119_s6 + $0x170] sm:$0xff] }
  0x20   : > { %319 = vmatpush.msra.mxu0 %v278_v20  ;;  %947 = vmatpush.msra.mxu2 %v278_v20  ;;  %v256_v63 = vld [vmem:[%s1119_s6 + $0x178] sm:$0xff]  ;;  %v225_v0 = vld [vmem:[%s1119_s6 + $0x80] sm:$0xff]  ;;  %v226_v1 = vld [vmem:[%s1119_s6 + $0x88] sm:$0xff] }
  0x21   : > { %432 = vmatpush.msra.mxu1 %v294_v21  ;;  %963 = vmatpush.msra.mxu3 %v294_v21  ;;  %v257_v2 = vld [vmem:[%s1119_s6 + $0x180] sm:$0xff]  ;;  %v258_v3 = vld [vmem:[%s1119_s6 + $0x188] sm:$0xff]  ;;  %v227_v4 = vld [vmem:[%s1119_s6 + $0x90] sm:$0xff] }
  0x22   : > { %320 = vmatpush.msra.mxu0 %v277_v22  ;;  %948 = vmatpush.msra.mxu2 %v277_v22  ;;  %v228_v5 = vld [vmem:[%s1119_s6 + $0x98] sm:$0xff]  ;;  %v259_v6 = vld [vmem:[%s1119_s6 + $0x190] sm:$0xff]  ;;  %v229_v8 = vld [vmem:[%s1119_s6 + $0xa0] sm:$0xff] }
  0x23   : > { %433 = vmatpush.msra.mxu1 %v293_v23  ;;  %964 = vmatpush.msra.mxu3 %v293_v23  ;;  %v260_v7 = vld [vmem:[%s1119_s6 + $0x198] sm:$0xff]  ;;  %v230_v9 = vld [vmem:[%s1119_s6 + $0xa8] sm:$0xff]  ;;  %v261_v10 = vld [vmem:[%s1119_s6 + $0x1a0] sm:$0xff] }
  0x24   : > { %321 = vmatpush.msra.mxu0 %v276_v24  ;;  %949 = vmatpush.msra.mxu2 %v276_v24  ;;  %v262_v11 = vld [vmem:[%s1119_s6 + $0x1a8] sm:$0xff]  ;;  %v231_v12 = vld [vmem:[%s1119_s6 + $0xb0] sm:$0xff]  ;;  %v232_v13 = vld [vmem:[%s1119_s6 + $0xb8] sm:$0xff] }
  0x25   : > { %434 = vmatpush.msra.mxu1 %v292_v25  ;;  %965 = vmatpush.msra.mxu3 %v292_v25  ;;  %v263_v14 = vld [vmem:[%s1119_s6 + $0x1b0] sm:$0xff]  ;;  %v264_v15 = vld [vmem:[%s1119_s6 + $0x1b8] sm:$0xff]  ;;  %v233_v16 = vld [vmem:[%s1119_s6 + $0xc0] sm:$0xff] }
  0x26   : > { %322 = vmatpush.msra.mxu0 %v275_v26  ;;  %950 = vmatpush.msra.mxu2 %v275_v26  ;;  %v234_v17 = vld [vmem:[%s1119_s6 + $0xc8] sm:$0xff]  ;;  %v265_v18 = vld [vmem:[%s1119_s6 + $0x1c0] sm:$0xff]  ;;  %v235_v20 = vld [vmem:[%s1119_s6 + $0xd0] sm:$0xff] }
  0x27   : > { %435 = vmatpush.msra.mxu1 %v291_v27  ;;  %966 = vmatpush.msra.mxu3 %v291_v27  ;;  %v266_v19 = vld [vmem:[%s1119_s6 + $0x1c8] sm:$0xff]  ;;  %v236_v21 = vld [vmem:[%s1119_s6 + $0xd8] sm:$0xff]  ;;  %v267_v22 = vld [vmem:[%s1119_s6 + $0x1d0] sm:$0xff] }
  0x28   : > { %323 = vmatpush.msra.mxu0 %v274_v28  ;;  %951 = vmatpush.msra.mxu2 %v274_v28  ;;  %v268_v23 = vld [vmem:[%s1119_s6 + $0x1d8] sm:$0xff]  ;;  %v237_v24 = vld [vmem:[%s1119_s6 + $0xe0] sm:$0xff]  ;;  %v238_v25 = vld [vmem:[%s1119_s6 + $0xe8] sm:$0xff] }
  0x29   : > { %436 = vmatpush.msra.mxu1 %v290_v29  ;;  %967 = vmatpush.msra.mxu3 %v290_v29  ;;  %v269_v26 = vld [vmem:[%s1119_s6 + $0x1e0] sm:$0xff]  ;;  %v270_v27 = vld [vmem:[%s1119_s6 + $0x1e8] sm:$0xff]  ;;  %v239_v28 = vld [vmem:[%s1119_s6 + $0xf0] sm:$0xff] }
  0x2a   : > { %324 = vmatpush.msra.mxu0 %v273_v30  ;;  %952 = vmatpush.msra.mxu2 %v273_v30  ;;  %v240_v29 = vld [vmem:[%s1119_s6 + $0xf8] sm:$0xff]  ;;  %v271_v30 = vld [vmem:[%s1119_s6 + $0x1f0] sm:$0xff] }
  0x2b   : > { %437 = vmatpush.msra.mxu1 %v289_v31  ;;  %325 = vmatmul.f32.vlgmr.msra.gmra.mxu0 %v209_v32  ;;  %v1194_v32 = vld [vmem:[%s1515_s2] ss:$0 sm:$0xff] }
  0x2c   : > { %438 = vmatmul.f32.vlgmr.msra.gmra.mxu1 %v210_v33  ;;  %968 = vmatpush.msra.mxu3 %v289_v31  ;;  %v272_v31 = vld [vmem:[%s1119_s6 + $0x1f8] sm:$0xff] }
  0x2d   : > { %373 = vmatmul.f32.vlgmr.msra.gmra.mxu2 %v241_v34  ;;  %486 = vmatmul.f32.vlgmr.msra.gmra.mxu3 %v242_v35 }
  0x33   : > { %328 = vmatmul.f32.gmra.mxu0 %v211_v36 }
  0x34   : > { %441 = vmatmul.f32.gmra.mxu1 %v212_v37 }
  0x35   : > { %376 = vmatmul.f32.gmra.mxu2 %v243_v38  ;;  %489 = vmatmul.f32.gmra.mxu3 %v244_v39 }
  0x3b   : > { %331 = vmatmul.f32.gmra.mxu0 %v213_v40 }
  0x3c   : > { %444 = vmatmul.f32.gmra.mxu1 %v214_v41 }
  0x3d   : > { %379 = vmatmul.f32.gmra.mxu2 %v245_v42  ;;  %492 = vmatmul.f32.gmra.mxu3 %v246_v43 }
  0x43   : > { %334 = vmatmul.f32.gmra.mxu0 %v215_v44 }
  0x44   : > { %447 = vmatmul.f32.gmra.mxu1 %v216_v45 }
  0x45   : > { %382 = vmatmul.f32.gmra.mxu2 %v247_v46  ;;  %495 = vmatmul.f32.gmra.mxu3 %v248_v47 }
  0x4b   : > { %337 = vmatmul.f32.gmra.mxu0 %v217_v48 }
  0x4c   : > { %450 = vmatmul.f32.gmra.mxu1 %v218_v49 }
  0x4d   : > { %385 = vmatmul.f32.gmra.mxu2 %v249_v50  ;;  %498 = vmatmul.f32.gmra.mxu3 %v250_v51 }
  0x53   : > { %340 = vmatmul.f32.gmra.mxu0 %v219_v52 }
  0x54   : > { %453 = vmatmul.f32.gmra.mxu1 %v220_v53 }
  0x55   : > { %388 = vmatmul.f32.gmra.mxu2 %v251_v54  ;;  %501 = vmatmul.f32.gmra.mxu3 %v252_v55 }
  0x5b   : > { %343 = vmatmul.f32.gmra.mxu0 %v221_v56 }
  0x5c   : > { %456 = vmatmul.f32.gmra.mxu1 %v222_v57 }
  0x5d   : > { %391 = vmatmul.f32.gmra.mxu2 %v253_v58  ;;  %504 = vmatmul.f32.gmra.mxu3 %v254_v59 }
  0x63   : > { %346 = vmatmul.f32.gmra.mxu0 %v223_v60 }
  0x64   : > { %459 = vmatmul.f32.gmra.mxu1 %v224_v61 }
  0x65   : > { %394 = vmatmul.f32.gmra.mxu2 %v255_v62  ;;  %507 = vmatmul.f32.gmra.mxu3 %v256_v63 }
  0x6b   : > { %349 = vmatmul.f32.gmra.mxu0 %v225_v0 }
  0x6c   : > { %462 = vmatmul.f32.gmra.mxu1 %v226_v1 }
  0x6d   : > { %397 = vmatmul.f32.gmra.mxu2 %v257_v2  ;;  %510 = vmatmul.f32.gmra.mxu3 %v258_v3 }
  0x73   : > { %352 = vmatmul.f32.gmra.mxu0 %v227_v4 }
  0x74   : > { %465 = vmatmul.f32.gmra.mxu1 %v228_v5 }
  0x75   : > { %400 = vmatmul.f32.gmra.mxu2 %v259_v6  ;;  %513 = vmatmul.f32.gmra.mxu3 %v260_v7 }
  0x7b   : > { %355 = vmatmul.f32.gmra.mxu0 %v229_v8 }
  0x7c   : > { %468 = vmatmul.f32.gmra.mxu1 %v230_v9 }
  0x7d   : > { %403 = vmatmul.f32.gmra.mxu2 %v261_v10  ;;  %516 = vmatmul.f32.gmra.mxu3 %v262_v11 }
  0x83   : > { %358 = vmatmul.f32.gmra.mxu0 %v231_v12 }
  0x84   : > { %471 = vmatmul.f32.gmra.mxu1 %v232_v13 }
  0x85   : > { %406 = vmatmul.f32.gmra.mxu2 %v263_v14  ;;  %519 = vmatmul.f32.gmra.mxu3 %v264_v15 }
  0x8b   : > { %361 = vmatmul.f32.gmra.mxu0 %v233_v16 }
  0x8c   : > { %474 = vmatmul.f32.gmra.mxu1 %v234_v17 }
  0x8d   : > { %409 = vmatmul.f32.gmra.mxu2 %v265_v18  ;;  %522 = vmatmul.f32.gmra.mxu3 %v266_v19 }
  0x93   : > { %364 = vmatmul.f32.gmra.mxu0 %v235_v20 }
  0x94   : > { %477 = vmatmul.f32.gmra.mxu1 %v236_v21 }
  0x95   : > { %412 = vmatmul.f32.gmra.mxu2 %v267_v22  ;;  %525 = vmatmul.f32.gmra.mxu3 %v268_v23 }
  0x9b   : > { %367 = vmatmul.f32.gmra.mxu0 %v237_v24 }
  0x9c   : > { %480 = vmatmul.f32.gmra.mxu1 %v238_v25 }
  0x9d   : > { %415 = vmatmul.f32.gmra.mxu2 %v269_v26  ;;  %528 = vmatmul.f32.gmra.mxu3 %v270_v27 }
  0xa3   : > { %370 = vmatmul.f32.gmra.mxu0 %v239_v28 }
  0xa4   : > { %483 = vmatmul.f32.gmra.mxu1 %v240_v29 }
  0xa5   : > { %418 = vmatmul.f32.gmra.mxu2 %v271_v30  ;;  %531 = vmatmul.f32.gmra.mxu3 %v272_v31 }
  0xa8   : > { %v326_v33 = vpop.f32.mrf.mxu0 }
  0xa9   : > { %v439_v34 = vpop.f32.mrf.mxu1  ;;  %v327_v35 = vadd.f32 %v1194_v32, %v326_v33 }
  0xab   : > { %v440_v36 = vadd.f32 %v439_v34, %v327_v35 }
  0xad   : > { %vm535_vm0 = vcmp.ge.f32.partialorder %v440_v36, 0.0  ;;  %v567_v37 = vmul.f32 0.2, %v440_v36 }
  0xaf   : > { %v599_v38 = vsel %vm535_vm0, %v440_v36, %v567_v37 }
  0xb0   : > { %632 = vst.msk [vmem:[%s1201_s18] sm:$0xff] %vm631_vm1, %v599_v38  ;;  %v329_v39 = vpop.f32.mrf.mxu0  ;;  %v374_v42 = vpop.f32.mrf.mxu2  ;;  %v735_v48 = vmul.f32 %v599_v38, %v599_v38  ;;  %v664_v51 = vsel %vm631_vm1, %v599_v38, 0.0 }
  0xb1   : > { %v442_v40 = vpop.f32.mrf.mxu1  ;;  %v330_v41 = vadd.f32 %v1194_v32, %v329_v39  ;;  %v487_v43 = vpop.f32.mrf.mxu3  ;;  %v375_v44 = vadd.f32 %v1194_v32, %v374_v42 }
  0xb2   : > { %v767_v61 = vsel %vm631_vm1, %v735_v48, 0.0 }
  0xb3   : > { %v443_v45 = vadd.f32 %v442_v40, %v330_v41  ;;  %v488_v46 = vadd.f32 %v487_v43, %v375_v44 }
  0xb5   : > { %vm536_vm2 = vcmp.ge.f32.partialorder %v443_v45, 0.0  ;;  %v568_v47 = vmul.f32 0.2, %v443_v45  ;;  %vm551_vm3 = vcmp.ge.f32.partialorder %v488_v46, 0.0  ;;  %v583_v49 = vmul.f32 0.2, %v488_v46 }
  0xb7   : > { %v600_v50 = vsel %vm536_vm2, %v443_v45, %v568_v47  ;;  %v1211_v56 = vsel %vm551_vm3, %v488_v46, %v583_v49 }
  0xb8   : > { %633 = vst.msk [vmem:[%s1201_s18 + $0x8] sm:$0xff] %vm631_vm1, %v600_v50  ;;  %v665_v52 = vsel %vm631_vm1, %v600_v50, 0.0  ;;  %v736_v53 = vmul.f32 %v600_v50, %v600_v50  ;;  %v332_v54 = vpop.f32.mrf.mxu0  ;;  %v377_v59 = vpop.f32.mrf.mxu2 }
  0xb9   : > { %v445_v55 = vpop.f32.mrf.mxu1  ;;  %v666_v57 = vadd.f32 %v665_v52, %v664_v51  ;;  %v333_v58 = vadd.f32 %v1194_v32, %v332_v54  ;;  %648 = vst.msk [vmem:[%s1201_s18 + $0x80] sm:$0xff] %vm631_vm1, %v1211_v56  ;;  %v490_v60 = vpop.f32.mrf.mxu3  ;;  %v378_v63 = vadd.f32 %v1194_v32, %v377_v59 }
  0xba   : > { %v768_v62 = vsel %vm631_vm1, %v736_v53, 0.0 }
  0xbb   : > { %v769_v0 = vadd.f32 %v768_v62, %v767_v61  ;;  %v446_v1 = vadd.f32 %v445_v55, %v333_v58  ;;  %v491_v2 = vadd.f32 %v490_v60, %v378_v63 }
  0xbd   : > { %vm537_vm4 = vcmp.ge.f32.partialorder %v446_v1, 0.0  ;;  %v569_v3 = vmul.f32 0.2, %v446_v1  ;;  %vm552_vm5 = vcmp.ge.f32.partialorder %v491_v2, 0.0  ;;  %v584_v4 = vmul.f32 0.2, %v491_v2 }
  0xbf   : > { %v601_v5 = vsel %vm537_vm4, %v446_v1, %v569_v3  ;;  %v1223_v10 = vsel %vm552_vm5, %v491_v2, %v584_v4 }
  0xc0   : > { %634 = vst.msk [vmem:[%s1201_s18 + $0x10] sm:$0xff] %vm631_vm1, %v601_v5  ;;  %v667_v6 = vsel %vm631_vm1, %v601_v5, 0.0  ;;  %v737_v7 = vmul.f32 %v601_v5, %v601_v5  ;;  %v335_v8 = vpop.f32.mrf.mxu0  ;;  %v380_v13 = vpop.f32.mrf.mxu2 }
  0xc1   : > { %v448_v9 = vpop.f32.mrf.mxu1  ;;  %v668_v11 = vadd.f32 %v667_v6, %v666_v57  ;;  %v336_v12 = vadd.f32 %v1194_v32, %v335_v8  ;;  %649 = vst.msk [vmem:[%s1201_s18 + $0x88] sm:$0xff] %vm631_vm1, %v1223_v10  ;;  %v493_v14 = vpop.f32.mrf.mxu3  ;;  %v381_v16 = vadd.f32 %v1194_v32, %v380_v13 }
  0xc2   : > { %v770_v15 = vsel %vm631_vm1, %v737_v7, 0.0 }
  0xc3   : > { %v771_v17 = vadd.f32 %v770_v15, %v769_v0  ;;  %v449_v18 = vadd.f32 %v448_v9, %v336_v12  ;;  %v494_v19 = vadd.f32 %v493_v14, %v381_v16 }
  0xc5   : > { %vm538_vm6 = vcmp.ge.f32.partialorder %v449_v18, 0.0  ;;  %v570_v20 = vmul.f32 0.2, %v449_v18  ;;  %vm553_vm7 = vcmp.ge.f32.partialorder %v494_v19, 0.0  ;;  %v585_v21 = vmul.f32 0.2, %v494_v19 }
  0xc7   : > { %v602_v22 = vsel %vm538_vm6, %v449_v18, %v570_v20  ;;  %v1234_v27 = vsel %vm553_vm7, %v494_v19, %v585_v21 }
  0xc8   : > { %635 = vst.msk [vmem:[%s1201_s18 + $0x18] sm:$0xff] %vm631_vm1, %v602_v22  ;;  %v669_v23 = vsel %vm631_vm1, %v602_v22, 0.0  ;;  %v738_v24 = vmul.f32 %v602_v22, %v602_v22  ;;  %v338_v25 = vpop.f32.mrf.mxu0  ;;  %v383_v30 = vpop.f32.mrf.mxu2 }
  0xc9   : > { %v451_v26 = vpop.f32.mrf.mxu1  ;;  %v670_v28 = vadd.f32 %v669_v23, %v668_v11  ;;  %v339_v29 = vadd.f32 %v1194_v32, %v338_v25  ;;  %650 = vst.msk [vmem:[%s1201_s18 + $0x90] sm:$0xff] %vm631_vm1, %v1234_v27  ;;  %v496_v31 = vpop.f32.mrf.mxu3  ;;  %v384_v34 = vadd.f32 %v1194_v32, %v383_v30 }
  0xca   : > { %v772_v33 = vsel %vm631_vm1, %v738_v24, 0.0 }
  0xcb   : > { %v773_v35 = vadd.f32 %v772_v33, %v771_v17  ;;  %v452_v36 = vadd.f32 %v451_v26, %v339_v29  ;;  %v497_v37 = vadd.f32 %v496_v31, %v384_v34 }
  0xcd   : > { %vm539_vm8 = vcmp.ge.f32.partialorder %v452_v36, 0.0  ;;  %v571_v38 = vmul.f32 0.2, %v452_v36  ;;  %vm554_vm9 = vcmp.ge.f32.partialorder %v497_v37, 0.0  ;;  %v586_v39 = vmul.f32 0.2, %v497_v37 }
  0xcf   : > { %v603_v40 = vsel %vm539_vm8, %v452_v36, %v571_v38  ;;  %v1245_v45 = vsel %vm554_vm9, %v497_v37, %v586_v39 }
  0xd0   : > { %636 = vst.msk [vmem:[%s1201_s18 + $0x20] sm:$0xff] %vm631_vm1, %v603_v40  ;;  %v671_v41 = vsel %vm631_vm1, %v603_v40, 0.0  ;;  %v739_v42 = vmul.f32 %v603_v40, %v603_v40  ;;  %v341_v43 = vpop.f32.mrf.mxu0  ;;  %v386_v48 = vpop.f32.mrf.mxu2 }
  0xd1   : > { %v454_v44 = vpop.f32.mrf.mxu1  ;;  %v1247_v46 = vadd.f32 %v671_v41, %v670_v28  ;;  %v342_v47 = vadd.f32 %v1194_v32, %v341_v43  ;;  %651 = vst.msk [vmem:[%s1201_s18 + $0x98] sm:$0xff] %vm631_vm1, %v1245_v45  ;;  %v499_v49 = vpop.f32.mrf.mxu3  ;;  %v387_v51 = vadd.f32 %v1194_v32, %v386_v48 }
  0xd2   : > { %v774_v50 = vsel %vm631_vm1, %v739_v42, 0.0 }
  0xd3   : > { %v1255_v52 = vadd.f32 %v774_v50, %v773_v35  ;;  %v455_v53 = vadd.f32 %v454_v44, %v342_v47  ;;  %v500_v54 = vadd.f32 %v499_v49, %v387_v51 }
  0xd5   : > { %vm540_vm10 = vcmp.ge.f32.partialorder %v455_v53, 0.0  ;;  %v572_v55 = vmul.f32 0.2, %v455_v53  ;;  %vm555_vm11 = vcmp.ge.f32.partialorder %v500_v54, 0.0  ;;  %v587_v57 = vmul.f32 0.2, %v500_v54 }
  0xd7   : > { %v1257_v58 = vsel %vm540_vm10, %v455_v53, %v572_v55  ;;  %v1262_v61 = vsel %vm555_vm11, %v500_v54, %v587_v57 }
  0xd8   : > { %637 = vst.msk [vmem:[%s1201_s18 + $0x28] sm:$0xff] %vm631_vm1, %v1257_v58  ;;  %v344_v59 = vpop.f32.mrf.mxu0  ;;  %v389_v63 = vpop.f32.mrf.mxu2 }
  0xd9   : > { %v457_v60 = vpop.f32.mrf.mxu1  ;;  %v345_v62 = vadd.f32 %v1194_v32, %v344_v59  ;;  %652 = vst.msk [vmem:[%s1201_s18 + $0xa0] sm:$0xff] %vm631_vm1, %v1262_v61  ;;  %v502_v0 = vpop.f32.mrf.mxu3  ;;  %v390_v1 = vadd.f32 %v1194_v32, %v389_v63 }
  0xdb   : > { %v458_v2 = vadd.f32 %v457_v60, %v345_v62  ;;  %v503_v3 = vadd.f32 %v502_v0, %v390_v1 }
  0xdd   : > { %vm541_vm12 = vcmp.ge.f32.partialorder %v458_v2, 0.0  ;;  %v573_v4 = vmul.f32 0.2, %v458_v2  ;;  %vm556_vm13 = vcmp.ge.f32.partialorder %v503_v3, 0.0  ;;  %v588_v5 = vmul.f32 0.2, %v503_v3 }
  0xdf   : > { %v1269_v6 = vsel %vm541_vm12, %v458_v2, %v573_v4  ;;  %v1274_v9 = vsel %vm556_vm13, %v503_v3, %v588_v5 }
  0xe0   : > { %638 = vst.msk [vmem:[%s1201_s18 + $0x30] sm:$0xff] %vm631_vm1, %v1269_v6  ;;  %v347_v7 = vpop.f32.mrf.mxu0  ;;  %v392_v12 = vpop.f32.mrf.mxu2 }
  0xe1   : > { %v460_v8 = vpop.f32.mrf.mxu1  ;;  %v348_v11 = vadd.f32 %v1194_v32, %v347_v7  ;;  %653 = vst.msk [vmem:[%s1201_s18 + $0xa8] sm:$0xff] %vm631_vm1, %v1274_v9  ;;  %v505_v13 = vpop.f32.mrf.mxu3  ;;  %v393_v14 = vadd.f32 %v1194_v32, %v392_v12 }
  0xe3   : > { %v461_v15 = vadd.f32 %v460_v8, %v348_v11  ;;  %v506_v16 = vadd.f32 %v505_v13, %v393_v14 }
  0xe5   : > { %vm542_vm14 = vcmp.ge.f32.partialorder %v461_v15, 0.0  ;;  %v574_v17 = vmul.f32 0.2, %v461_v15  ;;  %vm557_vm15 = vcmp.ge.f32.partialorder %v506_v16, 0.0  ;;  %v589_v18 = vmul.f32 0.2, %v506_v16 }
  0xe7   : > { %v1281_v19 = vsel %vm542_vm14, %v461_v15, %v574_v17  ;;  %v1286_v22 = vsel %vm557_vm15, %v506_v16, %v589_v18 }
  0xe8   : > { %639 = vst.msk [vmem:[%s1201_s18 + $0x38] sm:$0xff] %vm631_vm1, %v1281_v19  ;;  %v350_v20 = vpop.f32.mrf.mxu0  ;;  %v395_v24 = vpop.f32.mrf.mxu2 }
  0xe9   : > { %v463_v21 = vpop.f32.mrf.mxu1  ;;  %v351_v23 = vadd.f32 %v1194_v32, %v350_v20  ;;  %654 = vst.msk [vmem:[%s1201_s18 + $0xb0] sm:$0xff] %vm631_vm1, %v1286_v22  ;;  %v508_v25 = vpop.f32.mrf.mxu3  ;;  %v396_v26 = vadd.f32 %v1194_v32, %v395_v24 }
  0xeb   : > { %v464_v28 = vadd.f32 %v463_v21, %v351_v23  ;;  %v509_v29 = vadd.f32 %v508_v25, %v396_v26 }
  0xed   : > { %vm543_vm0 = vcmp.ge.f32.partialorder %v464_v28, 0.0  ;;  %v575_v30 = vmul.f32 0.2, %v464_v28  ;;  %vm558_vm2 = vcmp.ge.f32.partialorder %v509_v29, 0.0  ;;  %v590_v31 = vmul.f32 0.2, %v509_v29 }
  0xef   : > { %v1293_v33 = vsel %vm543_vm0, %v464_v28, %v575_v30  ;;  %v1298_v36 = vsel %vm558_vm2, %v509_v29, %v590_v31  ;;  %v740_v28 = vmul.f32 %v1257_v58, %v1257_v58  ;;  %v741_v31 = vmul.f32 %v1269_v6, %v1269_v6 }
  0xf0   : > { %640 = vst.msk [vmem:[%s1201_s18 + $0x40] sm:$0xff] %vm631_vm1, %v1293_v33  ;;  %v353_v34 = vpop.f32.mrf.mxu0  ;;  %v398_v38 = vpop.f32.mrf.mxu2 }
  0xf1   : > { %v466_v35 = vpop.f32.mrf.mxu1  ;;  %v354_v37 = vadd.f32 %v1194_v32, %v353_v34  ;;  %655 = vst.msk [vmem:[%s1201_s18 + $0xb8] sm:$0xff] %vm631_vm1, %v1298_v36  ;;  %v511_v39 = vpop.f32.mrf.mxu3  ;;  %v399_v40 = vadd.f32 %v1194_v32, %v398_v38 }
  0xf3   : > { %v467_v41 = vadd.f32 %v466_v35, %v354_v37  ;;  %v512_v42 = vadd.f32 %v511_v39, %v399_v40 }
  0xf5   : > { %vm544_vm3 = vcmp.ge.f32.partialorder %v467_v41, 0.0  ;;  %v576_v43 = vmul.f32 0.2, %v467_v41  ;;  %vm559_vm4 = vcmp.ge.f32.partialorder %v512_v42, 0.0  ;;  %v591_v44 = vmul.f32 0.2, %v512_v42 }
  0xf7   : > { %v1305_v47 = vsel %vm544_vm3, %v467_v41, %v576_v43  ;;  %v1310_v50 = vsel %vm559_vm4, %v512_v42, %v591_v44  ;;  %v673_v41 = vsel %vm631_vm1, %v1257_v58, 0.0  ;;  %v776_v42 = vsel %vm631_vm1, %v740_v28, 0.0 }
  0xf8   : > { %641 = vst.msk [vmem:[%s1201_s18 + $0x48] sm:$0xff] %vm631_vm1, %v1305_v47  ;;  %v356_v48 = vpop.f32.mrf.mxu0  ;;  %v401_v53 = vpop.f32.mrf.mxu2  ;;  %v742_v43 = vmul.f32 %v1281_v19, %v1281_v19  ;;  %v674_v58 = vadd.f32 %v673_v41, %v1247_v46  ;;  %vm733_vm3 = vcmask 253952  }
  0xf9   : > { %v469_v49 = vpop.f32.mrf.mxu1  ;;  %v357_v51 = vadd.f32 %v1194_v32, %v356_v48  ;;  %656 = vst.msk [vmem:[%s1201_s18 + $0xc0] sm:$0xff] %vm631_vm1, %v1310_v50  ;;  %v514_v54 = vpop.f32.mrf.mxu3  ;;  %v402_v55 = vadd.f32 %v1194_v32, %v401_v53  ;;  %v743_v53 = vmul.f32 %v1293_v33, %v1293_v33 }
  0xfb   : > { %v470_v57 = vadd.f32 %v469_v49, %v357_v51  ;;  %v515_v59 = vadd.f32 %v514_v54, %v402_v55  ;;  %v675_v49 = vsel %vm631_vm1, %v1269_v6, 0.0  ;;  %v778_v51 = vsel %vm631_vm1, %v741_v31, 0.0 }
  0xfc   : > { %v777_v55 = vadd.f32 %v776_v42, %v1255_v52  ;;  %v782_v46 = vsel %vm631_vm1, %v743_v53, 0.0  ;;  %v744_v52 = vmul.f32 %v1305_v47, %v1305_v47 }
  0xfd   : > { %vm545_vm5 = vcmp.ge.f32.partialorder %v470_v57, 0.0  ;;  %v577_v60 = vmul.f32 0.2, %v470_v57  ;;  %vm560_vm6 = vcmp.ge.f32.partialorder %v515_v59, 0.0  ;;  %v592_v62 = vmul.f32 0.2, %v515_v59 }
  0xff   : > { %v1317_v63 = vsel %vm545_vm5, %v470_v57, %v577_v60  ;;  %v1322_v2 = vsel %vm560_vm6, %v515_v59, %v592_v62  ;;  %v677_v59 = vsel %vm631_vm1, %v1281_v19, 0.0  ;;  %v780_v60 = vsel %vm631_vm1, %v742_v43, 0.0 }
 0x100   : > { %642 = vst.msk [vmem:[%s1201_s18 + $0x50] sm:$0xff] %vm631_vm1, %v1317_v63  ;;  %v359_v0 = vpop.f32.mrf.mxu0  ;;  %v404_v4 = vpop.f32.mrf.mxu2  ;;  %v676_v62 = vadd.f32 %v675_v49, %v674_v58 }
 0x101   : > { %v472_v1 = vpop.f32.mrf.mxu1  ;;  %v360_v3 = vadd.f32 %v1194_v32, %v359_v0  ;;  %657 = vst.msk [vmem:[%s1201_s18 + $0xc8] sm:$0xff] %vm631_vm1, %v1322_v2  ;;  %v517_v5 = vpop.f32.mrf.mxu3  ;;  %v405_v7 = vadd.f32 %v1194_v32, %v404_v4  ;;  %v779_v0 = vadd.f32 %v778_v51, %v777_v55 }
 0x103   : > { %v473_v8 = vadd.f32 %v472_v1, %v360_v3  ;;  %v518_v11 = vadd.f32 %v517_v5, %v405_v7  ;;  %v679_v3 = vsel %vm631_vm1, %v1293_v33, 0.0  ;;  %v678_v7 = vadd.f32 %v677_v59, %v676_v62 }
 0x105   : > { %vm546_vm7 = vcmp.ge.f32.partialorder %v473_v8, 0.0  ;;  %v578_v12 = vmul.f32 0.2, %v473_v8  ;;  %vm561_vm8 = vcmp.ge.f32.partialorder %v518_v11, 0.0  ;;  %v593_v13 = vmul.f32 0.2, %v518_v11 }
 0x107   : > { %v1329_v14 = vsel %vm546_vm7, %v473_v8, %v578_v12  ;;  %v1334_v17 = vsel %vm561_vm8, %v518_v11, %v593_v13  ;;  %v781_v8 = vadd.f32 %v780_v60, %v779_v0  ;;  %v745_v11 = vmul.f32 %v1317_v63, %v1317_v63 }
 0x108   : > { %643 = vst.msk [vmem:[%s1201_s18 + $0x58] sm:$0xff] %vm631_vm1, %v1329_v14  ;;  %v362_v15 = vpop.f32.mrf.mxu0  ;;  %v407_v20 = vpop.f32.mrf.mxu2  ;;  %v685_v31 = vsel %vm631_vm1, %v1329_v14, 0.0 }
 0x109   : > { %v475_v16 = vpop.f32.mrf.mxu1  ;;  %v363_v18 = vadd.f32 %v1194_v32, %v362_v15  ;;  %658 = vst.msk [vmem:[%s1201_s18 + $0xd0] sm:$0xff] %vm631_vm1, %v1334_v17  ;;  %v520_v21 = vpop.f32.mrf.mxu3  ;;  %v408_v23 = vadd.f32 %v1194_v32, %v407_v20  ;;  %v681_v15 = vsel %vm631_vm1, %v1305_v47, 0.0  ;;  %v783_v20 = vadd.f32 %v782_v46, %v781_v8 }
 0x10b   : > { %v476_v24 = vadd.f32 %v475_v16, %v363_v18  ;;  %v521_v25 = vadd.f32 %v520_v21, %v408_v23  ;;  %v680_v18 = vadd.f32 %v679_v3, %v678_v7  ;;  %v784_v23 = vsel %vm631_vm1, %v744_v52, 0.0 }
 0x10d   : > { %vm547_vm9 = vcmp.ge.f32.partialorder %v476_v24, 0.0  ;;  %v579_v26 = vmul.f32 0.2, %v476_v24  ;;  %vm562_vm10 = vcmp.ge.f32.partialorder %v521_v25, 0.0  ;;  %v594_v29 = vmul.f32 0.2, %v521_v25 }
 0x10e   : > { %v682_v28 = vadd.f32 %v681_v15, %v680_v18 }
 0x10f   : > { %v1343_v30 = vsel %vm547_vm9, %v476_v24, %v579_v26  ;;  %v1350_v37 = vsel %vm562_vm10, %v521_v25, %v594_v29  ;;  %v683_v24 = vsel %vm631_vm1, %v1317_v63, 0.0  ;;  %v746_v25 = vmul.f32 %v1329_v14, %v1329_v14 }
 0x110   : > { %644 = vst.msk [vmem:[%s1201_s18 + $0x60] sm:$0xff] %vm631_vm1, %v1343_v30  ;;  %v365_v34 = vpop.f32.mrf.mxu0  ;;  %v410_v39 = vpop.f32.mrf.mxu2  ;;  %v786_v29 = vsel %vm631_vm1, %v745_v11, 0.0  ;;  %v785_v63 = vadd.f32 %v784_v23, %v783_v20  ;;  %v687_v41 = vsel %vm631_vm1, %v1343_v30, 0.0 }
 0x111   : > { %v478_v35 = vpop.f32.mrf.mxu1  ;;  %v366_v38 = vadd.f32 %v1194_v32, %v365_v34  ;;  %659 = vst.msk [vmem:[%s1201_s18 + $0xd8] sm:$0xff] %vm631_vm1, %v1350_v37  ;;  %v523_v40 = vpop.f32.mrf.mxu3  ;;  %v411_v44 = vadd.f32 %v1194_v32, %v410_v39  ;;  %v747_v34 = vmul.f32 %v1343_v30, %v1343_v30 }
 0x113   : > { %v479_v48 = vadd.f32 %v478_v35, %v366_v38  ;;  %v524_v54 = vadd.f32 %v523_v40, %v411_v44  ;;  %v684_v38 = vadd.f32 %v683_v24, %v682_v28  ;;  %v788_v40 = vsel %vm631_vm1, %v746_v25, 0.0 }
 0x114   : > { %v790_v58 = vsel %vm631_vm1, %v747_v34, 0.0  ;;  %v695_v24 = vsel %vm631_vm1, %v1211_v56, 0.0  ;;  %v753_v34 = vmul.f32 %v1234_v27, %v1234_v27 }
 0x115   : > { %vm548_vm11 = vcmp.ge.f32.partialorder %v479_v48, 0.0  ;;  %v580_v57 = vmul.f32 0.2, %v479_v48  ;;  %vm563_vm12 = vcmp.ge.f32.partialorder %v524_v54, 0.0  ;;  %v595_v6 = vmul.f32 0.2, %v524_v54 }
 0x116   : > { %v686_v49 = vadd.f32 %v685_v31, %v684_v38  ;;  %v697_v31 = vsel %vm631_vm1, %v1223_v10, 0.0 }
 0x117   : > { %v612_v1 = vsel %vm548_vm11, %v479_v48, %v580_v57  ;;  %v1379_v5 = vsel %vm563_vm12, %v524_v54, %v595_v6  ;;  %v787_v48 = vadd.f32 %v786_v29, %v785_v63 }
 0x118   : > { %645 = vst.msk [vmem:[%s1201_s18 + $0x68] sm:$0xff] %vm631_vm1, %v612_v1  ;;  %v368_v4 = vpop.f32.mrf.mxu0  ;;  %v413_v33 = vpop.f32.mrf.mxu2  ;;  %v748_v42 = vmul.f32 %v612_v1, %v612_v1  ;;  %v689_v30 = vsel %vm631_vm1, %v612_v1, 0.0  ;;  %v688_v60 = vadd.f32 %v687_v41, %v686_v49 }
 0x119   : > { %v481_v19 = vpop.f32.mrf.mxu1  ;;  %v369_v12 = vadd.f32 %v1194_v32, %v368_v4  ;;  %660 = vst.msk [vmem:[%s1201_s18 + $0xe0] sm:$0xff] %vm631_vm1, %v1379_v5  ;;  %v526_v13 = vpop.f32.mrf.mxu3  ;;  %v414_v16 = vadd.f32 %v1194_v32, %v413_v33  ;;  %v789_v59 = vadd.f32 %v788_v40, %v787_v48 }
 0x11a   : > { %v792_v62 = vsel %vm631_vm1, %v748_v42, 0.0  ;;  %v690_v52 = vadd.f32 %v689_v30, %v688_v60 }
 0x11b   : > { %v482_v21 = vadd.f32 %v481_v19, %v369_v12  ;;  %v527_v26 = vadd.f32 %v526_v13, %v414_v16  ;;  %v791_v46 = vadd.f32 %v790_v58, %v789_v59  ;;  %v751_v12 = vmul.f32 %v1211_v56, %v1211_v56 }
 0x11c   : > { %v752_v16 = vmul.f32 %v1223_v10, %v1223_v10  ;;  %v802_v10 = vsel %vm631_vm1, %v753_v34, 0.0 }
 0x11d   : > { %vm549_vm13 = vcmp.ge.f32.partialorder %v482_v21, 0.0  ;;  %v581_v47 = vmul.f32 0.2, %v482_v21  ;;  %vm564_vm14 = vcmp.ge.f32.partialorder %v527_v26, 0.0  ;;  %v596_v35 = vmul.f32 0.2, %v527_v26 }
 0x11e   : > { %v793_v7 = vadd.f32 %v792_v62, %v791_v46  ;;  %v800_v63 = vsel %vm631_vm1, %v752_v16, 0.0  ;;  %v758_v62 = vmul.f32 %v1298_v36, %v1298_v36 }
 0x11f   : > { %v613_v39 = vsel %vm549_vm13, %v482_v21, %v581_v47  ;;  %v1405_v14 = vsel %vm564_vm14, %v527_v26, %v596_v35  ;;  %v798_v47 = vsel %vm631_vm1, %v751_v12, 0.0 }
 0x120   : > { %646 = vst.msk [vmem:[%s1201_s18 + $0x70] sm:$0xff] %vm631_vm1, %v613_v39  ;;  %v371_v43 = vpop.f32.mrf.mxu0  ;;  %v416_v53 = vpop.f32.mrf.mxu2  ;;  %v749_v55 = vmul.f32 %v613_v39, %v613_v39  ;;  %v691_v0 = vsel %vm631_vm1, %v613_v39, 0.0  ;;  %v699_v39 = vsel %vm631_vm1, %v1234_v27, 0.0 }
 0x121   : > { %v484_v44 = vpop.f32.mrf.mxu1  ;;  %v372_v51 = vadd.f32 %v1194_v32, %v371_v43  ;;  %661 = vst.msk [vmem:[%s1201_s18 + $0xe8] sm:$0xff] %vm631_vm1, %v1405_v14  ;;  %v529_v54 = vpop.f32.mrf.mxu3  ;;  %v417_v57 = vadd.f32 %v1194_v32, %v416_v53  ;;  %v692_v8 = vadd.f32 %v691_v0, %v690_v52  ;;  %v701_v43 = vsel %vm631_vm1, %v1245_v45, 0.0 }
 0x122   : > { %v794_v19 = vsel %vm631_vm1, %v749_v55, 0.0  ;;  %v703_v53 = vsel %vm631_vm1, %v1262_v61, 0.0  ;;  %v705_v55 = vsel %vm631_vm1, %v1274_v9, 0.0  ;;  %v759_v52 = vmul.f32 %v1310_v50, %v1310_v50 }
 0x123   : > { %v485_v6 = vadd.f32 %v484_v44, %v372_v51  ;;  %v530_v3 = vadd.f32 %v529_v54, %v417_v57  ;;  %v795_v18 = vadd.f32 %v794_v19, %v793_v7  ;;  %v755_v44 = vmul.f32 %v1262_v61, %v1262_v61 }
 0x124   : > { %v756_v54 = vmul.f32 %v1274_v9, %v1274_v9  ;;  %v757_v57 = vmul.f32 %v1286_v22, %v1286_v22  ;;  %v707_v61 = vsel %vm631_vm1, %v1286_v22, 0.0  ;;  %v709_v9 = vsel %vm631_vm1, %v1298_v36, 0.0 }
 0x125   : > { %vm550_vm15 = vcmp.ge.f32.partialorder %v485_v6, 0.0  ;;  %v582_v4 = vmul.f32 0.2, %v485_v6  ;;  %vm565_vm0 = vcmp.ge.f32.partialorder %v530_v3, 0.0  ;;  %v597_v1 = vmul.f32 0.2, %v530_v3 }
 0x126   : > { %v810_v46 = vsel %vm631_vm1, %v757_v57, 0.0  ;;  %v711_v22 = vsel %vm631_vm1, %v1310_v50, 0.0  ;;  %v760_v7 = vmul.f32 %v1322_v2, %v1322_v2  ;;  %v814_v12 = vsel %vm631_vm1, %v759_v52, 0.0 }
 0x127   : > { %v614_v11 = vsel %vm550_vm15, %v485_v6, %v582_v4  ;;  %v1422_v15 = vsel %vm565_vm0, %v530_v3, %v597_v1  ;;  %v808_v6 = vsel %vm631_vm1, %v756_v54, 0.0  ;;  %v812_v1 = vsel %vm631_vm1, %v758_v62, 0.0 }
 0x128   : > { %647 = vst.msk [vmem:[%s1201_s18 + $0x78] sm:$0xff] %vm631_vm1, %v614_v11  ;;  %v693_v33 = vsel %vm631_vm1, %v614_v11, 0.0  ;;  %v750_v13 = vmul.f32 %v614_v11, %v614_v11  ;;  %v419_v21 = vpop.f32.mrf.mxu2  ;;  %v713_v36 = vsel %vm631_vm1, %v1322_v2, 0.0  ;;  %v715_v50 = vsel %vm631_vm1, %v1334_v17, 0.0 }
 0x129   : > { %v694_v20 = vadd.f32 %v693_v33, %v692_v8  ;;  %662 = vst.msk [vmem:[%s1201_s18 + $0xf0] sm:$0xff] %vm631_vm1, %v1422_v15  ;;  %v532_v23 = vpop.f32.mrf.mxu3  ;;  %v420_v26 = vadd.f32 %v1194_v32, %v419_v21  ;;  %v754_v32 = vmul.f32 %v1245_v45, %v1245_v45  ;;  %v806_v45 = vsel %vm631_vm1, %v755_v44, 0.0 }
 0x12a   : > { %v796_v25 = vsel %vm631_vm1, %v750_v13, 0.0  ;;  %v761_v33 = vmul.f32 %v1334_v17, %v1334_v17  ;;  %v717_v2 = vsel %vm631_vm1, %v1350_v37, 0.0  ;;  %v719_v17 = vsel %vm631_vm1, %v1379_v5, 0.0 }
 0x12b   : > { %v696_v28 = vadd.f32 %v695_v24, %v694_v20  ;;  %v797_v29 = vadd.f32 %v796_v25, %v795_v18  ;;  %v533_v35 = vadd.f32 %v532_v23, %v420_v26  ;;  %v804_v27 = vsel %vm631_vm1, %v754_v32, 0.0 }
 0x12c   : > { %v816_v18 = vsel %vm631_vm1, %v760_v7, 0.0  ;;  %v762_v20 = vmul.f32 %v1350_v37, %v1350_v37  ;;  %v818_v24 = vsel %vm631_vm1, %v761_v33, 0.0  ;;  %v763_v25 = vmul.f32 %v1379_v5, %v1379_v5 }
 0x12d   : > { %v698_v38 = vadd.f32 %v697_v31, %v696_v28  ;;  %v799_v56 = vadd.f32 %v798_v47, %v797_v29  ;;  %vm566_vm2 = vcmp.ge.f32.partialorder %v533_v35, 0.0  ;;  %v598_v40 = vmul.f32 0.2, %v533_v35 }
 0x12e   : > { %v820_v29 = vsel %vm631_vm1, %v762_v20, 0.0  ;;  %v764_v47 = vmul.f32 %v1405_v14, %v1405_v14  ;;  %v721_v37 = vsel %vm631_vm1, %v1405_v14, 0.0  ;;  %v723_v5 = vsel %vm631_vm1, %v1422_v15, 0.0 }
 0x12f   : > { %v700_v41 = vadd.f32 %v699_v39, %v698_v38  ;;  %v801_v42 = vadd.f32 %v800_v63, %v799_v56  ;;  %v630_v48 = vsel %vm566_vm2, %v533_v35, %v598_v40  ;;  %v822_v35 = vsel %vm631_vm1, %v763_v25, 0.0 }
 0x130   : > { %663 = vst.msk [vmem:[%s1201_s18 + $0xf8] sm:$0xff] %vm631_vm1, %v630_v48  ;;  %v765_v63 = vmul.f32 %v1422_v15, %v1422_v15  ;;  %v824_v39 = vsel %vm631_vm1, %v764_v47, 0.0  ;;  %v766_v32 = vmul.f32 %v630_v48, %v630_v48 }
 0x131   : > { %v702_v49 = vadd.f32 %v701_v43, %v700_v41  ;;  %v803_v51 = vadd.f32 %v802_v10, %v801_v42  ;;  %v725_v10 = vsel %vm631_vm1, %v630_v48, 0.0 }
 0x132   : > { %v826_v42 = vsel %vm631_vm1, %v765_v63, 0.0  ;;  %v828_v44 = vsel %vm631_vm1, %v766_v32, 0.0 }
 0x133   : > { %v704_v58 = vadd.f32 %v703_v53, %v702_v49  ;;  %v805_v30 = vadd.f32 %v804_v27, %v803_v51 }
 0x135   : > { %v706_v59 = vadd.f32 %v705_v55, %v704_v58  ;;  %v807_v60 = vadd.f32 %v806_v45, %v805_v30 }
 0x137   : > { %v809_v0 = vadd.f32 %v808_v6, %v807_v60  ;;  %v708_v3 = vadd.f32 %v707_v61, %v706_v59 }
 0x139   : > { %v710_v4 = vadd.f32 %v709_v9, %v708_v3  ;;  %v811_v19 = vadd.f32 %v810_v46, %v809_v0 }
 0x13b   : > { %v712_v8 = vadd.f32 %v711_v22, %v710_v4  ;;  %v813_v11 = vadd.f32 %v812_v1, %v811_v19 }
 0x13d   : > { %v714_v13 = vadd.f32 %v713_v36, %v712_v8  ;;  %v815_v16 = vadd.f32 %v814_v12, %v813_v11 }
 0x13f   : > { %v716_v21 = vadd.f32 %v715_v50, %v714_v13  ;;  %v817_v23 = vadd.f32 %v816_v18, %v815_v16 }
 0x141   : > { %v718_v26 = vadd.f32 %v717_v2, %v716_v21  ;;  %v819_v28 = vadd.f32 %v818_v24, %v817_v23 }
 0x143   : > { %v720_v31 = vadd.f32 %v719_v17, %v718_v26  ;;  %v821_v34 = vadd.f32 %v820_v29, %v819_v28 }
 0x145   : > { %v823_v38 = vadd.f32 %v822_v35, %v821_v34  ;;  %v722_v56 = vadd.f32 %v721_v37, %v720_v31 }
 0x147   : > { %v825_v40 = vadd.f32 %v824_v39, %v823_v38  ;;  %v724_v41 = vadd.f32 %v723_v5, %v722_v56 }
 0x149   : > { %v827_v43 = vadd.f32 %v826_v42, %v825_v40  ;;  %v726_v14 = vadd.f32 %v725_v10, %v724_v41 }
 0x14b   : > { %v727_v49 = vrot.slane %v726_v14, 4  ;;  %v829_v51 = vadd.f32 %v828_v44, %v827_v43 }
 0x14d   : > { %v728_v27 = vadd.f32 %v727_v49, %v726_v14  ;;  %v830_v53 = vrot.slane %v829_v51, 4 }
 0x14f   : > { %v729_v54 = vrot.slane %v728_v27, 2  ;;  %v831_v58 = vadd.f32 %v830_v53, %v829_v51 }
 0x151   : > { %v730_v30 = vadd.f32 %v729_v54, %v728_v27  ;;  %v832_v15 = vrot.slane %v831_v58, 2 }
 0x153   : > { %v731_v45 = vrot.slane %v730_v30, 1  ;;  %v833_v55 = vadd.f32 %v832_v15, %v831_v58 }
 0x155   : > { %v732_v48 = vadd.f32 %v731_v45, %v730_v30  ;;  %v834_v57 = vrot.slane %v833_v55, 1 }
 0x157   : > { %734 = vst.msk [vmem:[%s208_s22] sm:$0x1] %vm733_vm3, %v732_v48  ;;  %v835_v59 = vadd.f32 %v834_v57, %v833_v55 }
 0x159   : > { %836 = vst.msk [vmem:[%s208_s22 + $0x1] sm:$0x1] %vm733_vm3, %v835_v59 }
 0x15a PF: > { %s15_s15 = sadd.s32 1, %s984_s15  }
 0x15b   : > { %p12_p4 = scmp.ge.s32.totalorder %s15_s15, 4  }
 0x15d   :  { %14 = sbr.rel (!%p12_p4) target bundleno = 1 (0x1), region = 74 }

// kernel: _lambda_.7
= control target key start
LH: loop header
LB: loop body
LE: loop exit
PB: predicated region body
PF: predicated region fallthrough
CT: control target
= control target key end

     0   :  { %s701_s15 = smov 0   ;;  %s1015_s0 = inlined_call_operand.vmem [shape: f32[2,64,512], index: 0, kind: input, shape index: {}]   ;;  %s1016_s1 = inlined_call_operand.vmem [shape: f32[512,64], index: 1, kind: input, shape index: {}]   ;;  %s1017_s2 = inlined_call_operand.vmem [shape: f32[1,64], index: 2, kind: input, shape index: {}]   ;;  %s1018_s3 = inlined_call_operand.vmem [shape: f32[2,64,64], index: 3, kind: output, shape index: {0}]   ;;  %s1019_s4 = inlined_call_operand.vmem [shape: f32[2,2,64], index: 4, kind: output, shape index: {1}]  }
   0x1 LB: > { %s645_s16 = sadd.s32 4294967295, %s674_s15   ;;  %p649_p0 = scmp.ge.s32.totalorder %s674_s15, 1  ;;  %s674_s15 = sphi %s701_s15, %s15_s15  }
   0x2   : > { %p165_p1 = scmp.lt.s32.totalorder %s674_s15, 3 }
   0x4   : > { %p166_p2 = pnand %p649_p0, %p165_p1 }
   0x5   : > { %p819_p3 = scmp.lt.s32.totalorder (!%p166_p2), %s645_s16, 1 }
   0x6   : > { %169 = sbr.rel (%p166_p2) target bundleno = 257 (0x101), region = 32 }
   0xb   : > { %v288_v0 = vld [vmem:[%s1016_s1 + $0x178] sm:$0xff]  ;;  %v287_v2 = vld [vmem:[%s1016_s1 + $0x170] sm:$0xff]  ;;  %v286_v6 = vld [vmem:[%s1016_s1 + $0x168] sm:$0xff]  ;;  %s1022_s16 = smov (!%p819_p3, %s645_s16), 1  ;;  %vm497_vm1 = vcmask 523264   ;;  %vm527_vm9 = vcmask 516096  }
   0xc   : > { %v256_v1 = vld [vmem:[%s1016_s1 + $0x78] sm:$0xff]  ;;  %391 = vmatpush.msra.mxu2 %v288_v0  ;;  %v255_v4 = vld [vmem:[%s1016_s1 + $0x70] sm:$0xff]  ;;  %v254_v8 = vld [vmem:[%s1016_s1 + $0x68] sm:$0xff]  ;;  %s657_s26 = sshll.u32 %s1022_s16, 8  ;;  %s658_s6 = sshll.u32 %s1022_s16, 6 }
   0xd   : > { %309 = vmatpush.msra.mxu0 %v256_v1  ;;  %v304_v3 = vld [vmem:[%s1016_s1 + $0x1f8] sm:$0xff]  ;;  %v303_v7 = vld [vmem:[%s1016_s1 + $0x1f0] sm:$0xff]  ;;  %v302_v10 = vld [vmem:[%s1016_s1 + $0x1e8] sm:$0xff]  ;;  %s899_s17 = scalar_lea.vmem %s1015_s0, %s657_s26  ;;  %s962_s9 = scalar_lea.vmem %s1018_s3, %s658_s6 }
   0xe   : > { %v272_v5 = vld [vmem:[%s1016_s1 + $0xf8] sm:$0xff]  ;;  %432 = vmatpush.msra.mxu3 %v304_v3  ;;  %392 = vmatpush.msra.mxu2 %v287_v2  ;;  %v271_v9 = vld [vmem:[%s1016_s1 + $0xf0] sm:$0xff]  ;;  %v285_v11 = vld [vmem:[%s1016_s1 + $0x160] sm:$0xff]  ;;  %s654_s10 = sshll.u32 %s1022_s16, 1 }
   0xf   : > { %350 = vmatpush.msra.mxu1 %v272_v5  ;;  %310 = vmatpush.msra.mxu0 %v255_v4  ;;  %v253_v12 = vld [vmem:[%s1016_s1 + $0x60] sm:$0xff]  ;;  %v270_v13 = vld [vmem:[%s1016_s1 + $0xe8] sm:$0xff]  ;;  %v284_v16 = vld [vmem:[%s1016_s1 + $0x158] sm:$0xff]  ;;  %s208_s13 = scalar_lea.vmem %s1019_s4, %s654_s10 }
  0x10   : > { %433 = vmatpush.msra.mxu3 %v303_v7  ;;  %393 = vmatpush.msra.mxu2 %v286_v6  ;;  %v301_v14 = vld [vmem:[%s1016_s1 + $0x1e0] sm:$0xff]  ;;  %v252_v17 = vld [vmem:[%s1016_s1 + $0x58] sm:$0xff]  ;;  %v283_v20 = vld [vmem:[%s1016_s1 + $0x150] sm:$0xff] }
  0x11   : > { %351 = vmatpush.msra.mxu1 %v271_v9  ;;  %311 = vmatpush.msra.mxu0 %v254_v8  ;;  %v269_v15 = vld [vmem:[%s1016_s1 + $0xe0] sm:$0xff]  ;;  %v300_v18 = vld [vmem:[%s1016_s1 + $0x1d8] sm:$0xff]  ;;  %v251_v21 = vld [vmem:[%s1016_s1 + $0x50] sm:$0xff] }
  0x12   : > { %434 = vmatpush.msra.mxu3 %v302_v10  ;;  %394 = vmatpush.msra.mxu2 %v285_v11  ;;  %v268_v19 = vld [vmem:[%s1016_s1 + $0xd8] sm:$0xff]  ;;  %v299_v22 = vld [vmem:[%s1016_s1 + $0x1d0] sm:$0xff]  ;;  %v282_v24 = vld [vmem:[%s1016_s1 + $0x148] sm:$0xff] }
  0x13   : > { %352 = vmatpush.msra.mxu1 %v270_v13  ;;  %312 = vmatpush.msra.mxu0 %v253_v12  ;;  %v267_v23 = vld [vmem:[%s1016_s1 + $0xd0] sm:$0xff]  ;;  %v250_v25 = vld [vmem:[%s1016_s1 + $0x48] sm:$0xff]  ;;  %v281_v28 = vld [vmem:[%s1016_s1 + $0x140] sm:$0xff] }
  0x14   : > { %435 = vmatpush.msra.mxu3 %v301_v14  ;;  %395 = vmatpush.msra.mxu2 %v284_v16  ;;  %v298_v26 = vld [vmem:[%s1016_s1 + $0x1c8] sm:$0xff]  ;;  %v249_v29 = vld [vmem:[%s1016_s1 + $0x40] sm:$0xff]  ;;  %v280_v32 = vld [vmem:[%s1016_s1 + $0x138] sm:$0xff] }
  0x15   : > { %353 = vmatpush.msra.mxu1 %v269_v15  ;;  %313 = vmatpush.msra.mxu0 %v252_v17  ;;  %v266_v27 = vld [vmem:[%s1016_s1 + $0xc8] sm:$0xff]  ;;  %v297_v30 = vld [vmem:[%s1016_s1 + $0x1c0] sm:$0xff]  ;;  %v248_v33 = vld [vmem:[%s1016_s1 + $0x38] sm:$0xff] }
  0x16   : > { %436 = vmatpush.msra.mxu3 %v300_v18  ;;  %396 = vmatpush.msra.mxu2 %v283_v20  ;;  %v265_v31 = vld [vmem:[%s1016_s1 + $0xc0] sm:$0xff]  ;;  %v296_v34 = vld [vmem:[%s1016_s1 + $0x1b8] sm:$0xff]  ;;  %v279_v36 = vld [vmem:[%s1016_s1 + $0x130] sm:$0xff] }
  0x17   : > { %354 = vmatpush.msra.mxu1 %v268_v19  ;;  %314 = vmatpush.msra.mxu0 %v251_v21  ;;  %v264_v35 = vld [vmem:[%s1016_s1 + $0xb8] sm:$0xff]  ;;  %v247_v37 = vld [vmem:[%s1016_s1 + $0x30] sm:$0xff]  ;;  %v278_v40 = vld [vmem:[%s1016_s1 + $0x128] sm:$0xff] }
  0x18   : > { %437 = vmatpush.msra.mxu3 %v299_v22  ;;  %397 = vmatpush.msra.mxu2 %v282_v24  ;;  %v295_v38 = vld [vmem:[%s1016_s1 + $0x1b0] sm:$0xff]  ;;  %v246_v41 = vld [vmem:[%s1016_s1 + $0x28] sm:$0xff]  ;;  %v277_v44 = vld [vmem:[%s1016_s1 + $0x120] sm:$0xff] }
  0x19   : > { %355 = vmatpush.msra.mxu1 %v267_v23  ;;  %315 = vmatpush.msra.mxu0 %v250_v25  ;;  %v263_v39 = vld [vmem:[%s1016_s1 + $0xb0] sm:$0xff]  ;;  %v294_v42 = vld [vmem:[%s1016_s1 + $0x1a8] sm:$0xff]  ;;  %v245_v45 = vld [vmem:[%s1016_s1 + $0x20] sm:$0xff] }
  0x1a   : > { %438 = vmatpush.msra.mxu3 %v298_v26  ;;  %398 = vmatpush.msra.mxu2 %v281_v28  ;;  %v262_v43 = vld [vmem:[%s1016_s1 + $0xa8] sm:$0xff]  ;;  %v293_v46 = vld [vmem:[%s1016_s1 + $0x1a0] sm:$0xff]  ;;  %v276_v48 = vld [vmem:[%s1016_s1 + $0x118] sm:$0xff] }
  0x1b   : > { %356 = vmatpush.msra.mxu1 %v266_v27  ;;  %316 = vmatpush.msra.mxu0 %v249_v29  ;;  %v261_v47 = vld [vmem:[%s1016_s1 + $0xa0] sm:$0xff]  ;;  %v244_v49 = vld [vmem:[%s1016_s1 + $0x18] sm:$0xff]  ;;  %v275_v52 = vld [vmem:[%s1016_s1 + $0x110] sm:$0xff] }
  0x1c   : > { %439 = vmatpush.msra.mxu3 %v297_v30  ;;  %399 = vmatpush.msra.mxu2 %v280_v32  ;;  %v292_v50 = vld [vmem:[%s1016_s1 + $0x198] sm:$0xff]  ;;  %v243_v53 = vld [vmem:[%s1016_s1 + $0x10] sm:$0xff]  ;;  %v274_v56 = vld [vmem:[%s1016_s1 + $0x108] sm:$0xff] }
  0x1d   : > { %357 = vmatpush.msra.mxu1 %v265_v31  ;;  %317 = vmatpush.msra.mxu0 %v248_v33  ;;  %v260_v51 = vld [vmem:[%s1016_s1 + $0x98] sm:$0xff]  ;;  %v291_v54 = vld [vmem:[%s1016_s1 + $0x190] sm:$0xff]  ;;  %v242_v57 = vld [vmem:[%s1016_s1 + $0x8] sm:$0xff] }
  0x1e   : > { %440 = vmatpush.msra.mxu3 %v296_v34  ;;  %400 = vmatpush.msra.mxu2 %v279_v36  ;;  %v259_v55 = vld [vmem:[%s1016_s1 + $0x90] sm:$0xff]  ;;  %v290_v58 = vld [vmem:[%s1016_s1 + $0x188] sm:$0xff]  ;;  %v273_v60 = vld [vmem:[%s1016_s1 + $0x100] sm:$0xff] }
  0x1f   : > { %358 = vmatpush.msra.mxu1 %v264_v35  ;;  %318 = vmatpush.msra.mxu0 %v247_v37  ;;  %v258_v59 = vld [vmem:[%s1016_s1 + $0x88] sm:$0xff]  ;;  %v241_v61 = vld [vmem:[%s1016_s1] sm:$0xff]  ;;  %v211_v62 = vld [vmem:[%s899_s17 + $0x10] sm:$0xff] }
  0x20   : > { %441 = vmatpush.msra.mxu3 %v295_v38  ;;  %401 = vmatpush.msra.mxu2 %v278_v40  ;;  %v289_v63 = vld [vmem:[%s1016_s1 + $0x180] sm:$0xff]  ;;  %v212_v1 = vld [vmem:[%s899_s17 + $0x18] sm:$0xff]  ;;  %v210_v3 = vld [vmem:[%s899_s17 + $0x8] sm:$0xff] }
  0x21   : > { %359 = vmatpush.msra.mxu1 %v263_v39  ;;  %319 = vmatpush.msra.mxu0 %v246_v41  ;;  %v209_v0 = vld [vmem:[%s899_s17] sm:$0xff]  ;;  %v215_v4 = vld [vmem:[%s899_s17 + $0x30] sm:$0xff]  ;;  %v216_v6 = vld [vmem:[%s899_s17 + $0x38] sm:$0xff] }
  0x22   : > { %442 = vmatpush.msra.mxu3 %v294_v42  ;;  %402 = vmatpush.msra.mxu2 %v277_v44  ;;  %v257_v2 = vld [vmem:[%s1016_s1 + $0x80] sm:$0xff]  ;;  %v214_v7 = vld [vmem:[%s899_s17 + $0x28] sm:$0xff]  ;;  %v219_v8 = vld [vmem:[%s899_s17 + $0x50] sm:$0xff] }
  0x23   : > { %360 = vmatpush.msra.mxu1 %v262_v43  ;;  %320 = vmatpush.msra.mxu0 %v245_v45  ;;  %v213_v5 = vld [vmem:[%s899_s17 + $0x20] sm:$0xff]  ;;  %v220_v10 = vld [vmem:[%s899_s17 + $0x58] sm:$0xff]  ;;  %v218_v11 = vld [vmem:[%s899_s17 + $0x48] sm:$0xff] }
  0x24   : > { %443 = vmatpush.msra.mxu3 %v293_v46  ;;  %403 = vmatpush.msra.mxu2 %v276_v48  ;;  %v217_v9 = vld [vmem:[%s899_s17 + $0x40] sm:$0xff]  ;;  %v223_v12 = vld [vmem:[%s899_s17 + $0x70] sm:$0xff]  ;;  %v224_v14 = vld [vmem:[%s899_s17 + $0x78] sm:$0xff] }
  0x25   : > { %361 = vmatpush.msra.mxu1 %v261_v47  ;;  %321 = vmatpush.msra.mxu0 %v244_v49  ;;  %v221_v13 = vld [vmem:[%s899_s17 + $0x60] sm:$0xff]  ;;  %v222_v15 = vld [vmem:[%s899_s17 + $0x68] sm:$0xff]  ;;  %v227_v16 = vld [vmem:[%s899_s17 + $0x90] sm:$0xff] }
  0x26   : > { %444 = vmatpush.msra.mxu3 %v292_v50  ;;  %404 = vmatpush.msra.mxu2 %v275_v52  ;;  %v225_v17 = vld [vmem:[%s899_s17 + $0x80] sm:$0xff]  ;;  %v228_v18 = vld [vmem:[%s899_s17 + $0x98] sm:$0xff]  ;;  %v226_v19 = vld [vmem:[%s899_s17 + $0x88] sm:$0xff] }
  0x27   : > { %362 = vmatpush.msra.mxu1 %v260_v51  ;;  %322 = vmatpush.msra.mxu0 %v243_v53  ;;  %v231_v20 = vld [vmem:[%s899_s17 + $0xb0] sm:$0xff]  ;;  %v229_v21 = vld [vmem:[%s899_s17 + $0xa0] sm:$0xff]  ;;  %v232_v22 = vld [vmem:[%s899_s17 + $0xb8] sm:$0xff] }
  0x28   : > { %445 = vmatpush.msra.mxu3 %v291_v54  ;;  %405 = vmatpush.msra.mxu2 %v274_v56  ;;  %v230_v23 = vld [vmem:[%s899_s17 + $0xa8] sm:$0xff]  ;;  %v235_v24 = vld [vmem:[%s899_s17 + $0xd0] sm:$0xff]  ;;  %v233_v25 = vld [vmem:[%s899_s17 + $0xc0] sm:$0xff] }
  0x29   : > { %363 = vmatpush.msra.mxu1 %v259_v55  ;;  %323 = vmatpush.msra.mxu0 %v242_v57  ;;  %v236_v26 = vld [vmem:[%s899_s17 + $0xd8] sm:$0xff]  ;;  %v234_v27 = vld [vmem:[%s899_s17 + $0xc8] sm:$0xff]  ;;  %v239_v28 = vld [vmem:[%s899_s17 + $0xf0] sm:$0xff] }
  0x2a   : > { %446 = vmatpush.msra.mxu3 %v290_v58  ;;  %406 = vmatpush.msra.mxu2 %v273_v60  ;;  %v237_v29 = vld [vmem:[%s899_s17 + $0xe0] sm:$0xff]  ;;  %v240_v30 = vld [vmem:[%s899_s17 + $0xf8] sm:$0xff]  ;;  %v238_v31 = vld [vmem:[%s899_s17 + $0xe8] sm:$0xff] }
  0x2b   : > { %364 = vmatpush.msra.mxu1 %v258_v59  ;;  %324 = vmatpush.msra.mxu0 %v241_v61  ;;  %v954_v32 = vld [vmem:[%s1017_s2] ss:$0 sm:$0xff] }
  0x2c   : > { %407 = vmatmul.f32.vlgmr.msra.gmra.mxu2 %v211_v62  ;;  %447 = vmatpush.msra.mxu3 %v289_v63 }
  0x2d   : > { %325 = vmatmul.f32.vlgmr.msra.gmra.mxu0 %v209_v0  ;;  %448 = vmatmul.f32.vlgmr.msra.gmra.mxu3 %v212_v1 }
  0x2e   : > { %365 = vmatpush.msra.mxu1 %v257_v2 }
  0x2f   : > { %366 = vmatmul.f32.vlgmr.msra.gmra.mxu1 %v210_v3 }
  0x34   : > { %410 = vmatmul.f32.gmra.mxu2 %v215_v4 }
  0x35   : > { %328 = vmatmul.f32.gmra.mxu0 %v213_v5  ;;  %451 = vmatmul.f32.gmra.mxu3 %v216_v6 }
  0x37   : > { %369 = vmatmul.f32.gmra.mxu1 %v214_v7 }
  0x3c   : > { %413 = vmatmul.f32.gmra.mxu2 %v219_v8 }
  0x3d   : > { %331 = vmatmul.f32.gmra.mxu0 %v217_v9  ;;  %454 = vmatmul.f32.gmra.mxu3 %v220_v10 }
  0x3f   : > { %372 = vmatmul.f32.gmra.mxu1 %v218_v11 }
  0x44   : > { %416 = vmatmul.f32.gmra.mxu2 %v223_v12 }
  0x45   : > { %334 = vmatmul.f32.gmra.mxu0 %v221_v13  ;;  %457 = vmatmul.f32.gmra.mxu3 %v224_v14 }
  0x47   : > { %375 = vmatmul.f32.gmra.mxu1 %v222_v15 }
  0x4c   : > { %419 = vmatmul.f32.gmra.mxu2 %v227_v16 }
  0x4d   : > { %337 = vmatmul.f32.gmra.mxu0 %v225_v17  ;;  %460 = vmatmul.f32.gmra.mxu3 %v228_v18 }
  0x4f   : > { %378 = vmatmul.f32.gmra.mxu1 %v226_v19 }
  0x54   : > { %422 = vmatmul.f32.gmra.mxu2 %v231_v20 }
  0x55   : > { %340 = vmatmul.f32.gmra.mxu0 %v229_v21  ;;  %463 = vmatmul.f32.gmra.mxu3 %v232_v22 }
  0x57   : > { %381 = vmatmul.f32.gmra.mxu1 %v230_v23 }
  0x5c   : > { %425 = vmatmul.f32.gmra.mxu2 %v235_v24 }
  0x5d   : > { %343 = vmatmul.f32.gmra.mxu0 %v233_v25  ;;  %466 = vmatmul.f32.gmra.mxu3 %v236_v26 }
  0x5f   : > { %384 = vmatmul.f32.gmra.mxu1 %v234_v27 }
  0x64   : > { %428 = vmatmul.f32.gmra.mxu2 %v239_v28 }
  0x65   : > { %346 = vmatmul.f32.gmra.mxu0 %v237_v29  ;;  %469 = vmatmul.f32.gmra.mxu3 %v240_v30 }
  0x67   : > { %387 = vmatmul.f32.gmra.mxu1 %v238_v31 }
  0xaa   : > { %v326_v33 = vpop.f32.mrf.mxu0 }
  0xab   : > { %v327_v34 = vadd.f32 %v954_v32, %v326_v33 }
  0xac   : > { %v367_v35 = vpop.f32.mrf.mxu1 }
  0xad   : > { %v368_v36 = vadd.f32 %v367_v35, %v327_v34 }
  0xaf   : > { %v408_v37 = vpop.f32.mrf.mxu2 }
  0xb0   : > { %v409_v38 = vadd.f32 %v408_v37, %v368_v36  ;;  %v449_v39 = vpop.f32.mrf.mxu3 }
  0xb2   : > { %v450_v40 = vadd.f32 %v449_v39, %v409_v38  ;;  %v329_v41 = vpop.f32.mrf.mxu0 }
  0xb3   : > { %v330_v42 = vadd.f32 %v954_v32, %v329_v41 }
  0xb4   : > { %vm473_vm0 = vcmp.ge.f32.partialorder %v450_v40, 0.0  ;;  %v481_v43 = vmul.f32 0.2, %v450_v40  ;;  %v370_v44 = vpop.f32.mrf.mxu1 }
  0xb5   : > { %v371_v45 = vadd.f32 %v370_v44, %v330_v42 }
  0xb6   : > { %v964_v46 = vsel %vm473_vm0, %v450_v40, %v481_v43 }
  0xb7   : > { %498 = vst.msk [vmem:[%s962_s9] sm:$0xff] %vm497_vm1, %v964_v46  ;;  %v411_v47 = vpop.f32.mrf.mxu2  ;;  %v529_v36 = vmul.f32 %v964_v46, %v964_v46  ;;  %v506_v41 = vsel %vm497_vm1, %v964_v46, 0.0 }
  0xb8   : > { %v412_v48 = vadd.f32 %v411_v47, %v371_v45  ;;  %v452_v49 = vpop.f32.mrf.mxu3 }
  0xba   : > { %v453_v50 = vadd.f32 %v452_v49, %v412_v48  ;;  %v332_v51 = vpop.f32.mrf.mxu0  ;;  %v537_v49 = vsel %vm497_vm1, %v529_v36, 0.0 }
  0xbb   : > { %v333_v52 = vadd.f32 %v954_v32, %v332_v51 }
  0xbc   : > { %vm474_vm2 = vcmp.ge.f32.partialorder %v453_v50, 0.0  ;;  %v482_v53 = vmul.f32 0.2, %v453_v50  ;;  %v373_v54 = vpop.f32.mrf.mxu1 }
  0xbd   : > { %v374_v55 = vadd.f32 %v373_v54, %v333_v52 }
  0xbe   : > { %v490_v56 = vsel %vm474_vm2, %v453_v50, %v482_v53 }
  0xbf   : > { %499 = vst.msk [vmem:[%s962_s9 + $0x8] sm:$0xff] %vm497_vm1, %v490_v56  ;;  %v414_v57 = vpop.f32.mrf.mxu2  ;;  %v530_v34 = vmul.f32 %v490_v56, %v490_v56  ;;  %v507_v39 = vsel %vm497_vm1, %v490_v56, 0.0 }
  0xc0   : > { %v415_v58 = vadd.f32 %v414_v57, %v374_v55  ;;  %v455_v59 = vpop.f32.mrf.mxu3  ;;  %v508_v50 = vadd.f32 %v507_v39, %v506_v41 }
  0xc1   : > { %v538_v44 = vsel %vm497_vm1, %v530_v34, 0.0 }
  0xc2   : > { %v456_v60 = vadd.f32 %v455_v59, %v415_v58  ;;  %v335_v61 = vpop.f32.mrf.mxu0  ;;  %v539_v56 = vadd.f32 %v538_v44, %v537_v49 }
  0xc3   : > { %v336_v62 = vadd.f32 %v954_v32, %v335_v61 }
  0xc4   : > { %vm475_vm3 = vcmp.ge.f32.partialorder %v456_v60, 0.0  ;;  %v483_v63 = vmul.f32 0.2, %v456_v60  ;;  %v376_v0 = vpop.f32.mrf.mxu1 }
  0xc5   : > { %v377_v1 = vadd.f32 %v376_v0, %v336_v62 }
  0xc6   : > { %v491_v2 = vsel %vm475_vm3, %v456_v60, %v483_v63 }
  0xc7   : > { %500 = vst.msk [vmem:[%s962_s9 + $0x10] sm:$0xff] %vm497_vm1, %v491_v2  ;;  %v417_v3 = vpop.f32.mrf.mxu2  ;;  %v531_v40 = vmul.f32 %v491_v2, %v491_v2  ;;  %v509_v45 = vsel %vm497_vm1, %v491_v2, 0.0 }
  0xc8   : > { %v418_v4 = vadd.f32 %v417_v3, %v377_v1  ;;  %v458_v5 = vpop.f32.mrf.mxu3  ;;  %v510_v57 = vadd.f32 %v509_v45, %v508_v50 }
  0xc9   : > { %v540_v53 = vsel %vm497_vm1, %v531_v40, 0.0 }
  0xca   : > { %v459_v6 = vadd.f32 %v458_v5, %v418_v4  ;;  %v338_v7 = vpop.f32.mrf.mxu0  ;;  %v541_v62 = vadd.f32 %v540_v53, %v539_v56 }
  0xcb   : > { %v339_v8 = vadd.f32 %v954_v32, %v338_v7 }
  0xcc   : > { %vm476_vm4 = vcmp.ge.f32.partialorder %v459_v6, 0.0  ;;  %v484_v9 = vmul.f32 0.2, %v459_v6  ;;  %v379_v10 = vpop.f32.mrf.mxu1 }
  0xcd   : > { %v380_v11 = vadd.f32 %v379_v10, %v339_v8 }
  0xce   : > { %v492_v12 = vsel %vm476_vm4, %v459_v6, %v484_v9 }
  0xcf   : > { %501 = vst.msk [vmem:[%s962_s9 + $0x18] sm:$0xff] %vm497_vm1, %v492_v12  ;;  %v420_v13 = vpop.f32.mrf.mxu2  ;;  %v532_v47 = vmul.f32 %v492_v12, %v492_v12  ;;  %v511_v46 = vsel %vm497_vm1, %v492_v12, 0.0 }
  0xd0   : > { %v421_v14 = vadd.f32 %v420_v13, %v380_v11  ;;  %v461_v15 = vpop.f32.mrf.mxu3  ;;  %v512_v63 = vadd.f32 %v511_v46, %v510_v57 }
  0xd1   : > { %v542_v59 = vsel %vm497_vm1, %v532_v47, 0.0 }
  0xd2   : > { %v462_v16 = vadd.f32 %v461_v15, %v421_v14  ;;  %v341_v17 = vpop.f32.mrf.mxu0  ;;  %v543_v5 = vadd.f32 %v542_v59, %v541_v62 }
  0xd3   : > { %v342_v18 = vadd.f32 %v954_v32, %v341_v17 }
  0xd4   : > { %vm477_vm5 = vcmp.ge.f32.partialorder %v462_v16, 0.0  ;;  %v485_v19 = vmul.f32 0.2, %v462_v16  ;;  %v382_v20 = vpop.f32.mrf.mxu1 }
  0xd5   : > { %v383_v21 = vadd.f32 %v382_v20, %v342_v18 }
  0xd6   : > { %v493_v22 = vsel %vm477_vm5, %v462_v16, %v485_v19 }
  0xd7   : > { %502 = vst.msk [vmem:[%s962_s9 + $0x20] sm:$0xff] %vm497_vm1, %v493_v22  ;;  %v423_v23 = vpop.f32.mrf.mxu2  ;;  %v533_v54 = vmul.f32 %v493_v22, %v493_v22 }
  0xd8   : > { %v424_v24 = vadd.f32 %v423_v23, %v383_v21  ;;  %v464_v25 = vpop.f32.mrf.mxu3 }
  0xd9   : > { %v544_v2 = vsel %vm497_vm1, %v533_v54, 0.0 }
  0xda   : > { %v465_v26 = vadd.f32 %v464_v25, %v424_v24  ;;  %v344_v27 = vpop.f32.mrf.mxu0  ;;  %v545_v10 = vadd.f32 %v544_v2, %v543_v5 }
  0xdb   : > { %v345_v28 = vadd.f32 %v954_v32, %v344_v27 }
  0xdc   : > { %vm478_vm6 = vcmp.ge.f32.partialorder %v465_v26, 0.0  ;;  %v486_v29 = vmul.f32 0.2, %v465_v26  ;;  %v385_v30 = vpop.f32.mrf.mxu1 }
  0xdd   : > { %v386_v31 = vadd.f32 %v385_v30, %v345_v28 }
  0xde   : > { %v494_v33 = vsel %vm478_vm6, %v465_v26, %v486_v29 }
  0xdf   : > { %503 = vst.msk [vmem:[%s962_s9 + $0x28] sm:$0xff] %vm497_vm1, %v494_v33  ;;  %v426_v35 = vpop.f32.mrf.mxu2  ;;  %v534_v60 = vmul.f32 %v494_v33, %v494_v33  ;;  %v515_v3 = vsel %vm497_vm1, %v494_v33, 0.0 }
  0xe0   : > { %v427_v37 = vadd.f32 %v426_v35, %v386_v31  ;;  %v467_v38 = vpop.f32.mrf.mxu3 }
  0xe1   : > { %v546_v8 = vsel %vm497_vm1, %v534_v60, 0.0 }
  0xe2   : > { %v468_v42 = vadd.f32 %v467_v38, %v427_v37  ;;  %v347_v43 = vpop.f32.mrf.mxu0  ;;  %v547_v14 = vadd.f32 %v546_v8, %v545_v10 }
  0xe3   : > { %v348_v48 = vadd.f32 %v954_v32, %v347_v43  ;;  %v513_v32 = vsel %vm497_vm1, %v493_v22, 0.0 }
  0xe4   : > { %vm479_vm7 = vcmp.ge.f32.partialorder %v468_v42, 0.0  ;;  %v487_v51 = vmul.f32 0.2, %v468_v42  ;;  %v388_v52 = vpop.f32.mrf.mxu1  ;;  %v514_v6 = vadd.f32 %v513_v32, %v512_v63 }
  0xe5   : > { %v389_v55 = vadd.f32 %v388_v52, %v348_v48 }
  0xe6   : > { %v495_v58 = vsel %vm479_vm7, %v468_v42, %v487_v51  ;;  %v516_v11 = vadd.f32 %v515_v3, %v514_v6 }
  0xe7   : > { %504 = vst.msk [vmem:[%s962_s9 + $0x30] sm:$0xff] %vm497_vm1, %v495_v58  ;;  %v429_v61 = vpop.f32.mrf.mxu2  ;;  %v535_v4 = vmul.f32 %v495_v58, %v495_v58  ;;  %v517_v9 = vsel %vm497_vm1, %v495_v58, 0.0 }
  0xe8   : > { %v430_v0 = vadd.f32 %v429_v61, %v389_v55  ;;  %v470_v1 = vpop.f32.mrf.mxu3  ;;  %v518_v15 = vadd.f32 %v517_v9, %v516_v11 }
  0xe9   : > { %v548_v13 = vsel %vm497_vm1, %v535_v4, 0.0 }
  0xea   : > { %v471_v7 = vadd.f32 %v470_v1, %v430_v0  ;;  %v549_v19 = vadd.f32 %v548_v13, %v547_v14 }
  0xec   : > { %vm480_vm8 = vcmp.ge.f32.partialorder %v471_v7, 0.0  ;;  %v488_v12 = vmul.f32 0.2, %v471_v7 }
  0xee   : > { %v496_v16 = vsel %vm480_vm8, %v471_v7, %v488_v12 }
  0xef   : > { %505 = vst.msk [vmem:[%s962_s9 + $0x38] sm:$0xff] %vm497_vm1, %v496_v16  ;;  %v519_v17 = vsel %vm497_vm1, %v496_v16, 0.0  ;;  %v536_v18 = vmul.f32 %v496_v16, %v496_v16 }
  0xf0   : > { %v520_v20 = vadd.f32 %v519_v17, %v518_v15 }
  0xf1   : > { %v550_v21 = vsel %vm497_vm1, %v536_v18, 0.0 }
  0xf2   : > { %v521_v22 = vrot.slane %v520_v20, 4  ;;  %v551_v23 = vadd.f32 %v550_v21, %v549_v19 }
  0xf4   : > { %v522_v24 = vadd.f32 %v521_v22, %v520_v20  ;;  %v552_v25 = vrot.slane %v551_v23, 4 }
  0xf6   : > { %v523_v26 = vrot.slane %v522_v24, 2  ;;  %v553_v27 = vadd.f32 %v552_v25, %v551_v23 }
  0xf8   : > { %v524_v28 = vadd.f32 %v523_v26, %v522_v24  ;;  %v554_v29 = vrot.slane %v553_v27, 2 }
  0xfa   : > { %v525_v30 = vrot.slane %v524_v28, 1  ;;  %v555_v31 = vadd.f32 %v554_v29, %v553_v27 }
  0xfc   : > { %v526_v33 = vadd.f32 %v525_v30, %v524_v28  ;;  %v556_v34 = vrot.slane %v555_v31, 1 }
  0xfe   : > { %528 = vst.msk [vmem:[%s208_s13] sm:$0x1] %vm527_vm9, %v526_v33  ;;  %v557_v35 = vadd.f32 %v556_v34, %v555_v31 }
 0x100   : > { %558 = vst.msk [vmem:[%s208_s13 + $0x1] sm:$0x1] %vm527_vm9, %v557_v35 }
 0x101 PF: > { %s15_s15 = sadd.s32 1, %s674_s15  }
 0x102   : > { %p12_p4 = scmp.ge.s32.totalorder %s15_s15, 4  }
 0x104   :  { %14 = sbr.rel (!%p12_p4) target bundleno = 1 (0x1), region = 74 }

// kernel: _lambda_.8
= control target key start
LH: loop header
LB: loop body
LE: loop exit
PB: predicated region body
PF: predicated region fallthrough
CT: control target
= control target key end

     0   :  { %s709_s15 = smov 0   ;;  %s1149_s0 = inlined_call_operand.vmem [shape: f32[2,16,1024], index: 0, kind: input, shape index: {}]   ;;  %s1150_s1 = inlined_call_operand.vmem [shape: f32[1024,128], index: 1, kind: input, shape index: {}]   ;;  %s1151_s2 = inlined_call_operand.vmem [shape: f32[1,128], index: 2, kind: input, shape index: {}]   ;;  %s1152_s3 = inlined_call_operand.vmem [shape: f32[2,16,128], index: 3, kind: output, shape index: {0}]   ;;  %s1153_s4 = inlined_call_operand.vmem [shape: f32[2,2,128], index: 4, kind: output, shape index: {1}]  }
   0x1 LB: > { %s653_s16 = sadd.s32 4294967295, %s682_s15   ;;  %p657_p0 = scmp.ge.s32.totalorder %s682_s15, 1  ;;  %s682_s15 = sphi %s709_s15, %s15_s15  }
   0x2   : > { %p165_p1 = scmp.lt.s32.totalorder %s682_s15, 3 }
   0x4   : > { %p166_p2 = pnand %p657_p0, %p165_p1 }
   0x5   : > { %p923_p3 = scmp.lt.s32.totalorder (!%p166_p2), %s653_s16, 1 }
   0x6   : > { %169 = sbr.rel (%p166_p2) target bundleno = 244 (0xf4), region = 32 }
   0xb   : > { %v240_v0 = vld [vmem:[%s1150_s1 + $0x78] sm:$0xff]  ;;  %v239_v2 = vld [vmem:[%s1150_s1 + $0x70] sm:$0xff]  ;;  %v238_v6 = vld [vmem:[%s1150_s1 + $0x68] sm:$0xff]  ;;  %s1156_s16 = smov (!%p923_p3, %s653_s16), 1 }
   0xc   : > { %v272_v1 = vld [vmem:[%s1150_s1 + $0x178] sm:$0xff]  ;;  %357 = vmatpush.msra.mxu0 %v240_v0  ;;  %v271_v4 = vld [vmem:[%s1150_s1 + $0x170] sm:$0xff]  ;;  %v270_v8 = vld [vmem:[%s1150_s1 + $0x168] sm:$0xff]  ;;  %s665_s18 = sshll.u32 %s1156_s16, 7  ;;  %s662_s22 = sshll.u32 %s1156_s16, 1 }
   0xd   : > { %403 = vmatpush.msra.mxu2 %v272_v1  ;;  %v256_v3 = vld [vmem:[%s1150_s1 + $0xf8] sm:$0xff]  ;;  %v255_v7 = vld [vmem:[%s1150_s1 + $0xf0] sm:$0xff]  ;;  %v254_v10 = vld [vmem:[%s1150_s1 + $0xe8] sm:$0xff]  ;;  %s1003_s7 = scalar_lea.vmem %s1149_s0, %s665_s18  ;;  %s208_s25 = scalar_lea.vmem %s1153_s4, %s662_s22 }
   0xe   : > { %v288_v5 = vld [vmem:[%s1150_s1 + $0x1f8] sm:$0xff]  ;;  %380 = vmatpush.msra.mxu1 %v256_v3  ;;  %358 = vmatpush.msra.mxu0 %v239_v2  ;;  %v287_v9 = vld [vmem:[%s1150_s1 + $0x1f0] sm:$0xff]  ;;  %v237_v11 = vld [vmem:[%s1150_s1 + $0x60] sm:$0xff] }
   0xf   : > { %426 = vmatpush.msra.mxu3 %v288_v5  ;;  %404 = vmatpush.msra.mxu2 %v271_v4  ;;  %v269_v12 = vld [vmem:[%s1150_s1 + $0x160] sm:$0xff]  ;;  %v286_v13 = vld [vmem:[%s1150_s1 + $0x1e8] sm:$0xff]  ;;  %v236_v16 = vld [vmem:[%s1150_s1 + $0x58] sm:$0xff] }
  0x10   : > { %381 = vmatpush.msra.mxu1 %v255_v7  ;;  %359 = vmatpush.msra.mxu0 %v238_v6  ;;  %v253_v14 = vld [vmem:[%s1150_s1 + $0xe0] sm:$0xff]  ;;  %v268_v17 = vld [vmem:[%s1150_s1 + $0x158] sm:$0xff]  ;;  %v235_v20 = vld [vmem:[%s1150_s1 + $0x50] sm:$0xff] }
  0x11   : > { %427 = vmatpush.msra.mxu3 %v287_v9  ;;  %405 = vmatpush.msra.mxu2 %v270_v8  ;;  %v285_v15 = vld [vmem:[%s1150_s1 + $0x1e0] sm:$0xff]  ;;  %v252_v18 = vld [vmem:[%s1150_s1 + $0xd8] sm:$0xff]  ;;  %v267_v21 = vld [vmem:[%s1150_s1 + $0x150] sm:$0xff] }
  0x12   : > { %382 = vmatpush.msra.mxu1 %v254_v10  ;;  %360 = vmatpush.msra.mxu0 %v237_v11  ;;  %v284_v19 = vld [vmem:[%s1150_s1 + $0x1d8] sm:$0xff]  ;;  %v251_v22 = vld [vmem:[%s1150_s1 + $0xd0] sm:$0xff]  ;;  %v234_v24 = vld [vmem:[%s1150_s1 + $0x48] sm:$0xff] }
  0x13   : > { %428 = vmatpush.msra.mxu3 %v286_v13  ;;  %406 = vmatpush.msra.mxu2 %v269_v12  ;;  %v283_v23 = vld [vmem:[%s1150_s1 + $0x1d0] sm:$0xff]  ;;  %v266_v25 = vld [vmem:[%s1150_s1 + $0x148] sm:$0xff]  ;;  %v233_v28 = vld [vmem:[%s1150_s1 + $0x40] sm:$0xff] }
  0x14   : > { %383 = vmatpush.msra.mxu1 %v253_v14  ;;  %361 = vmatpush.msra.mxu0 %v236_v16  ;;  %v250_v26 = vld [vmem:[%s1150_s1 + $0xc8] sm:$0xff]  ;;  %v265_v29 = vld [vmem:[%s1150_s1 + $0x140] sm:$0xff]  ;;  %v232_v32 = vld [vmem:[%s1150_s1 + $0x38] sm:$0xff] }
  0x15   : > { %429 = vmatpush.msra.mxu3 %v285_v15  ;;  %407 = vmatpush.msra.mxu2 %v268_v17  ;;  %v282_v27 = vld [vmem:[%s1150_s1 + $0x1c8] sm:$0xff]  ;;  %v249_v30 = vld [vmem:[%s1150_s1 + $0xc0] sm:$0xff]  ;;  %v264_v33 = vld [vmem:[%s1150_s1 + $0x138] sm:$0xff] }
  0x16   : > { %384 = vmatpush.msra.mxu1 %v252_v18  ;;  %362 = vmatpush.msra.mxu0 %v235_v20  ;;  %v281_v31 = vld [vmem:[%s1150_s1 + $0x1c0] sm:$0xff]  ;;  %v248_v34 = vld [vmem:[%s1150_s1 + $0xb8] sm:$0xff]  ;;  %v231_v36 = vld [vmem:[%s1150_s1 + $0x30] sm:$0xff] }
  0x17   : > { %430 = vmatpush.msra.mxu3 %v284_v19  ;;  %408 = vmatpush.msra.mxu2 %v267_v21  ;;  %v280_v35 = vld [vmem:[%s1150_s1 + $0x1b8] sm:$0xff]  ;;  %v263_v37 = vld [vmem:[%s1150_s1 + $0x130] sm:$0xff]  ;;  %v230_v40 = vld [vmem:[%s1150_s1 + $0x28] sm:$0xff] }
  0x18   : > { %385 = vmatpush.msra.mxu1 %v251_v22  ;;  %363 = vmatpush.msra.mxu0 %v234_v24  ;;  %v247_v38 = vld [vmem:[%s1150_s1 + $0xb0] sm:$0xff]  ;;  %v262_v41 = vld [vmem:[%s1150_s1 + $0x128] sm:$0xff]  ;;  %v229_v44 = vld [vmem:[%s1150_s1 + $0x20] sm:$0xff] }
  0x19   : > { %431 = vmatpush.msra.mxu3 %v283_v23  ;;  %409 = vmatpush.msra.mxu2 %v266_v25  ;;  %v279_v39 = vld [vmem:[%s1150_s1 + $0x1b0] sm:$0xff]  ;;  %v246_v42 = vld [vmem:[%s1150_s1 + $0xa8] sm:$0xff]  ;;  %v261_v45 = vld [vmem:[%s1150_s1 + $0x120] sm:$0xff] }
  0x1a   : > { %386 = vmatpush.msra.mxu1 %v250_v26  ;;  %364 = vmatpush.msra.mxu0 %v233_v28  ;;  %v278_v43 = vld [vmem:[%s1150_s1 + $0x1a8] sm:$0xff]  ;;  %v245_v46 = vld [vmem:[%s1150_s1 + $0xa0] sm:$0xff]  ;;  %v228_v48 = vld [vmem:[%s1150_s1 + $0x18] sm:$0xff] }
  0x1b   : > { %432 = vmatpush.msra.mxu3 %v282_v27  ;;  %410 = vmatpush.msra.mxu2 %v265_v29  ;;  %v277_v47 = vld [vmem:[%s1150_s1 + $0x1a0] sm:$0xff]  ;;  %v260_v49 = vld [vmem:[%s1150_s1 + $0x118] sm:$0xff]  ;;  %v227_v52 = vld [vmem:[%s1150_s1 + $0x10] sm:$0xff] }
  0x1c   : > { %387 = vmatpush.msra.mxu1 %v249_v30  ;;  %365 = vmatpush.msra.mxu0 %v232_v32  ;;  %v244_v50 = vld [vmem:[%s1150_s1 + $0x98] sm:$0xff]  ;;  %v259_v53 = vld [vmem:[%s1150_s1 + $0x110] sm:$0xff]  ;;  %v226_v56 = vld [vmem:[%s1150_s1 + $0x8] sm:$0xff] }
  0x1d   : > { %433 = vmatpush.msra.mxu3 %v281_v31  ;;  %411 = vmatpush.msra.mxu2 %v264_v33  ;;  %v276_v51 = vld [vmem:[%s1150_s1 + $0x198] sm:$0xff]  ;;  %v243_v54 = vld [vmem:[%s1150_s1 + $0x90] sm:$0xff]  ;;  %v258_v57 = vld [vmem:[%s1150_s1 + $0x108] sm:$0xff] }
  0x1e   : > { %388 = vmatpush.msra.mxu1 %v248_v34  ;;  %366 = vmatpush.msra.mxu0 %v231_v36  ;;  %v275_v55 = vld [vmem:[%s1150_s1 + $0x190] sm:$0xff]  ;;  %v242_v58 = vld [vmem:[%s1150_s1 + $0x88] sm:$0xff]  ;;  %v225_v60 = vld [vmem:[%s1150_s1] sm:$0xff] }
  0x1f   : > { %434 = vmatpush.msra.mxu3 %v280_v35  ;;  %412 = vmatpush.msra.mxu2 %v263_v37  ;;  %v274_v59 = vld [vmem:[%s1150_s1 + $0x188] sm:$0xff]  ;;  %v257_v61 = vld [vmem:[%s1150_s1 + $0x100] sm:$0xff]  ;;  %v304_v62 = vld [vmem:[%s1150_s1 + $0x278] sm:$0xff] }
  0x20   : > { %389 = vmatpush.msra.mxu1 %v247_v38  ;;  %367 = vmatpush.msra.mxu0 %v230_v40  ;;  %v336_v63 = vld [vmem:[%s1150_s1 + $0x378] sm:$0xff]  ;;  %v241_v0 = vld [vmem:[%s1150_s1 + $0x80] sm:$0xff]  ;;  %v303_v2 = vld [vmem:[%s1150_s1 + $0x270] sm:$0xff] }
  0x21   : > { %435 = vmatpush.msra.mxu3 %v279_v39  ;;  %413 = vmatpush.msra.mxu2 %v262_v41  ;;  %v273_v1 = vld [vmem:[%s1150_s1 + $0x180] sm:$0xff]  ;;  %v320_v3 = vld [vmem:[%s1150_s1 + $0x2f8] sm:$0xff]  ;;  %v335_v4 = vld [vmem:[%s1150_s1 + $0x370] sm:$0xff] }
  0x22   : > { %390 = vmatpush.msra.mxu1 %v246_v42  ;;  %368 = vmatpush.msra.mxu0 %v229_v44  ;;  %v352_v5 = vld [vmem:[%s1150_s1 + $0x3f8] sm:$0xff]  ;;  %v302_v6 = vld [vmem:[%s1150_s1 + $0x268] sm:$0xff]  ;;  %v319_v7 = vld [vmem:[%s1150_s1 + $0x2f0] sm:$0xff] }
  0x23   : > { %436 = vmatpush.msra.mxu3 %v278_v43  ;;  %414 = vmatpush.msra.mxu2 %v261_v45  ;;  %v334_v8 = vld [vmem:[%s1150_s1 + $0x368] sm:$0xff]  ;;  %v351_v9 = vld [vmem:[%s1150_s1 + $0x3f0] sm:$0xff]  ;;  %v301_v10 = vld [vmem:[%s1150_s1 + $0x260] sm:$0xff] }
  0x24   : > { %391 = vmatpush.msra.mxu1 %v245_v46  ;;  %369 = vmatpush.msra.mxu0 %v228_v48  ;;  %v318_v11 = vld [vmem:[%s1150_s1 + $0x2e8] sm:$0xff]  ;;  %v333_v12 = vld [vmem:[%s1150_s1 + $0x360] sm:$0xff]  ;;  %v300_v14 = vld [vmem:[%s1150_s1 + $0x258] sm:$0xff] }
  0x25   : > { %437 = vmatpush.msra.mxu3 %v277_v47  ;;  %415 = vmatpush.msra.mxu2 %v260_v49  ;;  %v350_v13 = vld [vmem:[%s1150_s1 + $0x3e8] sm:$0xff]  ;;  %v317_v15 = vld [vmem:[%s1150_s1 + $0x2e0] sm:$0xff]  ;;  %v332_v16 = vld [vmem:[%s1150_s1 + $0x358] sm:$0xff] }
  0x26   : > { %392 = vmatpush.msra.mxu1 %v244_v50  ;;  %370 = vmatpush.msra.mxu0 %v227_v52  ;;  %v349_v17 = vld [vmem:[%s1150_s1 + $0x3e0] sm:$0xff]  ;;  %v299_v18 = vld [vmem:[%s1150_s1 + $0x250] sm:$0xff]  ;;  %v316_v19 = vld [vmem:[%s1150_s1 + $0x2d8] sm:$0xff] }
  0x27   : > { %438 = vmatpush.msra.mxu3 %v276_v51  ;;  %416 = vmatpush.msra.mxu2 %v259_v53  ;;  %v331_v20 = vld [vmem:[%s1150_s1 + $0x350] sm:$0xff]  ;;  %v348_v21 = vld [vmem:[%s1150_s1 + $0x3d8] sm:$0xff]  ;;  %v298_v22 = vld [vmem:[%s1150_s1 + $0x248] sm:$0xff] }
  0x28   : > { %393 = vmatpush.msra.mxu1 %v243_v54  ;;  %371 = vmatpush.msra.mxu0 %v226_v56  ;;  %v315_v23 = vld [vmem:[%s1150_s1 + $0x2d0] sm:$0xff]  ;;  %v330_v24 = vld [vmem:[%s1150_s1 + $0x348] sm:$0xff]  ;;  %v297_v26 = vld [vmem:[%s1150_s1 + $0x240] sm:$0xff] }
  0x29   : > { %439 = vmatpush.msra.mxu3 %v275_v55  ;;  %417 = vmatpush.msra.mxu2 %v258_v57  ;;  %v347_v25 = vld [vmem:[%s1150_s1 + $0x3d0] sm:$0xff]  ;;  %v314_v27 = vld [vmem:[%s1150_s1 + $0x2c8] sm:$0xff]  ;;  %v329_v28 = vld [vmem:[%s1150_s1 + $0x340] sm:$0xff] }
  0x2a   : > { %394 = vmatpush.msra.mxu1 %v242_v58  ;;  %372 = vmatpush.msra.mxu0 %v225_v60  ;;  %v346_v29 = vld [vmem:[%s1150_s1 + $0x3c8] sm:$0xff]  ;;  %v209_v30 = vld [vmem:[%s1003_s7] sm:$0xff]  ;;  %v211_v31 = vld [vmem:[%s1003_s7 + $0x10] sm:$0xff] }
  0x2b   : > { %440 = vmatpush.msra.mxu3 %v274_v59  ;;  %418 = vmatpush.msra.mxu2 %v257_v61  ;;  %v296_v32 = vld [vmem:[%s1150_s1 + $0x238] sm:$0xff]  ;;  %v313_v33 = vld [vmem:[%s1150_s1 + $0x2c0] sm:$0xff]  ;;  %v210_v36 = vld [vmem:[%s1003_s7 + $0x8] sm:$0xff] }
  0x2c   : > { %449 = vmatpush.msrb.mxu0 %v304_v62  ;;  %395 = vmatpush.msra.mxu1 %v241_v0  ;;  %v328_v34 = vld [vmem:[%s1150_s1 + $0x338] sm:$0xff]  ;;  %v345_v35 = vld [vmem:[%s1150_s1 + $0x3c0] sm:$0xff]  ;;  %v295_v38 = vld [vmem:[%s1150_s1 + $0x230] sm:$0xff] }
  0x2d   : > { %495 = vmatpush.msrb.mxu2 %v336_v63  ;;  %441 = vmatpush.msra.mxu3 %v273_v1  ;;  %v212_v37 = vld [vmem:[%s1003_s7 + $0x18] sm:$0xff]  ;;  %v327_v40 = vld [vmem:[%s1150_s1 + $0x330] sm:$0xff]  ;;  %v294_v42 = vld [vmem:[%s1150_s1 + $0x228] sm:$0xff] }
  0x2e   : > { %450 = vmatpush.msrb.mxu0 %v303_v2  ;;  %472 = vmatpush.msrb.mxu1 %v320_v3  ;;  %v312_v39 = vld [vmem:[%s1150_s1 + $0x2b8] sm:$0xff]  ;;  %v311_v43 = vld [vmem:[%s1150_s1 + $0x2b0] sm:$0xff]  ;;  %v326_v44 = vld [vmem:[%s1150_s1 + $0x328] sm:$0xff] }
  0x2f   : > { %496 = vmatpush.msrb.mxu2 %v335_v4  ;;  %518 = vmatpush.msrb.mxu3 %v352_v5  ;;  %v344_v41 = vld [vmem:[%s1150_s1 + $0x3b8] sm:$0xff]  ;;  %v343_v45 = vld [vmem:[%s1150_s1 + $0x3b0] sm:$0xff]  ;;  %v293_v46 = vld [vmem:[%s1150_s1 + $0x220] sm:$0xff] }
  0x30   : > { %451 = vmatpush.msrb.mxu0 %v302_v6  ;;  %473 = vmatpush.msrb.mxu1 %v319_v7  ;;  %v310_v47 = vld [vmem:[%s1150_s1 + $0x2a8] sm:$0xff]  ;;  %v325_v48 = vld [vmem:[%s1150_s1 + $0x320] sm:$0xff]  ;;  %v219_v51 = vld [vmem:[%s1003_s7 + $0x50] sm:$0xff] }
  0x31   : > { %497 = vmatpush.msrb.mxu2 %v334_v8  ;;  %519 = vmatpush.msrb.mxu3 %v351_v9  ;;  %v342_v49 = vld [vmem:[%s1150_s1 + $0x3a8] sm:$0xff]  ;;  %v217_v50 = vld [vmem:[%s1003_s7 + $0x40] sm:$0xff]  ;;  %v292_v52 = vld [vmem:[%s1150_s1 + $0x218] sm:$0xff] }
  0x32   : > { %452 = vmatpush.msrb.mxu0 %v301_v10  ;;  %474 = vmatpush.msrb.mxu1 %v318_v11  ;;  %v309_v53 = vld [vmem:[%s1150_s1 + $0x2a0] sm:$0xff]  ;;  %v324_v54 = vld [vmem:[%s1150_s1 + $0x318] sm:$0xff]  ;;  %v218_v56 = vld [vmem:[%s1003_s7 + $0x48] sm:$0xff] }
  0x33   : > { %498 = vmatpush.msrb.mxu2 %v333_v12  ;;  %520 = vmatpush.msrb.mxu3 %v350_v13  ;;  %v341_v55 = vld [vmem:[%s1150_s1 + $0x3a0] sm:$0xff]  ;;  %v220_v57 = vld [vmem:[%s1003_s7 + $0x58] sm:$0xff]  ;;  %v291_v58 = vld [vmem:[%s1150_s1 + $0x210] sm:$0xff] }
  0x34   : > { %453 = vmatpush.msrb.mxu0 %v300_v14  ;;  %475 = vmatpush.msrb.mxu1 %v317_v15  ;;  %v308_v59 = vld [vmem:[%s1150_s1 + $0x298] sm:$0xff]  ;;  %v323_v60 = vld [vmem:[%s1150_s1 + $0x310] sm:$0xff]  ;;  %v290_v62 = vld [vmem:[%s1150_s1 + $0x208] sm:$0xff] }
  0x35   : > { %499 = vmatpush.msrb.mxu2 %v332_v16  ;;  %521 = vmatpush.msrb.mxu3 %v349_v17  ;;  %v340_v61 = vld [vmem:[%s1150_s1 + $0x398] sm:$0xff]  ;;  %v307_v63 = vld [vmem:[%s1150_s1 + $0x290] sm:$0xff]  ;;  %v322_v0 = vld [vmem:[%s1150_s1 + $0x308] sm:$0xff] }
  0x36   : > { %454 = vmatpush.msrb.mxu0 %v299_v18  ;;  %476 = vmatpush.msrb.mxu1 %v316_v19  ;;  %v339_v1 = vld [vmem:[%s1150_s1 + $0x390] sm:$0xff]  ;;  %v289_v2 = vld [vmem:[%s1150_s1 + $0x200] sm:$0xff]  ;;  %v306_v3 = vld [vmem:[%s1150_s1 + $0x288] sm:$0xff] }
  0x37   : > { %500 = vmatpush.msrb.mxu2 %v331_v20  ;;  %522 = vmatpush.msrb.mxu3 %v348_v21  ;;  %v321_v4 = vld [vmem:[%s1150_s1 + $0x300] sm:$0xff]  ;;  %v338_v5 = vld [vmem:[%s1150_s1 + $0x388] sm:$0xff]  ;;  %v215_v7 = vld [vmem:[%s1003_s7 + $0x30] sm:$0xff] }
  0x38   : > { %455 = vmatpush.msrb.mxu0 %v298_v22  ;;  %477 = vmatpush.msrb.mxu1 %v315_v23  ;;  %v213_v6 = vld [vmem:[%s1003_s7 + $0x20] sm:$0xff]  ;;  %v214_v10 = vld [vmem:[%s1003_s7 + $0x28] sm:$0xff]  ;;  %v216_v11 = vld [vmem:[%s1003_s7 + $0x38] sm:$0xff] }
  0x39   : > { %501 = vmatpush.msrb.mxu2 %v330_v24  ;;  %523 = vmatpush.msrb.mxu3 %v347_v25  ;;  %v305_v8 = vld [vmem:[%s1150_s1 + $0x280] sm:$0xff]  ;;  %v223_v13 = vld [vmem:[%s1003_s7 + $0x70] sm:$0xff]  ;;  %v222_v14 = vld [vmem:[%s1003_s7 + $0x68] sm:$0xff] }
  0x3a   : > { %456 = vmatpush.msrb.mxu0 %v297_v26  ;;  %478 = vmatpush.msrb.mxu1 %v314_v27  ;;  %v337_v9 = vld [vmem:[%s1150_s1 + $0x380] sm:$0xff]  ;;  %v224_v15 = vld [vmem:[%s1003_s7 + $0x78] sm:$0xff] }
  0x3b   : > { %502 = vmatpush.msrb.mxu2 %v329_v28  ;;  %524 = vmatpush.msrb.mxu3 %v346_v29  ;;  %v221_v12 = vld [vmem:[%s1003_s7 + $0x60] sm:$0xff]  ;;  %s666_s7 = sshll.u32 %s1156_s16, 4 }
  0x3c   : > { %373 = vmatmul.f32.vlgmr.msra.gmra.mxu0 %v209_v30  ;;  %419 = vmatmul.f32.vlgmr.msra.gmra.mxu2 %v211_v31  ;;  %v675_v17 = vld [vmem:[%s1151_s2] ss:$0 sm:$0xff]  ;;  %s204_s21 = scalar_lea.vmem %s1152_s3, %s666_s7 }
  0x3d   : > { %457 = vmatpush.msrb.mxu0 %v296_v32  ;;  %479 = vmatpush.msrb.mxu1 %v313_v33 }
  0x3e   : > { %503 = vmatpush.msrb.mxu2 %v328_v34  ;;  %525 = vmatpush.msrb.mxu3 %v345_v35 }
  0x3f   : > { %396 = vmatmul.f32.vlgmr.msra.gmra.mxu1 %v210_v36  ;;  %442 = vmatmul.f32.vlgmr.msra.gmra.mxu3 %v212_v37 }
  0x40   : > { %458 = vmatpush.msrb.mxu0 %v295_v38  ;;  %480 = vmatpush.msrb.mxu1 %v312_v39 }
  0x41   : > { %504 = vmatpush.msrb.mxu2 %v327_v40  ;;  %526 = vmatpush.msrb.mxu3 %v344_v41 }
  0x42   : > { %459 = vmatpush.msrb.mxu0 %v294_v42  ;;  %481 = vmatpush.msrb.mxu1 %v311_v43 }
  0x43   : > { %505 = vmatpush.msrb.mxu2 %v326_v44  ;;  %527 = vmatpush.msrb.mxu3 %v343_v45 }
  0x44   : > { %460 = vmatpush.msrb.mxu0 %v293_v46  ;;  %482 = vmatpush.msrb.mxu1 %v310_v47 }
  0x45   : > { %506 = vmatpush.msrb.mxu2 %v325_v48  ;;  %528 = vmatpush.msrb.mxu3 %v342_v49 }
  0x46   : > { %376 = vmatmul.f32.gmra.mxu0 %v217_v50  ;;  %422 = vmatmul.f32.gmra.mxu2 %v219_v51 }
  0x47   : > { %461 = vmatpush.msrb.mxu0 %v292_v52  ;;  %483 = vmatpush.msrb.mxu1 %v309_v53 }
  0x48   : > { %507 = vmatpush.msrb.mxu2 %v324_v54  ;;  %529 = vmatpush.msrb.mxu3 %v341_v55 }
  0x49   : > { %399 = vmatmul.f32.gmra.mxu1 %v218_v56  ;;  %445 = vmatmul.f32.gmra.mxu3 %v220_v57 }
  0x4a   : > { %462 = vmatpush.msrb.mxu0 %v291_v58  ;;  %484 = vmatpush.msrb.mxu1 %v308_v59 }
  0x4b   : > { %508 = vmatpush.msrb.mxu2 %v323_v60  ;;  %530 = vmatpush.msrb.mxu3 %v340_v61 }
  0x4c   : > { %463 = vmatpush.msrb.mxu0 %v290_v62  ;;  %485 = vmatpush.msrb.mxu1 %v307_v63 }
  0x4d   : > { %509 = vmatpush.msrb.mxu2 %v322_v0  ;;  %531 = vmatpush.msrb.mxu3 %v339_v1 }
  0x4e   : > { %464 = vmatpush.msrb.mxu0 %v289_v2  ;;  %486 = vmatpush.msrb.mxu1 %v306_v3 }
  0x4f   : > { %510 = vmatpush.msrb.mxu2 %v321_v4  ;;  %532 = vmatpush.msrb.mxu3 %v338_v5 }
  0x50   : > { %465 = vmatmul.f32.vlgmr.msrb.gmra.mxu0 %v213_v6  ;;  %511 = vmatmul.f32.vlgmr.msrb.gmra.mxu2 %v215_v7 }
  0x51   : > { %487 = vmatpush.msrb.mxu1 %v305_v8  ;;  %533 = vmatpush.msrb.mxu3 %v337_v9 }
  0x52   : > { %488 = vmatmul.f32.vlgmr.msrb.gmra.mxu1 %v214_v10  ;;  %534 = vmatmul.f32.vlgmr.msrb.gmra.mxu3 %v216_v11 }
  0x58   : > { %468 = vmatmul.f32.gmra.mxu0 %v221_v12  ;;  %514 = vmatmul.f32.gmra.mxu2 %v223_v13 }
  0x5a   : > { %491 = vmatmul.f32.gmra.mxu1 %v222_v14  ;;  %537 = vmatmul.f32.gmra.mxu3 %v224_v15 }
  0xb9   : > { %v374_v16 = vpop.f32.mrf.mxu0 }
  0xba   : > { %v375_v20 = vadd.f32 %v675_v17, %v374_v16 }
  0xbc   : > { %v397_v18 = vpop.f32.mrf.mxu1 }
  0xbd   : > { %v398_v23 = vadd.f32 %v397_v18, %v375_v20 }
  0xbf   : > { %v420_v19 = vpop.f32.mrf.mxu2 }
  0xc0   : > { %v421_v25 = vadd.f32 %v420_v19, %v398_v23 }
  0xc2   : > { %v443_v21 = vpop.f32.mrf.mxu3 }
  0xc3   : > { %v377_v22 = vpop.f32.mrf.mxu0  ;;  %v444_v28 = vadd.f32 %v443_v21, %v421_v25 }
  0xc4   : > { %v378_v26 = vadd.f32 %v675_v17, %v377_v22 }
  0xc6   : > { %v400_v24 = vpop.f32.mrf.mxu1 }
  0xc7   : > { %v401_v29 = vadd.f32 %v400_v24, %v378_v26 }
  0xc9   : > { %v423_v27 = vpop.f32.mrf.mxu2 }
  0xca   : > { %v424_v34 = vadd.f32 %v423_v27, %v401_v29 }
  0xcc   : > { %v446_v30 = vpop.f32.mrf.mxu3 }
  0xcd   : > { %v466_v31 = vpop.f32.mrf.mxu0  ;;  %v447_v37 = vadd.f32 %v446_v30, %v424_v34 }
  0xce   : > { %v467_v32 = vadd.f32 %v466_v31, %v444_v28 }
  0xcf   : > { %v489_v33 = vpop.f32.mrf.mxu1 }
  0xd0   : > { %v490_v35 = vadd.f32 %v489_v33, %v467_v32 }
  0xd3   : > { %v512_v36 = vpop.f32.mrf.mxu2 }
  0xd4   : > { %v513_v38 = vadd.f32 %v512_v36, %v490_v35 }
  0xd5   : > { %v469_v39 = vpop.f32.mrf.mxu0  ;;  %v535_v40 = vpop.f32.mrf.mxu3 }
  0xd6   : > { %v470_v41 = vadd.f32 %v469_v39, %v447_v37  ;;  %v536_v42 = vadd.f32 %v535_v40, %v513_v38 }
  0xd7   : > { %v492_v43 = vpop.f32.mrf.mxu1 }
  0xd8   : > { %vm541_vm0 = vcmp.ge.f32.partialorder %v536_v42, 0.0  ;;  %v543_v44 = vmul.f32 0.2, %v536_v42  ;;  %v493_v46 = vadd.f32 %v492_v43, %v470_v41 }
  0xda   : > { %v545_v45 = vsel %vm541_vm0, %v536_v42, %v543_v44 }
  0xdb   : > { %547 = vst [vmem:[%s204_s21] sm:$0xff] %v545_v45  ;;  %v515_v47 = vpop.f32.mrf.mxu2  ;;  %v557_v53 = vmul.f32 %v545_v45, %v545_v45 }
  0xdc   : > { %v516_v48 = vadd.f32 %v515_v47, %v493_v46 }
  0xdd   : > { %v538_v49 = vpop.f32.mrf.mxu3 }
  0xde   : > { %v539_v50 = vadd.f32 %v538_v49, %v516_v48 }
  0xe0   : > { %vm542_vm1 = vcmp.ge.f32.partialorder %v539_v50, 0.0  ;;  %v544_v51 = vmul.f32 0.2, %v539_v50 }
  0xe2   : > { %v546_v52 = vsel %vm542_vm1, %v539_v50, %v544_v51 }
  0xe3   : > { %548 = vst [vmem:[%s204_s21 + $0x8] sm:$0xff] %v546_v52  ;;  %v549_v54 = vadd.f32 %v546_v52, %v545_v45  ;;  %v558_v55 = vmul.f32 %v546_v52, %v546_v52 }
  0xe5   : > { %v550_v56 = vrot.slane %v549_v54, 4  ;;  %v559_v57 = vadd.f32 %v558_v55, %v557_v53 }
  0xe7   : > { %v551_v58 = vadd.f32 %v550_v56, %v549_v54  ;;  %v560_v59 = vrot.slane %v559_v57, 4 }
  0xe9   : > { %v552_v60 = vrot.slane %v551_v58, 2  ;;  %v561_v61 = vadd.f32 %v560_v59, %v559_v57 }
  0xeb   : > { %v553_v62 = vadd.f32 %v552_v60, %v551_v58  ;;  %v562_v63 = vrot.slane %v561_v61, 2 }
  0xed   : > { %v554_v0 = vrot.slane %v553_v62, 1  ;;  %v563_v1 = vadd.f32 %v562_v63, %v561_v61 }
  0xef   : > { %v555_v2 = vadd.f32 %v554_v0, %v553_v62  ;;  %v564_v3 = vrot.slane %v563_v1, 1 }
  0xf1   : > { %556 = vst [vmem:[%s208_s25] sm:$0x1] %v555_v2  ;;  %v565_v4 = vadd.f32 %v564_v3, %v563_v1 }
  0xf3   : > { %566 = vst [vmem:[%s208_s25 + $0x1] sm:$0x1] %v565_v4 }
  0xf4 PF: > { %s15_s15 = sadd.s32 1, %s682_s15  }
  0xf5   : > { %p12_p4 = scmp.ge.s32.totalorder %s15_s15, 4  }
  0xf7   :  { %14 = sbr.rel (!%p12_p4) target bundleno = 1 (0x1), region = 74 }

// kernel: _lambda_.9
= control target key start
LH: loop header
LB: loop body
LE: loop exit
PB: predicated region body
PF: predicated region fallthrough
CT: control target
= control target key end

     0   :  { %s1975_s0 = inlined_call_operand.vmem [shape: f32[2,1,2048], index: 0, kind: input, shape index: {}]   ;;  %s1976_s1 = inlined_call_operand.vmem [shape: f32[2048,1], index: 1, kind: input, shape index: {}]   ;;  %s1977_s2 = inlined_call_operand.<no memory space> [shape: f32[1,1], index: 2, kind: input, shape index: {}]   ;;  %s1978_s3 = inlined_call_operand.vmem [shape: f32[2,1,1], index: 3, kind: output, shape index: {0}]   ;;  %s1979_s4 = inlined_call_operand.hbm [shape: f32[2,2,1], index: 4, kind: output, shape index: {1}]  }
   0x1   :  { %v10_v0 = vstv %s1977_s2 }
   0x2   :  { %11 = vst [vmem:[#allocation2] sm:$0x1] %v10_v0 }
   0x3   :  { %12 = vsyncpa [#allocation4], 0 }
   0x4   :  { %14 = vsyncpa [#allocation4 + $0x1], 0  ;;  %s1089_s17 = smov 0   ;;  %s1091_s18 = smov 0  }
   0x5   :  { %s1093_s19 = smov 0   ;;  %s1095_s20 = smov 0  }
   0x6 LB: > { %s1110_s2 = sadd.s32 4294967295, %s1059_s20   ;;  %s943_s21 = sadd.s32 4294967294, %s1059_s20   ;;  %s1059_s20 = sphi %s1095_s20, %s1985_s20   ;;  %s1055_s19 = sphi %s1093_s19, %s1984_s19   ;;  %s1051_s18 = sphi %s1091_s18, %s1983_s18   ;;  %s1047_s17 = sphi %s1089_s17, %s1982_s17  }
   0x7   : > { %s1114_s22 = sadd.s32 1, %s1059_s20   ;;  %s121_s23 = sadd.s32 1, %s1055_s19 }
   0x8   : > { %s118_s24 = ssub.s32 %s1059_s20, %s1114_s22  ;;  %p131_p0 = scmp.ne.s32.totalorder %s1055_s19, %s1051_s18 }
   0x9   : > { %p119_p1 = scmp.eq.s32.totalorder %s118_s24, 0  ;;  %p132_p2 = scmp.eq.s32.totalorder %s1110_s2, 1 }
   0xa   : > { %p137_p3 = scmp.ne.s32.totalorder %s1051_s18, %s1047_s17  ;;  %p138_p4 = scmp.eq.s32.totalorder %s943_s21, 1 }
   0xb   : > { %s1125_s25 = scalar_select %p119_p1, %s1055_s19, %s121_s23  }
   0xc   : > { %p1127_p5 = por %p132_p2, %p131_p0  ;;  %p1131_p6 = por %p138_p4, %p137_p3 }
   0xd   : > { %p946_p7 = scmp.ge.s32.totalorder %s1059_s20, 1  ;;  %p169_p8 = scmp.lt.s32.totalorder %s1059_s20, 3 }
   0xf   : > { %p170_p9 = pnand %p946_p7, %p169_p8 }
  0x10   : > { %p197_p10 = scmp.lt.s32.totalorder (!%p170_p9), %s1110_s2, 1  ;;  %s194_s7 = sand.u32 (!%p170_p9), 1, %s1051_s18  }
  0x11   : > { %173 = sbr.rel (%p170_p9) target bundleno = 326 (0x146), region = 32  ;;  %s947_s8 = sshll.u32 (!%p170_p9), %s194_s7, 1 }
  0x12   : > { %s951_s9 = sshll.u32 (!%p170_p9), %s1110_s2, 1  ;;  %s196_s15 = scalar_lea.vmem (!%p170_p9), [#allocation3], %s947_s8 }
  0x13   : > { %s860_s11 = scalar_lea.hbm (!%p170_p9), %s1979_s4, %s951_s9  ;;  %s847_s21 = scalar_lea.sflag (!%p170_p9), [#allocation4], %s194_s7 }
  0x14   : > { %s864_s16 = sshll.u32 (!%p170_p9), %s860_s11, 4  ;;  %s1017_s5 = scalar_lea.hbm (!%p170_p9), %s1979_s4, 4  ;;  %s865_s16 = int_to_ptr.hbm [resolvable:$true] %s864_s16 }
  0x16   : > { %v221_v1 = vld [vmem:[%s1976_s1 + $0x78] sm:$0xff]  ;;  %v220_v3 = vld [vmem:[%s1976_s1 + $0x70] sm:$0xff]  ;;  %v219_v7 = vld [vmem:[%s1976_s1 + $0x68] sm:$0xff]  ;;  %s1441_s30 = scalar_select %p197_p10, %s1110_s2, 1  ;;  %vm836_vm3 = vcmask 0  }
  0x17   : > { %v253_v2 = vld [vmem:[%s1976_s1 + $0x178] sm:$0xff]  ;;  %497 = vmatpush.msra.mxu0 %v221_v1  ;;  %v252_v5 = vld [vmem:[%s1976_s1 + $0x170] sm:$0xff]  ;;  %v251_v9 = vld [vmem:[%s1976_s1 + $0x168] sm:$0xff]  ;;  %s862_s2 = sshll.u32 %s196_s15, 4  ;;  %s863_s2 = int_to_ptr.vmem [resolvable:$true] %s862_s2 }
  0x18   : > { %537 = vmatpush.msra.mxu2 %v253_v2  ;;  %v237_v4 = vld [vmem:[%s1976_s1 + $0xf8] sm:$0xff]  ;;  %v236_v8 = vld [vmem:[%s1976_s1 + $0xf0] sm:$0xff]  ;;  %v235_v11 = vld [vmem:[%s1976_s1 + $0xe8] sm:$0xff]  ;;  %s948_s29 = sshll.u32 %s1441_s30, 4  ;;  %s203_s14 = scalar_lea.vmem %s1978_s3, %s1441_s30 }
  0x19   : > { %v269_v6 = vld [vmem:[%s1976_s1 + $0x1f8] sm:$0xff]  ;;  %517 = vmatpush.msra.mxu1 %v237_v4  ;;  %498 = vmatpush.msra.mxu0 %v220_v3  ;;  %v268_v10 = vld [vmem:[%s1976_s1 + $0x1f0] sm:$0xff]  ;;  %v218_v12 = vld [vmem:[%s1976_s1 + $0x60] sm:$0xff]  ;;  %s1489_s24 = scalar_lea.vmem %s1975_s0, %s948_s29  ;;  %s1011_s30 = sshra.s32 %s865_s16, 4  ;;  %s1012_s30 = int_to_ptr.hbm [resolvable:$true] %s1011_s30 }
  0x1a   : > { %557 = vmatpush.msra.mxu3 %v269_v6  ;;  %538 = vmatpush.msra.mxu2 %v252_v5  ;;  %v250_v13 = vld [vmem:[%s1976_s1 + $0x160] sm:$0xff]  ;;  %v267_v14 = vld [vmem:[%s1976_s1 + $0x1e8] sm:$0xff]  ;;  %v217_v17 = vld [vmem:[%s1976_s1 + $0x58] sm:$0xff]  ;;  %s1013_s23 = scalar_lea.hbm %s1012_s30, 2  ;;  %p1018_p0 = scmp.lt.s32.totalorder %s1012_s30, %s1979_s4 }
  0x1b   : > { %518 = vmatpush.msra.mxu1 %v236_v8  ;;  %499 = vmatpush.msra.mxu0 %v219_v7  ;;  %v234_v15 = vld [vmem:[%s1976_s1 + $0xe0] sm:$0xff]  ;;  %v249_v18 = vld [vmem:[%s1976_s1 + $0x158] sm:$0xff]  ;;  %v216_v21 = vld [vmem:[%s1976_s1 + $0x50] sm:$0xff]  ;;  %p1014_p11 = scmp.ne.s32.totalorder %s1012_s30, %s1013_s23  ;;  %p1019_p1 = scmp.lt.s32.totalorder %s1017_s5, %s1013_s23 }
  0x1c   : > { %558 = vmatpush.msra.mxu3 %v268_v10  ;;  %539 = vmatpush.msra.mxu2 %v251_v9  ;;  %v266_v16 = vld [vmem:[%s1976_s1 + $0x1e0] sm:$0xff]  ;;  %v233_v19 = vld [vmem:[%s1976_s1 + $0xd8] sm:$0xff]  ;;  %v248_v22 = vld [vmem:[%s1976_s1 + $0x150] sm:$0xff] }
  0x1d   : > { %519 = vmatpush.msra.mxu1 %v235_v11  ;;  %500 = vmatpush.msra.mxu0 %v218_v12  ;;  %v265_v20 = vld [vmem:[%s1976_s1 + $0x1d8] sm:$0xff]  ;;  %v232_v23 = vld [vmem:[%s1976_s1 + $0xd0] sm:$0xff]  ;;  %v215_v25 = vld [vmem:[%s1976_s1 + $0x48] sm:$0xff]  ;;  %p1015_p12 = pnand %p1014_p11, %p1127_p5  ;;  %p1020_p2 = por %p1019_p1, %p1018_p0 }
  0x1e   : > { %559 = vmatpush.msra.mxu3 %v267_v14  ;;  %540 = vmatpush.msra.mxu2 %v250_v13  ;;  %v264_v24 = vld [vmem:[%s1976_s1 + $0x1d0] sm:$0xff]  ;;  %v247_v26 = vld [vmem:[%s1976_s1 + $0x148] sm:$0xff]  ;;  %v214_v29 = vld [vmem:[%s1976_s1 + $0x40] sm:$0xff] }
  0x1f   : > { %520 = vmatpush.msra.mxu1 %v234_v15  ;;  %501 = vmatpush.msra.mxu0 %v217_v17  ;;  %v231_v27 = vld [vmem:[%s1976_s1 + $0xc8] sm:$0xff]  ;;  %v246_v30 = vld [vmem:[%s1976_s1 + $0x140] sm:$0xff]  ;;  %v213_v33 = vld [vmem:[%s1976_s1 + $0x38] sm:$0xff]  ;;  %p1016_p13 = pneg %p1015_p12 }
  0x20   : > { %560 = vmatpush.msra.mxu3 %v266_v16  ;;  %541 = vmatpush.msra.mxu2 %v249_v18  ;;  %v263_v28 = vld [vmem:[%s1976_s1 + $0x1c8] sm:$0xff]  ;;  %v230_v31 = vld [vmem:[%s1976_s1 + $0xc0] sm:$0xff]  ;;  %v245_v34 = vld [vmem:[%s1976_s1 + $0x138] sm:$0xff] }
  0x21   : > { %521 = vmatpush.msra.mxu1 %v233_v19  ;;  %502 = vmatpush.msra.mxu0 %v216_v21  ;;  %v262_v32 = vld [vmem:[%s1976_s1 + $0x1c0] sm:$0xff]  ;;  %v229_v35 = vld [vmem:[%s1976_s1 + $0xb8] sm:$0xff]  ;;  %v212_v37 = vld [vmem:[%s1976_s1 + $0x30] sm:$0xff]  ;;  %p1021_p3 = pnand %p1020_p2, %p1016_p13 }
  0x22   : > { %561 = vmatpush.msra.mxu3 %v265_v20  ;;  %542 = vmatpush.msra.mxu2 %v248_v22  ;;  %v261_v36 = vld [vmem:[%s1976_s1 + $0x1b8] sm:$0xff]  ;;  %v244_v38 = vld [vmem:[%s1976_s1 + $0x130] sm:$0xff]  ;;  %v211_v41 = vld [vmem:[%s1976_s1 + $0x28] sm:$0xff] }
  0x23   : > { %522 = vmatpush.msra.mxu1 %v232_v23  ;;  %503 = vmatpush.msra.mxu0 %v215_v25  ;;  %v228_v39 = vld [vmem:[%s1976_s1 + $0xb0] sm:$0xff]  ;;  %v243_v42 = vld [vmem:[%s1976_s1 + $0x128] sm:$0xff]  ;;  %v210_v45 = vld [vmem:[%s1976_s1 + $0x20] sm:$0xff] }
  0x24   : > { %562 = vmatpush.msra.mxu3 %v264_v24  ;;  %543 = vmatpush.msra.mxu2 %v247_v26  ;;  %v260_v40 = vld [vmem:[%s1976_s1 + $0x1b0] sm:$0xff]  ;;  %v227_v43 = vld [vmem:[%s1976_s1 + $0xa8] sm:$0xff]  ;;  %v242_v46 = vld [vmem:[%s1976_s1 + $0x120] sm:$0xff] }
  0x25   : > { %523 = vmatpush.msra.mxu1 %v231_v27  ;;  %504 = vmatpush.msra.mxu0 %v214_v29  ;;  %v259_v44 = vld [vmem:[%s1976_s1 + $0x1a8] sm:$0xff]  ;;  %v226_v47 = vld [vmem:[%s1976_s1 + $0xa0] sm:$0xff]  ;;  %v209_v49 = vld [vmem:[%s1976_s1 + $0x18] sm:$0xff] }
  0x26   : > { %563 = vmatpush.msra.mxu3 %v263_v28  ;;  %544 = vmatpush.msra.mxu2 %v246_v30  ;;  %v258_v48 = vld [vmem:[%s1976_s1 + $0x1a0] sm:$0xff]  ;;  %v241_v50 = vld [vmem:[%s1976_s1 + $0x118] sm:$0xff]  ;;  %v208_v53 = vld [vmem:[%s1976_s1 + $0x10] sm:$0xff] }
  0x27   : > { %524 = vmatpush.msra.mxu1 %v230_v31  ;;  %505 = vmatpush.msra.mxu0 %v213_v33  ;;  %v225_v51 = vld [vmem:[%s1976_s1 + $0x98] sm:$0xff]  ;;  %v240_v54 = vld [vmem:[%s1976_s1 + $0x110] sm:$0xff]  ;;  %v207_v57 = vld [vmem:[%s1976_s1 + $0x8] sm:$0xff] }
  0x28   : > { %564 = vmatpush.msra.mxu3 %v262_v32  ;;  %545 = vmatpush.msra.mxu2 %v245_v34  ;;  %v257_v52 = vld [vmem:[%s1976_s1 + $0x198] sm:$0xff]  ;;  %v224_v55 = vld [vmem:[%s1976_s1 + $0x90] sm:$0xff]  ;;  %v239_v58 = vld [vmem:[%s1976_s1 + $0x108] sm:$0xff] }
  0x29   : > { %525 = vmatpush.msra.mxu1 %v229_v35  ;;  %506 = vmatpush.msra.mxu0 %v212_v37  ;;  %v256_v56 = vld [vmem:[%s1976_s1 + $0x190] sm:$0xff]  ;;  %v223_v59 = vld [vmem:[%s1976_s1 + $0x88] sm:$0xff]  ;;  %v206_v61 = vld [vmem:[%s1976_s1] sm:$0xff] }
  0x2a   : > { %565 = vmatpush.msra.mxu3 %v261_v36  ;;  %546 = vmatpush.msra.mxu2 %v244_v38  ;;  %v255_v60 = vld [vmem:[%s1976_s1 + $0x188] sm:$0xff]  ;;  %v238_v62 = vld [vmem:[%s1976_s1 + $0x100] sm:$0xff]  ;;  %v285_v63 = vld [vmem:[%s1976_s1 + $0x278] sm:$0xff] }
  0x2b   : > { %526 = vmatpush.msra.mxu1 %v228_v39  ;;  %507 = vmatpush.msra.mxu0 %v211_v41  ;;  %v317_v0 = vld [vmem:[%s1976_s1 + $0x378] sm:$0xff]  ;;  %v222_v1 = vld [vmem:[%s1976_s1 + $0x80] sm:$0xff]  ;;  %v284_v3 = vld [vmem:[%s1976_s1 + $0x270] sm:$0xff] }
  0x2c   : > { %566 = vmatpush.msra.mxu3 %v260_v40  ;;  %547 = vmatpush.msra.mxu2 %v243_v42  ;;  %v254_v2 = vld [vmem:[%s1976_s1 + $0x180] sm:$0xff]  ;;  %v301_v4 = vld [vmem:[%s1976_s1 + $0x2f8] sm:$0xff]  ;;  %v316_v5 = vld [vmem:[%s1976_s1 + $0x370] sm:$0xff] }
  0x2d   : > { %527 = vmatpush.msra.mxu1 %v227_v43  ;;  %508 = vmatpush.msra.mxu0 %v210_v45  ;;  %v333_v6 = vld [vmem:[%s1976_s1 + $0x3f8] sm:$0xff]  ;;  %v283_v7 = vld [vmem:[%s1976_s1 + $0x268] sm:$0xff]  ;;  %v300_v8 = vld [vmem:[%s1976_s1 + $0x2f0] sm:$0xff] }
  0x2e   : > { %567 = vmatpush.msra.mxu3 %v259_v44  ;;  %548 = vmatpush.msra.mxu2 %v242_v46  ;;  %v315_v9 = vld [vmem:[%s1976_s1 + $0x368] sm:$0xff]  ;;  %v332_v10 = vld [vmem:[%s1976_s1 + $0x3f0] sm:$0xff]  ;;  %v282_v11 = vld [vmem:[%s1976_s1 + $0x260] sm:$0xff] }
  0x2f   : > { %528 = vmatpush.msra.mxu1 %v226_v47  ;;  %509 = vmatpush.msra.mxu0 %v209_v49  ;;  %v299_v12 = vld [vmem:[%s1976_s1 + $0x2e8] sm:$0xff]  ;;  %v314_v13 = vld [vmem:[%s1976_s1 + $0x360] sm:$0xff]  ;;  %v281_v15 = vld [vmem:[%s1976_s1 + $0x258] sm:$0xff] }
  0x30   : > { %568 = vmatpush.msra.mxu3 %v258_v48  ;;  %549 = vmatpush.msra.mxu2 %v241_v50  ;;  %v331_v14 = vld [vmem:[%s1976_s1 + $0x3e8] sm:$0xff]  ;;  %v298_v16 = vld [vmem:[%s1976_s1 + $0x2e0] sm:$0xff]  ;;  %v313_v17 = vld [vmem:[%s1976_s1 + $0x358] sm:$0xff] }
  0x31   : > { %529 = vmatpush.msra.mxu1 %v225_v51  ;;  %510 = vmatpush.msra.mxu0 %v208_v53  ;;  %v330_v18 = vld [vmem:[%s1976_s1 + $0x3e0] sm:$0xff]  ;;  %v280_v19 = vld [vmem:[%s1976_s1 + $0x250] sm:$0xff]  ;;  %v297_v20 = vld [vmem:[%s1976_s1 + $0x2d8] sm:$0xff] }
  0x32   : > { %569 = vmatpush.msra.mxu3 %v257_v52  ;;  %550 = vmatpush.msra.mxu2 %v240_v54  ;;  %v312_v21 = vld [vmem:[%s1976_s1 + $0x350] sm:$0xff]  ;;  %v329_v22 = vld [vmem:[%s1976_s1 + $0x3d8] sm:$0xff]  ;;  %v279_v23 = vld [vmem:[%s1976_s1 + $0x248] sm:$0xff] }
  0x33   : > { %530 = vmatpush.msra.mxu1 %v224_v55  ;;  %511 = vmatpush.msra.mxu0 %v207_v57  ;;  %v296_v24 = vld [vmem:[%s1976_s1 + $0x2d0] sm:$0xff]  ;;  %v311_v25 = vld [vmem:[%s1976_s1 + $0x348] sm:$0xff]  ;;  %v278_v27 = vld [vmem:[%s1976_s1 + $0x240] sm:$0xff] }
  0x34   : > { %570 = vmatpush.msra.mxu3 %v256_v56  ;;  %551 = vmatpush.msra.mxu2 %v239_v58  ;;  %v328_v26 = vld [vmem:[%s1976_s1 + $0x3d0] sm:$0xff]  ;;  %v295_v28 = vld [vmem:[%s1976_s1 + $0x2c8] sm:$0xff]  ;;  %v310_v29 = vld [vmem:[%s1976_s1 + $0x340] sm:$0xff] }
  0x35   : > { %531 = vmatpush.msra.mxu1 %v223_v59  ;;  %512 = vmatpush.msra.mxu0 %v206_v61  ;;  %v327_v30 = vld [vmem:[%s1976_s1 + $0x3c8] sm:$0xff]  ;;  %v277_v31 = vld [vmem:[%s1976_s1 + $0x238] sm:$0xff]  ;;  %v294_v32 = vld [vmem:[%s1976_s1 + $0x2c0] sm:$0xff] }
  0x36   : > { %571 = vmatpush.msra.mxu3 %v255_v60  ;;  %552 = vmatpush.msra.mxu2 %v238_v62  ;;  %v309_v33 = vld [vmem:[%s1976_s1 + $0x338] sm:$0xff]  ;;  %v326_v34 = vld [vmem:[%s1976_s1 + $0x3c0] sm:$0xff]  ;;  %v276_v35 = vld [vmem:[%s1976_s1 + $0x230] sm:$0xff] }
  0x37   : > { %577 = vmatpush.msrb.mxu0 %v285_v63  ;;  %532 = vmatpush.msra.mxu1 %v222_v1  ;;  %v293_v36 = vld [vmem:[%s1976_s1 + $0x2b8] sm:$0xff]  ;;  %v308_v37 = vld [vmem:[%s1976_s1 + $0x330] sm:$0xff]  ;;  %v275_v39 = vld [vmem:[%s1976_s1 + $0x228] sm:$0xff] }
  0x38   : > { %617 = vmatpush.msrb.mxu2 %v317_v0  ;;  %572 = vmatpush.msra.mxu3 %v254_v2  ;;  %v325_v38 = vld [vmem:[%s1976_s1 + $0x3b8] sm:$0xff]  ;;  %v292_v40 = vld [vmem:[%s1976_s1 + $0x2b0] sm:$0xff]  ;;  %v307_v41 = vld [vmem:[%s1976_s1 + $0x328] sm:$0xff] }
  0x39   : > { %578 = vmatpush.msrb.mxu0 %v284_v3  ;;  %597 = vmatpush.msrb.mxu1 %v301_v4  ;;  %v324_v42 = vld [vmem:[%s1976_s1 + $0x3b0] sm:$0xff]  ;;  %v274_v43 = vld [vmem:[%s1976_s1 + $0x220] sm:$0xff]  ;;  %v291_v44 = vld [vmem:[%s1976_s1 + $0x2a8] sm:$0xff] }
  0x3a   : > { %618 = vmatpush.msrb.mxu2 %v316_v5  ;;  %637 = vmatpush.msrb.mxu3 %v333_v6  ;;  %v306_v45 = vld [vmem:[%s1976_s1 + $0x320] sm:$0xff]  ;;  %v323_v46 = vld [vmem:[%s1976_s1 + $0x3a8] sm:$0xff]  ;;  %v273_v47 = vld [vmem:[%s1976_s1 + $0x218] sm:$0xff] }
  0x3b   : > { %579 = vmatpush.msrb.mxu0 %v283_v7  ;;  %598 = vmatpush.msrb.mxu1 %v300_v8  ;;  %v290_v48 = vld [vmem:[%s1976_s1 + $0x2a0] sm:$0xff]  ;;  %v305_v49 = vld [vmem:[%s1976_s1 + $0x318] sm:$0xff]  ;;  %v272_v51 = vld [vmem:[%s1976_s1 + $0x210] sm:$0xff] }
  0x3c   : > { %619 = vmatpush.msrb.mxu2 %v315_v9  ;;  %638 = vmatpush.msrb.mxu3 %v332_v10  ;;  %v322_v50 = vld [vmem:[%s1976_s1 + $0x3a0] sm:$0xff]  ;;  %v289_v52 = vld [vmem:[%s1976_s1 + $0x298] sm:$0xff]  ;;  %v304_v53 = vld [vmem:[%s1976_s1 + $0x310] sm:$0xff] }
  0x3d   : > { %580 = vmatpush.msrb.mxu0 %v282_v11  ;;  %599 = vmatpush.msrb.mxu1 %v299_v12  ;;  %v321_v54 = vld [vmem:[%s1976_s1 + $0x398] sm:$0xff]  ;;  %v271_v55 = vld [vmem:[%s1976_s1 + $0x208] sm:$0xff]  ;;  %v288_v56 = vld [vmem:[%s1976_s1 + $0x290] sm:$0xff] }
  0x3e   : > { %620 = vmatpush.msrb.mxu2 %v314_v13  ;;  %639 = vmatpush.msrb.mxu3 %v331_v14  ;;  %v1510_v57 = vld [vmem:[%s1489_s24] sm:$0xff]  ;;  %v303_v58 = vld [vmem:[%s1976_s1 + $0x308] sm:$0xff]  ;;  %v320_v59 = vld [vmem:[%s1976_s1 + $0x390] sm:$0xff] }
  0x3f   : > { %581 = vmatpush.msrb.mxu0 %v281_v15  ;;  %600 = vmatpush.msrb.mxu1 %v298_v16  ;;  %v270_v60 = vld [vmem:[%s1976_s1 + $0x200] sm:$0xff]  ;;  %v287_v61 = vld [vmem:[%s1976_s1 + $0x288] sm:$0xff]  ;;  %v465_v0 = vperm.slane %v1510_v57, 0  ;;  %v467_v1 = vperm.slane %v1510_v57, 2  ;;  %v349_v2 = vld [vmem:[%s1976_s1 + $0x478] sm:$0xff]  ;;  %v466_v6 = vperm.slane %v1510_v57, 1 }
  0x40   : > { %621 = vmatpush.msrb.mxu2 %v313_v17  ;;  %640 = vmatpush.msrb.mxu3 %v330_v18  ;;  %v302_v62 = vld [vmem:[%s1976_s1 + $0x300] sm:$0xff]  ;;  %v319_v63 = vld [vmem:[%s1976_s1 + $0x388] sm:$0xff]  ;;  %v381_v3 = vld [vmem:[%s1976_s1 + $0x578] sm:$0xff]  ;;  %v468_v7 = vperm.slane %v1510_v57, 3 }
  0x41   : > { %582 = vmatpush.msrb.mxu0 %v280_v19  ;;  %601 = vmatpush.msrb.mxu1 %v297_v20  ;;  %v286_v4 = vld [vmem:[%s1976_s1 + $0x280] sm:$0xff]  ;;  %v348_v8 = vld [vmem:[%s1976_s1 + $0x470] sm:$0xff]  ;;  %v365_v9 = vld [vmem:[%s1976_s1 + $0x4f8] sm:$0xff]  ;;  %v471_v20 = vperm.slane %v1510_v57, 6 }
  0x42   : > { %622 = vmatpush.msrb.mxu2 %v312_v21  ;;  %641 = vmatpush.msrb.mxu3 %v329_v22  ;;  %v318_v5 = vld [vmem:[%s1976_s1 + $0x380] sm:$0xff]  ;;  %v380_v10 = vld [vmem:[%s1976_s1 + $0x570] sm:$0xff]  ;;  %v397_v11 = vld [vmem:[%s1976_s1 + $0x5f8] sm:$0xff] }
  0x43   : > { %583 = vmatpush.msrb.mxu0 %v279_v23  ;;  %602 = vmatpush.msrb.mxu1 %v296_v24  ;;  %v347_v12 = vld [vmem:[%s1976_s1 + $0x468] sm:$0xff]  ;;  %v364_v13 = vld [vmem:[%s1976_s1 + $0x4f0] sm:$0xff]  ;;  %v346_v16 = vld [vmem:[%s1976_s1 + $0x460] sm:$0xff]  ;;  %v469_v24 = vperm.slane %v1510_v57, 4 }
  0x44   : > { %623 = vmatpush.msrb.mxu2 %v311_v25  ;;  %642 = vmatpush.msrb.mxu3 %v328_v26  ;;  %v379_v14 = vld [vmem:[%s1976_s1 + $0x568] sm:$0xff]  ;;  %v396_v15 = vld [vmem:[%s1976_s1 + $0x5f0] sm:$0xff]  ;;  %v378_v18 = vld [vmem:[%s1976_s1 + $0x560] sm:$0xff]  ;;  %v472_v26 = vperm.slane %v1510_v57, 7 }
  0x45   : > { %584 = vmatpush.msrb.mxu0 %v278_v27  ;;  %603 = vmatpush.msrb.mxu1 %v295_v28  ;;  %v363_v17 = vld [vmem:[%s1976_s1 + $0x4e8] sm:$0xff]  ;;  %v345_v21 = vld [vmem:[%s1976_s1 + $0x458] sm:$0xff]  ;;  %v362_v22 = vld [vmem:[%s1976_s1 + $0x4e0] sm:$0xff] }
  0x46   : > { %624 = vmatpush.msrb.mxu2 %v310_v29  ;;  %643 = vmatpush.msrb.mxu3 %v327_v30  ;;  %v395_v19 = vld [vmem:[%s1976_s1 + $0x5e8] sm:$0xff]  ;;  %v377_v23 = vld [vmem:[%s1976_s1 + $0x558] sm:$0xff]  ;;  %v394_v25 = vld [vmem:[%s1976_s1 + $0x5e0] sm:$0xff]  ;;  %v470_v30 = vperm.slane %v1510_v57, 5 }
  0x47   : > { %585 = vmatpush.msrb.mxu0 %v277_v31  ;;  %604 = vmatpush.msrb.mxu1 %v294_v32  ;;  %v344_v27 = vld [vmem:[%s1976_s1 + $0x450] sm:$0xff]  ;;  %v361_v28 = vld [vmem:[%s1976_s1 + $0x4d8] sm:$0xff]  ;;  %v343_v32 = vld [vmem:[%s1976_s1 + $0x448] sm:$0xff] }
  0x48   : > { %625 = vmatpush.msrb.mxu2 %v309_v33  ;;  %644 = vmatpush.msrb.mxu3 %v326_v34  ;;  %v376_v29 = vld [vmem:[%s1976_s1 + $0x550] sm:$0xff]  ;;  %v393_v31 = vld [vmem:[%s1976_s1 + $0x5d8] sm:$0xff]  ;;  %v375_v34 = vld [vmem:[%s1976_s1 + $0x548] sm:$0xff] }
  0x49   : > { %586 = vmatpush.msrb.mxu0 %v276_v35  ;;  %605 = vmatpush.msrb.mxu1 %v293_v36  ;;  %v360_v33 = vld [vmem:[%s1976_s1 + $0x4d0] sm:$0xff]  ;;  %v342_v36 = vld [vmem:[%s1976_s1 + $0x440] sm:$0xff] }
  0x4a   : > { %626 = vmatpush.msrb.mxu2 %v308_v37  ;;  %645 = vmatpush.msrb.mxu3 %v325_v38  ;;  %v392_v35 = vld [vmem:[%s1976_s1 + $0x5d0] sm:$0xff]  ;;  %v359_v37 = vld [vmem:[%s1976_s1 + $0x4c8] sm:$0xff]  ;;  %v374_v38 = vld [vmem:[%s1976_s1 + $0x540] sm:$0xff] }
  0x4b   : > { %587 = vmatpush.msrb.mxu0 %v275_v39  ;;  %606 = vmatpush.msrb.mxu1 %v292_v40  ;;  %v391_v39 = vld [vmem:[%s1976_s1 + $0x5c8] sm:$0xff]  ;;  %v341_v40 = vld [vmem:[%s1976_s1 + $0x438] sm:$0xff]  ;;  %v354_v57 = vld [vmem:[%s1976_s1 + $0x4a0] sm:$0xff] }
  0x4c   : > { %627 = vmatpush.msrb.mxu2 %v307_v41  ;;  %646 = vmatpush.msrb.mxu3 %v324_v42  ;;  %v358_v41 = vld [vmem:[%s1976_s1 + $0x4c0] sm:$0xff]  ;;  %v373_v42 = vld [vmem:[%s1976_s1 + $0x538] sm:$0xff] }
  0x4d   : > { %588 = vmatpush.msrb.mxu0 %v274_v43  ;;  %607 = vmatpush.msrb.mxu1 %v291_v44  ;;  %v390_v43 = vld [vmem:[%s1976_s1 + $0x5c0] sm:$0xff]  ;;  %v340_v44 = vld [vmem:[%s1976_s1 + $0x430] sm:$0xff] }
  0x4e   : > { %628 = vmatpush.msrb.mxu2 %v306_v45  ;;  %647 = vmatpush.msrb.mxu3 %v323_v46  ;;  %v357_v45 = vld [vmem:[%s1976_s1 + $0x4b8] sm:$0xff]  ;;  %v372_v46 = vld [vmem:[%s1976_s1 + $0x530] sm:$0xff] }
  0x4f   : > { %589 = vmatpush.msrb.mxu0 %v273_v47  ;;  %608 = vmatpush.msrb.mxu1 %v290_v48  ;;  %v389_v47 = vld [vmem:[%s1976_s1 + $0x5b8] sm:$0xff]  ;;  %v339_v48 = vld [vmem:[%s1976_s1 + $0x428] sm:$0xff] }
  0x50   : > { %629 = vmatpush.msrb.mxu2 %v305_v49  ;;  %648 = vmatpush.msrb.mxu3 %v322_v50  ;;  %v356_v49 = vld [vmem:[%s1976_s1 + $0x4b0] sm:$0xff]  ;;  %v371_v50 = vld [vmem:[%s1976_s1 + $0x528] sm:$0xff] }
  0x51   : > { %590 = vmatpush.msrb.mxu0 %v272_v51  ;;  %609 = vmatpush.msrb.mxu1 %v289_v52  ;;  %v388_v51 = vld [vmem:[%s1976_s1 + $0x5b0] sm:$0xff]  ;;  %v338_v52 = vld [vmem:[%s1976_s1 + $0x420] sm:$0xff] }
  0x52   : > { %630 = vmatpush.msrb.mxu2 %v304_v53  ;;  %649 = vmatpush.msrb.mxu3 %v321_v54  ;;  %v355_v53 = vld [vmem:[%s1976_s1 + $0x4a8] sm:$0xff]  ;;  %v370_v54 = vld [vmem:[%s1976_s1 + $0x520] sm:$0xff] }
  0x53   : > { %591 = vmatpush.msrb.mxu0 %v271_v55  ;;  %610 = vmatpush.msrb.mxu1 %v288_v56  ;;  %v387_v55 = vld [vmem:[%s1976_s1 + $0x5a8] sm:$0xff]  ;;  %v337_v56 = vld [vmem:[%s1976_s1 + $0x418] sm:$0xff] }
  0x54   : > { %631 = vmatpush.msrb.mxu2 %v303_v58  ;;  %650 = vmatpush.msrb.mxu3 %v320_v59  ;;  %v369_v58 = vld [vmem:[%s1976_s1 + $0x518] sm:$0xff]  ;;  %v386_v59 = vld [vmem:[%s1976_s1 + $0x5a0] sm:$0xff] }
  0x55   : > { %592 = vmatpush.msrb.mxu0 %v270_v60  ;;  %611 = vmatpush.msrb.mxu1 %v287_v61  ;;  %v336_v60 = vld [vmem:[%s1976_s1 + $0x410] sm:$0xff]  ;;  %v353_v61 = vld [vmem:[%s1976_s1 + $0x498] sm:$0xff] }
  0x56   : > { %632 = vmatpush.msrb.mxu2 %v302_v62  ;;  %651 = vmatpush.msrb.mxu3 %v319_v63  ;;  %v368_v62 = vld [vmem:[%s1976_s1 + $0x510] sm:$0xff]  ;;  %v385_v63 = vld [vmem:[%s1976_s1 + $0x598] sm:$0xff] }
  0x57   : > { %513 = vmatmul.f32.vlgmr.msra.gmra.mxu0 %v465_v0  ;;  %553 = vmatmul.f32.vlgmr.msra.gmra.mxu2 %v467_v1  ;;  %v1707_v0 = vld [vmem:[%s1489_s24 + $0x8] sm:$0xff] }
  0x58   : > { %657 = vmatpush.msra.mxu0 %v349_v2  ;;  %697 = vmatpush.msra.mxu2 %v381_v3  ;;  %v335_v1 = vld [vmem:[%s1976_s1 + $0x408] sm:$0xff]  ;;  %v352_v2 = vld [vmem:[%s1976_s1 + $0x490] sm:$0xff] }
  0x59   : > { %612 = vmatpush.msrb.mxu1 %v286_v4  ;;  %652 = vmatpush.msrb.mxu3 %v318_v5  ;;  %v367_v3 = vld [vmem:[%s1976_s1 + $0x508] sm:$0xff]  ;;  %v384_v4 = vld [vmem:[%s1976_s1 + $0x590] sm:$0xff]  ;;  %v334_v5 = vld [vmem:[%s1976_s1 + $0x400] sm:$0xff] }
  0x5a   : > { %533 = vmatmul.f32.vlgmr.msra.gmra.mxu1 %v466_v6  ;;  %573 = vmatmul.f32.vlgmr.msra.gmra.mxu3 %v468_v7  ;;  %v351_v6 = vld [vmem:[%s1976_s1 + $0x488] sm:$0xff]  ;;  %v366_v7 = vld [vmem:[%s1976_s1 + $0x500] sm:$0xff] }
  0x5b   : > { %658 = vmatpush.msra.mxu0 %v348_v8  ;;  %677 = vmatpush.msra.mxu1 %v365_v9  ;;  %v383_v8 = vld [vmem:[%s1976_s1 + $0x588] sm:$0xff]  ;;  %v473_v9 = vperm.slane %v1707_v0, 0 }
  0x5c   : > { %698 = vmatpush.msra.mxu2 %v380_v10  ;;  %717 = vmatpush.msra.mxu3 %v397_v11  ;;  %v475_v10 = vperm.slane %v1707_v0, 2  ;;  %v413_v11 = vld [vmem:[%s1976_s1 + $0x678] sm:$0xff] }
  0x5d   : > { %659 = vmatpush.msra.mxu0 %v347_v12  ;;  %678 = vmatpush.msra.mxu1 %v364_v13  ;;  %v445_v12 = vld [vmem:[%s1976_s1 + $0x778] sm:$0xff]  ;;  %v350_v13 = vld [vmem:[%s1976_s1 + $0x480] sm:$0xff] }
  0x5e   : > { %699 = vmatpush.msra.mxu2 %v379_v14  ;;  %718 = vmatpush.msra.mxu3 %v396_v15  ;;  %v382_v14 = vld [vmem:[%s1976_s1 + $0x580] sm:$0xff]  ;;  %v474_v15 = vperm.slane %v1707_v0, 1 }
  0x5f   : > { %660 = vmatpush.msra.mxu0 %v346_v16  ;;  %679 = vmatpush.msra.mxu1 %v363_v17  ;;  %v476_v16 = vperm.slane %v1707_v0, 3  ;;  %v412_v17 = vld [vmem:[%s1976_s1 + $0x670] sm:$0xff] }
  0x60   : > { %700 = vmatpush.msra.mxu2 %v378_v18  ;;  %719 = vmatpush.msra.mxu3 %v395_v19  ;;  %v429_v18 = vld [vmem:[%s1976_s1 + $0x6f8] sm:$0xff]  ;;  %v444_v19 = vld [vmem:[%s1976_s1 + $0x770] sm:$0xff] }
  0x61   : > { %633 = vmatmul.f32.vlgmr.msrb.gmra.mxu2 %v471_v20  ;;  %661 = vmatpush.msra.mxu0 %v345_v21  ;;  %v461_v20 = vld [vmem:[%s1976_s1 + $0x7f8] sm:$0xff]  ;;  %v411_v21 = vld [vmem:[%s1976_s1 + $0x668] sm:$0xff] }
  0x62   : > { %680 = vmatpush.msra.mxu1 %v362_v22  ;;  %701 = vmatpush.msra.mxu2 %v377_v23  ;;  %v428_v22 = vld [vmem:[%s1976_s1 + $0x6f0] sm:$0xff]  ;;  %v443_v23 = vld [vmem:[%s1976_s1 + $0x768] sm:$0xff] }
  0x63   : > { %720 = vmatpush.msra.mxu3 %v394_v25  ;;  %593 = vmatmul.f32.vlgmr.msrb.gmra.mxu0 %v469_v24  ;;  %v460_v24 = vld [vmem:[%s1976_s1 + $0x7f0] sm:$0xff]  ;;  %v410_v25 = vld [vmem:[%s1976_s1 + $0x660] sm:$0xff] }
  0x64   : > { %653 = vmatmul.f32.vlgmr.msrb.gmra.mxu3 %v472_v26  ;;  %662 = vmatpush.msra.mxu0 %v344_v27  ;;  %v427_v26 = vld [vmem:[%s1976_s1 + $0x6e8] sm:$0xff]  ;;  %v442_v27 = vld [vmem:[%s1976_s1 + $0x760] sm:$0xff] }
  0x65   : > { %681 = vmatpush.msra.mxu1 %v361_v28  ;;  %702 = vmatpush.msra.mxu2 %v376_v29  ;;  %v459_v28 = vld [vmem:[%s1976_s1 + $0x7e8] sm:$0xff]  ;;  %v409_v29 = vld [vmem:[%s1976_s1 + $0x658] sm:$0xff] }
  0x66   : > { %721 = vmatpush.msra.mxu3 %v393_v31  ;;  %613 = vmatmul.f32.vlgmr.msrb.gmra.mxu1 %v470_v30  ;;  %v426_v30 = vld [vmem:[%s1976_s1 + $0x6e0] sm:$0xff]  ;;  %v441_v31 = vld [vmem:[%s1976_s1 + $0x758] sm:$0xff] }
  0x67   : > { %663 = vmatpush.msra.mxu0 %v343_v32  ;;  %682 = vmatpush.msra.mxu1 %v360_v33  ;;  %v458_v32 = vld [vmem:[%s1976_s1 + $0x7e0] sm:$0xff]  ;;  %v408_v33 = vld [vmem:[%s1976_s1 + $0x650] sm:$0xff] }
  0x68   : > { %703 = vmatpush.msra.mxu2 %v375_v34  ;;  %722 = vmatpush.msra.mxu3 %v392_v35  ;;  %v425_v34 = vld [vmem:[%s1976_s1 + $0x6d8] sm:$0xff]  ;;  %v440_v35 = vld [vmem:[%s1976_s1 + $0x750] sm:$0xff] }
  0x69   : > { %664 = vmatpush.msra.mxu0 %v342_v36  ;;  %683 = vmatpush.msra.mxu1 %v359_v37  ;;  %v457_v36 = vld [vmem:[%s1976_s1 + $0x7d8] sm:$0xff]  ;;  %v407_v37 = vld [vmem:[%s1976_s1 + $0x648] sm:$0xff] }
  0x6a   : > { %704 = vmatpush.msra.mxu2 %v374_v38  ;;  %723 = vmatpush.msra.mxu3 %v391_v39  ;;  %v424_v38 = vld [vmem:[%s1976_s1 + $0x6d0] sm:$0xff]  ;;  %v439_v39 = vld [vmem:[%s1976_s1 + $0x748] sm:$0xff] }
  0x6b   : > { %665 = vmatpush.msra.mxu0 %v341_v40  ;;  %684 = vmatpush.msra.mxu1 %v358_v41  ;;  %v456_v40 = vld [vmem:[%s1976_s1 + $0x7d0] sm:$0xff]  ;;  %v406_v41 = vld [vmem:[%s1976_s1 + $0x640] sm:$0xff] }
  0x6c   : > { %705 = vmatpush.msra.mxu2 %v373_v42  ;;  %724 = vmatpush.msra.mxu3 %v390_v43  ;;  %v423_v42 = vld [vmem:[%s1976_s1 + $0x6c8] sm:$0xff]  ;;  %v438_v43 = vld [vmem:[%s1976_s1 + $0x740] sm:$0xff] }
  0x6d   : > { %666 = vmatpush.msra.mxu0 %v340_v44  ;;  %685 = vmatpush.msra.mxu1 %v357_v45  ;;  %v455_v44 = vld [vmem:[%s1976_s1 + $0x7c8] sm:$0xff]  ;;  %v405_v45 = vld [vmem:[%s1976_s1 + $0x638] sm:$0xff] }
  0x6e   : > { %706 = vmatpush.msra.mxu2 %v372_v46  ;;  %725 = vmatpush.msra.mxu3 %v389_v47  ;;  %v422_v46 = vld [vmem:[%s1976_s1 + $0x6c0] sm:$0xff]  ;;  %v437_v47 = vld [vmem:[%s1976_s1 + $0x738] sm:$0xff] }
  0x6f   : > { %667 = vmatpush.msra.mxu0 %v339_v48  ;;  %686 = vmatpush.msra.mxu1 %v356_v49  ;;  %v454_v48 = vld [vmem:[%s1976_s1 + $0x7c0] sm:$0xff]  ;;  %v404_v49 = vld [vmem:[%s1976_s1 + $0x630] sm:$0xff] }
  0x70   : > { %707 = vmatpush.msra.mxu2 %v371_v50  ;;  %726 = vmatpush.msra.mxu3 %v388_v51  ;;  %v421_v50 = vld [vmem:[%s1976_s1 + $0x6b8] sm:$0xff]  ;;  %v436_v51 = vld [vmem:[%s1976_s1 + $0x730] sm:$0xff] }
  0x71   : > { %668 = vmatpush.msra.mxu0 %v338_v52  ;;  %687 = vmatpush.msra.mxu1 %v355_v53  ;;  %v453_v52 = vld [vmem:[%s1976_s1 + $0x7b8] sm:$0xff]  ;;  %v403_v53 = vld [vmem:[%s1976_s1 + $0x628] sm:$0xff] }
  0x72   : > { %708 = vmatpush.msra.mxu2 %v370_v54  ;;  %727 = vmatpush.msra.mxu3 %v387_v55  ;;  %v420_v54 = vld [vmem:[%s1976_s1 + $0x6b0] sm:$0xff]  ;;  %v435_v55 = vld [vmem:[%s1976_s1 + $0x728] sm:$0xff] }
  0x73   : > { %669 = vmatpush.msra.mxu0 %v337_v56  ;;  %688 = vmatpush.msra.mxu1 %v354_v57  ;;  %v452_v56 = vld [vmem:[%s1976_s1 + $0x7b0] sm:$0xff]  ;;  %v402_v57 = vld [vmem:[%s1976_s1 + $0x620] sm:$0xff] }
  0x74   : > { %709 = vmatpush.msra.mxu2 %v369_v58  ;;  %728 = vmatpush.msra.mxu3 %v386_v59  ;;  %v419_v58 = vld [vmem:[%s1976_s1 + $0x6a8] sm:$0xff]  ;;  %v434_v59 = vld [vmem:[%s1976_s1 + $0x720] sm:$0xff] }
  0x75   : > { %670 = vmatpush.msra.mxu0 %v336_v60  ;;  %689 = vmatpush.msra.mxu1 %v353_v61  ;;  %v451_v60 = vld [vmem:[%s1976_s1 + $0x7a8] sm:$0xff]  ;;  %v401_v61 = vld [vmem:[%s1976_s1 + $0x618] sm:$0xff] }
  0x76   : > { %710 = vmatpush.msra.mxu2 %v368_v62  ;;  %729 = vmatpush.msra.mxu3 %v385_v63  ;;  %v418_v62 = vld [vmem:[%s1976_s1 + $0x6a0] sm:$0xff]  ;;  %v433_v63 = vld [vmem:[%s1976_s1 + $0x718] sm:$0xff] }
  0x77   : > { %671 = vmatpush.msra.mxu0 %v335_v1  ;;  %690 = vmatpush.msra.mxu1 %v352_v2  ;;  %v450_v1 = vld [vmem:[%s1976_s1 + $0x7a0] sm:$0xff]  ;;  %v400_v2 = vld [vmem:[%s1976_s1 + $0x610] sm:$0xff] }
  0x78   : > { %711 = vmatpush.msra.mxu2 %v367_v3  ;;  %730 = vmatpush.msra.mxu3 %v384_v4  ;;  %v417_v3 = vld [vmem:[%s1976_s1 + $0x698] sm:$0xff]  ;;  %v432_v4 = vld [vmem:[%s1976_s1 + $0x710] sm:$0xff] }
  0x79   : > { %672 = vmatpush.msra.mxu0 %v334_v5  ;;  %691 = vmatpush.msra.mxu1 %v351_v6  ;;  %v449_v5 = vld [vmem:[%s1976_s1 + $0x798] sm:$0xff]  ;;  %v399_v6 = vld [vmem:[%s1976_s1 + $0x608] sm:$0xff] }
  0x7a   : > { %712 = vmatpush.msra.mxu2 %v366_v7  ;;  %731 = vmatpush.msra.mxu3 %v383_v8  ;;  %v416_v7 = vld [vmem:[%s1976_s1 + $0x690] sm:$0xff]  ;;  %v431_v8 = vld [vmem:[%s1976_s1 + $0x708] sm:$0xff] }
  0x7b   : > { %673 = vmatmul.f32.vlgmr.msra.gmra.mxu0 %v473_v9  ;;  %713 = vmatmul.f32.vlgmr.msra.gmra.mxu2 %v475_v10  ;;  %v448_v9 = vld [vmem:[%s1976_s1 + $0x790] sm:$0xff]  ;;  %v398_v10 = vld [vmem:[%s1976_s1 + $0x600] sm:$0xff] }
  0x7c   : > { %737 = vmatpush.msrb.mxu0 %v413_v11  ;;  %777 = vmatpush.msrb.mxu2 %v445_v12  ;;  %v415_v11 = vld [vmem:[%s1976_s1 + $0x688] sm:$0xff]  ;;  %v430_v12 = vld [vmem:[%s1976_s1 + $0x700] sm:$0xff] }
  0x7d   : > { %692 = vmatpush.msra.mxu1 %v350_v13  ;;  %732 = vmatpush.msra.mxu3 %v382_v14  ;;  %v447_v13 = vld [vmem:[%s1976_s1 + $0x788] sm:$0xff]  ;;  %v477_v14 = vperm.slane %v1707_v0, 4 }
  0x7e   : > { %693 = vmatmul.f32.vlgmr.msra.gmra.mxu1 %v474_v15  ;;  %733 = vmatmul.f32.vlgmr.msra.gmra.mxu3 %v476_v16  ;;  %v479_v15 = vperm.slane %v1707_v0, 6  ;;  %v414_v16 = vld [vmem:[%s1976_s1 + $0x680] sm:$0xff] }
  0x7f   : > { %738 = vmatpush.msrb.mxu0 %v412_v17  ;;  %757 = vmatpush.msrb.mxu1 %v429_v18  ;;  %v446_v17 = vld [vmem:[%s1976_s1 + $0x780] sm:$0xff]  ;;  %v478_v18 = vperm.slane %v1707_v0, 5 }
  0x80   : > { %778 = vmatpush.msrb.mxu2 %v444_v19  ;;  %797 = vmatpush.msrb.mxu3 %v461_v20  ;;  %v480_v19 = vperm.slane %v1707_v0, 7  ;;  %v462_v20 = vld [vmem:[#allocation2] sm:$0x1] }
  0x81   : > { %739 = vmatpush.msrb.mxu0 %v411_v21  ;;  %758 = vmatpush.msrb.mxu1 %v428_v22 }
  0x82   : > { %779 = vmatpush.msrb.mxu2 %v443_v23  ;;  %798 = vmatpush.msrb.mxu3 %v460_v24 }
  0x83   : > { %740 = vmatpush.msrb.mxu0 %v410_v25  ;;  %759 = vmatpush.msrb.mxu1 %v427_v26 }
  0x84   : > { %780 = vmatpush.msrb.mxu2 %v442_v27  ;;  %799 = vmatpush.msrb.mxu3 %v459_v28 }
  0x85   : > { %741 = vmatpush.msrb.mxu0 %v409_v29  ;;  %760 = vmatpush.msrb.mxu1 %v426_v30 }
  0x86   : > { %781 = vmatpush.msrb.mxu2 %v441_v31  ;;  %800 = vmatpush.msrb.mxu3 %v458_v32 }
  0x87   : > { %742 = vmatpush.msrb.mxu0 %v408_v33  ;;  %761 = vmatpush.msrb.mxu1 %v425_v34 }
  0x88   : > { %782 = vmatpush.msrb.mxu2 %v440_v35  ;;  %801 = vmatpush.msrb.mxu3 %v457_v36 }
  0x89   : > { %743 = vmatpush.msrb.mxu0 %v407_v37  ;;  %762 = vmatpush.msrb.mxu1 %v424_v38 }
  0x8a   : > { %783 = vmatpush.msrb.mxu2 %v439_v39  ;;  %802 = vmatpush.msrb.mxu3 %v456_v40 }
  0x8b   : > { %744 = vmatpush.msrb.mxu0 %v406_v41  ;;  %763 = vmatpush.msrb.mxu1 %v423_v42 }
  0x8c   : > { %784 = vmatpush.msrb.mxu2 %v438_v43  ;;  %803 = vmatpush.msrb.mxu3 %v455_v44 }
  0x8d   : > { %745 = vmatpush.msrb.mxu0 %v405_v45  ;;  %764 = vmatpush.msrb.mxu1 %v422_v46 }
  0x8e   : > { %785 = vmatpush.msrb.mxu2 %v437_v47  ;;  %804 = vmatpush.msrb.mxu3 %v454_v48 }
  0x8f   : > { %746 = vmatpush.msrb.mxu0 %v404_v49  ;;  %765 = vmatpush.msrb.mxu1 %v421_v50 }
  0x90   : > { %786 = vmatpush.msrb.mxu2 %v436_v51  ;;  %805 = vmatpush.msrb.mxu3 %v453_v52 }
  0x91   : > { %747 = vmatpush.msrb.mxu0 %v403_v53  ;;  %766 = vmatpush.msrb.mxu1 %v420_v54 }
  0x92   : > { %787 = vmatpush.msrb.mxu2 %v435_v55  ;;  %806 = vmatpush.msrb.mxu3 %v452_v56 }
  0x93   : > { %748 = vmatpush.msrb.mxu0 %v402_v57  ;;  %767 = vmatpush.msrb.mxu1 %v419_v58 }
  0x94   : > { %788 = vmatpush.msrb.mxu2 %v434_v59  ;;  %807 = vmatpush.msrb.mxu3 %v451_v60 }
  0x95   : > { %749 = vmatpush.msrb.mxu0 %v401_v61  ;;  %768 = vmatpush.msrb.mxu1 %v418_v62 }
  0x96   : > { %789 = vmatpush.msrb.mxu2 %v433_v63  ;;  %808 = vmatpush.msrb.mxu3 %v450_v1 }
  0x97   : > { %750 = vmatpush.msrb.mxu0 %v400_v2  ;;  %769 = vmatpush.msrb.mxu1 %v417_v3 }
  0x98   : > { %790 = vmatpush.msrb.mxu2 %v432_v4  ;;  %809 = vmatpush.msrb.mxu3 %v449_v5 }
  0x99   : > { %751 = vmatpush.msrb.mxu0 %v399_v6  ;;  %770 = vmatpush.msrb.mxu1 %v416_v7 }
  0x9a   : > { %791 = vmatpush.msrb.mxu2 %v431_v8  ;;  %810 = vmatpush.msrb.mxu3 %v448_v9 }
  0x9b   : > { %752 = vmatpush.msrb.mxu0 %v398_v10  ;;  %771 = vmatpush.msrb.mxu1 %v415_v11 }
  0x9c   : > { %792 = vmatpush.msrb.mxu2 %v430_v12  ;;  %811 = vmatpush.msrb.mxu3 %v447_v13 }
  0x9d   : > { %753 = vmatmul.f32.vlgmr.msrb.gmra.mxu0 %v477_v14  ;;  %793 = vmatmul.f32.vlgmr.msrb.gmra.mxu2 %v479_v15 }
  0x9e   : > { %772 = vmatpush.msrb.mxu1 %v414_v16  ;;  %812 = vmatpush.msrb.mxu3 %v446_v17 }
  0x9f   : > { %773 = vmatmul.f32.vlgmr.msrb.gmra.mxu1 %v478_v18  ;;  %813 = vmatmul.f32.vlgmr.msrb.gmra.mxu3 %v480_v19 }
  0xd4   : > { %v514_v21 = vpop.f32.mrf.mxu0 }
  0xd5   : > { %v515_v22 = vadd.f32 %v514_v21, %v462_v20 }
  0xd7   : > { %v534_v23 = vpop.f32.mrf.mxu1 }
  0xd8   : > { %v535_v24 = vadd.f32 %v534_v23, %v515_v22 }
  0xda   : > { %v554_v25 = vpop.f32.mrf.mxu2 }
  0xdb   : > { %v555_v26 = vadd.f32 %v554_v25, %v535_v24 }
  0xdd   : > { %v574_v27 = vpop.f32.mrf.mxu3 }
  0xde   : > { %v575_v28 = vadd.f32 %v574_v27, %v555_v26 }
  0xe0   : > { %v594_v29 = vpop.f32.mrf.mxu0 }
  0xe1   : > { %v595_v30 = vadd.f32 %v594_v29, %v575_v28 }
  0xe3   : > { %v614_v0 = vpop.f32.mrf.mxu1 }
  0xe4   : > { %v615_v31 = vadd.f32 %v614_v0, %v595_v30  ;;  %v634_v32 = vpop.f32.mrf.mxu2 }
  0xe6   : > { %v635_v33 = vadd.f32 %v634_v32, %v615_v31 }
  0xe7   : > { %v654_v34 = vpop.f32.mrf.mxu3 }
  0xe8   : > { %v655_v36 = vadd.f32 %v654_v34, %v635_v33 }
  0xf8   : > { %v674_v35 = vpop.f32.mrf.mxu0 }
  0xf9   : > { %v675_v37 = vadd.f32 %v674_v35, %v655_v36 }
  0xfb   : > { %v694_v38 = vpop.f32.mrf.mxu1 }
  0xfc   : > { %v695_v40 = vadd.f32 %v694_v38, %v675_v37 }
  0xfe   : > { %v714_v39 = vpop.f32.mrf.mxu2 }
  0xff   : > { %v715_v41 = vadd.f32 %v714_v39, %v695_v40 }
 0x101   : > { %v734_v42 = vpop.f32.mrf.mxu3 }
 0x102   : > { %v735_v43 = vadd.f32 %v734_v42, %v715_v41 }
 0x11a   : > { %v754_v44 = vpop.f32.mrf.mxu0 }
 0x11b   : > { %v755_v45 = vadd.f32 %v754_v44, %v735_v43 }
 0x11c   : > { %v774_v46 = vpop.f32.mrf.mxu1 }
 0x11d   : > { %v775_v47 = vadd.f32 %v774_v46, %v755_v45 }
 0x120   : > { %v794_v48 = vpop.f32.mrf.mxu2 }
 0x121   : > { %v795_v49 = vadd.f32 %v794_v48, %v775_v47 }
 0x122   : > { %v814_v50 = vpop.f32.mrf.mxu3 }
 0x123   : > { %v815_v51 = vadd.f32 %v814_v50, %v795_v49 }
 0x125   : > { %v949_v52 = vmul.f32 -1.442695, %v815_v51 }
 0x127   : > { %993 = vpow2.f32 %v949_v52 }
 0x12d   : > { %v994_v53 = vpop.eup %993 }
 0x12e   : > { %v820_v54 = vadd.f32 1.0, %v994_v53 }
 0x130   : > { %995 = vrcp.f32 %v820_v54  ;;  %v832_v58 = vand.u32 2147483648, %v820_v54  ;;  %v830_v60 = vand.u32 2147483647, %v820_v54  ;;  %vm826_vm1 = vweird.f32 %v820_v54 }
 0x132   : > { %v833_v62 = vor.u32 1.1754944e-38, %v832_v58  ;;  %vm831_vm4 = vcmp.eq.f32.partialorder %v830_v60, 8.507059e+37 }
 0x136   : > { %v996_v55 = vpop.eup %995 }
 0x137   : > { %v822_v56 = vmul.f32 %v996_v55, %v820_v54  ;;  %vm827_vm0 = vweird.f32 %v996_v55 }
 0x138   : > { %vm828_vm2 = vmor %vm826_vm1, %vm827_vm0 }
 0x139   : > { %v823_v57 = vsub.f32 1.0, %v822_v56 }
 0x13b   : > { %v824_v59 = vmul.f32 %v996_v55, %v823_v57 }
 0x13d   : > { %v825_v61 = vadd.f32 %v996_v55, %v824_v59 }
 0x13f   : > { %v829_v63 = vsel %vm828_vm2, %v996_v55, %v825_v61 }
 0x140   : > { %v834_v1 = vsel %vm831_vm4, %v833_v62, %v829_v63 }
 0x141   : > { %837 = vst.msk [vmem:[%s203_s14] sm:$0x1] %vm836_vm3, %v834_v1  ;;  %v840_v2 = vmul.f32 %v834_v1, %v834_v1 }
 0x142   : > { %839 = vst.msk [vmem:[%s196_s15] sm:$0x1] %vm836_vm3, %v834_v1 }
 0x143   : > { %842 = vst.msk [vmem:[%s196_s15 + $0x1] sm:$0x1] %vm836_vm3, %v840_v2 }
 0x144   : > { %1024 = shalt.err (!%p1021_p3)
}
 0x145   : > { %954 = dma.vmem_to_hbm [thread:$0]  (%p1127_p5), %s863_s2, 32, %s865_s16, %s847_s21  }
 0x146 PF: > { %p960_p4 = scmp.ge.s32.totalorder %s1059_s20, 2  ;;  %s882_s7 = sand.u32 1, %s1047_s17  }
 0x147   : > { %s883_s9 = scalar_lea.sflag [#allocation4], %s882_s7 }
 0x148   : > { %p957_p7 = pnand %p960_p4, %p1131_p6 }
 0x14a   : > { %p958_p8 = pneg %p957_p7 }
 0x14c   : > { %1042 = dma.done.wait (%p958_p8), %s883_s9, 32  }
 0x14d   : > { %1044 = vsyncadd (%p958_p8), %s883_s9, 4294967264  ;;  %p17_p9 = scmp.ge.s32.totalorder %s1114_s22, 4   ;;  %s1982_s17 = smov %s1051_s18 }
 0x14e   : > { %s1983_s18 = smov %s1055_s19  ;;  %s1984_s19 = smov %s1125_s25 }
 0x14f   : > { %s1985_s20 = smov %s1114_s22  ;;  %19 = sbr.rel (!%p17_p9) target bundleno = 6 (0x6), region = 79 }
 0x154   :  { %889 = vsyncpa [#allocation4], 1 }
 0x155   :  { %891 = vsyncpa [#allocation4 + $0x1], 1 }

</bundles_post_ra>
